<compile_context>
chip_gen: v5e
topology: v5e:2x2
jax: 0.10.0
libtpu: 0.0.40
codegen_flags: <defaults>
</compile_context>

<pallas_src>
import jax
import jax.numpy as jnp
from jax.experimental import pallas as pl
from jax.experimental.pallas import tpu as pltpu

TB = 8        # images per grid step
H_PAD = 40    # per-image row stride after padding H: 32 -> 40 (multiple of 8)


# ----------------------------------------------------------------------------
# Single fused kernel: conv1+pool+relu -> conv2+pool+relu -> fc1 -> fc2 -> fc3
# ----------------------------------------------------------------------------

def _net_kernel(x_ref, m1_ref, ce1_ref, co1_ref, re1_ref, ro1_ref, b1_ref,
                m2_ref, ce2_ref, co2_ref, re2_ref, ro2_ref, b2_ref,
                w1h_ref, sel_ref, fb1_ref, w2_ref, fb2_ref, w3_ref, fb3_ref,
                o_ref):
    f32 = jnp.float32
    dot = lambda a, b: jnp.dot(a, b, preferred_element_type=f32)
    n1 = x_ref.shape[0] - 8       # TB*40 - 8  rows of conv1 output
    n2 = re1_ref.shape[0] - 8     # TB*16      rows of conv2 output
    n3 = re2_ref.shape[0] - 8     # TB*8       rows of fc1 staging

    x = x_ref[...]                                           # [TB*40, 32]

    # ---- conv1 (kw folded into slabs; kh handled by shifted row slices) ----
    y1 = dot(x[0:n1, :], m1_ref[0])
    for kh in range(1, 5):
        y1 = y1 + dot(x[kh:kh + n1, :], m1_ref[kh])          # [n1, 168]

    # ---- 2x2 max-pool (col selectors, then block-diag row selectors),
    #      then bias + relu (commute with the window max) -------------------
    cm1 = jnp.maximum(dot(y1, ce1_ref[...]), dot(y1, co1_ref[...]))   # [n1, 84]
    p1 = jnp.maximum(dot(re1_ref[...], cm1), dot(ro1_ref[...], cm1))  # [TB*16+8, 84]
    a1 = jnp.maximum(p1 + b1_ref[...], 0.0)

    # ---- conv2 -------------------------------------------------------------
    y2 = dot(a1[0:n2, :], m2_ref[0])
    for kh in range(1, 5):
        y2 = y2 + dot(a1[kh:kh + n2, :], m2_ref[kh])         # [TB*16, 160]

    cm2 = jnp.maximum(dot(y2, ce2_ref[...]), dot(y2, co2_ref[...]))   # [TB*16, 80]
    p2 = jnp.maximum(dot(re2_ref[...], cm2), dot(ro2_ref[...], cm2))  # [TB*8+8, 80]
    a2 = jnp.maximum(p2 + b2_ref[...], 0.0)

    # ---- fc1 via the same shifted-row trick: row b*8 of g holds the full
    #      400-feature dot product for image b --------------------------------
    g = dot(a2[0:n3, :], w1h_ref[0])
    for h in range(1, 5):
        g = g + dot(a2[h:h + n3, :], w1h_ref[h])             # [TB*8, 128]

    h1 = jnp.maximum(dot(sel_ref[...], g) + fb1_ref[...], 0.0)   # [TB, 128]
    h2 = jnp.maximum(dot(h1, w2_ref[...]) + fb2_ref[...], 0.0)   # [TB, 128]
    o_ref[...] = dot(h2, w3_ref[...]) + fb3_ref[...]             # [TB, 128]


# ----------------------------------------------------------------------------
# One-time parameter preparation (all layout transforms hoisted out of forward)
# ----------------------------------------------------------------------------

def prepare_params(params, tb=TB):
    f32 = jnp.float32
    w1 = params["conv1_w"].astype(f32)      # [6, 1, 5, 5]   (oc, ic, kh, kw)
    w2 = params["conv2_w"].astype(f32)      # [16, 6, 5, 5]

    # conv slabs with the kw loop folded in:
    #   m1[kh, wi, ow*6+oc]       = w1[oc, 0, kh, wi-ow]   for 0 <= wi-ow < 5
    #   m2[kh, wi*6+ci, ow*16+oc] = w2[oc, ci, kh, wi-ow]
    def bands(n_in, n_out):
        kw = jnp.arange(5)[:, None, None]
        wi = jnp.arange(n_in)[None, :, None]
        ow = jnp.arange(n_out)[None, None, :]
        return (wi == ow + kw).astype(f32)                  # [5, n_in, n_out]

    m1 = jnp.einsum("qwo,chq->hwoc", bands(32, 28), w1[:, 0]).reshape(5, 32, 168)
    m2 = jnp.einsum("qwo,echq->hwcoe", bands(14, 10), w2).reshape(5, 84, 160)

    # even/odd pooled-column selectors in the channels-interleaved layout
    def col_selectors(w_out, c):
        j = jnp.arange(w_out // 2)
        sel_e = (jnp.arange(w_out)[:, None] == 2 * j[None, :]).astype(f32)
        sel_o = (jnp.arange(w_out)[:, None] == 2 * j[None, :] + 1).astype(f32)
        eye_c = jnp.eye(c, dtype=f32)
        ce = jnp.einsum("wj,cd->wcjd", sel_e, eye_c).reshape(w_out * c, (w_out // 2) * c)
        co = jnp.einsum("wj,cd->wcjd", sel_o, eye_c).reshape(w_out * c, (w_out // 2) * c)
        return ce, co

    ce1, co1 = col_selectors(28, 6)      # [168, 84]
    ce2, co2 = col_selectors(10, 16)     # [160, 80]

    # block-diagonal (over the batch tile) even/odd row selectors for the 2x2
    # pool.  8 extra all-zero output rows keep the next stage's shifted row
    # slices in bounds without any in-kernel padding/concat.
    def row_selectors(in_stride, out_stride, n_valid, n_cols):
        r = jnp.arange(tb * out_stride + 8)
        c = jnp.arange(n_cols)
        b, ph = r // out_stride, r % out_stride
        valid = (ph < n_valid) & (b < tb)
        te = b * in_stride + 2 * ph
        re = ((c[None, :] == te[:, None]) & valid[:, None]).astype(f32)
        ro = ((c[None, :] == te[:, None] + 1) & valid[:, None]).astype(f32)
        return re, ro

    re1, ro1 = row_selectors(H_PAD, 16, 14, tb * H_PAD - 8)   # [tb*16+8, tb*40-8]
    re2, ro2 = row_selectors(16, 8, 5, tb * 16)               # [tb*8+8,  tb*16]

    b1 = jnp.tile(params["conv1_b"].astype(f32), 14).reshape(1, 84)
    b2 = jnp.tile(params["conv2_b"].astype(f32), 5).reshape(1, 80)

    # fc1 split per feature-map row h: w1h[h, w*16+c, j] = fc1_w[j, c*25+h*5+w]
    w1h = params["fc1_w"].astype(f32).reshape(120, 16, 5, 5)
    w1h = w1h.transpose(2, 3, 1, 0).reshape(5, 80, 120)
    w1h = jnp.pad(w1h, ((0, 0), (0, 0), (0, 8)))                        # [5, 80, 128]
    fb1 = jnp.pad(params["fc1_b"].astype(f32), (0, 8)).reshape(1, 128)
    w2p = jnp.pad(params["fc2_w"].astype(f32).T, ((0, 8), (0, 44)))     # [128, 128]
    fb2 = jnp.pad(params["fc2_b"].astype(f32), (0, 44)).reshape(1, 128)
    w3p = jnp.pad(params["fc3_w"].astype(f32).T, ((0, 44), (0, 118)))   # [128, 128]
    fb3 = jnp.pad(params["fc3_b"].astype(f32), (0, 118)).reshape(1, 128)

    # picks row b*8 (the only valid fc1 staging row per image)
    sel = (jnp.arange(tb * 8)[None, :] == 8 * jnp.arange(tb)[:, None]).astype(f32)

    return {"m1": m1, "ce1": ce1, "co1": co1, "re1": re1, "ro1": ro1, "b1": b1,
            "m2": m2, "ce2": ce2, "co2": co2, "re2": re2, "ro2": ro2, "b2": b2,
            "w1h": w1h, "sel": sel, "fb1": fb1, "w2": w2p, "fb2": fb2,
            "w3": w3p, "fb3": fb3}


_CONST_KEYS = ("m1", "ce1", "co1", "re1", "ro1", "b1",
               "m2", "ce2", "co2", "re2", "ro2", "b2",
               "w1h", "sel", "fb1", "w2", "fb2", "w3", "fb3")


# ------------------------------- forward ------------------------------------

def net_forward(cp, x):
    B = x.shape[0]
    bp = ((B + TB - 1) // TB) * TB
    # pad batch to a multiple of TB and H to 40 (so per-image row stride is a
    # multiple of 8 -> the batch-stacked 2-D layout needs no in-kernel reshape)
    x2 = jnp.pad(x[:, 0, :, :], ((0, bp - B), (0, H_PAD - 32), (0, 0)))
    xs = x2.reshape(bp * H_PAD, 32)

    consts = [cp[k] for k in _CONST_KEYS]
    const_specs = [
        pl.BlockSpec(c.shape, (lambda nd: (lambda i: (0,) * nd))(c.ndim))
        for c in consts
    ]
    out = pl.pallas_call(
        _net_kernel,
        out_shape=jax.ShapeDtypeStruct((bp, 128), jnp.float32),
        grid=(bp // TB,),
        in_specs=[pl.BlockSpec((TB * H_PAD, 32), lambda i: (i, 0))] + const_specs,
        out_specs=pl.BlockSpec((TB, 128), lambda i: (i, 0)),
        compiler_params=pltpu.CompilerParams(
            dimension_semantics=("parallel",)),
    )(xs, *consts)
    return out[:B, :10]


# ------------------------- reference (pure JAX) ------------------------------

def reference_forward(params, x):
    dn = ("NCHW", "OIHW", "NCHW")
    hi = jax.lax.Precision.HIGHEST
    y = jax.lax.conv_general_dilated(x, params["conv1_w"], (1, 1), "VALID",
                                     dimension_numbers=dn, precision=hi)
    y = jax.nn.relu(y + params["conv1_b"][None, :, None, None])
    y = jax.lax.reduce_window(y, -jnp.inf, jax.lax.max,
                              (1, 1, 2, 2), (1, 1, 2, 2), "VALID")
    y = jax.lax.conv_general_dilated(y, params["conv2_w"], (1, 1), "VALID",
                                     dimension_numbers=dn, precision=hi)
    y = jax.nn.relu(y + params["conv2_b"][None, :, None, None])
    y = jax.lax.reduce_window(y, -jnp.inf, jax.lax.max,
                              (1, 1, 2, 2), (1, 1, 2, 2), "VALID")
    y = y.reshape(y.shape[0], -1)
    y = jax.nn.relu(y @ params["fc1_w"].T + params["fc1_b"])
    y = jax.nn.relu(y @ params["fc2_w"].T + params["fc2_b"])
    return y @ params["fc3_w"].T + params["fc3_b"]


# ----------------------------- parameter init --------------------------------

def init_params(key):
    """Deterministic init mirroring PyTorch's U(-1/sqrt(fan_in), 1/sqrt(fan_in))."""
    def u(key, shape, fan_in):
        bound = 1.0 / jnp.sqrt(jnp.float32(fan_in))
        return jax.random.uniform(key, shape, jnp.float32, -bound, bound)

    ks = jax.random.split(key, 10)
    return {
        "conv1_w": u(ks[0], (6, 1, 5, 5), 1 * 5 * 5),
        "conv1_b": u(ks[1], (6,), 1 * 5 * 5),
        "conv2_w": u(ks[2], (16, 6, 5, 5), 6 * 5 * 5),
        "conv2_b": u(ks[3], (16,), 6 * 5 * 5),
        "fc1_w":   u(ks[4], (120, 400), 400),
        "fc1_b":   u(ks[5], (120,), 400),
        "fc2_w":   u(ks[6], (84, 120), 120),
        "fc2_b":   u(ks[7], (84,), 120),
        "fc3_w":   u(ks[8], (10, 84), 84),
        "fc3_b":   u(ks[9], (10,), 84),
    }


if __name__ == "__main__":
    key = jax.random.PRNGKey(0)
    k_param, k_x = jax.random.split(key)
    params = init_params(k_param)
    # LeNet geometry requires 32x32 single-channel input (16*5*5 flat features).
    x = jax.random.normal(k_x, (2, 1, 32, 32), dtype=jnp.float32)

    cp = prepare_params(params)                 # one-time weight layout prep
    fwd = jax.jit(net_forward)
    out = jax.block_until_ready(fwd(cp, x))

    assert out.shape == (2, 10) and out.dtype == jnp.float32
    ref = jax.block_until_ready(reference_forward(params, x))
    assert jnp.allclose(out, ref, atol=2e-3, rtol=2e-3), \
        float(jnp.max(jnp.abs(out - ref)))
    print("KERNEL_OK")
</pallas_src>

<mosaic_0001>
module attributes {stable_mosaic.version = 11 : i64} {
  func.func @_net_kernel(%arg0: i32, %arg1: memref<320x32xf32, #tpu.memory_space<vmem>>, %arg2: memref<5x32x168xf32, #tpu.memory_space<vmem>>, %arg3: memref<168x84xf32, #tpu.memory_space<vmem>>, %arg4: memref<168x84xf32, #tpu.memory_space<vmem>>, %arg5: memref<136x312xf32, #tpu.memory_space<vmem>>, %arg6: memref<136x312xf32, #tpu.memory_space<vmem>>, %arg7: memref<1x84xf32, #tpu.memory_space<vmem>>, %arg8: memref<5x84x160xf32, #tpu.memory_space<vmem>>, %arg9: memref<160x80xf32, #tpu.memory_space<vmem>>, %arg10: memref<160x80xf32, #tpu.memory_space<vmem>>, %arg11: memref<72x128xf32, #tpu.memory_space<vmem>>, %arg12: memref<72x128xf32, #tpu.memory_space<vmem>>, %arg13: memref<1x80xf32, #tpu.memory_space<vmem>>, %arg14: memref<5x80x128xf32, #tpu.memory_space<vmem>>, %arg15: memref<8x64xf32, #tpu.memory_space<vmem>>, %arg16: memref<1x128xf32, #tpu.memory_space<vmem>>, %arg17: memref<128x128xf32, #tpu.memory_space<vmem>>, %arg18: memref<1x128xf32, #tpu.memory_space<vmem>>, %arg19: memref<128x128xf32, #tpu.memory_space<vmem>>, %arg20: memref<1x128xf32, #tpu.memory_space<vmem>>, %arg21: memref<8x128xf32, #tpu.memory_space<vmem>>) attributes {dimension_semantics = [#tpu.dimension_semantics<parallel>], iteration_bounds = array<i64: 1>, scalar_prefetch = 0 : i64, scratch_operands = 0 : i64, tpu.core_type = #tpu.core_type<tc>, window_params = [{transform_indices = @transform_0, window_bounds = array<i64: 320, 32>}, {pipeline_mode = #tpu.pipeline_mode<synchronous>, transform_indices = @transform_1, window_bounds = array<i64: 5, 32, 168>}, {pipeline_mode = #tpu.pipeline_mode<synchronous>, transform_indices = @transform_2, window_bounds = array<i64: 168, 84>}, {pipeline_mode = #tpu.pipeline_mode<synchronous>, transform_indices = @transform_3, window_bounds = array<i64: 168, 84>}, {pipeline_mode = #tpu.pipeline_mode<synchronous>, transform_indices = @transform_4, window_bounds = array<i64: 136, 312>}, {pipeline_mode = #tpu.pipeline_mode<synchronous>, transform_indices = @transform_5, window_bounds = array<i64: 136, 312>}, {pipeline_mode = #tpu.pipeline_mode<synchronous>, transform_indices = @transform_6, window_bounds = array<i64: 1, 84>}, {pipeline_mode = #tpu.pipeline_mode<synchronous>, transform_indices = @transform_7, window_bounds = array<i64: 5, 84, 160>}, {pipeline_mode = #tpu.pipeline_mode<synchronous>, transform_indices = @transform_8, window_bounds = array<i64: 160, 80>}, {pipeline_mode = #tpu.pipeline_mode<synchronous>, transform_indices = @transform_9, window_bounds = array<i64: 160, 80>}, {pipeline_mode = #tpu.pipeline_mode<synchronous>, transform_indices = @transform_10, window_bounds = array<i64: 72, 128>}, {pipeline_mode = #tpu.pipeline_mode<synchronous>, transform_indices = @transform_11, window_bounds = array<i64: 72, 128>}, {pipeline_mode = #tpu.pipeline_mode<synchronous>, transform_indices = @transform_12, window_bounds = array<i64: 1, 80>}, {pipeline_mode = #tpu.pipeline_mode<synchronous>, transform_indices = @transform_13, window_bounds = array<i64: 5, 80, 128>}, {pipeline_mode = #tpu.pipeline_mode<synchronous>, transform_indices = @transform_14, window_bounds = array<i64: 8, 64>}, {pipeline_mode = #tpu.pipeline_mode<synchronous>, transform_indices = @transform_15, window_bounds = array<i64: 1, 128>}, {pipeline_mode = #tpu.pipeline_mode<synchronous>, transform_indices = @transform_16, window_bounds = array<i64: 128, 128>}, {pipeline_mode = #tpu.pipeline_mode<synchronous>, transform_indices = @transform_17, window_bounds = array<i64: 1, 128>}, {pipeline_mode = #tpu.pipeline_mode<synchronous>, transform_indices = @transform_18, window_bounds = array<i64: 128, 128>}, {pipeline_mode = #tpu.pipeline_mode<synchronous>, transform_indices = @transform_19, window_bounds = array<i64: 1, 128>}, {transform_indices = @transform_20, window_bounds = array<i64: 8, 128>}]} {
    %c0 = arith.constant 0 : index
    %c0_0 = arith.constant 0 : index
    %0 = vector.load %arg1[%c0, %c0_0] : memref<320x32xf32, #tpu.memory_space<vmem>>, vector<320x32xf32>
    %1 = vector.extract_strided_slice %0 {offsets = [0, 0], sizes = [312, 32], strides = [1, 1]} : vector<320x32xf32> to vector<312x32xf32>
    %c0_1 = arith.constant 0 : index
    %c0_2 = arith.constant 0 : index
    %c0_3 = arith.constant 0 : index
    %2 = vector.load %arg2[%c0_1, %c0_2, %c0_3] : memref<5x32x168xf32, #tpu.memory_space<vmem>>, vector<1x32x168xf32>
    %3 = vector.shape_cast %2 : vector<1x32x168xf32> to vector<32x168xf32>
    %cst = arith.constant dense<0.000000e+00> : vector<312x168xf32>
    %4 = tpu.matmul %1, %3, %cst {dimension_numbers = #tpu.dot_dimension_numbers<[1], [0], [0], [1], [0, 0, 1, 1], [], []>} : vector<312x32xf32>, vector<32x168xf32>, vector<312x168xf32> -> vector<312x168xf32>
    %5 = vector.extract_strided_slice %0 {offsets = [1, 0], sizes = [312, 32], strides = [1, 1]} : vector<320x32xf32> to vector<312x32xf32>
    %c1 = arith.constant 1 : index
    %c0_4 = arith.constant 0 : index
    %c0_5 = arith.constant 0 : index
    %6 = vector.load %arg2[%c1, %c0_4, %c0_5] : memref<5x32x168xf32, #tpu.memory_space<vmem>>, vector<1x32x168xf32>
    %7 = vector.shape_cast %6 : vector<1x32x168xf32> to vector<32x168xf32>
    %cst_6 = arith.constant dense<0.000000e+00> : vector<312x168xf32>
    %8 = tpu.matmul %5, %7, %cst_6 {dimension_numbers = #tpu.dot_dimension_numbers<[1], [0], [0], [1], [0, 0, 1, 1], [], []>} : vector<312x32xf32>, vector<32x168xf32>, vector<312x168xf32> -> vector<312x168xf32>
    %9 = arith.addf %4, %8 : vector<312x168xf32>
    %10 = vector.extract_strided_slice %0 {offsets = [2, 0], sizes = [312, 32], strides = [1, 1]} : vector<320x32xf32> to vector<312x32xf32>
    %c2 = arith.constant 2 : index
    %c0_7 = arith.constant 0 : index
    %c0_8 = arith.constant 0 : index
    %11 = vector.load %arg2[%c2, %c0_7, %c0_8] : memref<5x32x168xf32, #tpu.memory_space<vmem>>, vector<1x32x168xf32>
    %12 = vector.shape_cast %11 : vector<1x32x168xf32> to vector<32x168xf32>
    %cst_9 = arith.constant dense<0.000000e+00> : vector<312x168xf32>
    %13 = tpu.matmul %10, %12, %cst_9 {dimension_numbers = #tpu.dot_dimension_numbers<[1], [0], [0], [1], [0, 0, 1, 1], [], []>} : vector<312x32xf32>, vector<32x168xf32>, vector<312x168xf32> -> vector<312x168xf32>
    %14 = arith.addf %9, %13 : vector<312x168xf32>
    %15 = vector.extract_strided_slice %0 {offsets = [3, 0], sizes = [312, 32], strides = [1, 1]} : vector<320x32xf32> to vector<312x32xf32>
    %c3 = arith.constant 3 : index
    %c0_10 = arith.constant 0 : index
    %c0_11 = arith.constant 0 : index
    %16 = vector.load %arg2[%c3, %c0_10, %c0_11] : memref<5x32x168xf32, #tpu.memory_space<vmem>>, vector<1x32x168xf32>
    %17 = vector.shape_cast %16 : vector<1x32x168xf32> to vector<32x168xf32>
    %cst_12 = arith.constant dense<0.000000e+00> : vector<312x168xf32>
    %18 = tpu.matmul %15, %17, %cst_12 {dimension_numbers = #tpu.dot_dimension_numbers<[1], [0], [0], [1], [0, 0, 1, 1], [], []>} : vector<312x32xf32>, vector<32x168xf32>, vector<312x168xf32> -> vector<312x168xf32>
    %19 = arith.addf %14, %18 : vector<312x168xf32>
    %20 = vector.extract_strided_slice %0 {offsets = [4, 0], sizes = [312, 32], strides = [1, 1]} : vector<320x32xf32> to vector<312x32xf32>
    %c4 = arith.constant 4 : index
    %c0_13 = arith.constant 0 : index
    %c0_14 = arith.constant 0 : index
    %21 = vector.load %arg2[%c4, %c0_13, %c0_14] : memref<5x32x168xf32, #tpu.memory_space<vmem>>, vector<1x32x168xf32>
    %22 = vector.shape_cast %21 : vector<1x32x168xf32> to vector<32x168xf32>
    %cst_15 = arith.constant dense<0.000000e+00> : vector<312x168xf32>
    %23 = tpu.matmul %20, %22, %cst_15 {dimension_numbers = #tpu.dot_dimension_numbers<[1], [0], [0], [1], [0, 0, 1, 1], [], []>} : vector<312x32xf32>, vector<32x168xf32>, vector<312x168xf32> -> vector<312x168xf32>
    %24 = arith.addf %19, %23 : vector<312x168xf32>
    %c0_16 = arith.constant 0 : index
    %c0_17 = arith.constant 0 : index
    %25 = vector.load %arg3[%c0_16, %c0_17] : memref<168x84xf32, #tpu.memory_space<vmem>>, vector<168x84xf32>
    %cst_18 = arith.constant dense<0.000000e+00> : vector<312x84xf32>
    %26 = tpu.matmul %24, %25, %cst_18 {dimension_numbers = #tpu.dot_dimension_numbers<[1], [0], [0], [1], [0, 0, 1, 1], [], []>} : vector<312x168xf32>, vector<168x84xf32>, vector<312x84xf32> -> vector<312x84xf32>
    %c0_19 = arith.constant 0 : index
    %c0_20 = arith.constant 0 : index
    %27 = vector.load %arg4[%c0_19, %c0_20] : memref<168x84xf32, #tpu.memory_space<vmem>>, vector<168x84xf32>
    %cst_21 = arith.constant dense<0.000000e+00> : vector<312x84xf32>
    %28 = tpu.matmul %24, %27, %cst_21 {dimension_numbers = #tpu.dot_dimension_numbers<[1], [0], [0], [1], [0, 0, 1, 1], [], []>} : vector<312x168xf32>, vector<168x84xf32>, vector<312x84xf32> -> vector<312x84xf32>
    %29 = arith.maximumf %26, %28 : vector<312x84xf32>
    %c0_22 = arith.constant 0 : index
    %c0_23 = arith.constant 0 : index
    %30 = vector.load %arg5[%c0_22, %c0_23] : memref<136x312xf32, #tpu.memory_space<vmem>>, vector<136x312xf32>
    %cst_24 = arith.constant dense<0.000000e+00> : vector<136x84xf32>
    %31 = tpu.matmul %30, %29, %cst_24 {dimension_numbers = #tpu.dot_dimension_numbers<[1], [0], [0], [1], [0, 0, 1, 1], [], []>} : vector<136x312xf32>, vector<312x84xf32>, vector<136x84xf32> -> vector<136x84xf32>
    %c0_25 = arith.constant 0 : index
    %c0_26 = arith.constant 0 : index
    %32 = vector.load %arg6[%c0_25, %c0_26] : memref<136x312xf32, #tpu.memory_space<vmem>>, vector<136x312xf32>
    %cst_27 = arith.constant dense<0.000000e+00> : vector<136x84xf32>
    %33 = tpu.matmul %32, %29, %cst_27 {dimension_numbers = #tpu.dot_dimension_numbers<[1], [0], [0], [1], [0, 0, 1, 1], [], []>} : vector<136x312xf32>, vector<312x84xf32>, vector<136x84xf32> -> vector<136x84xf32>
    %34 = arith.maximumf %31, %33 : vector<136x84xf32>
    %c0_28 = arith.constant 0 : index
    %c0_29 = arith.constant 0 : index
    %35 = vector.load %arg7[%c0_28, %c0_29] : memref<1x84xf32, #tpu.memory_space<vmem>>, vector<1x84xf32>
    %36 = vector.broadcast %35 : vector<1x84xf32> to vector<136x84xf32>
    %37 = arith.addf %34, %36 : vector<136x84xf32>
    %cst_30 = arith.constant 0.000000e+00 : f32
    %38 = vector.broadcast %cst_30 : f32 to vector<136x84xf32>
    %39 = arith.maximumf %37, %38 : vector<136x84xf32>
    %40 = vector.extract_strided_slice %39 {offsets = [0, 0], sizes = [128, 84], strides = [1, 1]} : vector<136x84xf32> to vector<128x84xf32>
    %c0_31 = arith.constant 0 : index
    %c0_32 = arith.constant 0 : index
    %c0_33 = arith.constant 0 : index
    %41 = vector.load %arg8[%c0_31, %c0_32, %c0_33] : memref<5x84x160xf32, #tpu.memory_space<vmem>>, vector<1x84x160xf32>
    %42 = vector.shape_cast %41 : vector<1x84x160xf32> to vector<84x160xf32>
    %cst_34 = arith.constant dense<0.000000e+00> : vector<128x160xf32>
    %43 = tpu.matmul %40, %42, %cst_34 {dimension_numbers = #tpu.dot_dimension_numbers<[1], [0], [0], [1], [0, 0, 1, 1], [], []>} : vector<128x84xf32>, vector<84x160xf32>, vector<128x160xf32> -> vector<128x160xf32>
    %44 = vector.extract_strided_slice %39 {offsets = [1, 0], sizes = [128, 84], strides = [1, 1]} : vector<136x84xf32> to vector<128x84xf32>
    %c1_35 = arith.constant 1 : index
    %c0_36 = arith.constant 0 : index
    %c0_37 = arith.constant 0 : index
    %45 = vector.load %arg8[%c1_35, %c0_36, %c0_37] : memref<5x84x160xf32, #tpu.memory_space<vmem>>, vector<1x84x160xf32>
    %46 = vector.shape_cast %45 : vector<1x84x160xf32> to vector<84x160xf32>
    %cst_38 = arith.constant dense<0.000000e+00> : vector<128x160xf32>
    %47 = tpu.matmul %44, %46, %cst_38 {dimension_numbers = #tpu.dot_dimension_numbers<[1], [0], [0], [1], [0, 0, 1, 1], [], []>} : vector<128x84xf32>, vector<84x160xf32>, vector<128x160xf32> -> vector<128x160xf32>
    %48 = arith.addf %43, %47 : vector<128x160xf32>
    %49 = vector.extract_strided_slice %39 {offsets = [2, 0], sizes = [128, 84], strides = [1, 1]} : vector<136x84xf32> to vector<128x84xf32>
    %c2_39 = arith.constant 2 : index
    %c0_40 = arith.constant 0 : index
    %c0_41 = arith.constant 0 : index
    %50 = vector.load %arg8[%c2_39, %c0_40, %c0_41] : memref<5x84x160xf32, #tpu.memory_space<vmem>>, vector<1x84x160xf32>
    %51 = vector.shape_cast %50 : vector<1x84x160xf32> to vector<84x160xf32>
    %cst_42 = arith.constant dense<0.000000e+00> : vector<128x160xf32>
    %52 = tpu.matmul %49, %51, %cst_42 {dimension_numbers = #tpu.dot_dimension_numbers<[1], [0], [0], [1], [0, 0, 1, 1], [], []>} : vector<128x84xf32>, vector<84x160xf32>, vector<128x160xf32> -> vector<128x160xf32>
    %53 = arith.addf %48, %52 : vector<128x160xf32>
    %54 = vector.extract_strided_slice %39 {offsets = [3, 0], sizes = [128, 84], strides = [1, 1]} : vector<136x84xf32> to vector<128x84xf32>
    %c3_43 = arith.constant 3 : index
    %c0_44 = arith.constant 0 : index
    %c0_45 = arith.constant 0 : index
    %55 = vector.load %arg8[%c3_43, %c0_44, %c0_45] : memref<5x84x160xf32, #tpu.memory_space<vmem>>, vector<1x84x160xf32>
    %56 = vector.shape_cast %55 : vector<1x84x160xf32> to vector<84x160xf32>
    %cst_46 = arith.constant dense<0.000000e+00> : vector<128x160xf32>
    %57 = tpu.matmul %54, %56, %cst_46 {dimension_numbers = #tpu.dot_dimension_numbers<[1], [0], [0], [1], [0, 0, 1, 1], [], []>} : vector<128x84xf32>, vector<84x160xf32>, vector<128x160xf32> -> vector<128x160xf32>
    %58 = arith.addf %53, %57 : vector<128x160xf32>
    %59 = vector.extract_strided_slice %39 {offsets = [4, 0], sizes = [128, 84], strides = [1, 1]} : vector<136x84xf32> to vector<128x84xf32>
    %c4_47 = arith.constant 4 : index
    %c0_48 = arith.constant 0 : index
    %c0_49 = arith.constant 0 : index
    %60 = vector.load %arg8[%c4_47, %c0_48, %c0_49] : memref<5x84x160xf32, #tpu.memory_space<vmem>>, vector<1x84x160xf32>
    %61 = vector.shape_cast %60 : vector<1x84x160xf32> to vector<84x160xf32>
    %cst_50 = arith.constant dense<0.000000e+00> : vector<128x160xf32>
    %62 = tpu.matmul %59, %61, %cst_50 {dimension_numbers = #tpu.dot_dimension_numbers<[1], [0], [0], [1], [0, 0, 1, 1], [], []>} : vector<128x84xf32>, vector<84x160xf32>, vector<128x160xf32> -> vector<128x160xf32>
    %63 = arith.addf %58, %62 : vector<128x160xf32>
    %c0_51 = arith.constant 0 : index
    %c0_52 = arith.constant 0 : index
    %64 = vector.load %arg9[%c0_51, %c0_52] : memref<160x80xf32, #tpu.memory_space<vmem>>, vector<160x80xf32>
    %cst_53 = arith.constant dense<0.000000e+00> : vector<128x80xf32>
    %65 = tpu.matmul %63, %64, %cst_53 {dimension_numbers = #tpu.dot_dimension_numbers<[1], [0], [0], [1], [0, 0, 1, 1], [], []>} : vector<128x160xf32>, vector<160x80xf32>, vector<128x80xf32> -> vector<128x80xf32>
    %c0_54 = arith.constant 0 : index
    %c0_55 = arith.constant 0 : index
    %66 = vector.load %arg10[%c0_54, %c0_55] : memref<160x80xf32, #tpu.memory_space<vmem>>, vector<160x80xf32>
    %cst_56 = arith.constant dense<0.000000e+00> : vector<128x80xf32>
    %67 = tpu.matmul %63, %66, %cst_56 {dimension_numbers = #tpu.dot_dimension_numbers<[1], [0], [0], [1], [0, 0, 1, 1], [], []>} : vector<128x160xf32>, vector<160x80xf32>, vector<128x80xf32> -> vector<128x80xf32>
    %68 = arith.maximumf %65, %67 : vector<128x80xf32>
    %c0_57 = arith.constant 0 : index
    %c0_58 = arith.constant 0 : index
    %69 = vector.load %arg11[%c0_57, %c0_58] : memref<72x128xf32, #tpu.memory_space<vmem>>, vector<72x128xf32>
    %cst_59 = arith.constant dense<0.000000e+00> : vector<72x80xf32>
    %70 = tpu.matmul %69, %68, %cst_59 {dimension_numbers = #tpu.dot_dimension_numbers<[1], [0], [0], [1], [0, 0, 1, 1], [], []>} : vector<72x128xf32>, vector<128x80xf32>, vector<72x80xf32> -> vector<72x80xf32>
    %c0_60 = arith.constant 0 : index
    %c0_61 = arith.constant 0 : index
    %71 = vector.load %arg12[%c0_60, %c0_61] : memref<72x128xf32, #tpu.memory_space<vmem>>, vector<72x128xf32>
    %cst_62 = arith.constant dense<0.000000e+00> : vector<72x80xf32>
    %72 = tpu.matmul %71, %68, %cst_62 {dimension_numbers = #tpu.dot_dimension_numbers<[1], [0], [0], [1], [0, 0, 1, 1], [], []>} : vector<72x128xf32>, vector<128x80xf32>, vector<72x80xf32> -> vector<72x80xf32>
    %73 = arith.maximumf %70, %72 : vector<72x80xf32>
    %c0_63 = arith.constant 0 : index
    %c0_64 = arith.constant 0 : index
    %74 = vector.load %arg13[%c0_63, %c0_64] : memref<1x80xf32, #tpu.memory_space<vmem>>, vector<1x80xf32>
    %75 = vector.broadcast %74 : vector<1x80xf32> to vector<72x80xf32>
    %76 = arith.addf %73, %75 : vector<72x80xf32>
    %cst_65 = arith.constant 0.000000e+00 : f32
    %77 = vector.broadcast %cst_65 : f32 to vector<72x80xf32>
    %78 = arith.maximumf %76, %77 : vector<72x80xf32>
    %79 = vector.extract_strided_slice %78 {offsets = [0, 0], sizes = [64, 80], strides = [1, 1]} : vector<72x80xf32> to vector<64x80xf32>
    %c0_66 = arith.constant 0 : index
    %c0_67 = arith.constant 0 : index
    %c0_68 = arith.constant 0 : index
    %80 = vector.load %arg14[%c0_66, %c0_67, %c0_68] : memref<5x80x128xf32, #tpu.memory_space<vmem>>, vector<1x80x128xf32>
    %81 = vector.shape_cast %80 : vector<1x80x128xf32> to vector<80x128xf32>
    %cst_69 = arith.constant dense<0.000000e+00> : vector<64x128xf32>
    %82 = tpu.matmul %79, %81, %cst_69 {dimension_numbers = #tpu.dot_dimension_numbers<[1], [0], [0], [1], [0, 0, 1, 1], [], []>} : vector<64x80xf32>, vector<80x128xf32>, vector<64x128xf32> -> vector<64x128xf32>
    %83 = vector.extract_strided_slice %78 {offsets = [1, 0], sizes = [64, 80], strides = [1, 1]} : vector<72x80xf32> to vector<64x80xf32>
    %c1_70 = arith.constant 1 : index
    %c0_71 = arith.constant 0 : index
    %c0_72 = arith.constant 0 : index
    %84 = vector.load %arg14[%c1_70, %c0_71, %c0_72] : memref<5x80x128xf32, #tpu.memory_space<vmem>>, vector<1x80x128xf32>
    %85 = vector.shape_cast %84 : vector<1x80x128xf32> to vector<80x128xf32>
    %cst_73 = arith.constant dense<0.000000e+00> : vector<64x128xf32>
    %86 = tpu.matmul %83, %85, %cst_73 {dimension_numbers = #tpu.dot_dimension_numbers<[1], [0], [0], [1], [0, 0, 1, 1], [], []>} : vector<64x80xf32>, vector<80x128xf32>, vector<64x128xf32> -> vector<64x128xf32>
    %87 = arith.addf %82, %86 : vector<64x128xf32>
    %88 = vector.extract_strided_slice %78 {offsets = [2, 0], sizes = [64, 80], strides = [1, 1]} : vector<72x80xf32> to vector<64x80xf32>
    %c2_74 = arith.constant 2 : index
    %c0_75 = arith.constant 0 : index
    %c0_76 = arith.constant 0 : index
    %89 = vector.load %arg14[%c2_74, %c0_75, %c0_76] : memref<5x80x128xf32, #tpu.memory_space<vmem>>, vector<1x80x128xf32>
    %90 = vector.shape_cast %89 : vector<1x80x128xf32> to vector<80x128xf32>
    %cst_77 = arith.constant dense<0.000000e+00> : vector<64x128xf32>
    %91 = tpu.matmul %88, %90, %cst_77 {dimension_numbers = #tpu.dot_dimension_numbers<[1], [0], [0], [1], [0, 0, 1, 1], [], []>} : vector<64x80xf32>, vector<80x128xf32>, vector<64x128xf32> -> vector<64x128xf32>
    %92 = arith.addf %87, %91 : vector<64x128xf32>
    %93 = vector.extract_strided_slice %78 {offsets = [3, 0], sizes = [64, 80], strides = [1, 1]} : vector<72x80xf32> to vector<64x80xf32>
    %c3_78 = arith.constant 3 : index
    %c0_79 = arith.constant 0 : index
    %c0_80 = arith.constant 0 : index
    %94 = vector.load %arg14[%c3_78, %c0_79, %c0_80] : memref<5x80x128xf32, #tpu.memory_space<vmem>>, vector<1x80x128xf32>
    %95 = vector.shape_cast %94 : vector<1x80x128xf32> to vector<80x128xf32>
    %cst_81 = arith.constant dense<0.000000e+00> : vector<64x128xf32>
    %96 = tpu.matmul %93, %95, %cst_81 {dimension_numbers = #tpu.dot_dimension_numbers<[1], [0], [0], [1], [0, 0, 1, 1], [], []>} : vector<64x80xf32>, vector<80x128xf32>, vector<64x128xf32> -> vector<64x128xf32>
    %97 = arith.addf %92, %96 : vector<64x128xf32>
    %98 = vector.extract_strided_slice %78 {offsets = [4, 0], sizes = [64, 80], strides = [1, 1]} : vector<72x80xf32> to vector<64x80xf32>
    %c4_82 = arith.constant 4 : index
    %c0_83 = arith.constant 0 : index
    %c0_84 = arith.constant 0 : index
    %99 = vector.load %arg14[%c4_82, %c0_83, %c0_84] : memref<5x80x128xf32, #tpu.memory_space<vmem>>, vector<1x80x128xf32>
    %100 = vector.shape_cast %99 : vector<1x80x128xf32> to vector<80x128xf32>
    %cst_85 = arith.constant dense<0.000000e+00> : vector<64x128xf32>
    %101 = tpu.matmul %98, %100, %cst_85 {dimension_numbers = #tpu.dot_dimension_numbers<[1], [0], [0], [1], [0, 0, 1, 1], [], []>} : vector<64x80xf32>, vector<80x128xf32>, vector<64x128xf32> -> vector<64x128xf32>
    %102 = arith.addf %97, %101 : vector<64x128xf32>
    %c0_86 = arith.constant 0 : index
    %c0_87 = arith.constant 0 : index
    %103 = vector.load %arg15[%c0_86, %c0_87] : memref<8x64xf32, #tpu.memory_space<vmem>>, vector<8x64xf32>
    %cst_88 = arith.constant dense<0.000000e+00> : vector<8x128xf32>
    %104 = tpu.matmul %103, %102, %cst_88 {dimension_numbers = #tpu.dot_dimension_numbers<[1], [0], [0], [1], [0, 0, 1, 1], [], []>} : vector<8x64xf32>, vector<64x128xf32>, vector<8x128xf32> -> vector<8x128xf32>
    %c0_89 = arith.constant 0 : index
    %c0_90 = arith.constant 0 : index
    %105 = vector.load %arg16[%c0_89, %c0_90] : memref<1x128xf32, #tpu.memory_space<vmem>>, vector<1x128xf32>
    %106 = vector.broadcast %105 : vector<1x128xf32> to vector<8x128xf32>
    %107 = arith.addf %104, %106 : vector<8x128xf32>
    %cst_91 = arith.constant 0.000000e+00 : f32
    %108 = vector.broadcast %cst_91 : f32 to vector<8x128xf32>
    %109 = arith.maximumf %107, %108 : vector<8x128xf32>
    %c0_92 = arith.constant 0 : index
    %c0_93 = arith.constant 0 : index
    %110 = vector.load %arg17[%c0_92, %c0_93] : memref<128x128xf32, #tpu.memory_space<vmem>>, vector<128x128xf32>
    %cst_94 = arith.constant dense<0.000000e+00> : vector<8x128xf32>
    %111 = tpu.matmul %109, %110, %cst_94 {dimension_numbers = #tpu.dot_dimension_numbers<[1], [0], [0], [1], [0, 0, 1, 1], [], []>} : vector<8x128xf32>, vector<128x128xf32>, vector<8x128xf32> -> vector<8x128xf32>
    %c0_95 = arith.constant 0 : index
    %c0_96 = arith.constant 0 : index
    %112 = vector.load %arg18[%c0_95, %c0_96] : memref<1x128xf32, #tpu.memory_space<vmem>>, vector<1x128xf32>
    %113 = vector.broadcast %112 : vector<1x128xf32> to vector<8x128xf32>
    %114 = arith.addf %111, %113 : vector<8x128xf32>
    %cst_97 = arith.constant 0.000000e+00 : f32
    %115 = vector.broadcast %cst_97 : f32 to vector<8x128xf32>
    %116 = arith.maximumf %114, %115 : vector<8x128xf32>
    %c0_98 = arith.constant 0 : index
    %c0_99 = arith.constant 0 : index
    %117 = vector.load %arg19[%c0_98, %c0_99] : memref<128x128xf32, #tpu.memory_space<vmem>>, vector<128x128xf32>
    %cst_100 = arith.constant dense<0.000000e+00> : vector<8x128xf32>
    %118 = tpu.matmul %116, %117, %cst_100 {dimension_numbers = #tpu.dot_dimension_numbers<[1], [0], [0], [1], [0, 0, 1, 1], [], []>} : vector<8x128xf32>, vector<128x128xf32>, vector<8x128xf32> -> vector<8x128xf32>
    %c0_101 = arith.constant 0 : index
    %c0_102 = arith.constant 0 : index
    %119 = vector.load %arg20[%c0_101, %c0_102] : memref<1x128xf32, #tpu.memory_space<vmem>>, vector<1x128xf32>
    %120 = vector.broadcast %119 : vector<1x128xf32> to vector<8x128xf32>
    %121 = arith.addf %118, %120 : vector<8x128xf32>
    %c0_103 = arith.constant 0 : index
    %c0_104 = arith.constant 0 : index
    %122 = vector.load %arg21[%c0_103, %c0_104] : memref<8x128xf32, #tpu.memory_space<vmem>>, vector<8x128xf32>
    tpu.vector_store %arg21[%c0_103, %c0_104], %121 {strides = array<i32>} : memref<8x128xf32, #tpu.memory_space<vmem>>, vector<8x128xf32>,
    return
  }
  func.func @transform_0(%arg0: i32) -> (i32, i32) {
    %c0_i32 = arith.constant 0 : i32
    %c0_i32_0 = arith.constant 0 : i32
    return %arg0, %c0_i32 : i32, i32
  }
  func.func @transform_1(%arg0: i32) -> (i32, i32, i32) {
    %c0_i32 = arith.constant 0 : i32
    %c0_i32_0 = arith.constant 0 : i32
    %c0_i32_1 = arith.constant 0 : i32
    %c0_i32_2 = arith.constant 0 : i32
    return %c0_i32, %c0_i32_0, %c0_i32_1 : i32, i32, i32
  }
  func.func @transform_2(%arg0: i32) -> (i32, i32) {
    %c0_i32 = arith.constant 0 : i32
    %c0_i32_0 = arith.constant 0 : i32
    %c0_i32_1 = arith.constant 0 : i32
    return %c0_i32, %c0_i32_0 : i32, i32
  }
  func.func @transform_3(%arg0: i32) -> (i32, i32) {
    %c0_i32 = arith.constant 0 : i32
    %c0_i32_0 = arith.constant 0 : i32
    %c0_i32_1 = arith.constant 0 : i32
    return %c0_i32, %c0_i32_0 : i32, i32
  }
  func.func @transform_4(%arg0: i32) -> (i32, i32) {
    %c0_i32 = arith.constant 0 : i32
    %c0_i32_0 = arith.constant 0 : i32
    %c0_i32_1 = arith.constant 0 : i32
    return %c0_i32, %c0_i32_0 : i32, i32
  }
  func.func @transform_5(%arg0: i32) -> (i32, i32) {
    %c0_i32 = arith.constant 0 : i32
    %c0_i32_0 = arith.constant 0 : i32
    %c0_i32_1 = arith.constant 0 : i32
    return %c0_i32, %c0_i32_0 : i32, i32
  }
  func.func @transform_6(%arg0: i32) -> (i32, i32) {
    %c0_i32 = arith.constant 0 : i32
    %c0_i32_0 = arith.constant 0 : i32
    %c0_i32_1 = arith.constant 0 : i32
    return %c0_i32, %c0_i32_0 : i32, i32
  }
  func.func @transform_7(%arg0: i32) -> (i32, i32, i32) {
    %c0_i32 = arith.constant 0 : i32
    %c0_i32_0 = arith.constant 0 : i32
    %c0_i32_1 = arith.constant 0 : i32
    %c0_i32_2 = arith.constant 0 : i32
    return %c0_i32, %c0_i32_0, %c0_i32_1 : i32, i32, i32
  }
  func.func @transform_8(%arg0: i32) -> (i32, i32) {
    %c0_i32 = arith.constant 0 : i32
    %c0_i32_0 = arith.constant 0 : i32
    %c0_i32_1 = arith.constant 0 : i32
    return %c0_i32, %c0_i32_0 : i32, i32
  }
  func.func @transform_9(%arg0: i32) -> (i32, i32) {
    %c0_i32 = arith.constant 0 : i32
    %c0_i32_0 = arith.constant 0 : i32
    %c0_i32_1 = arith.constant 0 : i32
    return %c0_i32, %c0_i32_0 : i32, i32
  }
  func.func @transform_10(%arg0: i32) -> (i32, i32) {
    %c0_i32 = arith.constant 0 : i32
    %c0_i32_0 = arith.constant 0 : i32
    %c0_i32_1 = arith.constant 0 : i32
    return %c0_i32, %c0_i32_0 : i32, i32
  }
  func.func @transform_11(%arg0: i32) -> (i32, i32) {
    %c0_i32 = arith.constant 0 : i32
    %c0_i32_0 = arith.constant 0 : i32
    %c0_i32_1 = arith.constant 0 : i32
    return %c0_i32, %c0_i32_0 : i32, i32
  }
  func.func @transform_12(%arg0: i32) -> (i32, i32) {
    %c0_i32 = arith.constant 0 : i32
    %c0_i32_0 = arith.constant 0 : i32
    %c0_i32_1 = arith.constant 0 : i32
    return %c0_i32, %c0_i32_0 : i32, i32
  }
  func.func @transform_13(%arg0: i32) -> (i32, i32, i32) {
    %c0_i32 = arith.constant 0 : i32
    %c0_i32_0 = arith.constant 0 : i32
    %c0_i32_1 = arith.constant 0 : i32
    %c0_i32_2 = arith.constant 0 : i32
    return %c0_i32, %c0_i32_0, %c0_i32_1 : i32, i32, i32
  }
  func.func @transform_14(%arg0: i32) -> (i32, i32) {
    %c0_i32 = arith.constant 0 : i32
    %c0_i32_0 = arith.constant 0 : i32
    %c0_i32_1 = arith.constant 0 : i32
    return %c0_i32, %c0_i32_0 : i32, i32
  }
  func.func @transform_15(%arg0: i32) -> (i32, i32) {
    %c0_i32 = arith.constant 0 : i32
    %c0_i32_0 = arith.constant 0 : i32
    %c0_i32_1 = arith.constant 0 : i32
    return %c0_i32, %c0_i32_0 : i32, i32
  }
  func.func @transform_16(%arg0: i32) -> (i32, i32) {
    %c0_i32 = arith.constant 0 : i32
    %c0_i32_0 = arith.constant 0 : i32
    %c0_i32_1 = arith.constant 0 : i32
    return %c0_i32, %c0_i32_0 : i32, i32
  }
  func.func @transform_17(%arg0: i32) -> (i32, i32) {
    %c0_i32 = arith.constant 0 : i32
    %c0_i32_0 = arith.constant 0 : i32
    %c0_i32_1 = arith.constant 0 : i32
    return %c0_i32, %c0_i32_0 : i32, i32
  }
  func.func @transform_18(%arg0: i32) -> (i32, i32) {
    %c0_i32 = arith.constant 0 : i32
    %c0_i32_0 = arith.constant 0 : i32
    %c0_i32_1 = arith.constant 0 : i32
    return %c0_i32, %c0_i32_0 : i32, i32
  }
  func.func @transform_19(%arg0: i32) -> (i32, i32) {
    %c0_i32 = arith.constant 0 : i32
    %c0_i32_0 = arith.constant 0 : i32
    %c0_i32_1 = arith.constant 0 : i32
    return %c0_i32, %c0_i32_0 : i32, i32
  }
  func.func @transform_20(%arg0: i32) -> (i32, i32) {
    %c0_i32 = arith.constant 0 : i32
    %c0_i32_0 = arith.constant 0 : i32
    return %arg0, %c0_i32 : i32, i32
  }
}

</mosaic_0001>

<bundles_post_ra>
// kernel: net_forward.1
= control target key start
LH: loop header
LB: loop body
LE: loop exit
PB: predicated region body
PF: predicated region fallthrough
CT: control target
= control target key end

     0   :  { %s12199_s0 = inlined_call_operand.vmem [shape: f32[320,32], index: 0, kind: input, shape index: {}]   ;;  %s12200_s1 = inlined_call_operand.vmem [shape: f32[5,32,168], index: 1, kind: input, shape index: {}]   ;;  %s12201_s2 = inlined_call_operand.vmem [shape: f32[168,84], index: 2, kind: input, shape index: {}]   ;;  %s12202_s3 = inlined_call_operand.vmem [shape: f32[168,84], index: 3, kind: input, shape index: {}]   ;;  %s12203_s4 = inlined_call_operand.vmem [shape: f32[136,312], index: 4, kind: input, shape index: {}]   ;;  %s12204_s5 = inlined_call_operand.vmem [shape: f32[136,312], index: 5, kind: input, shape index: {}]   ;;  %s12205_s6 = inlined_call_operand.vmem [shape: f32[1,84], index: 6, kind: input, shape index: {}]   ;;  %s12206_s7 = inlined_call_operand.vmem [shape: f32[5,84,160], index: 7, kind: input, shape index: {}]   ;;  %s12207_s8 = inlined_call_operand.vmem [shape: f32[160,80], index: 8, kind: input, shape index: {}]   ;;  %s12208_s9 = inlined_call_operand.hbm [shape: f32[160,80], index: 9, kind: input, shape index: {}]   ;;  %s12209_s10 = inlined_call_operand.hbm [shape: f32[72,128], index: 10, kind: input, shape index: {}]   ;;  %s12210_s11 = inlined_call_operand.hbm [shape: f32[72,128], index: 11, kind: input, shape index: {}]   ;;  %s12211_s12 = inlined_call_operand.vmem [shape: f32[1,80], index: 12, kind: input, shape index: {}]   ;;  %s12212_s13 = inlined_call_operand.vmem [shape: f32[5,80,128], index: 13, kind: input, shape index: {}]   ;;  %s12213_s14 = inlined_call_operand.vmem [shape: f32[8,64], index: 14, kind: input, shape index: {}]   ;;  %s12214_s15 = inlined_call_operand.vmem [shape: f32[1,128], index: 15, kind: input, shape index: {}]   ;;  %s12215_s16 = inlined_call_operand.hbm [shape: f32[128,128], index: 16, kind: input, shape index: {}]   ;;  %s12216_s17 = inlined_call_operand.vmem [shape: f32[1,128], index: 17, kind: input, shape index: {}]   ;;  %s12217_s18 = inlined_call_operand.hbm [shape: f32[128,128], index: 18, kind: input, shape index: {}]   ;;  %s12218_s19 = inlined_call_operand.vmem [shape: f32[1,128], index: 19, kind: input, shape index: {}]   ;;  %s12219_s20 = inlined_call_operand.vmem [shape: f32[8,128], index: 20, kind: output, shape index: {}]  }
   0x1   :  { %12274 = sst [smem:[#allocation145_spill]] %s12199_s0 }
   0x2   :  { %12275 = sst [smem:[#allocation146_spill]] %s12200_s1 }
   0x3   :  { %12276 = sst [smem:[#allocation147_spill]] %s12201_s2 }
   0x4   :  { %12277 = sst [smem:[#allocation148_spill]] %s12202_s3 }
   0x5   :  { %12278 = sst [smem:[#allocation149_spill]] %s12203_s4 }
   0x6   :  { %25 = vsyncpa [#allocation3], 0 }
   0x7   :  { %26 = vsyncpa [#allocation5], 0 }
   0x8   :  { %27 = vsyncpa [#allocation8], 0  ;;  %s63_s23 = sshll.u32 %s12209_s10, 4  ;;  %s7310_s24 = smov [#allocation4]   ;;  %s64_s23 = int_to_ptr.hbm [resolvable:$true] %s63_s23 }
   0x9   :  { %s65_s2 = sshll.u32 %s7310_s24, 4  ;;  %s97_s26 = sshll.u32 %s12215_s16, 4  ;;  %s66_s2 = int_to_ptr.vmem [resolvable:$true] %s65_s2  ;;  %s98_s26 = int_to_ptr.hbm [resolvable:$true] %s97_s26 }
   0xa   :  { %s7311_s27 = smov 128   ;;  %s7312_s28 = smov 8  }
   0xb   :  { %71 = dma.hbm_to_vmem [thread:$0]  %s64_s23, 1152, %s66_s2, [#allocation5], %s7311_s27, %s7311_s27, %s7312_s28  }
   0xc   :  { %s7313_s4 = smov [#allocation7]   ;;  %s50_s21 = sshll.u32 %s12208_s9, 4  ;;  %s51_s21 = int_to_ptr.hbm [resolvable:$true] %s50_s21 }
   0xd   :  { %s99_s29 = sshll.u32 %s7313_s4, 4  ;;  %s76_s22 = sshll.u32 %s12210_s11, 4  ;;  %s100_s29 = int_to_ptr.vmem [resolvable:$true] %s99_s29  ;;  %s77_s22 = int_to_ptr.hbm [resolvable:$true] %s76_s22 }
   0xe   :  { %105 = dma.hbm_to_vmem [thread:$0]  %s98_s26, 2048, %s100_s29, [#allocation8], %s7311_s27, %s7311_s27, %s7312_s28  }
   0xf   :  { %s7314_s24 = smov [#allocation2]   ;;  %s7315_s16 = smov [#allocation6]  }
  0x10   :  { %s52_s25 = sshll.u32 %s7314_s24, 4  ;;  %s78_s23 = sshll.u32 %s7315_s16, 4  ;;  %s53_s25 = int_to_ptr.vmem [resolvable:$true] %s52_s25  ;;  %s79_s23 = int_to_ptr.vmem [resolvable:$true] %s78_s23 }
  0x11   :  { %58 = dma.hbm_to_vmem [thread:$0]  %s51_s21, 2560, %s53_s25, [#allocation3], %s7311_s27, %s7311_s27, %s7312_s28  }
  0x12   :  { %s112_s4 = sshll.u32 %s12217_s18, 4  ;;  %s7316_s9 = smov [#allocation9]   ;;  %s113_s4 = int_to_ptr.hbm [resolvable:$true] %s112_s4 }
  0x13   :  { %84 = dma.hbm_to_vmem [thread:$0]  %s77_s22, 1152, %s79_s23, [#allocation5], %s7311_s27, %s7311_s27, %s7312_s28  }
  0x14   :  { %s114_s26 = sshll.u32 %s7316_s9, 4  ;;  %s115_s26 = int_to_ptr.vmem [resolvable:$true] %s114_s26 }
  0x15   :  { %120 = dma.hbm_to_vmem [thread:$0]  %s113_s4, 2048, %s115_s26, [#allocation8], %s7311_s27, %s7311_s27, %s7312_s28  }
  0x16   :  { %7304 = dma.done.wait [#allocation3], 2560  }
  0x17   :  { %7305 = vsyncadd [#allocation3], 4294964736 }
  0x18   :  { %7306 = dma.done.wait [#allocation5], 2304  }
  0x19   :  { %7307 = vsyncadd [#allocation5], 4294964992 }
  0x1a   :  { %7308 = dma.done.wait [#allocation8], 4096  }
  0x1b   :  { %7309 = vsyncadd [#allocation8], 4294963200  ;;  %s12279_s30 = sld [smem:[#allocation146_spill]]  ;;  %vm240_vm0 = vcmask 1046528   ;;  %vm320_vm1 = vcmask 261120   ;;  %vm1022_vm2 = vcmask 1045504  }
  0x1c   :  { %s12280_s2 = sld [smem:[#allocation145_spill]]  ;;  %vm1535_vm3 = vcmask 1044480   ;;  %vm2048_vm4 = vcmask 1043456   ;;  %vm2573_vm5 = vcmask 326656   ;;  %vm3338_vm6 = vcmask 457728  }
  0x1d   :  { %s12381_s10 = sld [smem:[#allocation147_spill]]  ;;  %vm4050_vm7 = vcmask 687104   ;;  %vm5703_vm8 = vcmask 654336   ;;  %vm6102_vm9 = vcmask 523264  }
  0x1e   :  { %s12435_s26 = sld [smem:[#allocation148_spill]] }
  0x1f   :  { %s12630_s21 = sld [smem:[#allocation149_spill]] }
  0x21   :  { %v6222_v0 = vld [vmem:[%s12279_s30 + $0x70] sm:$0xff]  ;;  %v6220_v2 = vld [vmem:[%s12279_s30 + $0x60] sm:$0xff]  ;;  %v6223_v21 = vld [vmem:[%s12279_s30 + $0x78] sm:$0xff] }
  0x22   :  { %v189_v1 = vld [vmem:[%s12279_s30 + $0x30] sm:$0xff]  ;;  %411 = vmatpush.msra.mxu0 %v6222_v0  ;;  %7121 = vmatpush.msra.mxu1 %v6222_v0  ;;  %v187_v3 = vld [vmem:[%s12279_s30 + $0x20] sm:$0xff]  ;;  %v7463_v7 = vld [vmem:[%s12280_s2 + $0x8] sm:$0xff] }
  0x23   :  { %7122 = vmatpush.msra.mxu3 %v6222_v0  ;;  %757 = vmatpush.msra.mxu2 %v189_v1  ;;  %v6218_v4 = vld [vmem:[%s12279_s30 + $0x50] sm:$0xff]  ;;  %v7458_v6 = vld [vmem:[%s12280_s2] sm:$0xff]  ;;  %v7469_v9 = vld [vmem:[%s12280_s2 + $0x128] sm:$0xff]  ;;  %v242_v12 = vrot.slane %v7463_v7, 1 }
  0x24   :  { %v185_v5 = vld [vmem:[%s12279_s30 + $0x10] sm:$0xff]  ;;  %412 = vmatpush.msra.mxu0 %v6220_v2  ;;  %7123 = vmatpush.msra.mxu1 %v6220_v2  ;;  %v241_v8 = vrot.slane %v7458_v6, 1  ;;  %v6216_v11 = vld [vmem:[%s12279_s30 + $0x40] sm:$0xff]  ;;  %v12225_v13 = vrot.slane %v7469_v9, 1  ;;  %v182_v15 = vld [vmem:[%s12280_s2 + $0x138] sm:$0xff] }
  0x25   :  { %v7474_v10 = vld [vmem:[%s12280_s2 + $0x130] sm:$0xff]  ;;  %7124 = vmatpush.msra.mxu3 %v6220_v2  ;;  %758 = vmatpush.msra.mxu2 %v187_v3  ;;  %v183_v16 = vld [vmem:[%s12279_s30] sm:$0xff]  ;;  %v318_v17 = vrot.slane %v182_v15, 1  ;;  %v190_v22 = vld [vmem:[%s12279_s30 + $0x38] sm:$0xff] }
  0x26   :  { %v316_v14 = vrot.slane %v7474_v10, 1  ;;  %413 = vmatpush.msra.mxu0 %v6218_v4  ;;  %7125 = vmatpush.msra.mxu1 %v6218_v4  ;;  %v243_v18 = vsel %vm240_vm0, %v241_v8, %v242_v12  ;;  %v7506_v23 = vld [vmem:[%s12280_s2 + $0x10] sm:$0xff]  ;;  %v6221_v24 = vld [vmem:[%s12279_s30 + $0x68] sm:$0xff]  ;;  %v6219_v27 = vld [vmem:[%s12279_s30 + $0x58] sm:$0xff] }
  0x27   :  { %7126 = vmatpush.msra.mxu3 %v6218_v4  ;;  %759 = vmatpush.msra.mxu2 %v185_v5  ;;  %v188_v25 = vld [vmem:[%s12279_s30 + $0x28] sm:$0xff]  ;;  %v244_v26 = vrot.slane %v7506_v23, 1  ;;  %v186_v28 = vld [vmem:[%s12279_s30 + $0x18] sm:$0xff]  ;;  %v7551_v35 = vld [vmem:[%s12280_s2 + $0x20] sm:$0xff] }
  0x28   :  { %v7492_v19 = vsel %vm240_vm0, %v12225_v13, %v316_v14  ;;  %414 = vmatpush.msra.mxu0 %v6216_v11  ;;  %7127 = vmatpush.msra.mxu1 %v6216_v11  ;;  %v7495_v20 = vsel %vm240_vm0, %v316_v14, %v318_v17  ;;  %v6217_v29 = vld [vmem:[%s12279_s30 + $0x48] sm:$0xff]  ;;  %v7538_v32 = vld [vmem:[%s12280_s2 + $0x18] sm:$0xff]  ;;  %v248_v36 = vrot.slane %v7551_v35, 1  ;;  %v7577_v41 = vld [vmem:[%s12280_s2 + $0x30] sm:$0xff] }
  0x29   :  { %7128 = vmatpush.msra.mxu3 %v6216_v11  ;;  %760 = vmatpush.msra.mxu2 %v183_v16  ;;  %v184_v30 = vld [vmem:[%s12279_s30 + $0x8] sm:$0xff]  ;;  %v245_v31 = vsel %vm240_vm0, %v242_v12, %v244_v26  ;;  %v246_v33 = vrot.slane %v7538_v32, 1  ;;  %v252_v42 = vrot.slane %v7577_v41, 1  ;;  %v7590_v44 = vld [vmem:[%s12280_s2 + $0x38] sm:$0xff]  ;;  %v7603_v47 = vld [vmem:[%s12280_s2 + $0x40] sm:$0xff] }
  0x2a   :  { %6224 = vmatmul.msk.f32.vlgmr.msra.gmra.mxu0 %vm320_vm1, %v243_v18  ;;  %6261 = vmatmul.msk.f32.vlgmr.msra.gmra.mxu1 %vm320_vm1, %v7492_v19  ;;  %v7564_v38 = vld [vmem:[%s12280_s2 + $0x28] sm:$0xff]  ;;  %v254_v45 = vrot.slane %v7590_v44, 1  ;;  %v256_v48 = vrot.slane %v7603_v47, 1  ;;  %v7629_v53 = vld [vmem:[%s12280_s2 + $0x50] sm:$0xff]  ;;  %v7642_v56 = vld [vmem:[%s12280_s2 + $0x58] sm:$0xff] }
  0x2b   :  { %6262 = vmatmul.msk.f32.vlgmr.msra.gmra.mxu3 %vm320_vm1, %v7495_v20  ;;  %6302 = vmatmul.msk.f32.vlgmr.msra.gmra.mxu2 %vm320_vm1, %v7458_v6  ;;  %v247_v34 = vsel %vm240_vm0, %v244_v26, %v246_v33  ;;  %v249_v37 = vsel %vm240_vm0, %v246_v33, %v248_v36  ;;  %v250_v39 = vrot.slane %v7564_v38, 1  ;;  %v7616_v50 = vld [vmem:[%s12280_s2 + $0x48] sm:$0xff]  ;;  %v260_v54 = vrot.slane %v7629_v53, 1  ;;  %v7655_v59 = vld [vmem:[%s12280_s2 + $0x60] sm:$0xff]  ;;  %v7681_v1 = vld [vmem:[%s12280_s2 + $0x70] sm:$0xff] }
  0x2c   :  { %545 = vmatpush.msrb.mxu1 %v6223_v21  ;;  %891 = vmatpush.msrb.mxu3 %v190_v22  ;;  %v255_v46 = vsel %vm240_vm0, %v252_v42, %v254_v45  ;;  %v257_v49 = vsel %vm240_vm0, %v254_v45, %v256_v48  ;;  %v258_v51 = vrot.slane %v7616_v50, 1  ;;  %v262_v57 = vrot.slane %v7642_v56, 1  ;;  %v7668_v62 = vld [vmem:[%s12280_s2 + $0x68] sm:$0xff]  ;;  %v158_v4 = vld [vmem:[%s12280_s2 + $0x78] sm:$0xff]  ;;  %v159_v11 = vld [vmem:[%s12280_s2 + $0x80] sm:$0xff] }
  0x2d   :  { %v251_v40 = vsel %vm240_vm0, %v248_v36, %v250_v39  ;;  %v253_v43 = vsel %vm240_vm0, %v250_v39, %v252_v42  ;;  %v264_v60 = vrot.slane %v7655_v59, 1  ;;  %v266_v63 = vrot.slane %v7668_v62, 1  ;;  %v160_v15 = vld [vmem:[%s12280_s2 + $0x88] sm:$0xff]  ;;  %v161_v22 = vld [vmem:[%s12280_s2 + $0x90] sm:$0xff]  ;;  %v163_v45 = vld [vmem:[%s12280_s2 + $0xa0] sm:$0xff] }
  0x2e   :  { %546 = vmatpush.msrb.mxu1 %v6221_v24  ;;  %892 = vmatpush.msrb.mxu3 %v188_v25  ;;  %v259_v52 = vsel %vm240_vm0, %v256_v48, %v258_v51  ;;  %v261_v55 = vsel %vm240_vm0, %v258_v51, %v260_v54  ;;  %v263_v58 = vsel %vm240_vm0, %v260_v54, %v262_v57  ;;  %v268_v2 = vrot.slane %v7681_v1, 1  ;;  %v175_v13 = vld [vmem:[%s12280_s2 + $0x100] sm:$0xff] }
  0x2f   :  { %v265_v61 = vsel %vm240_vm0, %v262_v57, %v264_v60  ;;  %v267_v0 = vsel %vm240_vm0, %v264_v60, %v266_v63  ;;  %v270_v5 = vrot.slane %v158_v4, 1  ;;  %v272_v12 = vrot.slane %v159_v11, 1 }
  0x30   :  { %547 = vmatpush.msrb.mxu1 %v6219_v27  ;;  %893 = vmatpush.msrb.mxu3 %v186_v28  ;;  %v269_v3 = vsel %vm240_vm0, %v266_v63, %v268_v2  ;;  %v274_v16 = vrot.slane %v160_v15, 1  ;;  %v276_v24 = vrot.slane %v161_v22, 1 }
  0x31   :  { %v271_v8 = vsel %vm240_vm0, %v268_v2, %v270_v5  ;;  %v273_v14 = vsel %vm240_vm0, %v270_v5, %v272_v12 }
  0x32   :  { %548 = vmatpush.msrb.mxu1 %v6217_v29  ;;  %894 = vmatpush.msrb.mxu3 %v184_v30  ;;  %v275_v21 = vsel %vm240_vm0, %v272_v12, %v274_v16  ;;  %v277_v30 = vsel %vm240_vm0, %v274_v16, %v276_v24 }
  0x33   :  { %6225 = vmatmul.msk.f32.gmra.mxu0 %vm320_vm1, %v245_v31  ;;  %6263 = vmatmul.msk.f32.vlgmr.msrb.gmra.mxu1 %vm320_vm1, %v243_v18 }
  0x34   :  { %6303 = vmatmul.msk.f32.gmra.mxu2 %vm320_vm1, %v7463_v7  ;;  %6341 = vmatmul.msk.f32.vlgmr.msrb.gmra.mxu3 %vm320_vm1, %v7458_v6 }
  0x3b   :  { %6226 = vmatmul.msk.f32.gmra.mxu0 %vm320_vm1, %v247_v34  ;;  %6264 = vmatmul.msk.f32.gmra.mxu1 %vm320_vm1, %v245_v31  ;;  %v162_v31 = vld [vmem:[%s12280_s2 + $0x98] sm:$0xff] }
  0x3c   :  { %6304 = vmatmul.msk.f32.gmra.mxu2 %vm320_vm1, %v7506_v23  ;;  %6342 = vmatmul.msk.f32.gmra.mxu3 %vm320_vm1, %v7463_v7  ;;  %v278_v33 = vrot.slane %v162_v31, 1 }
  0x43   :  { %6227 = vmatmul.msk.f32.gmra.mxu0 %vm320_vm1, %v249_v37  ;;  %6265 = vmatmul.msk.f32.gmra.mxu1 %vm320_vm1, %v247_v34 }
  0x44   :  { %6305 = vmatmul.msk.f32.gmra.mxu2 %vm320_vm1, %v7538_v32  ;;  %6343 = vmatmul.msk.f32.gmra.mxu3 %vm320_vm1, %v7506_v23 }
  0x4b   :  { %6228 = vmatmul.msk.f32.gmra.mxu0 %vm320_vm1, %v251_v40  ;;  %6266 = vmatmul.msk.f32.gmra.mxu1 %vm320_vm1, %v249_v37 }
  0x4c   :  { %6306 = vmatmul.msk.f32.gmra.mxu2 %vm320_vm1, %v7551_v35  ;;  %6344 = vmatmul.msk.f32.gmra.mxu3 %vm320_vm1, %v7538_v32 }
  0x53   :  { %6229 = vmatmul.msk.f32.gmra.mxu0 %vm320_vm1, %v253_v43  ;;  %6267 = vmatmul.msk.f32.gmra.mxu1 %vm320_vm1, %v251_v40 }
  0x54   :  { %6307 = vmatmul.msk.f32.gmra.mxu2 %vm320_vm1, %v7564_v38  ;;  %6345 = vmatmul.msk.f32.gmra.mxu3 %vm320_vm1, %v7551_v35 }
  0x5b   :  { %6230 = vmatmul.msk.f32.gmra.mxu0 %vm320_vm1, %v255_v46  ;;  %6268 = vmatmul.msk.f32.gmra.mxu1 %vm320_vm1, %v253_v43  ;;  %v279_v43 = vsel %vm240_vm0, %v276_v24, %v278_v33  ;;  %v166_v24 = vld [vmem:[%s12280_s2 + $0xb8] sm:$0xff] }
  0x5c   :  { %6308 = vmatmul.msk.f32.gmra.mxu2 %vm320_vm1, %v7577_v41  ;;  %6346 = vmatmul.msk.f32.gmra.mxu3 %vm320_vm1, %v7564_v38 }
  0x63   :  { %6231 = vmatmul.msk.f32.gmra.mxu0 %vm320_vm1, %v257_v49  ;;  %6269 = vmatmul.msk.f32.gmra.mxu1 %vm320_vm1, %v255_v46  ;;  %v280_v46 = vrot.slane %v163_v45, 1 }
  0x64   :  { %6309 = vmatmul.msk.f32.gmra.mxu2 %vm320_vm1, %v7590_v44  ;;  %6347 = vmatmul.msk.f32.gmra.mxu3 %vm320_vm1, %v7577_v41 }
  0x65   :  { %v281_v57 = vsel %vm240_vm0, %v278_v33, %v280_v46 }
  0x6b   :  { %6232 = vmatmul.msk.f32.gmra.mxu0 %vm320_vm1, %v259_v52  ;;  %6270 = vmatmul.msk.f32.gmra.mxu1 %vm320_vm1, %v257_v49 }
  0x6c   :  { %6310 = vmatmul.msk.f32.gmra.mxu2 %vm320_vm1, %v7603_v47  ;;  %6348 = vmatmul.msk.f32.gmra.mxu3 %vm320_vm1, %v7590_v44 }
  0x73   :  { %6233 = vmatmul.msk.f32.gmra.mxu0 %vm320_vm1, %v261_v55  ;;  %6271 = vmatmul.msk.f32.gmra.mxu1 %vm320_vm1, %v259_v52 }
  0x74   :  { %6311 = vmatmul.msk.f32.gmra.mxu2 %vm320_vm1, %v7616_v50  ;;  %6349 = vmatmul.msk.f32.gmra.mxu3 %vm320_vm1, %v7603_v47 }
  0x7b   :  { %6234 = vmatmul.msk.f32.gmra.mxu0 %vm320_vm1, %v263_v58  ;;  %6272 = vmatmul.msk.f32.gmra.mxu1 %vm320_vm1, %v261_v55 }
  0x7c   :  { %6312 = vmatmul.msk.f32.gmra.mxu2 %vm320_vm1, %v7629_v53  ;;  %6350 = vmatmul.msk.f32.gmra.mxu3 %vm320_vm1, %v7616_v50 }
  0x83   :  { %6235 = vmatmul.msk.f32.gmra.mxu0 %vm320_vm1, %v265_v61  ;;  %6273 = vmatmul.msk.f32.gmra.mxu1 %vm320_vm1, %v263_v58  ;;  %v164_v58 = vld [vmem:[%s12280_s2 + $0xa8] sm:$0xff] }
  0x84   :  { %6313 = vmatmul.msk.f32.gmra.mxu2 %vm320_vm1, %v7642_v56  ;;  %6351 = vmatmul.msk.f32.gmra.mxu3 %vm320_vm1, %v7629_v53  ;;  %v282_v60 = vrot.slane %v164_v58, 1 }
  0x86   :  { %v283_v5 = vsel %vm240_vm0, %v280_v46, %v282_v60 }
  0x8b   :  { %6236 = vmatmul.msk.f32.gmra.mxu0 %vm320_vm1, %v267_v0  ;;  %6274 = vmatmul.msk.f32.gmra.mxu1 %vm320_vm1, %v265_v61 }
  0x8c   :  { %6314 = vmatmul.msk.f32.gmra.mxu2 %vm320_vm1, %v7655_v59  ;;  %6352 = vmatmul.msk.f32.gmra.mxu3 %vm320_vm1, %v7642_v56 }
  0x93   :  { %6237 = vmatmul.msk.f32.gmra.mxu0 %vm320_vm1, %v269_v3  ;;  %6275 = vmatmul.msk.f32.gmra.mxu1 %vm320_vm1, %v267_v0 }
  0x94   :  { %6315 = vmatmul.msk.f32.gmra.mxu2 %vm320_vm1, %v7668_v62  ;;  %6353 = vmatmul.msk.f32.gmra.mxu3 %vm320_vm1, %v7655_v59 }
  0x9b   :  { %6238 = vmatmul.msk.f32.gmra.mxu0 %vm320_vm1, %v271_v8  ;;  %6276 = vmatmul.msk.f32.gmra.mxu1 %vm320_vm1, %v269_v3 }
  0x9c   :  { %6316 = vmatmul.msk.f32.gmra.mxu2 %vm320_vm1, %v7681_v1  ;;  %6354 = vmatmul.msk.f32.gmra.mxu3 %vm320_vm1, %v7668_v62 }
  0xa3   :  { %6239 = vmatmul.msk.f32.gmra.mxu0 %vm320_vm1, %v273_v14  ;;  %6277 = vmatmul.msk.f32.gmra.mxu1 %vm320_vm1, %v271_v8  ;;  %v165_v8 = vld [vmem:[%s12280_s2 + $0xb0] sm:$0xff] }
  0xa4   :  { %6317 = vmatmul.msk.f32.gmra.mxu2 %vm320_vm1, %v158_v4  ;;  %6355 = vmatmul.msk.f32.gmra.mxu3 %vm320_vm1, %v7681_v1 }
  0xa7   :  { %v416_v17 = vpop.f32.mrf.mxu0  ;;  %v7719_v18 = vpop.f32.mrf.mxu1 }
  0xa8   :  { %12281 = vst [vmem:[#allocation13_spill] sm:$0xff] %v7719_v18  ;;  %v176_v18 = vld [vmem:[%s12280_s2 + $0x108] sm:$0xff] }
  0xab   :  { %6240 = vmatmul.msk.f32.gmra.mxu0 %vm320_vm1, %v275_v21  ;;  %6278 = vmatmul.msk.f32.gmra.mxu1 %vm320_vm1, %v273_v14 }
  0xac   :  { %6318 = vmatmul.msk.f32.gmra.mxu2 %vm320_vm1, %v159_v11  ;;  %6356 = vmatmul.msk.f32.gmra.mxu3 %vm320_vm1, %v158_v4 }
  0xae   :  { %v7729_v25 = vpop.f32.mrf.mxu3  ;;  %v762_v26 = vpop.f32.mrf.mxu2 }
  0xaf   :  { %12282 = vst [vmem:[#allocation14_spill] sm:$0xff] %v7729_v25  ;;  %v7731_v27 = vadd.f32 %v762_v26, %v416_v17  ;;  %v286_v26 = vrot.slane %v166_v24, 1 }
  0xb0   :  { %v419_v28 = vpop.f32.mrf.mxu0  ;;  %v550_v29 = vpop.f32.mrf.mxu1 }
  0xb3   :  { %6241 = vmatmul.msk.f32.gmra.mxu0 %vm320_vm1, %v277_v30  ;;  %6279 = vmatmul.msk.f32.gmra.mxu1 %vm320_vm1, %v275_v21 }
  0xb4   :  { %6319 = vmatmul.msk.f32.gmra.mxu2 %vm320_vm1, %v160_v15  ;;  %6357 = vmatmul.msk.f32.gmra.mxu3 %vm320_vm1, %v159_v11  ;;  %v284_v11 = vrot.slane %v165_v8, 1 }
  0xb7   :  { %v765_v34 = vpop.f32.mrf.mxu2  ;;  %v896_v36 = vpop.f32.mrf.mxu3 }
  0xb8   :  { %v7741_v37 = vadd.f32 %v765_v34, %v419_v28  ;;  %v7743_v39 = vadd.f32 %v896_v36, %v550_v29  ;;  %v422_v40 = vpop.f32.mrf.mxu0  ;;  %v553_v42 = vpop.f32.mrf.mxu1  ;;  %v287_v36 = vsel %vm240_vm0, %v284_v11, %v286_v26 }
  0xbb   :  { %6242 = vmatmul.msk.f32.gmra.mxu0 %vm320_vm1, %v279_v43  ;;  %6280 = vmatmul.msk.f32.gmra.mxu1 %vm320_vm1, %v277_v30 }
  0xbc   :  { %6320 = vmatmul.msk.f32.gmra.mxu2 %vm320_vm1, %v161_v22  ;;  %6358 = vmatmul.msk.f32.gmra.mxu3 %vm320_vm1, %v160_v15 }
  0xbf   :  { %v768_v48 = vpop.f32.mrf.mxu2  ;;  %v899_v49 = vpop.f32.mrf.mxu3 }
  0xc0   :  { %v7753_v51 = vadd.f32 %v768_v48, %v422_v40  ;;  %v7755_v52 = vadd.f32 %v899_v49, %v553_v42  ;;  %v425_v54 = vpop.f32.mrf.mxu0  ;;  %v556_v55 = vpop.f32.mrf.mxu1  ;;  %v167_v40 = vld [vmem:[%s12280_s2 + $0xc0] sm:$0xff] }
  0xc1   :  { %v288_v42 = vrot.slane %v167_v40, 1 }
  0xc3   :  { %6243 = vmatmul.msk.f32.gmra.mxu0 %vm320_vm1, %v281_v57  ;;  %6281 = vmatmul.msk.f32.gmra.mxu1 %vm320_vm1, %v279_v43 }
  0xc4   :  { %6321 = vmatmul.msk.f32.gmra.mxu2 %vm320_vm1, %v162_v31  ;;  %6359 = vmatmul.msk.f32.gmra.mxu3 %vm320_vm1, %v161_v22  ;;  %v285_v22 = vsel %vm240_vm0, %v282_v60, %v284_v11 }
  0xc7   :  { %v771_v61 = vpop.f32.mrf.mxu2  ;;  %v902_v63 = vpop.f32.mrf.mxu3 }
  0xc8   :  { %v7765_v0 = vadd.f32 %v771_v61, %v425_v54  ;;  %v7767_v2 = vadd.f32 %v902_v63, %v556_v55  ;;  %v428_v3 = vpop.f32.mrf.mxu0  ;;  %v559_v4 = vpop.f32.mrf.mxu1  ;;  %v289_v55 = vsel %vm240_vm0, %v286_v26, %v288_v42 }
  0xcb   :  { %6244 = vmatmul.msk.f32.gmra.mxu0 %vm320_vm1, %v283_v5  ;;  %6282 = vmatmul.msk.f32.gmra.mxu1 %vm320_vm1, %v281_v57  ;;  %v168_v57 = vld [vmem:[%s12280_s2 + $0xc8] sm:$0xff] }
  0xcc   :  { %6322 = vmatmul.msk.f32.gmra.mxu2 %vm320_vm1, %v163_v45  ;;  %6360 = vmatmul.msk.f32.gmra.mxu3 %vm320_vm1, %v162_v31 }
  0xcf   :  { %v774_v12 = vpop.f32.mrf.mxu2  ;;  %v905_v14 = vpop.f32.mrf.mxu3 }
  0xd0   :  { %v7777_v15 = vadd.f32 %v774_v12, %v428_v3  ;;  %v7779_v16 = vadd.f32 %v905_v14, %v559_v4  ;;  %v431_v17 = vpop.f32.mrf.mxu0  ;;  %v562_v21 = vpop.f32.mrf.mxu1  ;;  %v169_v12 = vld [vmem:[%s12280_s2 + $0xd0] sm:$0xff] }
  0xd3   :  { %6245 = vmatmul.msk.f32.gmra.mxu0 %vm320_vm1, %v285_v22  ;;  %6283 = vmatmul.msk.f32.gmra.mxu1 %vm320_vm1, %v283_v5 }
  0xd4   :  { %6323 = vmatmul.msk.f32.gmra.mxu2 %vm320_vm1, %v164_v58  ;;  %6361 = vmatmul.msk.f32.gmra.mxu3 %vm320_vm1, %v163_v45 }
  0xd7   :  { %v777_v28 = vpop.f32.mrf.mxu2  ;;  %v908_v29 = vpop.f32.mrf.mxu3 }
  0xd8   :  { %v7789_v30 = vadd.f32 %v777_v28, %v431_v17  ;;  %v7791_v31 = vadd.f32 %v908_v29, %v562_v21  ;;  %v434_v33 = vpop.f32.mrf.mxu0  ;;  %v565_v34 = vpop.f32.mrf.mxu1 }
  0xdb   :  { %6246 = vmatmul.msk.f32.gmra.mxu0 %vm320_vm1, %v287_v36  ;;  %6284 = vmatmul.msk.f32.gmra.mxu1 %vm320_vm1, %v285_v22 }
  0xdc   :  { %6324 = vmatmul.msk.f32.gmra.mxu2 %vm320_vm1, %v165_v8  ;;  %6362 = vmatmul.msk.f32.gmra.mxu3 %vm320_vm1, %v164_v58  ;;  %v290_v58 = vrot.slane %v168_v57, 1 }
  0xde   :  { %v291_v11 = vsel %vm240_vm0, %v288_v42, %v290_v58 }
  0xdf   :  { %v780_v43 = vpop.f32.mrf.mxu2  ;;  %v911_v45 = vpop.f32.mrf.mxu3 }
  0xe0   :  { %v7801_v46 = vadd.f32 %v780_v43, %v434_v33  ;;  %v7803_v48 = vadd.f32 %v911_v45, %v565_v34  ;;  %v437_v49 = vpop.f32.mrf.mxu0  ;;  %v568_v54 = vpop.f32.mrf.mxu1  ;;  %v170_v33 = vld [vmem:[%s12280_s2 + $0xd8] sm:$0xff] }
  0xe3   :  { %6247 = vmatmul.msk.f32.gmra.mxu0 %vm320_vm1, %v289_v55  ;;  %6285 = vmatmul.msk.f32.gmra.mxu1 %vm320_vm1, %v287_v36 }
  0xe4   :  { %6325 = vmatmul.msk.f32.gmra.mxu2 %vm320_vm1, %v166_v24  ;;  %6363 = vmatmul.msk.f32.gmra.mxu3 %vm320_vm1, %v165_v8  ;;  %v292_v8 = vrot.slane %v169_v12, 1 }
  0xe6   :  { %v293_v29 = vsel %vm240_vm0, %v290_v58, %v292_v8 }
  0xe7   :  { %v783_v60 = vpop.f32.mrf.mxu2  ;;  %v914_v61 = vpop.f32.mrf.mxu3 }
  0xe8   :  { %v7813_v63 = vadd.f32 %v783_v60, %v437_v49  ;;  %v7815_v3 = vadd.f32 %v914_v61, %v568_v54  ;;  %v440_v4 = vpop.f32.mrf.mxu0  ;;  %v571_v5 = vpop.f32.mrf.mxu1 }
  0xeb   :  { %6248 = vmatmul.msk.f32.gmra.mxu0 %vm320_vm1, %v291_v11  ;;  %6286 = vmatmul.msk.f32.gmra.mxu1 %vm320_vm1, %v289_v55  ;;  %v171_v55 = vld [vmem:[%s12280_s2 + $0xe0] sm:$0xff] }
  0xec   :  { %6326 = vmatmul.msk.f32.gmra.mxu2 %vm320_vm1, %v167_v40  ;;  %6364 = vmatmul.msk.f32.gmra.mxu3 %vm320_vm1, %v166_v24  ;;  %v294_v24 = vrot.slane %v170_v33, 1 }
  0xee   :  { %v295_v54 = vsel %vm240_vm0, %v292_v8, %v294_v24 }
  0xef   :  { %v786_v14 = vpop.f32.mrf.mxu2  ;;  %v917_v17 = vpop.f32.mrf.mxu3 }
  0xf0   :  { %v7825_v21 = vadd.f32 %v786_v14, %v440_v4  ;;  %v7827_v22 = vadd.f32 %v917_v17, %v571_v5  ;;  %v443_v26 = vpop.f32.mrf.mxu0  ;;  %v574_v28 = vpop.f32.mrf.mxu1  ;;  %v172_v14 = vld [vmem:[%s12280_s2 + $0xe8] sm:$0xff] }
  0xf3   :  { %6249 = vmatmul.msk.f32.gmra.mxu0 %vm320_vm1, %v293_v29  ;;  %6287 = vmatmul.msk.f32.gmra.mxu1 %vm320_vm1, %v291_v11 }
  0xf4   :  { %6327 = vmatmul.msk.f32.gmra.mxu2 %vm320_vm1, %v168_v57  ;;  %6365 = vmatmul.msk.f32.gmra.mxu3 %vm320_vm1, %v167_v40  ;;  %v296_v40 = vrot.slane %v171_v55, 1 }
  0xf6   :  { %v297_v8 = vsel %vm240_vm0, %v294_v24, %v296_v40 }
  0xf7   :  { %v789_v34 = vpop.f32.mrf.mxu2  ;;  %v920_v36 = vpop.f32.mrf.mxu3 }
  0xf8   :  { %v7837_v42 = vadd.f32 %v789_v34, %v443_v26  ;;  %v7839_v43 = vadd.f32 %v920_v36, %v574_v28  ;;  %v446_v45 = vpop.f32.mrf.mxu0  ;;  %v577_v49 = vpop.f32.mrf.mxu1 }
  0xfb   :  { %6250 = vmatmul.msk.f32.gmra.mxu0 %vm320_vm1, %v295_v54  ;;  %6288 = vmatmul.msk.f32.gmra.mxu1 %vm320_vm1, %v293_v29 }
  0xfc   :  { %6328 = vmatmul.msk.f32.gmra.mxu2 %vm320_vm1, %v169_v12  ;;  %6366 = vmatmul.msk.f32.gmra.mxu3 %vm320_vm1, %v168_v57  ;;  %v298_v57 = vrot.slane %v172_v14, 1 }
  0xfe   :  { %v299_v36 = vsel %vm240_vm0, %v296_v40, %v298_v57 }
  0xff   :  { %v792_v58 = vpop.f32.mrf.mxu2  ;;  %v923_v60 = vpop.f32.mrf.mxu3 }
 0x100   :  { %v7849_v61 = vadd.f32 %v792_v58, %v446_v45  ;;  %v7851_v4 = vadd.f32 %v923_v60, %v577_v49  ;;  %v449_v5 = vpop.f32.mrf.mxu0  ;;  %v580_v11 = vpop.f32.mrf.mxu1  ;;  %v173_v45 = vld [vmem:[%s12280_s2 + $0xf0] sm:$0xff] }
 0x103   :  { %6251 = vmatmul.msk.f32.gmra.mxu0 %vm320_vm1, %v297_v8  ;;  %6289 = vmatmul.msk.f32.gmra.mxu1 %vm320_vm1, %v295_v54 }
 0x104   :  { %6329 = vmatmul.msk.f32.gmra.mxu2 %vm320_vm1, %v170_v33  ;;  %6367 = vmatmul.msk.f32.gmra.mxu3 %vm320_vm1, %v169_v12  ;;  %v300_v12 = vrot.slane %v173_v45, 1 }
 0x107   :  { %v795_v17 = vpop.f32.mrf.mxu2  ;;  %v926_v26 = vpop.f32.mrf.mxu3 }
 0x108   :  { %v7861_v28 = vadd.f32 %v795_v17, %v449_v5  ;;  %v7863_v29 = vadd.f32 %v926_v26, %v580_v11  ;;  %v452_v24 = vpop.f32.mrf.mxu0  ;;  %v583_v34 = vpop.f32.mrf.mxu1  ;;  %v301_v11 = vsel %vm240_vm0, %v298_v57, %v300_v12  ;;  %v174_v17 = vld [vmem:[%s12280_s2 + $0xf8] sm:$0xff] }
 0x10b   :  { %6252 = vmatmul.msk.f32.gmra.mxu0 %vm320_vm1, %v299_v36  ;;  %6290 = vmatmul.msk.f32.gmra.mxu1 %vm320_vm1, %v297_v8 }
 0x10c   :  { %6330 = vmatmul.msk.f32.gmra.mxu2 %vm320_vm1, %v171_v55  ;;  %6368 = vmatmul.msk.f32.gmra.mxu3 %vm320_vm1, %v170_v33  ;;  %v302_v33 = vrot.slane %v174_v17, 1 }
 0x10f   :  { %v798_v49 = vpop.f32.mrf.mxu2  ;;  %v929_v54 = vpop.f32.mrf.mxu3 }
 0x110   :  { %v7873_v58 = vadd.f32 %v798_v49, %v452_v24  ;;  %v7875_v60 = vadd.f32 %v929_v54, %v583_v34  ;;  %v455_v40 = vpop.f32.mrf.mxu0  ;;  %v586_v5 = vpop.f32.mrf.mxu1  ;;  %v303_v54 = vsel %vm240_vm0, %v300_v12, %v302_v33 }
 0x113   :  { %6253 = vmatmul.msk.f32.gmra.mxu0 %vm320_vm1, %v301_v11  ;;  %6291 = vmatmul.msk.f32.gmra.mxu1 %vm320_vm1, %v299_v36 }
 0x114   :  { %6331 = vmatmul.msk.f32.gmra.mxu2 %vm320_vm1, %v172_v14  ;;  %6369 = vmatmul.msk.f32.gmra.mxu3 %vm320_vm1, %v171_v55  ;;  %v304_v55 = vrot.slane %v175_v13, 1 }
 0x116   :  { %v305_v25 = vsel %vm240_vm0, %v302_v33, %v304_v55 }
 0x117   :  { %v801_v8 = vpop.f32.mrf.mxu2  ;;  %v932_v26 = vpop.f32.mrf.mxu3 }
 0x118   :  { %v7885_v24 = vadd.f32 %v801_v8, %v455_v40  ;;  %v7887_v34 = vadd.f32 %v932_v26, %v586_v5  ;;  %v458_v57 = vpop.f32.mrf.mxu0  ;;  %v589_v49 = vpop.f32.mrf.mxu1 }
 0x11b   :  { %6254 = vmatmul.msk.f32.gmra.mxu0 %vm320_vm1, %v303_v54  ;;  %6292 = vmatmul.msk.f32.gmra.mxu1 %vm320_vm1, %v301_v11 }
 0x11c   :  { %6332 = vmatmul.msk.f32.gmra.mxu2 %vm320_vm1, %v173_v45  ;;  %6370 = vmatmul.msk.f32.gmra.mxu3 %vm320_vm1, %v172_v14  ;;  %v306_v14 = vrot.slane %v176_v18, 1 }
 0x11f   :  { %v804_v36 = vpop.f32.mrf.mxu2  ;;  %v935_v40 = vpop.f32.mrf.mxu3 }
 0x120   :  { %v7897_v5 = vadd.f32 %v804_v36, %v458_v57  ;;  %v7899_v8 = vadd.f32 %v935_v40, %v589_v49  ;;  %v461_v12 = vpop.f32.mrf.mxu0  ;;  %v592_v26 = vpop.f32.mrf.mxu1 }
 0x122   :  { %12283 = vst [vmem:[#allocation15_spill] sm:$0xff] %v7897_v5  ;;  %v177_v5 = vld [vmem:[%s12280_s2 + $0x110] sm:$0xff] }
 0x123   :  { %12284 = vst [vmem:[#allocation16_spill] sm:$0xff] %v7899_v8  ;;  %6255 = vmatmul.msk.f32.gmra.mxu0 %vm320_vm1, %v305_v25  ;;  %6293 = vmatmul.msk.f32.gmra.mxu1 %vm320_vm1, %v303_v54  ;;  %v307_v8 = vsel %vm240_vm0, %v304_v55, %v306_v14  ;;  %v6386_v54 = vld [vmem:[%s12279_s30 + $0xb0] sm:$0xff]  ;;  %v6387_v55 = vld [vmem:[%s12279_s30 + $0xb8] sm:$0xff] }
 0x124   :  { %6333 = vmatmul.msk.f32.gmra.mxu2 %vm320_vm1, %v174_v17  ;;  %6371 = vmatmul.msk.f32.gmra.mxu3 %vm320_vm1, %v173_v45  ;;  %v308_v45 = vrot.slane %v177_v5, 1 }
 0x125   :  { %1192 = vmatpush.msrb.mxu0 %v6386_v54  ;;  %1326 = vmatpush.msra.mxu1 %v6387_v55  ;;  %v6382_v54 = vld [vmem:[%s12279_s30 + $0x90] sm:$0xff]  ;;  %v7941_v55 = vld [vmem:[%s12280_s2 + $0x118] sm:$0xff] }
 0x127   :  { %v807_v11 = vpop.f32.mrf.mxu2  ;;  %v938_v57 = vpop.f32.mrf.mxu3 }
 0x128   :  { %v7909_v49 = vadd.f32 %v807_v11, %v461_v12  ;;  %v7911_v36 = vadd.f32 %v938_v57, %v592_v26  ;;  %v464_v33 = vpop.f32.mrf.mxu0  ;;  %v595_v40 = vpop.f32.mrf.mxu1  ;;  %v6384_v12 = vld [vmem:[%s12279_s30 + $0xa0] sm:$0xff] }
 0x129   :  { %1193 = vmatpush.msrb.mxu0 %v6384_v12 }
 0x12a   :  { %12285 = vst [vmem:[#allocation17_spill] sm:$0xff] %v7909_v49 }
 0x12b   :  { %12286 = vst [vmem:[#allocation18_spill] sm:$0xff] %v7911_v36  ;;  %6256 = vmatmul.msk.f32.gmra.mxu0 %vm320_vm1, %v307_v8  ;;  %6294 = vmatmul.msk.f32.gmra.mxu1 %vm320_vm1, %v305_v25  ;;  %v309_v36 = vsel %vm240_vm0, %v306_v14, %v308_v45  ;;  %v310_v14 = vrot.slane %v7941_v55, 1 }
 0x12c   :  { %6334 = vmatmul.msk.f32.gmra.mxu2 %vm320_vm1, %v175_v13  ;;  %6372 = vmatmul.msk.f32.gmra.mxu3 %vm320_vm1, %v174_v17 }
 0x12d   :  { %1194 = vmatpush.msrb.mxu0 %v6382_v54 }
 0x12f   :  { %v810_v25 = vpop.f32.mrf.mxu2  ;;  %v941_v26 = vpop.f32.mrf.mxu3 }
 0x130   :  { %v7930_v11 = vadd.f32 %v810_v25, %v464_v33  ;;  %v7932_v17 = vadd.f32 %v941_v26, %v595_v40  ;;  %v467_v57 = vpop.f32.mrf.mxu0  ;;  %v598_v49 = vpop.f32.mrf.mxu1  ;;  %v6380_v33 = vld [vmem:[%s12279_s30 + $0x80] sm:$0xff] }
 0x131   :  { %1195 = vmatpush.msrb.mxu0 %v6380_v33 }
 0x132   :  { %12287 = vst [vmem:[#allocation19_spill] sm:$0xff] %v7930_v11  ;;  %v311_v11 = vsel %vm240_vm0, %v308_v45, %v310_v14  ;;  %v6470_v45 = vld [vmem:[%s12279_s30 + $0xe0] sm:$0xff] }
 0x133   :  { %12288 = vst [vmem:[#allocation20_spill] sm:$0xff] %v7932_v17  ;;  %6257 = vmatmul.msk.f32.gmra.mxu0 %vm320_vm1, %v309_v36  ;;  %6295 = vmatmul.msk.f32.gmra.mxu1 %vm320_vm1, %v307_v8  ;;  %v7959_v8 = vld [vmem:[%s12280_s2 + $0x120] sm:$0xff] }
 0x134   :  { %6335 = vmatmul.msk.f32.gmra.mxu2 %vm320_vm1, %v176_v18  ;;  %6373 = vmatmul.msk.f32.gmra.mxu3 %vm320_vm1, %v175_v13  ;;  %v312_v13 = vrot.slane %v7959_v8, 1 }
 0x137   :  { %v813_v40 = vpop.f32.mrf.mxu2  ;;  %v944_v12 = vpop.f32.mrf.mxu3 }
 0x138   :  { %v7951_v25 = vadd.f32 %v813_v40, %v467_v57  ;;  %v7953_v26 = vadd.f32 %v944_v12, %v598_v49  ;;  %v470_v54 = vpop.f32.mrf.mxu0  ;;  %v601_v17 = vpop.f32.mrf.mxu1  ;;  %v6472_v49 = vld [vmem:[%s12279_s30 + $0xf0] sm:$0xff] }
 0x139   :  { %1705 = vmatpush.msrb.mxu2 %v6472_v49  ;;  %v6466_v49 = vld [vmem:[%s12279_s30 + $0xc0] sm:$0xff] }
 0x13a   :  { %12289 = vst [vmem:[#allocation21_spill] sm:$0xff] %v7951_v25  ;;  %v6468_v25 = vld [vmem:[%s12279_s30 + $0xd0] sm:$0xff] }
 0x13b   :  { %12290 = vst [vmem:[#allocation22_spill] sm:$0xff] %v7953_v26  ;;  %6258 = vmatmul.msk.f32.gmra.mxu0 %vm320_vm1, %v311_v11  ;;  %6296 = vmatmul.msk.f32.gmra.mxu1 %vm320_vm1, %v309_v36  ;;  %v313_v26 = vsel %vm240_vm0, %v310_v14, %v312_v13  ;;  %v6385_v14 = vld [vmem:[%s12279_s30 + $0xa8] sm:$0xff] }
 0x13c   :  { %6336 = vmatmul.msk.f32.gmra.mxu2 %vm320_vm1, %v177_v5  ;;  %6374 = vmatmul.msk.f32.gmra.mxu3 %vm320_vm1, %v176_v18 }
 0x13d   :  { %1706 = vmatpush.msrb.mxu2 %v6470_v45  ;;  %1327 = vmatpush.msra.mxu1 %v6385_v14 }
 0x13f   :  { %v816_v57 = vpop.f32.mrf.mxu2  ;;  %v947_v33 = vpop.f32.mrf.mxu3  ;;  %1707 = vmatpush.msrb.mxu2 %v6468_v25  ;;  %v6471_v25 = vld [vmem:[%s12279_s30 + $0xe8] sm:$0xff] }
 0x140   :  { %v7972_v40 = vadd.f32 %v816_v57, %v470_v54  ;;  %v7974_v36 = vadd.f32 %v947_v33, %v601_v17  ;;  %v473_v12 = vpop.f32.mrf.mxu0  ;;  %v604_v18 = vpop.f32.mrf.mxu1  ;;  %v6473_v17 = vld [vmem:[%s12279_s30 + $0xf8] sm:$0xff] }
 0x141   :  { %1708 = vmatpush.msrb.mxu2 %v6466_v49  ;;  %1839 = vmatpush.msra.mxu3 %v6473_v17  ;;  %v12295_v49 = vrot.slane %v7469_v9, 1 }
 0x142   :  { %12291 = vst [vmem:[#allocation23_spill] sm:$0xff] %v7972_v40  ;;  %v6469_v40 = vld [vmem:[%s12279_s30 + $0xd8] sm:$0xff] }
 0x143   :  { %12292 = vst [vmem:[#allocation24_spill] sm:$0xff] %v7974_v36  ;;  %6259 = vmatmul.msk.f32.gmra.mxu0 %vm320_vm1, %v313_v26  ;;  %6297 = vmatmul.msk.f32.gmra.mxu1 %vm320_vm1, %v311_v11  ;;  %v315_v17 = vsel %vm240_vm0, %v312_v13, %v12295_v49  ;;  %v6383_v36 = vld [vmem:[%s12279_s30 + $0x98] sm:$0xff]  ;;  %v1023_v13 = vrot.slane %v7458_v6, 2 }
 0x144   :  { %6337 = vmatmul.msk.f32.gmra.mxu2 %vm320_vm1, %v7941_v55  ;;  %6375 = vmatmul.msk.f32.gmra.mxu3 %vm320_vm1, %v177_v5 }
 0x145   :  { %1840 = vmatpush.msra.mxu3 %v6471_v25  ;;  %1328 = vmatpush.msra.mxu1 %v6383_v36 }
 0x147   :  { %v819_v11 = vpop.f32.mrf.mxu2  ;;  %v950_v54 = vpop.f32.mrf.mxu3  ;;  %1841 = vmatpush.msra.mxu3 %v6469_v40  ;;  %v1024_v40 = vrot.slane %v7463_v7, 2 }
 0x148   :  { %v7997_v45 = vadd.f32 %v819_v11, %v473_v12  ;;  %v7999_v5 = vadd.f32 %v950_v54, %v604_v18  ;;  %v476_v57 = vpop.f32.mrf.mxu0  ;;  %v607_v33 = vpop.f32.mrf.mxu1  ;;  %v6381_v12 = vld [vmem:[%s12279_s30 + $0x88] sm:$0xff] }
 0x149   :  { %v6467_v18 = vld [vmem:[%s12279_s30 + $0xc8] sm:$0xff]  ;;  %1329 = vmatpush.msra.mxu1 %v6381_v12  ;;  %v1025_v49 = vsel %vm1022_vm2, %v1023_v13, %v1024_v40 }
 0x14a   :  { %12293 = vst [vmem:[#allocation25_spill] sm:$0xff] %v7997_v45  ;;  %1842 = vmatpush.msra.mxu3 %v6467_v18 }
 0x14b   :  { %12294 = vst [vmem:[#allocation26_spill] sm:$0xff] %v7999_v5  ;;  %6260 = vmatmul.msk.f32.gmra.mxu0 %vm320_vm1, %v315_v17  ;;  %6298 = vmatmul.msk.f32.gmra.mxu1 %vm320_vm1, %v313_v26 }
 0x14c   :  { %6338 = vmatmul.msk.f32.gmra.mxu2 %vm320_vm1, %v7959_v8  ;;  %6376 = vmatmul.msk.f32.gmra.mxu3 %vm320_vm1, %v7941_v55  ;;  %v1026_v55 = vrot.slane %v7506_v23, 2 }
 0x14f   :  { %v822_v36 = vpop.f32.mrf.mxu2  ;;  %v953_v14 = vpop.f32.mrf.mxu3 }
 0x150   :  { %v8024_v25 = vadd.f32 %v822_v36, %v476_v57  ;;  %v8026_v11 = vadd.f32 %v953_v14, %v607_v33  ;;  %v479_v26 = vpop.f32.mrf.mxu0  ;;  %v610_v54 = vpop.f32.mrf.mxu1  ;;  %v1536_v14 = vrot.slane %v7458_v6, 3  ;;  %v1030_v6 = vrot.slane %v7551_v35, 2 }
 0x152   :  { %12296 = vst [vmem:[#allocation27_spill] sm:$0xff] %v8024_v25 }
 0x153   :  { %12297 = vst [vmem:[#allocation28_spill] sm:$0xff] %v8026_v11  ;;  %6299 = vmatmul.msk.f32.gmra.mxu1 %vm320_vm1, %v315_v17  ;;  %6388 = vmatmul.msk.f32.vlgmr.msrb.gmra.mxu0 %vm320_vm1, %v1025_v49  ;;  %v1027_v17 = vsel %vm1022_vm2, %v1024_v40, %v1026_v55 }
 0x154   :  { %6339 = vmatmul.msk.f32.gmra.mxu2 %vm320_vm1, %v7469_v9  ;;  %6377 = vmatmul.msk.f32.gmra.mxu3 %vm320_vm1, %v7959_v8  ;;  %v1028_v8 = vrot.slane %v7538_v32, 2 }
 0x156   :  { %v1029_v11 = vsel %vm1022_vm2, %v1026_v55, %v1028_v8 }
 0x157   :  { %v825_v57 = vpop.f32.mrf.mxu2  ;;  %v956_v12 = vpop.f32.mrf.mxu3 }
 0x158   :  { %v8036_v33 = vadd.f32 %v825_v57, %v479_v26  ;;  %v8038_v18 = vadd.f32 %v956_v12, %v610_v54  ;;  %v482_v36 = vpop.f32.mrf.mxu0  ;;  %v613_v13 = vpop.f32.mrf.mxu1  ;;  %v1537_v26 = vrot.slane %v7463_v7, 3  ;;  %v1539_v7 = vrot.slane %v7506_v23, 3 }
 0x159   :  { %v1541_v23 = vrot.slane %v7538_v32, 3  ;;  %v1034_v32 = vrot.slane %v7577_v41, 2 }
 0x15a   :  { %12298 = vst [vmem:[#allocation29_spill] sm:$0xff] %v8036_v33  ;;  %v1538_v5 = vsel %vm1535_vm3, %v1536_v14, %v1537_v26 }
 0x15b   :  { %12299 = vst [vmem:[#allocation30_spill] sm:$0xff] %v8038_v18  ;;  %6300 = vmatmul.msk.f32.gmra.mxu1 %vm320_vm1, %v7492_v19  ;;  %6389 = vmatmul.msk.f32.gmra.mxu0 %vm320_vm1, %v1027_v17 }
 0x15c   :  { %6340 = vmatmul.msk.f32.gmra.mxu2 %vm320_vm1, %v7474_v10  ;;  %6378 = vmatmul.msk.f32.gmra.mxu3 %vm320_vm1, %v7469_v9 }
 0x15f   :  { %v828_v54 = vpop.f32.mrf.mxu2  ;;  %v959_v40 = vpop.f32.mrf.mxu3 }
 0x160   :  { %v8051_v57 = vadd.f32 %v828_v54, %v482_v36  ;;  %v8053_v19 = vadd.f32 %v959_v40, %v613_v13  ;;  %v485_v12 = vpop.f32.mrf.mxu0  ;;  %v616_v18 = vpop.f32.mrf.mxu1  ;;  %v1540_v40 = vsel %vm1535_vm3, %v1537_v26, %v1539_v7 }
 0x162   :  { %12300 = vst [vmem:[#allocation31_spill] sm:$0xff] %v8051_v57 }
 0x163   :  { %12301 = vst [vmem:[#allocation32_spill] sm:$0xff] %v8053_v19  ;;  %6301 = vmatmul.msk.f32.gmra.mxu1 %vm320_vm1, %v7495_v20  ;;  %6390 = vmatmul.msk.f32.gmra.mxu0 %vm320_vm1, %v1029_v11  ;;  %v1031_v20 = vsel %vm1022_vm2, %v1028_v8, %v1030_v6 }
 0x164   :  { %6379 = vmatmul.msk.f32.gmra.mxu3 %vm320_vm1, %v7474_v10  ;;  %6474 = vmatmul.msk.f32.vlgmr.msrb.gmra.mxu2 %vm320_vm1, %v1538_v5  ;;  %v1032_v10 = vrot.slane %v7564_v38, 2 }
 0x167   :  { %v831_v9 = vpop.f32.mrf.mxu2  ;;  %v962_v36 = vpop.f32.mrf.mxu3 }
 0x168   :  { %v8065_v13 = vadd.f32 %v831_v9, %v485_v12  ;;  %v8067_v55 = vadd.f32 %v962_v36, %v616_v18  ;;  %v488_v14 = vpop.f32.mrf.mxu0  ;;  %v619_v54 = vpop.f32.mrf.mxu1 }
 0x16a   :  { %12302 = vst [vmem:[#allocation33_spill] sm:$0xff] %v8065_v13 }
 0x16b   :  { %12303 = vst [vmem:[#allocation34_spill] sm:$0xff] %v8067_v55  ;;  %6391 = vmatmul.msk.f32.gmra.mxu0 %vm320_vm1, %v1031_v20  ;;  %6427 = vmatmul.msk.f32.vlgmr.msra.gmra.mxu1 %vm320_vm1, %v1025_v49  ;;  %v1033_v55 = vsel %vm1022_vm2, %v1030_v6, %v1032_v10  ;;  %v1542_v49 = vsel %vm1535_vm3, %v1539_v7, %v1541_v23 }
 0x16c   :  { %6475 = vmatmul.msk.f32.gmra.mxu2 %vm320_vm1, %v1540_v40  ;;  %6513 = vmatmul.msk.f32.vlgmr.msra.gmra.mxu3 %vm320_vm1, %v1538_v5  ;;  %v1543_v5 = vrot.slane %v7551_v35, 3  ;;  %v1036_v35 = vrot.slane %v7590_v44, 2 }
 0x16f   :  { %v834_v18 = vpop.f32.mrf.mxu2  ;;  %v965_v12 = vpop.f32.mrf.mxu3 }
 0x170   :  { %v8077_v9 = vadd.f32 %v834_v18, %v488_v14  ;;  %v8079_v36 = vadd.f32 %v965_v12, %v619_v54  ;;  %v491_v8 = vpop.f32.mrf.mxu0  ;;  %v622_v26 = vpop.f32.mrf.mxu1 }
 0x172   :  { %12304 = vst [vmem:[#allocation35_spill] sm:$0xff] %v8077_v9 }
 0x173   :  { %12305 = vst [vmem:[#allocation36_spill] sm:$0xff] %v8079_v36  ;;  %6392 = vmatmul.msk.f32.gmra.mxu0 %vm320_vm1, %v1033_v55  ;;  %6428 = vmatmul.msk.f32.gmra.mxu1 %vm320_vm1, %v1027_v17  ;;  %v1035_v36 = vsel %vm1022_vm2, %v1032_v10, %v1034_v32  ;;  %v1544_v17 = vsel %vm1535_vm3, %v1541_v23, %v1543_v5 }
 0x174   :  { %6476 = vmatmul.msk.f32.gmra.mxu2 %vm320_vm1, %v1542_v49  ;;  %6514 = vmatmul.msk.f32.gmra.mxu3 %vm320_vm1, %v1540_v40  ;;  %v1545_v40 = vrot.slane %v7564_v38, 3  ;;  %v1038_v38 = vrot.slane %v7603_v47, 2 }
 0x177   :  { %v837_v14 = vpop.f32.mrf.mxu2  ;;  %v968_v54 = vpop.f32.mrf.mxu3 }
 0x178   :  { %v8089_v18 = vadd.f32 %v837_v14, %v491_v8  ;;  %v8091_v12 = vadd.f32 %v968_v54, %v622_v26  ;;  %v494_v6 = vpop.f32.mrf.mxu0  ;;  %v625_v7 = vpop.f32.mrf.mxu1 }
 0x17a   :  { %12306 = vst [vmem:[#allocation37_spill] sm:$0xff] %v8089_v18 }
 0x17b   :  { %12307 = vst [vmem:[#allocation38_spill] sm:$0xff] %v8091_v12  ;;  %6393 = vmatmul.msk.f32.gmra.mxu0 %vm320_vm1, %v1035_v36  ;;  %6429 = vmatmul.msk.f32.gmra.mxu1 %vm320_vm1, %v1029_v11  ;;  %v1037_v12 = vsel %vm1022_vm2, %v1034_v32, %v1036_v35  ;;  %v1546_v11 = vsel %vm1535_vm3, %v1543_v5, %v1545_v40 }
 0x17c   :  { %6477 = vmatmul.msk.f32.gmra.mxu2 %vm320_vm1, %v1544_v17  ;;  %6515 = vmatmul.msk.f32.gmra.mxu3 %vm320_vm1, %v1542_v49  ;;  %v1547_v49 = vrot.slane %v7577_v41, 3  ;;  %v1040_v41 = vrot.slane %v7616_v50, 2 }
 0x17f   :  { %v840_v8 = vpop.f32.mrf.mxu2  ;;  %v971_v26 = vpop.f32.mrf.mxu3 }
 0x180   :  { %v8101_v14 = vadd.f32 %v840_v8, %v494_v6  ;;  %v8103_v54 = vadd.f32 %v971_v26, %v625_v7  ;;  %v497_v10 = vpop.f32.mrf.mxu0  ;;  %v628_v23 = vpop.f32.mrf.mxu1 }
 0x182   :  { %12308 = vst [vmem:[#allocation39_spill] sm:$0xff] %v8101_v14 }
 0x183   :  { %12309 = vst [vmem:[#allocation40_spill] sm:$0xff] %v8103_v54  ;;  %6394 = vmatmul.msk.f32.gmra.mxu0 %vm320_vm1, %v1037_v12  ;;  %6430 = vmatmul.msk.f32.gmra.mxu1 %vm320_vm1, %v1031_v20  ;;  %v1039_v54 = vsel %vm1022_vm2, %v1036_v35, %v1038_v38  ;;  %v1548_v20 = vsel %vm1535_vm3, %v1545_v40, %v1547_v49 }
 0x184   :  { %6478 = vmatmul.msk.f32.gmra.mxu2 %vm320_vm1, %v1546_v11  ;;  %6516 = vmatmul.msk.f32.gmra.mxu3 %vm320_vm1, %v1544_v17  ;;  %v1549_v17 = vrot.slane %v7590_v44, 3  ;;  %v1042_v44 = vrot.slane %v7629_v53, 2 }
 0x187   :  { %v843_v6 = vpop.f32.mrf.mxu2  ;;  %v974_v7 = vpop.f32.mrf.mxu3 }
 0x188   :  { %v8113_v8 = vadd.f32 %v843_v6, %v497_v10  ;;  %v8115_v26 = vadd.f32 %v974_v7, %v628_v23  ;;  %v500_v32 = vpop.f32.mrf.mxu0  ;;  %v631_v5 = vpop.f32.mrf.mxu1 }
 0x18a   :  { %12310 = vst [vmem:[#allocation41_spill] sm:$0xff] %v8113_v8 }
 0x18b   :  { %12311 = vst [vmem:[#allocation42_spill] sm:$0xff] %v8115_v26  ;;  %6395 = vmatmul.msk.f32.gmra.mxu0 %vm320_vm1, %v1039_v54  ;;  %6431 = vmatmul.msk.f32.gmra.mxu1 %vm320_vm1, %v1033_v55  ;;  %v1041_v26 = vsel %vm1022_vm2, %v1038_v38, %v1040_v41  ;;  %v1550_v55 = vsel %vm1535_vm3, %v1547_v49, %v1549_v17 }
 0x18c   :  { %6479 = vmatmul.msk.f32.gmra.mxu2 %vm320_vm1, %v1548_v20  ;;  %6517 = vmatmul.msk.f32.gmra.mxu3 %vm320_vm1, %v1546_v11  ;;  %v1551_v11 = vrot.slane %v7603_v47, 3  ;;  %v1044_v47 = vrot.slane %v7642_v56, 2  ;;  %v1555_v56 = vrot.slane %v7629_v53, 3  ;;  %v1048_v53 = vrot.slane %v7668_v62, 2 }
 0x18d   :  { %v1050_v62 = vrot.slane %v7681_v1, 2  ;;  %v7143_v1 = vld [vmem:[%s12280_s2 + $0x78] sm:$0xff] }
 0x18f   :  { %v846_v10 = vpop.f32.mrf.mxu2  ;;  %v977_v23 = vpop.f32.mrf.mxu3 }
 0x190   :  { %v8125_v6 = vadd.f32 %v846_v10, %v500_v32  ;;  %v8127_v7 = vadd.f32 %v977_v23, %v631_v5  ;;  %v503_v35 = vpop.f32.mrf.mxu0  ;;  %v634_v40 = vpop.f32.mrf.mxu1 }
 0x192   :  { %12312 = vst [vmem:[#allocation43_spill] sm:$0xff] %v8125_v6 }
 0x193   :  { %12313 = vst [vmem:[#allocation44_spill] sm:$0xff] %v8127_v7  ;;  %6396 = vmatmul.msk.f32.gmra.mxu0 %vm320_vm1, %v1041_v26  ;;  %6432 = vmatmul.msk.f32.gmra.mxu1 %vm320_vm1, %v1035_v36  ;;  %v1043_v7 = vsel %vm1022_vm2, %v1040_v41, %v1042_v44  ;;  %v1552_v36 = vsel %vm1535_vm3, %v1549_v17, %v1551_v11 }
 0x194   :  { %6480 = vmatmul.msk.f32.gmra.mxu2 %vm320_vm1, %v1550_v55  ;;  %6518 = vmatmul.msk.f32.gmra.mxu3 %vm320_vm1, %v1548_v20  ;;  %v1553_v20 = vrot.slane %v7616_v50, 3  ;;  %v1046_v50 = vrot.slane %v7655_v59, 2  ;;  %v8175_v59 = vld [vmem:[%s12280_s2 + $0x58] sm:$0xff] }
 0x197   :  { %v849_v32 = vpop.f32.mrf.mxu2  ;;  %v980_v5 = vpop.f32.mrf.mxu3 }
 0x198   :  { %v8137_v10 = vadd.f32 %v849_v32, %v503_v35  ;;  %v8139_v23 = vadd.f32 %v980_v5, %v634_v40  ;;  %v506_v38 = vpop.f32.mrf.mxu0  ;;  %v637_v49 = vpop.f32.mrf.mxu1 }
 0x19a   :  { %12314 = vst [vmem:[#allocation45_spill] sm:$0xff] %v8137_v10 }
 0x19b   :  { %12315 = vst [vmem:[#allocation46_spill] sm:$0xff] %v8139_v23  ;;  %6397 = vmatmul.msk.f32.gmra.mxu0 %vm320_vm1, %v1043_v7  ;;  %6433 = vmatmul.msk.f32.gmra.mxu1 %vm320_vm1, %v1037_v12  ;;  %v1045_v23 = vsel %vm1022_vm2, %v1042_v44, %v1044_v47  ;;  %v1554_v12 = vsel %vm1535_vm3, %v1551_v11, %v1553_v20 }
 0x19c   :  { %6481 = vmatmul.msk.f32.gmra.mxu2 %vm320_vm1, %v1552_v36  ;;  %6519 = vmatmul.msk.f32.gmra.mxu3 %vm320_vm1, %v1550_v55 }
 0x19f   :  { %v852_v35 = vpop.f32.mrf.mxu2  ;;  %v983_v40 = vpop.f32.mrf.mxu3 }
 0x1a0   :  { %v8149_v32 = vadd.f32 %v852_v35, %v506_v38  ;;  %v8151_v5 = vadd.f32 %v983_v40, %v637_v49  ;;  %v509_v41 = vpop.f32.mrf.mxu0  ;;  %v640_v17 = vpop.f32.mrf.mxu1  ;;  %v1047_v40 = vsel %vm1022_vm2, %v1044_v47, %v1046_v50 }
 0x1a2   :  { %12316 = vst [vmem:[#allocation47_spill] sm:$0xff] %v8149_v32 }
 0x1a3   :  { %12317 = vst [vmem:[#allocation48_spill] sm:$0xff] %v8151_v5  ;;  %6398 = vmatmul.msk.f32.gmra.mxu0 %vm320_vm1, %v1045_v23  ;;  %6434 = vmatmul.msk.f32.gmra.mxu1 %vm320_vm1, %v1039_v54  ;;  %v1556_v54 = vsel %vm1535_vm3, %v1553_v20, %v1555_v56 }
 0x1a4   :  { %6482 = vmatmul.msk.f32.gmra.mxu2 %vm320_vm1, %v1554_v12  ;;  %6520 = vmatmul.msk.f32.gmra.mxu3 %vm320_vm1, %v1552_v36  ;;  %v1557_v36 = vrot.slane %v8175_v59, 3 }
 0x1a7   :  { %v855_v55 = vpop.f32.mrf.mxu2  ;;  %v986_v38 = vpop.f32.mrf.mxu3 }
 0x1a8   :  { %v8161_v49 = vadd.f32 %v855_v55, %v509_v41  ;;  %v8163_v35 = vadd.f32 %v986_v38, %v640_v17  ;;  %v512_v44 = vpop.f32.mrf.mxu0  ;;  %v643_v11 = vpop.f32.mrf.mxu1  ;;  %v1049_v38 = vsel %vm1022_vm2, %v1046_v50, %v1048_v53 }
 0x1aa   :  { %12318 = vst [vmem:[#allocation49_spill] sm:$0xff] %v8161_v49 }
 0x1ab   :  { %12319 = vst [vmem:[#allocation50_spill] sm:$0xff] %v8163_v35  ;;  %6399 = vmatmul.msk.f32.gmra.mxu0 %vm320_vm1, %v1047_v40  ;;  %6435 = vmatmul.msk.f32.gmra.mxu1 %vm320_vm1, %v1041_v26  ;;  %v1051_v35 = vsel %vm1022_vm2, %v1048_v53, %v1050_v62 }
 0x1ac   :  { %6483 = vmatmul.msk.f32.gmra.mxu2 %vm320_vm1, %v1556_v54  ;;  %6521 = vmatmul.msk.f32.gmra.mxu3 %vm320_vm1, %v1554_v12  ;;  %v1558_v12 = vsel %vm1535_vm3, %v1555_v56, %v1557_v36 }
 0x1af   :  { %v858_v47 = vpop.f32.mrf.mxu2  ;;  %v989_v41 = vpop.f32.mrf.mxu3 }
 0x1b0   :  { %v8178_v20 = vadd.f32 %v858_v47, %v512_v44  ;;  %v8180_v17 = vadd.f32 %v989_v41, %v643_v11  ;;  %v515_v26 = vpop.f32.mrf.mxu0  ;;  %v646_v55 = vpop.f32.mrf.mxu1  ;;  %v8192_v44 = vld [vmem:[%s12280_s2 + $0x60] sm:$0xff] }
 0x1b1   :  { %v1559_v11 = vrot.slane %v8192_v44, 3 }
 0x1b2   :  { %12320 = vst [vmem:[#allocation51_spill] sm:$0xff] %v8178_v20 }
 0x1b3   :  { %12321 = vst [vmem:[#allocation52_spill] sm:$0xff] %v8180_v17  ;;  %6400 = vmatmul.msk.f32.gmra.mxu0 %vm320_vm1, %v1049_v38  ;;  %6436 = vmatmul.msk.f32.gmra.mxu1 %vm320_vm1, %v1043_v7 }
 0x1b4   :  { %6484 = vmatmul.msk.f32.gmra.mxu2 %vm320_vm1, %v1558_v12  ;;  %6522 = vmatmul.msk.f32.gmra.mxu3 %vm320_vm1, %v1556_v54  ;;  %v1560_v54 = vsel %vm1535_vm3, %v1557_v36, %v1559_v11 }
 0x1b7   :  { %v861_v50 = vpop.f32.mrf.mxu2  ;;  %v992_v47 = vpop.f32.mrf.mxu3 }
 0x1b8   :  { %v8195_v56 = vadd.f32 %v861_v50, %v515_v26  ;;  %v8197_v41 = vadd.f32 %v992_v47, %v646_v55  ;;  %v518_v7 = vpop.f32.mrf.mxu0  ;;  %v649_v17 = vpop.f32.mrf.mxu1  ;;  %v1052_v26 = vrot.slane %v7143_v1, 2  ;;  %v8211_v55 = vld [vmem:[%s12280_s2 + $0x68] sm:$0xff] }
 0x1b9   :  { %v1561_v53 = vrot.slane %v8211_v55, 3 }
 0x1ba   :  { %12322 = vst [vmem:[#allocation53_spill] sm:$0xff] %v8195_v56  ;;  %v1053_v56 = vsel %vm1022_vm2, %v1050_v62, %v1052_v26 }
 0x1bb   :  { %12323 = vst [vmem:[#allocation54_spill] sm:$0xff] %v8197_v41  ;;  %6401 = vmatmul.msk.f32.gmra.mxu0 %vm320_vm1, %v1051_v35  ;;  %6437 = vmatmul.msk.f32.gmra.mxu1 %vm320_vm1, %v1045_v23  ;;  %v1562_v5 = vsel %vm1535_vm3, %v1559_v11, %v1561_v53 }
 0x1bc   :  { %6485 = vmatmul.msk.f32.gmra.mxu2 %vm320_vm1, %v1560_v54  ;;  %6523 = vmatmul.msk.f32.gmra.mxu3 %vm320_vm1, %v1558_v12 }
 0x1bf   :  { %v864_v36 = vpop.f32.mrf.mxu2  ;;  %v995_v50 = vpop.f32.mrf.mxu3 }
 0x1c0   :  { %v8214_v47 = vadd.f32 %v864_v36, %v518_v7  ;;  %v8216_v23 = vadd.f32 %v995_v50, %v649_v17  ;;  %v521_v41 = vpop.f32.mrf.mxu0  ;;  %v652_v12 = vpop.f32.mrf.mxu1  ;;  %v7145_v7 = vld [vmem:[%s12280_s2 + $0x80] sm:$0xff]  ;;  %v8230_v36 = vld [vmem:[%s12280_s2 + $0x70] sm:$0xff] }
 0x1c1   :  { %v1054_v17 = vrot.slane %v7145_v7, 2  ;;  %v1563_v62 = vrot.slane %v8230_v36, 3 }
 0x1c2   :  { %12324 = vst [vmem:[#allocation55_spill] sm:$0xff] %v8214_v47 }
 0x1c3   :  { %12325 = vst [vmem:[#allocation56_spill] sm:$0xff] %v8216_v23  ;;  %6402 = vmatmul.msk.f32.gmra.mxu0 %vm320_vm1, %v1053_v56  ;;  %6438 = vmatmul.msk.f32.gmra.mxu1 %vm320_vm1, %v1047_v40  ;;  %v1055_v20 = vsel %vm1022_vm2, %v1052_v26, %v1054_v17  ;;  %v1564_v49 = vsel %vm1535_vm3, %v1561_v53, %v1563_v62 }
 0x1c4   :  { %6486 = vmatmul.msk.f32.gmra.mxu2 %vm320_vm1, %v1562_v5  ;;  %6524 = vmatmul.msk.f32.gmra.mxu3 %vm320_vm1, %v1560_v54 }
 0x1c7   :  { %v867_v11 = vpop.f32.mrf.mxu2  ;;  %v998_v50 = vpop.f32.mrf.mxu3 }
 0x1c8   :  { %v8233_v23 = vadd.f32 %v867_v11, %v521_v41  ;;  %v8235_v40 = vadd.f32 %v998_v50, %v652_v12  ;;  %v524_v47 = vpop.f32.mrf.mxu0  ;;  %v655_v54 = vpop.f32.mrf.mxu1  ;;  %v7147_v41 = vld [vmem:[%s12280_s2 + $0x88] sm:$0xff]  ;;  %v1565_v11 = vrot.slane %v7143_v1, 3 }
 0x1c9   :  { %v1056_v12 = vrot.slane %v7147_v41, 2 }
 0x1ca   :  { %12326 = vst [vmem:[#allocation57_spill] sm:$0xff] %v8233_v23  ;;  %v1566_v10 = vsel %vm1535_vm3, %v1563_v62, %v1565_v11 }
 0x1cb   :  { %12327 = vst [vmem:[#allocation58_spill] sm:$0xff] %v8235_v40  ;;  %6403 = vmatmul.msk.f32.gmra.mxu0 %vm320_vm1, %v1055_v20  ;;  %6439 = vmatmul.msk.f32.gmra.mxu1 %vm320_vm1, %v1049_v38  ;;  %v1057_v38 = vsel %vm1022_vm2, %v1054_v17, %v1056_v12 }
 0x1cc   :  { %6487 = vmatmul.msk.f32.gmra.mxu2 %vm320_vm1, %v1564_v49  ;;  %6525 = vmatmul.msk.f32.gmra.mxu3 %vm320_vm1, %v1562_v5  ;;  %v8259_v5 = vld [vmem:[%s12280_s2 + $0x90] sm:$0xff] }
 0x1cd   :  { %v1058_v1 = vrot.slane %v8259_v5, 2 }
 0x1cf   :  { %v870_v50 = vpop.f32.mrf.mxu2  ;;  %v1001_v40 = vpop.f32.mrf.mxu3 }
 0x1d0   :  { %v8246_v23 = vadd.f32 %v870_v50, %v524_v47  ;;  %v8248_v26 = vadd.f32 %v1001_v40, %v655_v54  ;;  %v658_v53 = vpop.f32.mrf.mxu1  ;;  %v1197_v32 = vpop.f32.mrf.mxu0  ;;  %v1567_v47 = vrot.slane %v7145_v7, 3 }
 0x1d2   :  { %12328 = vst [vmem:[#allocation59_spill] sm:$0xff] %v8246_v23 }
 0x1d3   :  { %12329 = vst [vmem:[#allocation60_spill] sm:$0xff] %v8248_v26  ;;  %6404 = vmatmul.msk.f32.gmra.mxu0 %vm320_vm1, %v1057_v38  ;;  %6440 = vmatmul.msk.f32.gmra.mxu1 %vm320_vm1, %v1051_v35  ;;  %v1059_v35 = vsel %vm1022_vm2, %v1056_v12, %v1058_v1  ;;  %v1568_v26 = vsel %vm1535_vm3, %v1565_v11, %v1567_v47 }
 0x1d4   :  { %6488 = vmatmul.msk.f32.gmra.mxu2 %vm320_vm1, %v1566_v10  ;;  %6526 = vmatmul.msk.f32.gmra.mxu3 %vm320_vm1, %v1564_v49  ;;  %v8275_v49 = vld [vmem:[%s12280_s2 + $0x98] sm:$0xff] }
 0x1d5   :  { %v1060_v7 = vrot.slane %v8275_v49, 2 }
 0x1d7   :  { %v8262_v40 = vpop.f32.mrf.mxu2  ;;  %v1004_v17 = vpop.f32.mrf.mxu3 }
 0x1d8   :  { %12330 = vst [vmem:[#allocation61_spill] sm:$0xff] %v8262_v40  ;;  %v8264_v62 = vadd.f32 %v1004_v17, %v658_v53  ;;  %v661_v54 = vpop.f32.mrf.mxu1  ;;  %v1200_v50 = vpop.f32.mrf.mxu0  ;;  %v1569_v53 = vrot.slane %v7147_v41, 3 }
 0x1da   :  { %12331 = vst [vmem:[#allocation62_spill] sm:$0xff] %v8264_v62  ;;  %v1570_v23 = vsel %vm1535_vm3, %v1567_v47, %v1569_v53 }
 0x1db   :  { %6405 = vmatmul.msk.f32.gmra.mxu0 %vm320_vm1, %v1059_v35  ;;  %6441 = vmatmul.msk.f32.gmra.mxu1 %vm320_vm1, %v1053_v56  ;;  %v1061_v56 = vsel %vm1022_vm2, %v1058_v1, %v1060_v7  ;;  %v1448_v1 = vadd.f32 %v1197_v32, %v7731_v27  ;;  %v8309_v27 = vld [vmem:[%s12280_s2 + $0xa8] sm:$0xff] }
 0x1dc   :  { %6489 = vmatmul.msk.f32.gmra.mxu2 %vm320_vm1, %v1568_v26  ;;  %6527 = vmatmul.msk.f32.gmra.mxu3 %vm320_vm1, %v1566_v10  ;;  %v8291_v10 = vld [vmem:[%s12280_s2 + $0xa0] sm:$0xff]  ;;  %v1064_v32 = vrot.slane %v8309_v27, 2 }
 0x1dd   :  { %v1062_v41 = vrot.slane %v8291_v10, 2 }
 0x1df   :  { %v8278_v17 = vpop.f32.mrf.mxu2  ;;  %v1007_v12 = vpop.f32.mrf.mxu3  ;;  %v1065_v14 = vsel %vm1022_vm2, %v1062_v41, %v1064_v32 }
 0x1e0   :  { %12332 = vst [vmem:[#allocation63_spill] sm:$0xff] %v8278_v17  ;;  %v8280_v11 = vadd.f32 %v1007_v12, %v661_v54  ;;  %v664_v62 = vpop.f32.mrf.mxu1  ;;  %v1203_v40 = vpop.f32.mrf.mxu0  ;;  %v1571_v54 = vrot.slane %v8259_v5, 3 }
 0x1e2   :  { %12333 = vst [vmem:[#allocation64_spill] sm:$0xff] %v8280_v11  ;;  %v1572_v8 = vsel %vm1535_vm3, %v1569_v53, %v1571_v54 }
 0x1e3   :  { %6406 = vmatmul.msk.f32.gmra.mxu0 %vm320_vm1, %v1061_v56  ;;  %6442 = vmatmul.msk.f32.gmra.mxu1 %vm320_vm1, %v1055_v20 }
 0x1e4   :  { %6490 = vmatmul.msk.f32.gmra.mxu2 %vm320_vm1, %v1570_v23  ;;  %6528 = vmatmul.msk.f32.gmra.mxu3 %vm320_vm1, %v1568_v26  ;;  %v1063_v26 = vsel %vm1022_vm2, %v1060_v7, %v1062_v41  ;;  %v1450_v7 = vadd.f32 %v1200_v50, %v7741_v37  ;;  %v8328_v37 = vld [vmem:[%s12280_s2 + $0xb0] sm:$0xff]  ;;  %v1452_v50 = vadd.f32 %v1203_v40, %v7753_v51  ;;  %v8347_v51 = vld [vmem:[%s12280_s2 + $0xb8] sm:$0xff]  ;;  %v1577_v40 = vrot.slane %v8309_v27, 3 }
 0x1e7   :  { %v1010_v47 = vpop.f32.mrf.mxu3  ;;  %v1710_v12 = vpop.f32.mrf.mxu2 }
 0x1e8   :  { %v8296_v11 = vadd.f32 %v1010_v47, %v664_v62  ;;  %v8298_v20 = vadd.f32 %v1710_v12, %v1448_v1  ;;  %v1206_v17 = vpop.f32.mrf.mxu0  ;;  %v1331_v6 = vpop.f32.mrf.mxu1  ;;  %v1573_v62 = vrot.slane %v8275_v49, 3 }
 0x1e9   :  { %v1449_v53 = vadd.f32 %v1331_v6, %v7743_v39  ;;  %v1066_v39 = vrot.slane %v8328_v37, 2  ;;  %v1575_v6 = vrot.slane %v8291_v10, 3 }
 0x1ea   :  { %12334 = vst [vmem:[#allocation65_spill] sm:$0xff] %v8296_v11  ;;  %v1574_v18 = vsel %vm1535_vm3, %v1571_v54, %v1573_v62 }
 0x1eb   :  { %6407 = vmatmul.msk.f32.gmra.mxu0 %vm320_vm1, %v1063_v26  ;;  %6443 = vmatmul.msk.f32.gmra.mxu1 %vm320_vm1, %v1057_v38  ;;  %v1576_v19 = vsel %vm1535_vm3, %v1573_v62, %v1575_v6  ;;  %v1578_v9 = vsel %vm1535_vm3, %v1575_v6, %v1577_v40 }
 0x1ec   :  { %6491 = vmatmul.msk.f32.gmra.mxu2 %vm320_vm1, %v1572_v8  ;;  %6529 = vmatmul.msk.f32.gmra.mxu3 %vm320_vm1, %v1570_v23 }
 0x1ef   :  { %v1713_v1 = vpop.f32.mrf.mxu2  ;;  %v1844_v47 = vpop.f32.mrf.mxu3 }
 0x1f0   :  { %v8315_v38 = vadd.f32 %v1713_v1, %v1450_v7  ;;  %v8317_v12 = vadd.f32 %v1844_v47, %v1449_v53  ;;  %v1209_v23 = vpop.f32.mrf.mxu0  ;;  %v1334_v11 = vpop.f32.mrf.mxu1  ;;  %v1067_v47 = vsel %vm1022_vm2, %v1064_v32, %v1066_v39 }
 0x1f1   :  { %v1451_v41 = vadd.f32 %v1334_v11, %v7755_v52  ;;  %v1068_v52 = vrot.slane %v8347_v51, 2  ;;  %v1454_v11 = vadd.f32 %v1206_v17, %v7765_v0  ;;  %v8366_v0 = vld [vmem:[%s12280_s2 + $0xc0] sm:$0xff]  ;;  %v1579_v17 = vrot.slane %v8328_v37, 3 }
 0x1f3   :  { %6408 = vmatmul.msk.f32.gmra.mxu0 %vm320_vm1, %v1065_v14  ;;  %6444 = vmatmul.msk.f32.gmra.mxu1 %vm320_vm1, %v1059_v35  ;;  %v1580_v13 = vsel %vm1535_vm3, %v1577_v40, %v1579_v17 }
 0x1f4   :  { %6492 = vmatmul.msk.f32.gmra.mxu2 %vm320_vm1, %v1574_v18  ;;  %6530 = vmatmul.msk.f32.gmra.mxu3 %vm320_vm1, %v1572_v8 }
 0x1f7   :  { %v1716_v54 = vpop.f32.mrf.mxu2  ;;  %v1847_v7 = vpop.f32.mrf.mxu3 }
 0x1f8   :  { %v8334_v35 = vadd.f32 %v1716_v54, %v1452_v50  ;;  %v8336_v53 = vadd.f32 %v1847_v7, %v1451_v41  ;;  %v1212_v8 = vpop.f32.mrf.mxu0  ;;  %v1337_v1 = vpop.f32.mrf.mxu1  ;;  %v1069_v7 = vsel %vm1022_vm2, %v1066_v39, %v1068_v52  ;;  %v1456_v39 = vadd.f32 %v1209_v23, %v7777_v15  ;;  %v8385_v15 = vld [vmem:[%s12280_s2 + $0xc8] sm:$0xff] }
 0x1f9   :  { %v1453_v32 = vadd.f32 %v1337_v1, %v7767_v2  ;;  %v1070_v2 = vrot.slane %v8366_v0, 2  ;;  %v1581_v23 = vrot.slane %v8347_v51, 3 }
 0x1fb   :  { %6409 = vmatmul.msk.f32.gmra.mxu0 %vm320_vm1, %v1067_v47  ;;  %6445 = vmatmul.msk.f32.gmra.mxu1 %vm320_vm1, %v1061_v56  ;;  %v1582_v57 = vsel %vm1535_vm3, %v1579_v17, %v1581_v23 }
 0x1fc   :  { %6493 = vmatmul.msk.f32.gmra.mxu2 %vm320_vm1, %v1576_v19  ;;  %6531 = vmatmul.msk.f32.gmra.mxu3 %vm320_vm1, %v1574_v18 }
 0x1ff   :  { %v1719_v62 = vpop.f32.mrf.mxu2  ;;  %v1850_v50 = vpop.f32.mrf.mxu3 }
 0x200   :  { %v8353_v56 = vadd.f32 %v1719_v62, %v1454_v11  ;;  %v8355_v41 = vadd.f32 %v1850_v50, %v1453_v32  ;;  %v1215_v18 = vpop.f32.mrf.mxu0  ;;  %v1340_v54 = vpop.f32.mrf.mxu1  ;;  %v1071_v50 = vsel %vm1022_vm2, %v1068_v52, %v1070_v2  ;;  %v1458_v52 = vadd.f32 %v1212_v8, %v7789_v30  ;;  %v8404_v30 = vld [vmem:[%s12280_s2 + $0xd0] sm:$0xff] }
 0x201   :  { %v1455_v6 = vadd.f32 %v1340_v54, %v7779_v16  ;;  %v1072_v16 = vrot.slane %v8385_v15, 2  ;;  %v1583_v8 = vrot.slane %v8366_v0, 3 }
 0x203   :  { %6410 = vmatmul.msk.f32.gmra.mxu0 %vm320_vm1, %v1069_v7  ;;  %6446 = vmatmul.msk.f32.gmra.mxu1 %vm320_vm1, %v1063_v26  ;;  %v1584_v33 = vsel %vm1535_vm3, %v1581_v23, %v1583_v8 }
 0x204   :  { %6494 = vmatmul.msk.f32.gmra.mxu2 %vm320_vm1, %v1578_v9  ;;  %6532 = vmatmul.msk.f32.gmra.mxu3 %vm320_vm1, %v1576_v19 }
 0x207   :  { %v1722_v1 = vpop.f32.mrf.mxu2  ;;  %v1853_v11 = vpop.f32.mrf.mxu3 }
 0x208   :  { %v8372_v26 = vadd.f32 %v1722_v1, %v1456_v39  ;;  %v8374_v32 = vadd.f32 %v1853_v11, %v1455_v6  ;;  %v1218_v19 = vpop.f32.mrf.mxu0  ;;  %v1343_v62 = vpop.f32.mrf.mxu1  ;;  %v1073_v11 = vsel %vm1022_vm2, %v1070_v2, %v1072_v16  ;;  %v1460_v2 = vadd.f32 %v1215_v18, %v7801_v46  ;;  %v8423_v46 = vld [vmem:[%s12280_s2 + $0xd8] sm:$0xff] }
 0x209   :  { %v1457_v40 = vadd.f32 %v1343_v62, %v7791_v31  ;;  %v1074_v31 = vrot.slane %v8404_v30, 2  ;;  %v1585_v18 = vrot.slane %v8385_v15, 3 }
 0x20b   :  { %6411 = vmatmul.msk.f32.gmra.mxu0 %vm320_vm1, %v1071_v50  ;;  %6447 = vmatmul.msk.f32.gmra.mxu1 %vm320_vm1, %v1065_v14  ;;  %v1586_v25 = vsel %vm1535_vm3, %v1583_v8, %v1585_v18 }
 0x20c   :  { %6495 = vmatmul.msk.f32.gmra.mxu2 %vm320_vm1, %v1580_v13  ;;  %6533 = vmatmul.msk.f32.gmra.mxu3 %vm320_vm1, %v1578_v9 }
 0x20f   :  { %v1725_v54 = vpop.f32.mrf.mxu2  ;;  %v1856_v39 = vpop.f32.mrf.mxu3 }
 0x210   :  { %v8391_v14 = vadd.f32 %v1725_v54, %v1458_v52  ;;  %v8393_v6 = vadd.f32 %v1856_v39, %v1457_v40  ;;  %v1221_v9 = vpop.f32.mrf.mxu0  ;;  %v1346_v1 = vpop.f32.mrf.mxu1  ;;  %v1075_v39 = vsel %vm1022_vm2, %v1072_v16, %v1074_v31  ;;  %v1462_v16 = vadd.f32 %v1218_v19, %v7813_v63  ;;  %v8442_v63 = vld [vmem:[%s12280_s2 + $0xe0] sm:$0xff] }
 0x211   :  { %v1459_v17 = vadd.f32 %v1346_v1, %v7803_v48  ;;  %v1076_v48 = vrot.slane %v8423_v46, 2  ;;  %v1587_v19 = vrot.slane %v8404_v30, 3 }
 0x213   :  { %6412 = vmatmul.msk.f32.gmra.mxu0 %vm320_vm1, %v1073_v11  ;;  %6448 = vmatmul.msk.f32.gmra.mxu1 %vm320_vm1, %v1067_v47  ;;  %v1588_v45 = vsel %vm1535_vm3, %v1585_v18, %v1587_v19 }
 0x214   :  { %6496 = vmatmul.msk.f32.gmra.mxu2 %vm320_vm1, %v1582_v57  ;;  %6534 = vmatmul.msk.f32.gmra.mxu3 %vm320_vm1, %v1580_v13 }
 0x217   :  { %v1728_v62 = vpop.f32.mrf.mxu2  ;;  %v1859_v52 = vpop.f32.mrf.mxu3 }
 0x218   :  { %v8410_v47 = vadd.f32 %v1728_v62, %v1460_v2  ;;  %v8412_v40 = vadd.f32 %v1859_v52, %v1459_v17  ;;  %v1224_v13 = vpop.f32.mrf.mxu0  ;;  %v1349_v54 = vpop.f32.mrf.mxu1  ;;  %v1077_v52 = vsel %vm1022_vm2, %v1074_v31, %v1076_v48  ;;  %v1464_v31 = vadd.f32 %v1221_v9, %v7825_v21  ;;  %v8461_v21 = vld [vmem:[%s12280_s2 + $0xe8] sm:$0xff] }
 0x219   :  { %v1461_v23 = vadd.f32 %v1349_v54, %v7815_v3  ;;  %v1078_v3 = vrot.slane %v8442_v63, 2  ;;  %v1589_v9 = vrot.slane %v8423_v46, 3 }
 0x21b   :  { %6413 = vmatmul.msk.f32.gmra.mxu0 %vm320_vm1, %v1075_v39  ;;  %6449 = vmatmul.msk.f32.gmra.mxu1 %vm320_vm1, %v1069_v7 }
 0x21c   :  { %6497 = vmatmul.msk.f32.gmra.mxu2 %vm320_vm1, %v1584_v33  ;;  %6535 = vmatmul.msk.f32.gmra.mxu3 %vm320_vm1, %v1582_v57 }
 0x21f   :  { %v1731_v1 = vpop.f32.mrf.mxu2  ;;  %v1862_v2 = vpop.f32.mrf.mxu3 }
 0x220   :  { %v8429_v7 = vadd.f32 %v1731_v1, %v1462_v16  ;;  %v8431_v17 = vadd.f32 %v1862_v2, %v1461_v23  ;;  %v1227_v57 = vpop.f32.mrf.mxu0  ;;  %v1352_v62 = vpop.f32.mrf.mxu1  ;;  %v1079_v2 = vsel %vm1022_vm2, %v1076_v48, %v1078_v3  ;;  %v1466_v48 = vadd.f32 %v1224_v13, %v7837_v42  ;;  %v8480_v42 = vld [vmem:[%s12280_s2 + $0xf0] sm:$0xff] }
 0x221   :  { %v1463_v8 = vadd.f32 %v1352_v62, %v7827_v22  ;;  %v1080_v22 = vrot.slane %v8461_v21, 2  ;;  %v1591_v13 = vrot.slane %v8442_v63, 3 }
 0x223   :  { %6414 = vmatmul.msk.f32.gmra.mxu0 %vm320_vm1, %v1077_v52  ;;  %6450 = vmatmul.msk.f32.gmra.mxu1 %vm320_vm1, %v1071_v50 }
 0x224   :  { %6498 = vmatmul.msk.f32.gmra.mxu2 %vm320_vm1, %v1586_v25  ;;  %6536 = vmatmul.msk.f32.gmra.mxu3 %vm320_vm1, %v1584_v33 }
 0x227   :  { %v1734_v54 = vpop.f32.mrf.mxu2  ;;  %v1865_v16 = vpop.f32.mrf.mxu3 }
 0x228   :  { %v8448_v50 = vadd.f32 %v1734_v54, %v1464_v31  ;;  %v8450_v23 = vadd.f32 %v1865_v16, %v1463_v8  ;;  %v1230_v33 = vpop.f32.mrf.mxu0  ;;  %v1355_v1 = vpop.f32.mrf.mxu1  ;;  %v1081_v16 = vsel %vm1022_vm2, %v1078_v3, %v1080_v22  ;;  %v1468_v3 = vadd.f32 %v1227_v57, %v7849_v61  ;;  %v8499_v61 = vld [vmem:[%s12280_s2 + $0xf8] sm:$0xff] }
 0x229   :  { %v1465_v18 = vadd.f32 %v1355_v1, %v7839_v43  ;;  %v1082_v43 = vrot.slane %v8480_v42, 2  ;;  %v1593_v57 = vrot.slane %v8461_v21, 3 }
 0x22a   :  { %12335 = vst [vmem:[#allocation66_spill] sm:$0xff] %v8450_v23  ;;  %v1590_v23 = vsel %vm1535_vm3, %v1587_v19, %v1589_v9 }
 0x22b   :  { %6415 = vmatmul.msk.f32.gmra.mxu0 %vm320_vm1, %v1079_v2  ;;  %6451 = vmatmul.msk.f32.gmra.mxu1 %vm320_vm1, %v1073_v11 }
 0x22c   :  { %6499 = vmatmul.msk.f32.gmra.mxu2 %vm320_vm1, %v1588_v45  ;;  %6537 = vmatmul.msk.f32.gmra.mxu3 %vm320_vm1, %v1586_v25 }
 0x22f   :  { %v1737_v62 = vpop.f32.mrf.mxu2  ;;  %v1868_v31 = vpop.f32.mrf.mxu3 }
 0x230   :  { %v8467_v11 = vadd.f32 %v1737_v62, %v1466_v48  ;;  %v8469_v8 = vadd.f32 %v1868_v31, %v1465_v18  ;;  %v1233_v25 = vpop.f32.mrf.mxu0  ;;  %v1358_v54 = vpop.f32.mrf.mxu1  ;;  %v1083_v31 = vsel %vm1022_vm2, %v1080_v22, %v1082_v43  ;;  %v1470_v22 = vadd.f32 %v1230_v33, %v7861_v28  ;;  %v8518_v28 = vld [vmem:[%s12280_s2 + $0x100] sm:$0xff] }
 0x231   :  { %v1467_v19 = vadd.f32 %v1358_v54, %v7851_v4  ;;  %v1084_v4 = vrot.slane %v8499_v61, 2  ;;  %v1595_v33 = vrot.slane %v8480_v42, 3 }
 0x232   :  { %12336 = vst [vmem:[#allocation67_spill] sm:$0xff] %v8469_v8  ;;  %v1592_v8 = vsel %vm1535_vm3, %v1589_v9, %v1591_v13 }
 0x233   :  { %6416 = vmatmul.msk.f32.gmra.mxu0 %vm320_vm1, %v1081_v16  ;;  %6452 = vmatmul.msk.f32.gmra.mxu1 %vm320_vm1, %v1075_v39 }
 0x234   :  { %6500 = vmatmul.msk.f32.gmra.mxu2 %vm320_vm1, %v1590_v23  ;;  %6538 = vmatmul.msk.f32.gmra.mxu3 %vm320_vm1, %v1588_v45 }
 0x237   :  { %v1740_v1 = vpop.f32.mrf.mxu2  ;;  %v1871_v48 = vpop.f32.mrf.mxu3 }
 0x238   :  { %v8486_v39 = vadd.f32 %v1740_v1, %v1468_v3  ;;  %v8488_v18 = vadd.f32 %v1871_v48, %v1467_v19  ;;  %v1236_v45 = vpop.f32.mrf.mxu0  ;;  %v1361_v62 = vpop.f32.mrf.mxu1  ;;  %v1085_v48 = vsel %vm1022_vm2, %v1082_v43, %v1084_v4  ;;  %v1472_v43 = vadd.f32 %v1233_v25, %v7873_v58  ;;  %v8539_v58 = vld [vmem:[%s12280_s2 + $0x108] sm:$0xff] }
 0x239   :  { %v1469_v9 = vadd.f32 %v1361_v62, %v7863_v29  ;;  %v1086_v29 = vrot.slane %v8518_v28, 2  ;;  %v1597_v25 = vrot.slane %v8499_v61, 3 }
 0x23a   :  { %12337 = vst [vmem:[#allocation68_spill] sm:$0xff] %v8488_v18  ;;  %v1594_v18 = vsel %vm1535_vm3, %v1591_v13, %v1593_v57 }
 0x23b   :  { %6417 = vmatmul.msk.f32.gmra.mxu0 %vm320_vm1, %v1083_v31  ;;  %6453 = vmatmul.msk.f32.gmra.mxu1 %vm320_vm1, %v1077_v52 }
 0x23c   :  { %6501 = vmatmul.msk.f32.gmra.mxu2 %vm320_vm1, %v1592_v8  ;;  %6539 = vmatmul.msk.f32.gmra.mxu3 %vm320_vm1, %v1590_v23 }
 0x23f   :  { %v1743_v54 = vpop.f32.mrf.mxu2  ;;  %v1874_v3 = vpop.f32.mrf.mxu3 }
 0x240   :  { %v8505_v52 = vadd.f32 %v1743_v54, %v1470_v22  ;;  %v8507_v19 = vadd.f32 %v1874_v3, %v1469_v9  ;;  %v1239_v23 = vpop.f32.mrf.mxu0  ;;  %v1364_v1 = vpop.f32.mrf.mxu1  ;;  %v1087_v3 = vsel %vm1022_vm2, %v1084_v4, %v1086_v29  ;;  %v1474_v4 = vadd.f32 %v1236_v45, %v7885_v24  ;;  %v8560_v24 = vld [vmem:[%s12280_s2 + $0x110] sm:$0xff] }
 0x241   :  { %v1471_v13 = vadd.f32 %v1364_v1, %v7875_v60  ;;  %v1088_v60 = vrot.slane %v8539_v58, 2  ;;  %v1599_v45 = vrot.slane %v8518_v28, 3 }
 0x242   :  { %12338 = vst [vmem:[#allocation69_spill] sm:$0xff] %v8507_v19  ;;  %v1596_v19 = vsel %vm1535_vm3, %v1593_v57, %v1595_v33 }
 0x243   :  { %6418 = vmatmul.msk.f32.gmra.mxu0 %vm320_vm1, %v1085_v48  ;;  %6454 = vmatmul.msk.f32.gmra.mxu1 %vm320_vm1, %v1079_v2 }
 0x244   :  { %6502 = vmatmul.msk.f32.gmra.mxu2 %vm320_vm1, %v1594_v18  ;;  %6540 = vmatmul.msk.f32.gmra.mxu3 %vm320_vm1, %v1592_v8 }
 0x247   :  { %v1746_v62 = vpop.f32.mrf.mxu2  ;;  %v1877_v22 = vpop.f32.mrf.mxu3 }
 0x248   :  { %v8524_v2 = vadd.f32 %v1746_v62, %v1472_v43  ;;  %v8526_v9 = vadd.f32 %v1877_v22, %v1471_v13  ;;  %v8528_v8 = vpop.f32.mrf.mxu0  ;;  %v1367_v54 = vpop.f32.mrf.mxu1  ;;  %v1089_v22 = vsel %vm1022_vm2, %v1086_v29, %v1088_v60  ;;  %v12343_v29 = vld [vmem:[#allocation15_spill] sm:$0xff] }
 0x249   :  { %12340 = vst [vmem:[#allocation71_spill] sm:$0xff] %v8528_v8  ;;  %v1473_v57 = vadd.f32 %v1367_v54, %v7887_v34  ;;  %v1598_v8 = vsel %vm1535_vm3, %v1595_v33, %v1597_v25  ;;  %v1090_v34 = vrot.slane %v8560_v24, 2  ;;  %v1476_v54 = vadd.f32 %v1239_v23, %v12343_v29  ;;  %v12344_v33 = vld [vmem:[#allocation16_spill] sm:$0xff]  ;;  %v8581_v23 = vld [vmem:[%s12280_s2 + $0x118] sm:$0xff] }
 0x24a   :  { %12339 = vst [vmem:[#allocation70_spill] sm:$0xff] %v8526_v9  ;;  %v1600_v9 = vsel %vm1535_vm3, %v1597_v25, %v1599_v45  ;;  %v1601_v29 = vrot.slane %v8539_v58, 3 }
 0x24b   :  { %6419 = vmatmul.msk.f32.gmra.mxu0 %vm320_vm1, %v1087_v3  ;;  %6455 = vmatmul.msk.f32.gmra.mxu1 %vm320_vm1, %v1081_v16 }
 0x24c   :  { %6503 = vmatmul.msk.f32.gmra.mxu2 %vm320_vm1, %v1596_v19  ;;  %6541 = vmatmul.msk.f32.gmra.mxu3 %vm320_vm1, %v1594_v18 }
 0x24f   :  { %v1749_v1 = vpop.f32.mrf.mxu2  ;;  %v1880_v43 = vpop.f32.mrf.mxu3 }
 0x250   :  { %v8545_v16 = vadd.f32 %v1749_v1, %v1474_v4  ;;  %v8547_v13 = vadd.f32 %v1880_v43, %v1473_v57  ;;  %v8549_v18 = vpop.f32.mrf.mxu0  ;;  %v1370_v62 = vpop.f32.mrf.mxu1 }
 0x251   :  { %12342 = vst [vmem:[#allocation73_spill] sm:$0xff] %v8549_v18  ;;  %v1475_v4 = vadd.f32 %v1370_v62, %v12344_v33  ;;  %v1092_v62 = vrot.slane %v8581_v23, 2 }
 0x252   :  { %12341 = vst [vmem:[#allocation72_spill] sm:$0xff] %v8547_v13  ;;  %v1091_v13 = vsel %vm1022_vm2, %v1088_v60, %v1090_v34  ;;  %v12345_v60 = vld [vmem:[#allocation18_spill] sm:$0xff] }
 0x253   :  { %6420 = vmatmul.msk.f32.gmra.mxu0 %vm320_vm1, %v1089_v22  ;;  %6456 = vmatmul.msk.f32.gmra.mxu1 %vm320_vm1, %v1083_v31 }
 0x254   :  { %6504 = vmatmul.msk.f32.gmra.mxu2 %vm320_vm1, %v1598_v8  ;;  %6542 = vmatmul.msk.f32.gmra.mxu3 %vm320_vm1, %v1596_v19 }
 0x257   :  { %v1752_v57 = vpop.f32.mrf.mxu2  ;;  %v1883_v1 = vpop.f32.mrf.mxu3 }
 0x258   :  { %v8566_v31 = vadd.f32 %v1752_v57, %v1476_v54  ;;  %v8568_v43 = vadd.f32 %v1883_v1, %v1475_v4  ;;  %v8570_v19 = vpop.f32.mrf.mxu0  ;;  %v1373_v18 = vpop.f32.mrf.mxu1  ;;  %v1602_v57 = vsel %vm1535_vm3, %v1599_v45, %v1601_v29  ;;  %v6559_v45 = vld [vmem:[%s12279_s30 + $0x138] sm:$0xff] }
 0x259   :  { %v1477_v54 = vadd.f32 %v1373_v18, %v12345_v60  ;;  %v8601_v18 = vld [vmem:[%s12280_s2 + $0x120] sm:$0xff]  ;;  %2352 = vmatpush.msrb.mxu1 %v6559_v45 }
 0x25a   :  { %12348 = vst [vmem:[#allocation18_spill] sm:$0xff] %v8601_v18  ;;  %v1094_v1 = vrot.slane %v8601_v18, 2 }
 0x25b   :  { %6421 = vmatmul.msk.f32.gmra.mxu0 %vm320_vm1, %v1091_v13  ;;  %6457 = vmatmul.msk.f32.gmra.mxu1 %vm320_vm1, %v1085_v48 }
 0x25c   :  { %6505 = vmatmul.msk.f32.gmra.mxu2 %vm320_vm1, %v1600_v9  ;;  %6543 = vmatmul.msk.f32.gmra.mxu3 %vm320_vm1, %v1598_v8  ;;  %v1093_v8 = vsel %vm1022_vm2, %v1090_v34, %v1092_v62  ;;  %v6558_v34 = vld [vmem:[%s12279_s30 + $0x130] sm:$0xff] }
 0x25d   :  { %2218 = vmatpush.msra.mxu0 %v6558_v34  ;;  %v6552_v34 = vld [vmem:[%s12279_s30 + $0x100] sm:$0xff] }
 0x25f   :  { %v1886_v25 = vpop.f32.mrf.mxu3 }
 0x260   :  { %v8586_v33 = vadd.f32 %v1886_v25, %v1477_v54  ;;  %v8588_v4 = vpop.f32.mrf.mxu0  ;;  %v8590_v48 = vpop.f32.mrf.mxu1  ;;  %v1095_v25 = vsel %vm1022_vm2, %v1092_v62, %v1094_v1  ;;  %v8633_v62 = vld [vmem:[%s12280_s2 + $0x128] sm:$0xff] }
 0x261   :  { %12346 = vst [vmem:[#allocation15_spill] sm:$0xff] %v8588_v4 }
 0x262   :  { %12347 = vst [vmem:[#allocation16_spill] sm:$0xff] %v8590_v48  ;;  %v6554_v48 = vld [vmem:[%s12279_s30 + $0x110] sm:$0xff] }
 0x263   :  { %6422 = vmatmul.msk.f32.gmra.mxu0 %vm320_vm1, %v1093_v8  ;;  %6458 = vmatmul.msk.f32.gmra.mxu1 %vm320_vm1, %v1087_v3  ;;  %v1603_v3 = vrot.slane %v8560_v24, 3  ;;  %12351 = vst [vmem:[#allocation76_spill] sm:$0xff] %v8633_v62 }
 0x264   :  { %6506 = vmatmul.msk.f32.gmra.mxu2 %vm320_vm1, %v1602_v57  ;;  %6544 = vmatmul.msk.f32.gmra.mxu3 %vm320_vm1, %v1600_v9  ;;  %v6556_v9 = vld [vmem:[%s12279_s30 + $0x120] sm:$0xff] }
 0x265   :  { %2219 = vmatpush.msra.mxu0 %v6556_v9  ;;  %v1604_v4 = vsel %vm1535_vm3, %v1601_v29, %v1603_v3  ;;  %v1096_v29 = vrot.slane %v8633_v62, 2 }
 0x267   :  { %2220 = vmatpush.msra.mxu0 %v6554_v48  ;;  %v1605_v48 = vrot.slane %v8581_v23, 3 }
 0x268   :  { %v8614_v60 = vpop.f32.mrf.mxu0  ;;  %v8616_v54 = vpop.f32.mrf.mxu1 }
 0x269   :  { %12349 = vst [vmem:[#allocation74_spill] sm:$0xff] %v8614_v60  ;;  %2221 = vmatpush.msra.mxu0 %v6552_v34  ;;  %v6555_v60 = vld [vmem:[%s12279_s30 + $0x118] sm:$0xff] }
 0x26a   :  { %12350 = vst [vmem:[#allocation75_spill] sm:$0xff] %v8616_v54  ;;  %v1606_v54 = vsel %vm1535_vm3, %v1603_v3, %v1605_v48 }
 0x26b   :  { %6423 = vmatmul.msk.f32.gmra.mxu0 %vm320_vm1, %v1095_v25  ;;  %6459 = vmatmul.msk.f32.gmra.mxu1 %vm320_vm1, %v1089_v22  ;;  %v1097_v22 = vsel %vm1022_vm2, %v1094_v1, %v1096_v29 }
 0x26c   :  { %6507 = vmatmul.msk.f32.gmra.mxu2 %vm320_vm1, %v1604_v4  ;;  %6545 = vmatmul.msk.f32.gmra.mxu3 %vm320_vm1, %v1602_v57  ;;  %v8650_v57 = vld [vmem:[%s12280_s2 + $0x130] sm:$0xff] }
 0x26d   :  { %12354 = vst [vmem:[#allocation79_spill] sm:$0xff] %v8650_v57  ;;  %v1098_v34 = vrot.slane %v8650_v57, 2 }
 0x270   :  { %v8637_v45 = vpop.f32.mrf.mxu0  ;;  %v8639_v9 = vpop.f32.mrf.mxu1 }
 0x271   :  { %12352 = vst [vmem:[#allocation77_spill] sm:$0xff] %v8637_v45  ;;  %v1099_v45 = vsel %vm1022_vm2, %v1096_v29, %v1098_v34  ;;  %v6557_v29 = vld [vmem:[%s12279_s30 + $0x128] sm:$0xff] }
 0x272   :  { %12353 = vst [vmem:[#allocation78_spill] sm:$0xff] %v8639_v9  ;;  %v1607_v9 = vrot.slane %v8601_v18, 3  ;;  %2353 = vmatpush.msrb.mxu1 %v6557_v29  ;;  %v1611_v29 = vrot.slane %v8650_v57, 3 }
 0x273   :  { %6424 = vmatmul.msk.f32.gmra.mxu0 %vm320_vm1, %v1097_v22  ;;  %6460 = vmatmul.msk.f32.gmra.mxu1 %vm320_vm1, %v1091_v13 }
 0x274   :  { %6508 = vmatmul.msk.f32.gmra.mxu2 %vm320_vm1, %v1606_v54  ;;  %6546 = vmatmul.msk.f32.gmra.mxu3 %vm320_vm1, %v1604_v4  ;;  %v1608_v13 = vsel %vm1535_vm3, %v1605_v48, %v1607_v9  ;;  %v8667_v4 = vld [vmem:[%s12280_s2 + $0x138] sm:$0xff] }
 0x275   :  { %12357 = vst [vmem:[#allocation82_spill] sm:$0xff] %v8667_v4  ;;  %2354 = vmatpush.msrb.mxu1 %v6555_v60  ;;  %v7171_v60 = vld [vmem:[%s12280_s2 + $0x8] sm:$0xff] }
 0x278   :  { %v8654_v1 = vpop.f32.mrf.mxu0  ;;  %v8656_v3 = vpop.f32.mrf.mxu1 }
 0x279   :  { %12355 = vst [vmem:[#allocation80_spill] sm:$0xff] %v8654_v1  ;;  %v1100_v1 = vrot.slane %v8667_v4, 2 }
 0x27a   :  { %12356 = vst [vmem:[#allocation81_spill] sm:$0xff] %v8656_v3  ;;  %v1609_v3 = vrot.slane %v8633_v62, 3  ;;  %v6553_v62 = vld [vmem:[%s12279_s30 + $0x108] sm:$0xff] }
 0x27b   :  { %6425 = vmatmul.msk.f32.gmra.mxu0 %vm320_vm1, %v1099_v45  ;;  %6461 = vmatmul.msk.f32.gmra.mxu1 %vm320_vm1, %v1093_v8 }
 0x27c   :  { %6509 = vmatmul.msk.f32.gmra.mxu2 %vm320_vm1, %v1608_v13  ;;  %6547 = vmatmul.msk.f32.gmra.mxu3 %vm320_vm1, %v1606_v54  ;;  %v1101_v54 = vsel %vm1022_vm2, %v1098_v34, %v1100_v1  ;;  %v1610_v18 = vsel %vm1535_vm3, %v1607_v9, %v1609_v3  ;;  %v7170_v34 = vld [vmem:[%s12280_s2] sm:$0xff]  ;;  %v2050_v9 = vrot.slane %v7171_v60, 4  ;;  %v1613_v60 = vrot.slane %v8667_v4, 3 }
 0x27d   :  { %v2049_v1 = vrot.slane %v7170_v34, 4  ;;  %2355 = vmatpush.msrb.mxu1 %v6553_v62  ;;  %v7172_v62 = vld [vmem:[%s12280_s2 + $0x10] sm:$0xff] }
 0x27e   :  { %v2052_v34 = vrot.slane %v7172_v62, 4 }
 0x280   :  { %v8674_v48 = vpop.f32.mrf.mxu0  ;;  %v8676_v8 = vpop.f32.mrf.mxu1 }
 0x281   :  { %12358 = vst [vmem:[#allocation83_spill] sm:$0xff] %v8674_v48  ;;  %v1612_v48 = vsel %vm1535_vm3, %v1609_v3, %v1611_v29  ;;  %v2053_v3 = vsel %vm2048_vm4, %v2050_v9, %v2052_v34 }
 0x282   :  { %12359 = vst [vmem:[#allocation84_spill] sm:$0xff] %v8676_v8 }
 0x283   :  { %6426 = vmatmul.msk.f32.gmra.mxu0 %vm320_vm1, %v1101_v54  ;;  %6462 = vmatmul.msk.f32.gmra.mxu1 %vm320_vm1, %v1095_v25 }
 0x284   :  { %6510 = vmatmul.msk.f32.gmra.mxu2 %vm320_vm1, %v1610_v18  ;;  %6548 = vmatmul.msk.f32.gmra.mxu3 %vm320_vm1, %v1608_v13  ;;  %v2051_v13 = vsel %vm2048_vm4, %v2049_v1, %v2050_v9 }
 0x288   :  { %v8697_v8 = vpop.f32.mrf.mxu0  ;;  %v8699_v25 = vpop.f32.mrf.mxu1 }
 0x289   :  { %12360 = vst [vmem:[#allocation85_spill] sm:$0xff] %v8697_v8 }
 0x28a   :  { %12361 = vst [vmem:[#allocation86_spill] sm:$0xff] %v8699_v25 }
 0x28b   :  { %6463 = vmatmul.msk.f32.gmra.mxu1 %vm320_vm1, %v1097_v22  ;;  %6560 = vmatmul.msk.f32.vlgmr.msra.gmra.mxu0 %vm320_vm1, %v2051_v13  ;;  %v1614_v22 = vsel %vm1535_vm3, %v1611_v29, %v1613_v60 }
 0x28c   :  { %6511 = vmatmul.msk.f32.gmra.mxu2 %vm320_vm1, %v1612_v48  ;;  %6549 = vmatmul.msk.f32.gmra.mxu3 %vm320_vm1, %v1610_v18  ;;  %v7173_v18 = vld [vmem:[%s12280_s2 + $0x18] sm:$0xff] }
 0x28d   :  { %v2054_v62 = vrot.slane %v7173_v18, 4 }
 0x28f   :  { %v2055_v9 = vsel %vm2048_vm4, %v2052_v34, %v2054_v62 }
 0x290   :  { %v8711_v25 = vpop.f32.mrf.mxu0  ;;  %v8713_v1 = vpop.f32.mrf.mxu1 }
 0x291   :  { %12362 = vst [vmem:[#allocation87_spill] sm:$0xff] %v8711_v25 }
 0x292   :  { %12363 = vst [vmem:[#allocation88_spill] sm:$0xff] %v8713_v1 }
 0x293   :  { %6464 = vmatmul.msk.f32.gmra.mxu1 %vm320_vm1, %v1099_v45  ;;  %6561 = vmatmul.msk.f32.gmra.mxu0 %vm320_vm1, %v2053_v3  ;;  %v7174_v45 = vld [vmem:[%s12280_s2 + $0x20] sm:$0xff] }
 0x294   :  { %6512 = vmatmul.msk.f32.gmra.mxu2 %vm320_vm1, %v1614_v22  ;;  %6550 = vmatmul.msk.f32.gmra.mxu3 %vm320_vm1, %v1612_v48  ;;  %v2056_v48 = vrot.slane %v7174_v45, 4 }
 0x296   :  { %v2057_v18 = vsel %vm2048_vm4, %v2054_v62, %v2056_v48 }
 0x298   :  { %v8724_v25 = vpop.f32.mrf.mxu0  ;;  %v8726_v1 = vpop.f32.mrf.mxu1 }
 0x299   :  { %12364 = vst [vmem:[#allocation89_spill] sm:$0xff] %v8724_v25 }
 0x29a   :  { %12365 = vst [vmem:[#allocation90_spill] sm:$0xff] %v8726_v1  ;;  %v8740_v1 = vpop.f32.mrf.mxu2 }
 0x29b   :  { %6465 = vmatmul.msk.f32.gmra.mxu1 %vm320_vm1, %v1101_v54  ;;  %6562 = vmatmul.msk.f32.gmra.mxu0 %vm320_vm1, %v2055_v9  ;;  %v7175_v54 = vld [vmem:[%s12280_s2 + $0x28] sm:$0xff] }
 0x29c   :  { %6551 = vmatmul.msk.f32.gmra.mxu3 %vm320_vm1, %v1614_v22  ;;  %v2058_v34 = vrot.slane %v7175_v54, 4 }
 0x2a0   :  { %v8735_v29 = vpop.f32.mrf.mxu0  ;;  %v8737_v60 = vpop.f32.mrf.mxu1 }
 0x2a1   :  { %12366 = vst [vmem:[#allocation91_spill] sm:$0xff] %v8735_v29  ;;  %v2059_v29 = vsel %vm2048_vm4, %v2056_v48, %v2058_v34  ;;  %v7177_v48 = vld [vmem:[%s12280_s2 + $0x38] sm:$0xff] }
 0x2a2   :  { %12367 = vst [vmem:[#allocation92_spill] sm:$0xff] %v8737_v60  ;;  %v8752_v60 = vpop.f32.mrf.mxu2 }
 0x2a3   :  { %6563 = vmatmul.msk.f32.gmra.mxu0 %vm320_vm1, %v2057_v18  ;;  %6599 = vmatmul.msk.f32.vlgmr.msrb.gmra.mxu1 %vm320_vm1, %v2051_v13  ;;  %v7176_v13 = vld [vmem:[%s12280_s2 + $0x30] sm:$0xff] }
 0x2a4   :  { %v2060_v62 = vrot.slane %v7176_v13, 4 }
 0x2a8   :  { %v8747_v22 = vpop.f32.mrf.mxu0  ;;  %v8749_v45 = vpop.f32.mrf.mxu1 }
 0x2a9   :  { %12368 = vst [vmem:[#allocation93_spill] sm:$0xff] %v8747_v22  ;;  %v2061_v22 = vsel %vm2048_vm4, %v2058_v34, %v2060_v62 }
 0x2aa   :  { %12369 = vst [vmem:[#allocation94_spill] sm:$0xff] %v8749_v45  ;;  %v8769_v45 = vpop.f32.mrf.mxu2 }
 0x2ab   :  { %6564 = vmatmul.msk.f32.gmra.mxu0 %vm320_vm1, %v2059_v29  ;;  %6600 = vmatmul.msk.f32.gmra.mxu1 %vm320_vm1, %v2053_v3  ;;  %v2062_v3 = vrot.slane %v7177_v48, 4 }
 0x2b0   :  { %v8759_v25 = vpop.f32.mrf.mxu0  ;;  %v8761_v54 = vpop.f32.mrf.mxu1 }
 0x2b1   :  { %12370 = vst [vmem:[#allocation95_spill] sm:$0xff] %v8759_v25  ;;  %v2063_v25 = vsel %vm2048_vm4, %v2060_v62, %v2062_v3 }
 0x2b2   :  { %12371 = vst [vmem:[#allocation96_spill] sm:$0xff] %v8761_v54  ;;  %v8776_v54 = vpop.f32.mrf.mxu3  ;;  %v8783_v48 = vpop.f32.mrf.mxu2 }
 0x2b3   :  { %6565 = vmatmul.msk.f32.gmra.mxu0 %vm320_vm1, %v2061_v22  ;;  %6601 = vmatmul.msk.f32.gmra.mxu1 %vm320_vm1, %v2055_v9  ;;  %v7178_v9 = vld [vmem:[%s12280_s2 + $0x40] sm:$0xff]  ;;  %12374 = vst [vmem:[#allocation99_spill] sm:$0xff] %v8783_v48 }
 0x2b4   :  { %v2064_v34 = vrot.slane %v7178_v9, 4 }
 0x2b8   :  { %v8771_v8 = vpop.f32.mrf.mxu0  ;;  %v8773_v13 = vpop.f32.mrf.mxu1 }
 0x2b9   :  { %12372 = vst [vmem:[#allocation97_spill] sm:$0xff] %v8771_v8 }
 0x2ba   :  { %12373 = vst [vmem:[#allocation98_spill] sm:$0xff] %v8773_v13  ;;  %v2065_v13 = vsel %vm2048_vm4, %v2062_v3, %v2064_v34  ;;  %v8790_v62 = vpop.f32.mrf.mxu3  ;;  %v7180_v3 = vld [vmem:[%s12280_s2 + $0x50] sm:$0xff] }
 0x2bb   :  { %6566 = vmatmul.msk.f32.gmra.mxu0 %vm320_vm1, %v2063_v25  ;;  %6602 = vmatmul.msk.f32.gmra.mxu1 %vm320_vm1, %v2057_v18  ;;  %12377 = vst [vmem:[#allocation102_spill] sm:$0xff] %v8790_v62  ;;  %v7179_v18 = vld [vmem:[%s12280_s2 + $0x48] sm:$0xff] }
 0x2bc   :  { %v2066_v57 = vrot.slane %v7179_v18, 4  ;;  %v2068_v18 = vrot.slane %v7180_v3, 4  ;;  %v2565_v62 = vld [vmem:[%s12381_s10 + $0x68] sm:$0xff] }
 0x2c0   :  { %v8785_v4 = vpop.f32.mrf.mxu0  ;;  %v8787_v8 = vpop.f32.mrf.mxu1 }
 0x2c1   :  { %12375 = vst [vmem:[#allocation100_spill] sm:$0xff] %v8785_v4  ;;  %v2067_v4 = vsel %vm2048_vm4, %v2064_v34, %v2066_v57  ;;  %v2566_v34 = vld [vmem:[%s12381_s10 + $0x70] sm:$0xff] }
 0x2c2   :  { %12376 = vst [vmem:[#allocation101_spill] sm:$0xff] %v8787_v8  ;;  %v8802_v8 = vpop.f32.mrf.mxu2 }
 0x2c3   :  { %6567 = vmatmul.msk.f32.gmra.mxu0 %vm320_vm1, %v2065_v13  ;;  %6603 = vmatmul.msk.f32.gmra.mxu1 %vm320_vm1, %v2059_v29  ;;  %12380 = vst [vmem:[#allocation105_spill] sm:$0xff] %v8802_v8  ;;  %v2567_v29 = vld [vmem:[%s12381_s10 + $0x78] sm:$0xff]  ;;  %v2069_v8 = vsel %vm2048_vm4, %v2066_v57, %v2068_v18  ;;  %v2070_v57 = vrot.slane %v8175_v59, 4  ;;  %v2560_v59 = vld [vmem:[%s12381_s10 + $0x40] sm:$0xff] }
 0x2c4   :  { %2691 = vmatpush.msra.mxu2 %v2567_v29  ;;  %v2564_v29 = vld [vmem:[%s12381_s10 + $0x60] sm:$0xff] }
 0x2c6   :  { %2692 = vmatpush.msra.mxu2 %v2566_v34  ;;  %v2563_v34 = vld [vmem:[%s12381_s10 + $0x58] sm:$0xff] }
 0x2c8   :  { %v8797_v9 = vpop.f32.mrf.mxu0  ;;  %v8799_v48 = vpop.f32.mrf.mxu1  ;;  %2693 = vmatpush.msra.mxu2 %v2565_v62  ;;  %v2562_v62 = vld [vmem:[%s12381_s10 + $0x50] sm:$0xff] }
 0x2c9   :  { %12378 = vst [vmem:[#allocation103_spill] sm:$0xff] %v8797_v9  ;;  %v8812_v9 = vpop.f32.mrf.mxu3 }
 0x2ca   :  { %12379 = vst [vmem:[#allocation104_spill] sm:$0xff] %v8799_v48  ;;  %v8828_v3 = vpop.f32.mrf.mxu2  ;;  %2694 = vmatpush.msra.mxu2 %v2564_v29  ;;  %v2559_v29 = vld [vmem:[%s12381_s10 + $0x38] sm:$0xff] }
 0x2cb   :  { %6568 = vmatmul.msk.f32.gmra.mxu0 %vm320_vm1, %v2067_v4  ;;  %6604 = vmatmul.msk.f32.gmra.mxu1 %vm320_vm1, %v2061_v22  ;;  %12382 = vst [vmem:[#allocation106_spill] sm:$0xff] %v8812_v9  ;;  %v2561_v9 = vld [vmem:[%s12381_s10 + $0x48] sm:$0xff] }
 0x2cc   :  { %12385 = vst [vmem:[#allocation109_spill] sm:$0xff] %v8828_v3  ;;  %2695 = vmatpush.msra.mxu2 %v2563_v34 }
 0x2ce   :  { %2696 = vmatpush.msra.mxu2 %v2562_v62  ;;  %v2558_v62 = vld [vmem:[%s12381_s10 + $0x30] sm:$0xff] }
 0x2d0   :  { %v8817_v48 = vpop.f32.mrf.mxu0  ;;  %v8819_v22 = vpop.f32.mrf.mxu1  ;;  %2697 = vmatpush.msra.mxu2 %v2561_v9 }
 0x2d1   :  { %12383 = vst [vmem:[#allocation107_spill] sm:$0xff] %v8817_v48 }
 0x2d2   :  { %12384 = vst [vmem:[#allocation108_spill] sm:$0xff] %v8819_v22  ;;  %v8839_v22 = vpop.f32.mrf.mxu3  ;;  %2698 = vmatpush.msra.mxu2 %v2560_v59  ;;  %v8858_v34 = vpop.f32.mrf.mxu2  ;;  %v2556_v59 = vld [vmem:[%s12381_s10 + $0x20] sm:$0xff] }
 0x2d3   :  { %6569 = vmatmul.msk.f32.gmra.mxu0 %vm320_vm1, %v2069_v8  ;;  %6605 = vmatmul.msk.f32.gmra.mxu1 %vm320_vm1, %v2063_v25  ;;  %v2071_v25 = vsel %vm2048_vm4, %v2068_v18, %v2070_v57  ;;  %v2072_v18 = vrot.slane %v8192_v44, 4 }
 0x2d4   :  { %2699 = vmatpush.msra.mxu2 %v2559_v29  ;;  %v2074_v29 = vrot.slane %v8211_v55, 4  ;;  %v2552_v55 = vld [vmem:[%s12381_s10] sm:$0xff] }
 0x2d6   :  { %2700 = vmatpush.msra.mxu2 %v2558_v62  ;;  %v2554_v62 = vld [vmem:[%s12381_s10 + $0x10] sm:$0xff] }
 0x2d8   :  { %v8841_v48 = vpop.f32.mrf.mxu0  ;;  %v8843_v3 = vpop.f32.mrf.mxu1 }
 0x2d9   :  { %12386 = vst [vmem:[#allocation110_spill] sm:$0xff] %v8841_v48  ;;  %v2557_v48 = vld [vmem:[%s12381_s10 + $0x28] sm:$0xff] }
 0x2da   :  { %12387 = vst [vmem:[#allocation111_spill] sm:$0xff] %v8843_v3  ;;  %v8871_v44 = vpop.f32.mrf.mxu3  ;;  %2701 = vmatpush.msra.mxu2 %v2557_v48 }
 0x2db   :  { %6570 = vmatmul.msk.f32.gmra.mxu0 %vm320_vm1, %v2071_v25  ;;  %6606 = vmatmul.msk.f32.gmra.mxu1 %vm320_vm1, %v2065_v13  ;;  %v2073_v13 = vsel %vm2048_vm4, %v2070_v57, %v2072_v18  ;;  %12390 = vst [vmem:[#allocation114_spill] sm:$0xff] %v8871_v44  ;;  %v2555_v57 = vld [vmem:[%s12381_s10 + $0x18] sm:$0xff]  ;;  %v2553_v44 = vld [vmem:[%s12381_s10 + $0x8] sm:$0xff] }
 0x2dc   :  { %2702 = vmatpush.msra.mxu2 %v2556_v59 }
 0x2de   :  { %2703 = vmatpush.msra.mxu2 %v2555_v57  ;;  %v2076_v57 = vrot.slane %v8230_v36, 4 }
 0x2e0   :  { %v8863_v3 = vpop.f32.mrf.mxu0  ;;  %v8865_v9 = vpop.f32.mrf.mxu1  ;;  %2704 = vmatpush.msra.mxu2 %v2554_v62 }
 0x2e1   :  { %12388 = vst [vmem:[#allocation112_spill] sm:$0xff] %v8863_v3 }
 0x2e2   :  { %12389 = vst [vmem:[#allocation113_spill] sm:$0xff] %v8865_v9  ;;  %v8885_v9 = vpop.f32.mrf.mxu2  ;;  %2705 = vmatpush.msra.mxu2 %v2553_v44  ;;  %v8898_v59 = vpop.f32.mrf.mxu3  ;;  %v7181_v44 = vld [vmem:[%s12280_s2 + $0x78] sm:$0xff] }
 0x2e3   :  { %6571 = vmatmul.msk.f32.gmra.mxu0 %vm320_vm1, %v2073_v13  ;;  %6607 = vmatmul.msk.f32.gmra.mxu1 %vm320_vm1, %v2067_v4  ;;  %v2075_v4 = vsel %vm2048_vm4, %v2072_v18, %v2074_v29  ;;  %12393 = vst [vmem:[#allocation117_spill] sm:$0xff] %v8898_v59 }
 0x2e4   :  { %2706 = vmatpush.msra.mxu2 %v2552_v55 }
 0x2e8   :  { %v8887_v3 = vpop.f32.mrf.mxu0  ;;  %v8889_v48 = vpop.f32.mrf.mxu1 }
 0x2e9   :  { %12391 = vst [vmem:[#allocation115_spill] sm:$0xff] %v8887_v3 }
 0x2ea   :  { %12392 = vst [vmem:[#allocation116_spill] sm:$0xff] %v8889_v48  ;;  %v2077_v48 = vsel %vm2048_vm4, %v2074_v29, %v2076_v57  ;;  %v8908_v3 = vpop.f32.mrf.mxu2  ;;  %v8915_v59 = vpop.f32.mrf.mxu3  ;;  %v2572_v29 = vld [vmem:[%s12381_s10 + $0xa0] sm:$0xff] }
 0x2eb   :  { %6572 = vmatmul.msk.f32.gmra.mxu0 %vm320_vm1, %v2075_v4  ;;  %6608 = vmatmul.msk.f32.gmra.mxu1 %vm320_vm1, %v2069_v8  ;;  %12396 = vst [vmem:[#allocation120_spill] sm:$0xff] %v8908_v3  ;;  %v2078_v8 = vrot.slane %v7181_v44, 4 }
 0x2ec   :  { %12397 = vst [vmem:[#allocation121_spill] sm:$0xff] %v8915_v59  ;;  %2836 = vmatpush.msrb.mxu3 %v2572_v29  ;;  %v2570_v29 = vld [vmem:[%s12381_s10 + $0x90] sm:$0xff] }
 0x2f0   :  { %v8903_v18 = vpop.f32.mrf.mxu0  ;;  %v8905_v62 = vpop.f32.mrf.mxu1 }
 0x2f1   :  { %12394 = vst [vmem:[#allocation118_spill] sm:$0xff] %v8903_v18 }
 0x2f2   :  { %12395 = vst [vmem:[#allocation119_spill] sm:$0xff] %v8905_v62  ;;  %v2079_v62 = vsel %vm2048_vm4, %v2076_v57, %v2078_v8  ;;  %v8925_v18 = vpop.f32.mrf.mxu2  ;;  %v2571_v57 = vld [vmem:[%s12381_s10 + $0x98] sm:$0xff] }
 0x2f3   :  { %6573 = vmatmul.msk.f32.gmra.mxu0 %vm320_vm1, %v2077_v48  ;;  %6609 = vmatmul.msk.f32.gmra.mxu1 %vm320_vm1, %v2071_v25  ;;  %12400 = vst [vmem:[#allocation124_spill] sm:$0xff] %v8925_v18  ;;  %v7182_v25 = vld [vmem:[%s12280_s2 + $0x80] sm:$0xff] }
 0x2f4   :  { %v2080_v44 = vrot.slane %v7182_v25, 4  ;;  %2837 = vmatpush.msrb.mxu3 %v2571_v57  ;;  %v2569_v25 = vld [vmem:[%s12381_s10 + $0x88] sm:$0xff]  ;;  %v2568_v57 = vld [vmem:[%s12381_s10 + $0x80] sm:$0xff] }
 0x2f6   :  { %2838 = vmatpush.msrb.mxu3 %v2570_v29  ;;  %v2081_v18 = vsel %vm2048_vm4, %v2078_v8, %v2080_v44  ;;  %v7183_v29 = vld [vmem:[%s12280_s2 + $0x88] sm:$0xff] }
 0x2f8   :  { %v8917_v36 = vpop.f32.mrf.mxu0  ;;  %v8919_v55 = vpop.f32.mrf.mxu1  ;;  %2839 = vmatpush.msrb.mxu3 %v2569_v25 }
 0x2f9   :  { %12398 = vst [vmem:[#allocation122_spill] sm:$0xff] %v8917_v36 }
 0x2fa   :  { %12399 = vst [vmem:[#allocation123_spill] sm:$0xff] %v8919_v55  ;;  %v8938_v55 = vpop.f32.mrf.mxu3  ;;  %2840 = vmatpush.msrb.mxu3 %v2568_v57  ;;  %v8956_v8 = vpop.f32.mrf.mxu2 }
 0x2fb   :  { %6574 = vmatmul.msk.f32.gmra.mxu0 %vm320_vm1, %v2079_v62  ;;  %6610 = vmatmul.msk.f32.gmra.mxu1 %vm320_vm1, %v2073_v13  ;;  %12401 = vst [vmem:[#allocation125_spill] sm:$0xff] %v8938_v55 }
 0x300   :  { %v8940_v36 = vpop.f32.mrf.mxu0  ;;  %v8942_v13 = vpop.f32.mrf.mxu1 }
 0x301   :  { %12402 = vst [vmem:[#allocation126_spill] sm:$0xff] %v8940_v36 }
 0x302   :  { %12403 = vst [vmem:[#allocation127_spill] sm:$0xff] %v8942_v13  ;;  %v2082_v13 = vrot.slane %v7183_v29, 4  ;;  %v8961_v59 = vpop.f32.mrf.mxu3  ;;  %v8970_v57 = vpop.f32.mrf.mxu2 }
 0x303   :  { %6575 = vmatmul.msk.f32.gmra.mxu0 %vm320_vm1, %v2081_v18  ;;  %6611 = vmatmul.msk.f32.gmra.mxu1 %vm320_vm1, %v2075_v4  ;;  %12405 = vst [vmem:[#allocation129_spill] sm:$0xff] %v8961_v59  ;;  %v2084_v4 = vrot.slane %v8259_v5, 4  ;;  %v2086_v5 = vrot.slane %v8275_v49, 4 }
 0x304   :  { %v2083_v25 = vsel %vm2048_vm4, %v2080_v44, %v2082_v13  ;;  %12406 = vst [vmem:[#allocation130_spill] sm:$0xff] %v8970_v57 }
 0x305   :  { %v2085_v44 = vsel %vm2048_vm4, %v2082_v13, %v2084_v4 }
 0x308   :  { %v8958_v36 = vpop.f32.mrf.mxu1  ;;  %v2223_v55 = vpop.f32.mrf.mxu0 }
 0x309   :  { %12404 = vst [vmem:[#allocation128_spill] sm:$0xff] %v8958_v36  ;;  %v8964_v3 = vadd.f32 %v2223_v55, %v8298_v20 }
 0x30a   :  { %v8978_v20 = vpop.f32.mrf.mxu3  ;;  %v8987_v57 = vpop.f32.mrf.mxu2 }
 0x30b   :  { %6576 = vmatmul.msk.f32.gmra.mxu0 %vm320_vm1, %v2083_v25  ;;  %6612 = vmatmul.msk.f32.gmra.mxu1 %vm320_vm1, %v2077_v48 }
 0x30c   :  { %2707 = vmatmul.f32.vlgmr.msra.gmra.mxu2 %v8964_v3 }
 0x310   :  { %v8972_v29 = vpop.f32.mrf.mxu1  ;;  %v2226_v36 = vpop.f32.mrf.mxu0 }
 0x311   :  { %12407 = vst [vmem:[#allocation131_spill] sm:$0xff] %v8972_v29  ;;  %v8976_v59 = vadd.f32 %v2226_v36, %v8315_v38  ;;  %v2087_v29 = vsel %vm2048_vm4, %v2084_v4, %v2086_v5 }
 0x312   :  { %v8996_v36 = vpop.f32.mrf.mxu3 }
 0x313   :  { %6577 = vmatmul.msk.f32.gmra.mxu0 %vm320_vm1, %v2085_v44  ;;  %6613 = vmatmul.msk.f32.gmra.mxu1 %vm320_vm1, %v2079_v62  ;;  %v2088_v62 = vrot.slane %v8291_v10, 4  ;;  %v2090_v10 = vrot.slane %v8309_v27, 4  ;;  %v2092_v27 = vrot.slane %v8328_v37, 4  ;;  %v2094_v37 = vrot.slane %v8347_v51, 4 }
 0x314   :  { %2710 = vmatmul.f32.gmra.mxu2 %v8976_v59  ;;  %v2096_v51 = vrot.slane %v8366_v0, 4  ;;  %v2098_v0 = vrot.slane %v8385_v15, 4  ;;  %v2100_v15 = vrot.slane %v8404_v30, 4  ;;  %v2102_v30 = vrot.slane %v8423_v46, 4 }
 0x315   :  { %v2104_v46 = vrot.slane %v8442_v63, 4  ;;  %v2106_v63 = vrot.slane %v8461_v21, 4  ;;  %v2108_v21 = vrot.slane %v8480_v42, 4  ;;  %v2110_v42 = vrot.slane %v8499_v61, 4 }
 0x316   :  { %v2112_v61 = vrot.slane %v8518_v28, 4  ;;  %v2114_v28 = vrot.slane %v8539_v58, 4 }
 0x318   :  { %v8984_v48 = vpop.f32.mrf.mxu1  ;;  %v2229_v55 = vpop.f32.mrf.mxu0  ;;  %v9224_v58 = vsel %vm2048_vm4, %v2112_v61, %v2114_v28 }
 0x319   :  { %12408 = vst [vmem:[#allocation132_spill] sm:$0xff] %v8984_v48  ;;  %v8990_v38 = vadd.f32 %v2229_v55, %v8334_v35  ;;  %v2089_v48 = vsel %vm2048_vm4, %v2086_v5, %v2088_v62  ;;  %v9005_v55 = vpop.f32.mrf.mxu2 }
 0x31b   :  { %6578 = vmatmul.msk.f32.gmra.mxu0 %vm320_vm1, %v2087_v29  ;;  %6614 = vmatmul.msk.f32.gmra.mxu1 %vm320_vm1, %v2081_v18  ;;  %v9013_v18 = vpop.f32.mrf.mxu3 }
 0x31c   :  { %2713 = vmatmul.f32.gmra.mxu2 %v8990_v38  ;;  %12409 = vst [vmem:[#allocation133_spill] sm:$0xff] %v9013_v18 }
 0x320   :  { %v2232_v49 = vpop.f32.mrf.mxu0  ;;  %v2357_v13 = vpop.f32.mrf.mxu1 }
 0x321   :  { %v9000_v4 = vadd.f32 %v2232_v49, %v8353_v56  ;;  %v9003_v35 = vadd.f32 %v2357_v13, %v8317_v12  ;;  %v2091_v12 = vsel %vm2048_vm4, %v2088_v62, %v2090_v10 }
 0x323   :  { %6579 = vmatmul.msk.f32.gmra.mxu0 %vm320_vm1, %v2089_v48  ;;  %6615 = vmatmul.msk.f32.gmra.mxu1 %vm320_vm1, %v2083_v25  ;;  %v9028_v25 = vpop.f32.mrf.mxu2 }
 0x324   :  { %2716 = vmatmul.f32.gmra.mxu2 %v9000_v4  ;;  %6638 = vmatmul.msk.f32.vlgmr.msrb.gmra.mxu3 %vm2573_vm5, %v9003_v35 }
 0x328   :  { %v2235_v56 = vpop.f32.mrf.mxu0  ;;  %v2360_v5 = vpop.f32.mrf.mxu1 }
 0x329   :  { %v9017_v49 = vadd.f32 %v2235_v56, %v8372_v26  ;;  %v9020_v13 = vadd.f32 %v2360_v5, %v8336_v53  ;;  %v2093_v26 = vsel %vm2048_vm4, %v2090_v10, %v2092_v27  ;;  %v9031_v56 = vpop.f32.mrf.mxu3 }
 0x32a   :  { %12410 = vst [vmem:[#allocation134_spill] sm:$0xff] %v9031_v56 }
 0x32b   :  { %6580 = vmatmul.msk.f32.gmra.mxu0 %vm320_vm1, %v2091_v12  ;;  %6616 = vmatmul.msk.f32.gmra.mxu1 %vm320_vm1, %v2085_v44  ;;  %v9045_v10 = vpop.f32.mrf.mxu2 }
 0x32c   :  { %2719 = vmatmul.f32.gmra.mxu2 %v9017_v49  ;;  %6639 = vmatmul.msk.f32.gmra.mxu3 %vm2573_vm5, %v9020_v13 }
 0x330   :  { %v2238_v62 = vpop.f32.mrf.mxu0  ;;  %v2363_v18 = vpop.f32.mrf.mxu1 }
 0x331   :  { %v9034_v53 = vadd.f32 %v2238_v62, %v8391_v14  ;;  %v9037_v44 = vadd.f32 %v2363_v18, %v8355_v41  ;;  %v2095_v14 = vsel %vm2048_vm4, %v2092_v27, %v2094_v37 }
 0x333   :  { %6581 = vmatmul.msk.f32.gmra.mxu0 %vm320_vm1, %v2093_v26  ;;  %6617 = vmatmul.msk.f32.gmra.mxu1 %vm320_vm1, %v2087_v29  ;;  %v9054_v29 = vpop.f32.mrf.mxu3 }
 0x334   :  { %2722 = vmatmul.f32.gmra.mxu2 %v9034_v53  ;;  %6640 = vmatmul.msk.f32.gmra.mxu3 %vm2573_vm5, %v9037_v44 }
 0x338   :  { %v2241_v5 = vpop.f32.mrf.mxu0  ;;  %v2366_v56 = vpop.f32.mrf.mxu1 }
 0x339   :  { %v9049_v41 = vadd.f32 %v2241_v5, %v8410_v47  ;;  %v9052_v18 = vadd.f32 %v2366_v56, %v8374_v32  ;;  %v2097_v47 = vsel %vm2048_vm4, %v2094_v37, %v2096_v51  ;;  %v9063_v5 = vpop.f32.mrf.mxu2 }
 0x33a   :  { %12411 = vst [vmem:[#allocation135_spill] sm:$0xff] %v9063_v5 }
 0x33b   :  { %6582 = vmatmul.msk.f32.gmra.mxu0 %vm320_vm1, %v2095_v14  ;;  %6618 = vmatmul.msk.f32.gmra.mxu1 %vm320_vm1, %v2089_v48  ;;  %v9077_v48 = vpop.f32.mrf.mxu3 }
 0x33c   :  { %2725 = vmatmul.f32.gmra.mxu2 %v9049_v41  ;;  %6641 = vmatmul.msk.f32.gmra.mxu3 %vm2573_vm5, %v9052_v18 }
 0x340   :  { %v2244_v27 = vpop.f32.mrf.mxu0  ;;  %v2369_v62 = vpop.f32.mrf.mxu1 }
 0x341   :  { %v9066_v32 = vadd.f32 %v2244_v27, %v8429_v7  ;;  %v9069_v56 = vadd.f32 %v2369_v62, %v8393_v6  ;;  %v2099_v7 = vsel %vm2048_vm4, %v2096_v51, %v2098_v0 }
 0x343   :  { %6583 = vmatmul.msk.f32.gmra.mxu0 %vm320_vm1, %v2097_v47  ;;  %6619 = vmatmul.msk.f32.gmra.mxu1 %vm320_vm1, %v2091_v12  ;;  %v9086_v12 = vpop.f32.mrf.mxu2  ;;  %v9094_v51 = vpop.f32.mrf.mxu3 }
 0x344   :  { %2728 = vmatmul.f32.gmra.mxu2 %v9066_v32  ;;  %6642 = vmatmul.msk.f32.gmra.mxu3 %vm2573_vm5, %v9069_v56  ;;  %12412 = vst [vmem:[#allocation136_spill] sm:$0xff] %v9094_v51 }
 0x348   :  { %v2247_v37 = vpop.f32.mrf.mxu0  ;;  %v2372_v5 = vpop.f32.mrf.mxu1 }
 0x349   :  { %v9081_v6 = vadd.f32 %v2247_v37, %v8448_v50  ;;  %v9084_v27 = vadd.f32 %v2372_v5, %v8412_v40  ;;  %v2101_v40 = vsel %vm2048_vm4, %v2098_v0, %v2100_v15 }
 0x34b   :  { %6584 = vmatmul.msk.f32.gmra.mxu0 %vm320_vm1, %v2099_v7  ;;  %6620 = vmatmul.msk.f32.gmra.mxu1 %vm320_vm1, %v2093_v26  ;;  %v9109_v26 = vpop.f32.mrf.mxu2 }
 0x34c   :  { %2731 = vmatmul.f32.gmra.mxu2 %v9081_v6  ;;  %6643 = vmatmul.msk.f32.gmra.mxu3 %vm2573_vm5, %v9084_v27  ;;  %12413 = vst [vmem:[#allocation137_spill] sm:$0xff] %v9109_v26 }
 0x350   :  { %v2250_v50 = vpop.f32.mrf.mxu0  ;;  %v2375_v62 = vpop.f32.mrf.mxu1 }
 0x351   :  { %v9098_v5 = vadd.f32 %v2250_v50, %v8467_v11  ;;  %v9101_v37 = vadd.f32 %v2375_v62, %v8431_v17  ;;  %v2103_v11 = vsel %vm2048_vm4, %v2100_v15, %v2102_v30  ;;  %v9112_v50 = vpop.f32.mrf.mxu3  ;;  %v12415_v62 = vld [vmem:[#allocation66_spill] sm:$0xff] }
 0x352   :  { %12414 = vst [vmem:[#allocation138_spill] sm:$0xff] %v9112_v50 }
 0x353   :  { %6585 = vmatmul.msk.f32.gmra.mxu0 %vm320_vm1, %v2101_v40  ;;  %6621 = vmatmul.msk.f32.gmra.mxu1 %vm320_vm1, %v2095_v14  ;;  %v9126_v15 = vpop.f32.mrf.mxu2 }
 0x354   :  { %2734 = vmatmul.f32.gmra.mxu2 %v9098_v5  ;;  %6644 = vmatmul.msk.f32.gmra.mxu3 %vm2573_vm5, %v9101_v37  ;;  %12416 = vst [vmem:[#allocation66_spill] sm:$0xff] %v9126_v15 }
 0x358   :  { %v2253_v0 = vpop.f32.mrf.mxu0  ;;  %v2378_v51 = vpop.f32.mrf.mxu1 }
 0x359   :  { %v9115_v17 = vadd.f32 %v2253_v0, %v8486_v39  ;;  %v9118_v14 = vadd.f32 %v2378_v51, %v12415_v62  ;;  %v2105_v39 = vsel %vm2048_vm4, %v2102_v30, %v2104_v46  ;;  %v12417_v0 = vld [vmem:[#allocation67_spill] sm:$0xff] }
 0x35b   :  { %6586 = vmatmul.msk.f32.gmra.mxu0 %vm320_vm1, %v2103_v11  ;;  %6622 = vmatmul.msk.f32.gmra.mxu1 %vm320_vm1, %v2097_v47  ;;  %v9135_v47 = vpop.f32.mrf.mxu3 }
 0x35c   :  { %2737 = vmatmul.f32.gmra.mxu2 %v9115_v17  ;;  %6645 = vmatmul.msk.f32.gmra.mxu3 %vm2573_vm5, %v9118_v14  ;;  %12418 = vst [vmem:[#allocation67_spill] sm:$0xff] %v9135_v47 }
 0x360   :  { %v2256_v50 = vpop.f32.mrf.mxu0  ;;  %v2381_v26 = vpop.f32.mrf.mxu1 }
 0x361   :  { %v9130_v51 = vadd.f32 %v2256_v50, %v8505_v52  ;;  %v9133_v62 = vadd.f32 %v2381_v26, %v12417_v0  ;;  %v2107_v52 = vsel %vm2048_vm4, %v2104_v46, %v2106_v63  ;;  %v9144_v50 = vpop.f32.mrf.mxu2  ;;  %v12420_v0 = vld [vmem:[#allocation68_spill] sm:$0xff] }
 0x362   :  { %12419 = vst [vmem:[#allocation139_spill] sm:$0xff] %v9144_v50 }
 0x363   :  { %6587 = vmatmul.msk.f32.gmra.mxu0 %vm320_vm1, %v2105_v39  ;;  %6623 = vmatmul.msk.f32.gmra.mxu1 %vm320_vm1, %v2099_v7  ;;  %v9158_v7 = vpop.f32.mrf.mxu3 }
 0x364   :  { %2740 = vmatmul.f32.gmra.mxu2 %v9130_v51  ;;  %6646 = vmatmul.msk.f32.gmra.mxu3 %vm2573_vm5, %v9133_v62  ;;  %12421 = vst [vmem:[#allocation68_spill] sm:$0xff] %v9158_v7 }
 0x368   :  { %v2259_v30 = vpop.f32.mrf.mxu0  ;;  %v2384_v15 = vpop.f32.mrf.mxu1 }
 0x369   :  { %v9147_v26 = vadd.f32 %v2259_v30, %v8524_v2  ;;  %v9150_v47 = vadd.f32 %v2384_v15, %v12420_v0  ;;  %v2109_v2 = vsel %vm2048_vm4, %v2106_v63, %v2108_v21  ;;  %v12423_v30 = vld [vmem:[#allocation69_spill] sm:$0xff] }
 0x36b   :  { %6588 = vmatmul.msk.f32.gmra.mxu0 %vm320_vm1, %v2107_v52  ;;  %6624 = vmatmul.msk.f32.gmra.mxu1 %vm320_vm1, %v2101_v40  ;;  %v9167_v40 = vpop.f32.mrf.mxu2  ;;  %v9175_v63 = vpop.f32.mrf.mxu3 }
 0x36c   :  { %2743 = vmatmul.f32.gmra.mxu2 %v9147_v26  ;;  %6647 = vmatmul.msk.f32.gmra.mxu3 %vm2573_vm5, %v9150_v47  ;;  %12425 = vst [vmem:[#allocation141_spill] sm:$0xff] %v9167_v40  ;;  %v12428_v40 = vld [vmem:[#allocation70_spill] sm:$0xff] }
 0x36d   :  { %12426 = vst [vmem:[#allocation142_spill] sm:$0xff] %v9175_v63  ;;  %v12431_v63 = vld [vmem:[#allocation71_spill] sm:$0xff] }
 0x370   :  { %v2262_v46 = vpop.f32.mrf.mxu0  ;;  %v2387_v50 = vpop.f32.mrf.mxu1 }
 0x371   :  { %v9162_v15 = vadd.f32 %v2262_v46, %v8545_v16  ;;  %v9165_v0 = vadd.f32 %v2387_v50, %v12423_v30  ;;  %v2111_v50 = vsel %vm2048_vm4, %v2108_v21, %v2110_v42 }
 0x373   :  { %12422 = vst [vmem:[#allocation140_spill] sm:$0xff] %v9162_v15  ;;  %6589 = vmatmul.msk.f32.gmra.mxu0 %vm320_vm1, %v2109_v2  ;;  %6625 = vmatmul.msk.f32.gmra.mxu1 %vm320_vm1, %v2103_v11  ;;  %v12430_v11 = vld [vmem:[#allocation17_spill] sm:$0xff] }
 0x374   :  { %12424 = vst [vmem:[#allocation69_spill] sm:$0xff] %v9165_v0  ;;  %2746 = vmatmul.f32.gmra.mxu2 %v9162_v15  ;;  %6648 = vmatmul.msk.f32.gmra.mxu3 %vm2573_vm5, %v9165_v0  ;;  %v1478_v21 = vadd.f32 %v12431_v63, %v12430_v11  ;;  %v9192_v0 = vpop.f32.mrf.mxu2  ;;  %v12433_v15 = vld [vmem:[#allocation72_spill] sm:$0xff]  ;;  %v12437_v63 = vld [vmem:[#allocation73_spill] sm:$0xff] }
 0x375   :  { %v2973_v11 = vld [vmem:[%s12435_s26 + $0x70] sm:$0xff] }
 0x378   :  { %v2265_v16 = vpop.f32.mrf.mxu0  ;;  %v2390_v46 = vpop.f32.mrf.mxu1 }
 0x379   :  { %v9179_v30 = vadd.f32 %v2265_v16, %v8566_v31  ;;  %v9182_v7 = vadd.f32 %v2390_v46, %v12428_v40  ;;  %v1991_v31 = vadd.f32 %v8740_v1, %v1478_v21  ;;  %v9196_v46 = vsel %vm2048_vm4, %v2110_v42, %v2112_v61  ;;  %v2974_v1 = vld [vmem:[%s12435_s26 + $0x78] sm:$0xff]  ;;  %v12436_v42 = vld [vmem:[#allocation19_spill] sm:$0xff] }
 0x37a   :  { %2980 = vmatpush.msrb.mxu0 %v2974_v1  ;;  %v2970_v61 = vld [vmem:[%s12435_s26 + $0x58] sm:$0xff] }
 0x37b   :  { %12427 = vst [vmem:[#allocation143_spill] sm:$0xff] %v9179_v30  ;;  %6590 = vmatmul.msk.f32.gmra.mxu0 %vm320_vm1, %v2111_v50  ;;  %6626 = vmatmul.msk.f32.gmra.mxu1 %vm320_vm1, %v2105_v39  ;;  %v9198_v39 = vpop.f32.mrf.mxu3 }
 0x37c   :  { %12429 = vst [vmem:[#allocation70_spill] sm:$0xff] %v9182_v7  ;;  %2749 = vmatmul.f32.gmra.mxu2 %v9179_v30  ;;  %6649 = vmatmul.msk.f32.gmra.mxu3 %vm2573_vm5, %v9182_v7  ;;  %v9221_v21 = vpop.f32.mrf.mxu2 }
 0x37d   :  { %2981 = vmatpush.msrb.mxu0 %v2973_v11 }
 0x380   :  { %v2268_v40 = vpop.f32.mrf.mxu0  ;;  %v2393_v16 = vpop.f32.mrf.mxu1 }
 0x381   :  { %v9200_v30 = vadd.f32 %v2268_v40, %v1991_v31  ;;  %v9203_v7 = vadd.f32 %v2393_v16, %v12433_v15  ;;  %v1480_v15 = vadd.f32 %v12437_v63, %v12436_v42  ;;  %v2972_v16 = vld [vmem:[%s12435_s26 + $0x68] sm:$0xff] }
 0x382   :  { %2982 = vmatpush.msrb.mxu0 %v2972_v16 }
 0x383   :  { %12432 = vst [vmem:[#allocation17_spill] sm:$0xff] %v9200_v30  ;;  %6591 = vmatmul.msk.f32.gmra.mxu0 %vm320_vm1, %v9196_v46  ;;  %6627 = vmatmul.msk.f32.gmra.mxu1 %vm320_vm1, %v2107_v52  ;;  %v1993_v52 = vadd.f32 %v8752_v60, %v1480_v15  ;;  %v2971_v60 = vld [vmem:[%s12435_s26 + $0x60] sm:$0xff]  ;;  %v9237_v63 = vpop.f32.mrf.mxu3  ;;  %v12441_v15 = vld [vmem:[#allocation21_spill] sm:$0xff] }
 0x384   :  { %12434 = vst [vmem:[#allocation71_spill] sm:$0xff] %v9203_v7  ;;  %2752 = vmatmul.f32.gmra.mxu2 %v9200_v30  ;;  %6650 = vmatmul.msk.f32.gmra.mxu3 %vm2573_vm5, %v9203_v7  ;;  %v1482_v11 = vadd.f32 %v8570_v19, %v12441_v15  ;;  %v2968_v19 = vld [vmem:[%s12435_s26 + $0x48] sm:$0xff] }
 0x385   :  { %12440 = vst [vmem:[#allocation73_spill] sm:$0xff] %v9237_v63  ;;  %2983 = vmatpush.msrb.mxu0 %v2971_v60  ;;  %v12445_v60 = vld [vmem:[#allocation15_spill] sm:$0xff]  ;;  %v12446_v15 = vld [vmem:[#allocation20_spill] sm:$0xff] }
 0x387   :  { %2984 = vmatpush.msrb.mxu0 %v2970_v61 }
 0x388   :  { %v2271_v31 = vpop.f32.mrf.mxu0  ;;  %v2396_v40 = vpop.f32.mrf.mxu1 }
 0x389   :  { %v9229_v42 = vadd.f32 %v2271_v31, %v1993_v52  ;;  %v9232_v1 = vadd.f32 %v2396_v40, %v8568_v43  ;;  %v2116_v43 = vrot.slane %v8560_v24, 4  ;;  %v2969_v52 = vld [vmem:[%s12435_s26 + $0x50] sm:$0xff] }
 0x38a   :  { %2985 = vmatpush.msrb.mxu0 %v2969_v52 }
 0x38b   :  { %12438 = vst [vmem:[#allocation72_spill] sm:$0xff] %v9229_v42  ;;  %6592 = vmatmul.msk.f32.gmra.mxu0 %vm320_vm1, %v9224_v58  ;;  %6628 = vmatmul.msk.f32.gmra.mxu1 %vm320_vm1, %v2109_v2  ;;  %v1995_v2 = vadd.f32 %v8769_v45, %v1482_v11  ;;  %v9258_v24 = vsel %vm2048_vm4, %v2114_v28, %v2116_v43  ;;  %v2118_v45 = vrot.slane %v8581_v23, 4  ;;  %v12444_v28 = vld [vmem:[#allocation23_spill] sm:$0xff]  ;;  %v12447_v11 = vld [vmem:[#allocation16_spill] sm:$0xff] }
 0x38c   :  { %12439 = vst [vmem:[#allocation19_spill] sm:$0xff] %v9232_v1  ;;  %2755 = vmatmul.f32.gmra.mxu2 %v9229_v42  ;;  %6651 = vmatmul.msk.f32.gmra.mxu3 %vm2573_vm5, %v9232_v1  ;;  %v1484_v61 = vadd.f32 %v12445_v60, %v12444_v28  ;;  %v1479_v52 = vadd.f32 %v12447_v11, %v12446_v15  ;;  %v12449_v23 = vld [vmem:[#allocation99_spill] sm:$0xff] }
 0x38d   :  { %2986 = vmatpush.msrb.mxu0 %v2968_v19  ;;  %v9292_v28 = vsel %vm2048_vm4, %v2116_v43, %v2118_v45  ;;  %v2965_v19 = vld [vmem:[%s12435_s26 + $0x30] sm:$0xff]  ;;  %v2979_v43 = vld [vmem:[%s12435_s26 + $0xa0] sm:$0xff] }
 0x38e   :  { %3125 = vmatpush.msra.mxu1 %v2979_v43 }
 0x38f   :  { %v9255_v31 = vpop.f32.mrf.mxu2 }
 0x390   :  { %v2274_v40 = vpop.f32.mrf.mxu0  ;;  %v2399_v16 = vpop.f32.mrf.mxu1 }
 0x391   :  { %v9260_v1 = vadd.f32 %v2274_v40, %v1995_v2  ;;  %v9263_v42 = vadd.f32 %v2399_v16, %v8586_v33  ;;  %v2967_v33 = vld [vmem:[%s12435_s26 + $0x40] sm:$0xff]  ;;  %v9282_v2 = vpop.f32.mrf.mxu3  ;;  %v1992_v40 = vadd.f32 %v8776_v54, %v1479_v52  ;;  %v1997_v16 = vadd.f32 %v12449_v23, %v1484_v61  ;;  %v12452_v54 = vld [vmem:[#allocation18_spill] sm:$0xff] }
 0x392   :  { %12448 = vst [vmem:[#allocation23_spill] sm:$0xff] %v9282_v2  ;;  %2987 = vmatpush.msrb.mxu0 %v2967_v33  ;;  %v12453_v33 = vld [vmem:[#allocation25_spill] sm:$0xff]  ;;  %v12454_v61 = vld [vmem:[#allocation74_spill] sm:$0xff] }
 0x393   :  { %12442 = vst [vmem:[#allocation21_spill] sm:$0xff] %v9260_v1  ;;  %6593 = vmatmul.msk.f32.gmra.mxu0 %vm320_vm1, %v9258_v24  ;;  %6629 = vmatmul.msk.f32.gmra.mxu1 %vm320_vm1, %v2111_v50  ;;  %v2966_v50 = vld [vmem:[%s12435_s26 + $0x38] sm:$0xff]  ;;  %v1486_v11 = vadd.f32 %v12454_v61, %v12453_v33 }
 0x394   :  { %12443 = vst [vmem:[#allocation144_spill] sm:$0xff] %v9263_v42  ;;  %2758 = vmatmul.f32.gmra.mxu2 %v9260_v1  ;;  %6652 = vmatmul.msk.f32.gmra.mxu3 %vm2573_vm5, %v9263_v42  ;;  %v12455_v52 = vld [vmem:[#allocation22_spill] sm:$0xff] }
 0x395   :  { %2988 = vmatpush.msrb.mxu0 %v2966_v50  ;;  %v12457_v23 = vld [vmem:[#allocation102_spill] sm:$0xff] }
 0x397   :  { %v9289_v42 = vpop.f32.mrf.mxu2  ;;  %2989 = vmatpush.msrb.mxu0 %v2965_v19 }
 0x398   :  { %v2277_v1 = vpop.f32.mrf.mxu0  ;;  %v2402_v63 = vpop.f32.mrf.mxu1 }
 0x399   :  { %v9294_v60 = vadd.f32 %v2277_v1, %v1997_v16  ;;  %v9296_v15 = vadd.f32 %v2402_v63, %v1992_v40  ;;  %v2120_v1 = vrot.slane %v12452_v54, 4  ;;  %v2964_v63 = vld [vmem:[%s12435_s26 + $0x28] sm:$0xff]  ;;  %v2963_v40 = vld [vmem:[%s12435_s26 + $0x20] sm:$0xff]  ;;  %v12458_v54 = vld [vmem:[#allocation105_spill] sm:$0xff] }
 0x39a   :  { %2990 = vmatpush.msrb.mxu0 %v2964_v63  ;;  %v12463_v63 = vld [vmem:[#allocation27_spill] sm:$0xff] }
 0x39b   :  { %12450 = vst [vmem:[#allocation15_spill] sm:$0xff] %v9294_v60  ;;  %6594 = vmatmul.msk.f32.gmra.mxu0 %vm320_vm1, %v9292_v28  ;;  %6630 = vmatmul.msk.f32.gmra.mxu1 %vm320_vm1, %v9196_v46  ;;  %v12456_v46 = vld [vmem:[#allocation75_spill] sm:$0xff]  ;;  %v9329_v61 = vsel %vm2048_vm4, %v2118_v45, %v2120_v1 }
 0x39c   :  { %12451 = vst [vmem:[#allocation20_spill] sm:$0xff] %v9296_v15  ;;  %2761 = vmatmul.f32.gmra.mxu2 %v9294_v60  ;;  %6653 = vmatmul.msk.f32.gmra.mxu3 %vm2573_vm5, %v9296_v15  ;;  %v1481_v50 = vadd.f32 %v12456_v46, %v12455_v52  ;;  %v1999_v15 = vadd.f32 %v12458_v54, %v1486_v11  ;;  %v9324_v60 = vpop.f32.mrf.mxu3  ;;  %v2962_v52 = vld [vmem:[%s12435_s26 + $0x18] sm:$0xff]  ;;  %v12464_v11 = vld [vmem:[#allocation77_spill] sm:$0xff] }
 0x39d   :  { %12459 = vst [vmem:[#allocation16_spill] sm:$0xff] %v9324_v60  ;;  %2991 = vmatpush.msrb.mxu0 %v2963_v40  ;;  %v1488_v46 = vadd.f32 %v12464_v11, %v12463_v63  ;;  %v12466_v40 = vld [vmem:[#allocation78_spill] sm:$0xff] }
 0x39e   :  { %v1994_v16 = vadd.f32 %v12457_v23, %v1481_v50  ;;  %v12465_v50 = vld [vmem:[#allocation24_spill] sm:$0xff] }
 0x39f   :  { %v9326_v2 = vpop.f32.mrf.mxu2  ;;  %v1483_v23 = vadd.f32 %v12466_v40, %v12465_v50  ;;  %2992 = vmatpush.msrb.mxu0 %v2962_v52  ;;  %v12475_v40 = vld [vmem:[#allocation81_spill] sm:$0xff] }
 0x3a0   :  { %v2280_v7 = vpop.f32.mrf.mxu0  ;;  %v2405_v33 = vpop.f32.mrf.mxu1 }
 0x3a1   :  { %v9331_v19 = vadd.f32 %v2280_v7, %v1999_v15  ;;  %v9333_v43 = vadd.f32 %v2405_v33, %v1994_v16  ;;  %v12462_v7 = vld [vmem:[#allocation76_spill] sm:$0xff]  ;;  %v2961_v15 = vld [vmem:[%s12435_s26 + $0x10] sm:$0xff]  ;;  %v12467_v16 = vld [vmem:[#allocation106_spill] sm:$0xff] }
 0x3a2   :  { %v2122_v45 = vrot.slane %v12462_v7, 4  ;;  %v1996_v54 = vadd.f32 %v12467_v16, %v1483_v23  ;;  %v12468_v33 = vld [vmem:[#allocation109_spill] sm:$0xff]  ;;  %2993 = vmatpush.msrb.mxu0 %v2961_v15  ;;  %v12474_v15 = vld [vmem:[#allocation26_spill] sm:$0xff] }
 0x3a3   :  { %12460 = vst [vmem:[#allocation99_spill] sm:$0xff] %v9331_v19  ;;  %6595 = vmatmul.msk.f32.gmra.mxu0 %vm320_vm1, %v9329_v61  ;;  %6631 = vmatmul.msk.f32.gmra.mxu1 %vm320_vm1, %v9224_v58  ;;  %v2960_v58 = vld [vmem:[%s12435_s26 + $0x8] sm:$0xff]  ;;  %v1485_v23 = vadd.f32 %v12475_v40, %v12474_v15 }
 0x3a4   :  { %12461 = vst [vmem:[#allocation18_spill] sm:$0xff] %v9333_v43  ;;  %2764 = vmatmul.f32.gmra.mxu2 %v9331_v19  ;;  %6654 = vmatmul.msk.f32.gmra.mxu3 %vm2573_vm5, %v9333_v43  ;;  %v2001_v43 = vadd.f32 %v12468_v33, %v1488_v46  ;;  %v9362_v63 = vsel %vm2048_vm4, %v2120_v1, %v2122_v45  ;;  %v2959_v46 = vld [vmem:[%s12435_s26] sm:$0xff]  ;;  %v12473_v1 = vld [vmem:[#allocation80_spill] sm:$0xff] }
 0x3a5   :  { %2994 = vmatpush.msrb.mxu0 %v2960_v58  ;;  %v1998_v58 = vadd.f32 %v8839_v22, %v1485_v23  ;;  %v12476_v22 = vld [vmem:[#allocation82_spill] sm:$0xff]  ;;  %v12480_v15 = vld [vmem:[#allocation84_spill] sm:$0xff] }
 0x3a6   :  { %v12481_v23 = vld [vmem:[#allocation114_spill] sm:$0xff] }
 0x3a7   :  { %v2842_v7 = vpop.f32.mrf.mxu3  ;;  %v2717_v11 = vpop.f32.mrf.mxu2  ;;  %2995 = vmatpush.msrb.mxu0 %v2959_v46  ;;  %v12478_v46 = vld [vmem:[#allocation83_spill] sm:$0xff] }
 0x3a8   :  { %v9359_v19 = vadd.f32 %v2842_v7, %v9255_v31  ;;  %v2283_v60 = vpop.f32.mrf.mxu0  ;;  %v2408_v30 = vpop.f32.mrf.mxu1  ;;  %v12471_v31 = vld [vmem:[#allocation79_spill] sm:$0xff] }
 0x3a9   :  { %v9364_v52 = vadd.f32 %v2283_v60, %v2001_v43  ;;  %v9366_v50 = vadd.f32 %v2408_v30, %v1996_v54  ;;  %v2124_v60 = vrot.slane %v12471_v31, 4  ;;  %v12472_v30 = vld [vmem:[#allocation29_spill] sm:$0xff] }
 0x3aa   :  { %v1490_v43 = vadd.f32 %v12473_v1, %v12472_v30 }
 0x3ab   :  { %12469 = vst [vmem:[#allocation25_spill] sm:$0xff] %v9364_v52  ;;  %6596 = vmatmul.msk.f32.gmra.mxu0 %vm320_vm1, %v9362_v63  ;;  %6632 = vmatmul.msk.f32.gmra.mxu1 %vm320_vm1, %v9258_v24 }
 0x3ac   :  { %12470 = vst [vmem:[#allocation74_spill] sm:$0xff] %v9366_v50  ;;  %2767 = vmatmul.f32.gmra.mxu2 %v9364_v52  ;;  %6655 = vmatmul.msk.f32.gmra.mxu3 %vm2573_vm5, %v9366_v50  ;;  %v2003_v16 = vadd.f32 %v8858_v34, %v1490_v43  ;;  %v2125_v50 = vsel %vm2048_vm4, %v2122_v45, %v2124_v60  ;;  %v2126_v34 = vrot.slane %v12476_v22, 4  ;;  %v12477_v45 = vld [vmem:[#allocation31_spill] sm:$0xff]  ;;  %v12479_v43 = vld [vmem:[#allocation28_spill] sm:$0xff] }
 0x3ad   :  { %v1492_v1 = vadd.f32 %v12478_v46, %v12477_v45  ;;  %v1487_v40 = vadd.f32 %v12480_v15, %v12479_v43  ;;  %v12487_v15 = vld [vmem:[#allocation86_spill] sm:$0xff] }
 0x3ae   :  { %v2127_v45 = vsel %vm2048_vm4, %v2124_v60, %v2126_v34  ;;  %v12485_v60 = vld [vmem:[#allocation85_spill] sm:$0xff] }
 0x3af   :  { %v2845_v54 = vpop.f32.mrf.mxu3  ;;  %v2720_v30 = vpop.f32.mrf.mxu2 }
 0x3b0   :  { %v9386_v24 = vadd.f32 %v2845_v54, %v9289_v42  ;;  %v2286_v33 = vpop.f32.mrf.mxu0  ;;  %v2411_v7 = vpop.f32.mrf.mxu1  ;;  %v2978_v42 = vld [vmem:[%s12435_s26 + $0x98] sm:$0xff] }
 0x3b1   :  { %v9389_v31 = vadd.f32 %v2286_v33, %v2003_v16  ;;  %v9391_v52 = vadd.f32 %v2411_v7, %v1998_v58  ;;  %3126 = vmatpush.msra.mxu1 %v2978_v42  ;;  %v2000_v58 = vadd.f32 %v12481_v23, %v1487_v40  ;;  %v2005_v16 = vadd.f32 %v8885_v9, %v1492_v1  ;;  %v2976_v42 = vld [vmem:[%s12435_s26 + $0x88] sm:$0xff]  ;;  %v2975_v9 = vld [vmem:[%s12435_s26 + $0x80] sm:$0xff]  ;;  %v12486_v1 = vld [vmem:[#allocation30_spill] sm:$0xff] }
 0x3b2   :  { %v1489_v40 = vadd.f32 %v12487_v15, %v12486_v1  ;;  %v12488_v23 = vld [vmem:[#allocation117_spill] sm:$0xff] }
 0x3b3   :  { %6597 = vmatmul.msk.f32.gmra.mxu0 %vm320_vm1, %v2125_v50  ;;  %6633 = vmatmul.msk.f32.gmra.mxu1 %vm320_vm1, %v9292_v28  ;;  %v2977_v28 = vld [vmem:[%s12435_s26 + $0x90] sm:$0xff] }
 0x3b4   :  { %2770 = vmatmul.f32.gmra.mxu2 %v9389_v31  ;;  %6656 = vmatmul.msk.f32.gmra.mxu3 %vm2573_vm5, %v9391_v52  ;;  %v12494_v15 = vld [vmem:[#allocation121_spill] sm:$0xff] }
 0x3b5   :  { %3127 = vmatpush.msra.mxu1 %v2977_v28 }
 0x3b7   :  { %v2848_v54 = vpop.f32.mrf.mxu3  ;;  %3128 = vmatpush.msra.mxu1 %v2976_v42  ;;  %v2723_v28 = vpop.f32.mrf.mxu2 }
 0x3b8   :  { %v9413_v33 = vadd.f32 %v2848_v54, %v9326_v2  ;;  %v2289_v7 = vpop.f32.mrf.mxu0  ;;  %v2414_v22 = vpop.f32.mrf.mxu1  ;;  %v12484_v2 = vld [vmem:[#allocation33_spill] sm:$0xff] }
 0x3b9   :  { %v9419_v46 = vadd.f32 %v2289_v7, %v2005_v16  ;;  %v9421_v43 = vadd.f32 %v2414_v22, %v2000_v58  ;;  %v1494_v34 = vadd.f32 %v12485_v60, %v12484_v2  ;;  %3129 = vmatpush.msra.mxu1 %v2975_v9  ;;  %v2002_v58 = vadd.f32 %v12488_v23, %v1489_v40  ;;  %v12489_v16 = vld [vmem:[#allocation120_spill] sm:$0xff]  ;;  %v12490_v9 = vld [vmem:[#allocation35_spill] sm:$0xff] }
 0x3ba   :  { %v12491_v2 = vld [vmem:[#allocation87_spill] sm:$0xff]  ;;  %v12492_v60 = vld [vmem:[#allocation32_spill] sm:$0xff] }
 0x3bb   :  { %12482 = vst [vmem:[#allocation22_spill] sm:$0xff] %v9419_v46  ;;  %6598 = vmatmul.msk.f32.gmra.mxu0 %vm320_vm1, %v2127_v45  ;;  %6634 = vmatmul.msk.f32.gmra.mxu1 %vm320_vm1, %v9329_v61  ;;  %v2007_v54 = vadd.f32 %v12489_v16, %v1494_v34  ;;  %v12493_v34 = vld [vmem:[#allocation88_spill] sm:$0xff] }
 0x3bc   :  { %12483 = vst [vmem:[#allocation75_spill] sm:$0xff] %v9421_v43  ;;  %2773 = vmatmul.f32.gmra.mxu2 %v9419_v46  ;;  %6657 = vmatmul.msk.f32.gmra.mxu3 %vm2573_vm5, %v9421_v43  ;;  %v1491_v1 = vadd.f32 %v12493_v34, %v12492_v60  ;;  %v12495_v23 = vld [vmem:[#allocation124_spill] sm:$0xff]  ;;  %v12499_v60 = vld [vmem:[#allocation90_spill] sm:$0xff] }
 0x3be   :  { %v2004_v40 = vadd.f32 %v12494_v15, %v1491_v1  ;;  %v12500_v1 = vld [vmem:[#allocation125_spill] sm:$0xff] }
 0x3bf   :  { %v2851_v7 = vpop.f32.mrf.mxu3  ;;  %v2726_v16 = vpop.f32.mrf.mxu2 }
 0x3c0   :  { %v9438_v22 = vadd.f32 %v2851_v7, %v2717_v11  ;;  %v2292_v61 = vpop.f32.mrf.mxu0  ;;  %v2417_v42 = vpop.f32.mrf.mxu1  ;;  %v1496_v11 = vadd.f32 %v12491_v2, %v12490_v9  ;;  %v12496_v9 = vld [vmem:[#allocation37_spill] sm:$0xff] }
 0x3c1   :  { %v9440_v46 = vadd.f32 %v2292_v61, %v2007_v54  ;;  %v9442_v43 = vadd.f32 %v2417_v42, %v2002_v58  ;;  %v12497_v2 = vld [vmem:[#allocation89_spill] sm:$0xff] }
 0x3c2   :  { %v2009_v58 = vadd.f32 %v12495_v23, %v1496_v11  ;;  %v1498_v11 = vadd.f32 %v12497_v2, %v12496_v9  ;;  %v12503_v9 = vld [vmem:[#allocation91_spill] sm:$0xff]  ;;  %v12504_v2 = vld [vmem:[#allocation36_spill] sm:$0xff] }
 0x3c3   :  { %6635 = vmatmul.msk.f32.gmra.mxu1 %vm320_vm1, %v9362_v63  ;;  %2996 = vmatmul.f32.vlgmr.msrb.gmra.mxu0 %v8964_v3 }
 0x3c4   :  { %2776 = vmatmul.f32.gmra.mxu2 %v9440_v46  ;;  %6658 = vmatmul.msk.f32.gmra.mxu3 %vm2573_vm5, %v9442_v43 }
 0x3c7   :  { %v2854_v54 = vpop.f32.mrf.mxu3 }
 0x3c8   :  { %v9456_v63 = vadd.f32 %v2854_v54, %v2720_v30  ;;  %v2295_v3 = vpop.f32.mrf.mxu0  ;;  %v2420_v7 = vpop.f32.mrf.mxu1  ;;  %v12498_v30 = vld [vmem:[#allocation34_spill] sm:$0xff] }
 0x3c9   :  { %v9458_v61 = vadd.f32 %v2295_v3, %v2009_v58  ;;  %v9460_v42 = vadd.f32 %v2420_v7, %v2004_v40  ;;  %v1493_v34 = vadd.f32 %v12499_v60, %v12498_v30  ;;  %v2011_v40 = vadd.f32 %v8956_v8, %v1498_v11  ;;  %v2729_v54 = vpop.f32.mrf.mxu2  ;;  %v12502_v8 = vld [vmem:[#allocation39_spill] sm:$0xff]  ;;  %v12505_v11 = vld [vmem:[#allocation92_spill] sm:$0xff]  ;;  %v12506_v60 = vld [vmem:[#allocation129_spill] sm:$0xff] }
 0x3ca   :  { %v1495_v30 = vadd.f32 %v12505_v11, %v12504_v2  ;;  %v12511_v2 = vld [vmem:[#allocation94_spill] sm:$0xff] }
 0x3cb   :  { %6636 = vmatmul.msk.f32.gmra.mxu1 %vm320_vm1, %v2125_v50  ;;  %2999 = vmatmul.f32.gmra.mxu0 %v8976_v59  ;;  %v2006_v15 = vadd.f32 %v12500_v1, %v1493_v34  ;;  %v12507_v1 = vld [vmem:[#allocation130_spill] sm:$0xff] }
 0x3cc   :  { %2779 = vmatmul.f32.gmra.mxu2 %v9458_v61  ;;  %6659 = vmatmul.msk.f32.gmra.mxu3 %vm2573_vm5, %v9460_v42  ;;  %v2008_v34 = vadd.f32 %v12506_v60, %v1495_v30 }
 0x3cf   :  { %v2857_v23 = vpop.f32.mrf.mxu3 }
 0x3d0   :  { %v9473_v58 = vadd.f32 %v2857_v23, %v2723_v28  ;;  %v2298_v50 = vpop.f32.mrf.mxu0  ;;  %v2423_v59 = vpop.f32.mrf.mxu1  ;;  %v1500_v28 = vadd.f32 %v12503_v9, %v12502_v8  ;;  %v12508_v8 = vld [vmem:[#allocation41_spill] sm:$0xff] }
 0x3d1   :  { %v9475_v3 = vadd.f32 %v2298_v50, %v2011_v40  ;;  %v9477_v7 = vadd.f32 %v2423_v59, %v2006_v15 }
 0x3d2   :  { %v2013_v15 = vadd.f32 %v12507_v1, %v1500_v28  ;;  %v12510_v28 = vld [vmem:[#allocation38_spill] sm:$0xff] }
 0x3d3   :  { %12501 = vst [vmem:[#allocation102_spill] sm:$0xff] %v9477_v7  ;;  %6637 = vmatmul.msk.f32.gmra.mxu1 %vm320_vm1, %v2127_v45  ;;  %3002 = vmatmul.f32.gmra.mxu0 %v8990_v38  ;;  %v1497_v11 = vadd.f32 %v12511_v2, %v12510_v28 }
 0x3d4   :  { %2782 = vmatmul.f32.gmra.mxu2 %v9475_v3  ;;  %6660 = vmatmul.msk.f32.gmra.mxu3 %vm2573_vm5, %v9477_v7  ;;  %v2732_v7 = vpop.f32.mrf.mxu2 }
 0x3d5   :  { %v2010_v30 = vadd.f32 %v8978_v20, %v1497_v11  ;;  %v12513_v20 = vld [vmem:[#allocation95_spill] sm:$0xff] }
 0x3d7   :  { %v2860_v40 = vpop.f32.mrf.mxu3 }
 0x3d8   :  { %v9490_v23 = vadd.f32 %v2860_v40, %v2726_v16  ;;  %v2301_v45 = vpop.f32.mrf.mxu0  ;;  %v2426_v38 = vpop.f32.mrf.mxu1  ;;  %v12509_v16 = vld [vmem:[#allocation93_spill] sm:$0xff] }
 0x3d9   :  { %v9492_v50 = vadd.f32 %v2301_v45, %v2013_v15  ;;  %v9494_v59 = vadd.f32 %v2426_v38, %v2008_v34  ;;  %v1502_v9 = vadd.f32 %v12509_v16, %v12508_v8  ;;  %v12514_v45 = vld [vmem:[#allocation40_spill] sm:$0xff] }
 0x3da   :  { %v12515_v38 = vld [vmem:[#allocation96_spill] sm:$0xff] }
 0x3db   :  { %3005 = vmatmul.f32.gmra.mxu0 %v9000_v4  ;;  %6677 = vmatmul.msk.f32.vlgmr.msra.gmra.mxu1 %vm2573_vm5, %v9003_v35  ;;  %v2015_v60 = vadd.f32 %v8987_v57, %v1502_v9  ;;  %v12512_v57 = vld [vmem:[#allocation43_spill] sm:$0xff]  ;;  %v1499_v8 = vadd.f32 %v12515_v38, %v12514_v45 }
 0x3dc   :  { %2785 = vmatmul.f32.gmra.mxu2 %v9492_v50  ;;  %6661 = vmatmul.msk.f32.gmra.mxu3 %vm2573_vm5, %v9494_v59  ;;  %v2735_v16 = vpop.f32.mrf.mxu2 }
 0x3dd   :  { %v2012_v9 = vadd.f32 %v8996_v36, %v1499_v8  ;;  %v12516_v36 = vld [vmem:[#allocation45_spill] sm:$0xff] }
 0x3df   :  { %v2863_v34 = vpop.f32.mrf.mxu3 }
 0x3e0   :  { %v9508_v4 = vadd.f32 %v2863_v34, %v2729_v54  ;;  %v2304_v1 = vpop.f32.mrf.mxu0  ;;  %v2429_v35 = vpop.f32.mrf.mxu1  ;;  %v1504_v54 = vadd.f32 %v12513_v20, %v12512_v57  ;;  %v12518_v34 = vld [vmem:[#allocation42_spill] sm:$0xff]  ;;  %v12520_v57 = vld [vmem:[#allocation133_spill] sm:$0xff] }
 0x3e1   :  { %v9510_v15 = vadd.f32 %v2304_v1, %v2015_v60  ;;  %v9512_v40 = vadd.f32 %v2429_v35, %v2010_v30  ;;  %v12519_v1 = vld [vmem:[#allocation98_spill] sm:$0xff] }
 0x3e2   :  { %v2017_v28 = vadd.f32 %v9005_v55, %v1504_v54  ;;  %v12517_v55 = vld [vmem:[#allocation97_spill] sm:$0xff]  ;;  %v1501_v35 = vadd.f32 %v12519_v1, %v12518_v34 }
 0x3e3   :  { %3008 = vmatmul.f32.gmra.mxu0 %v9017_v49  ;;  %6678 = vmatmul.msk.f32.gmra.mxu1 %vm2573_vm5, %v9020_v13 }
 0x3e4   :  { %2788 = vmatmul.f32.gmra.mxu2 %v9510_v15  ;;  %6662 = vmatmul.msk.f32.gmra.mxu3 %vm2573_vm5, %v9512_v40  ;;  %v2014_v20 = vadd.f32 %v12520_v57, %v1501_v35  ;;  %v2738_v45 = vpop.f32.mrf.mxu2 }
 0x3e7   :  { %v2866_v49 = vpop.f32.mrf.mxu3 }
 0x3e8   :  { %v9526_v2 = vadd.f32 %v2866_v49, %v2732_v7  ;;  %v2307_v13 = vpop.f32.mrf.mxu0  ;;  %v2432_v11 = vpop.f32.mrf.mxu1  ;;  %v1506_v7 = vadd.f32 %v12517_v55, %v12516_v36  ;;  %v12522_v49 = vld [vmem:[#allocation100_spill] sm:$0xff]  ;;  %v12525_v55 = vld [vmem:[#allocation134_spill] sm:$0xff] }
 0x3e9   :  { %v9528_v30 = vadd.f32 %v2307_v13, %v2017_v28  ;;  %v9530_v60 = vadd.f32 %v2432_v11, %v2012_v9  ;;  %v12523_v13 = vld [vmem:[#allocation44_spill] sm:$0xff]  ;;  %v12524_v11 = vld [vmem:[#allocation101_spill] sm:$0xff] }
 0x3ea   :  { %v2019_v54 = vadd.f32 %v9028_v25, %v1506_v7  ;;  %v12521_v25 = vld [vmem:[#allocation47_spill] sm:$0xff]  ;;  %v1503_v36 = vadd.f32 %v12524_v11, %v12523_v13 }
 0x3eb   :  { %3011 = vmatmul.f32.gmra.mxu0 %v9034_v53  ;;  %6679 = vmatmul.msk.f32.gmra.mxu1 %vm2573_vm5, %v9037_v44 }
 0x3ec   :  { %2791 = vmatmul.f32.gmra.mxu2 %v9528_v30  ;;  %6663 = vmatmul.msk.f32.gmra.mxu3 %vm2573_vm5, %v9530_v60  ;;  %v2016_v7 = vadd.f32 %v12525_v55, %v1503_v36  ;;  %v2741_v57 = vpop.f32.mrf.mxu2 }
 0x3ef   :  { %v2869_v53 = vpop.f32.mrf.mxu3 }
 0x3f0   :  { %v9544_v38 = vadd.f32 %v2869_v53, %v2735_v16  ;;  %v2310_v44 = vpop.f32.mrf.mxu0  ;;  %v2435_v8 = vpop.f32.mrf.mxu1  ;;  %v1508_v16 = vadd.f32 %v12522_v49, %v12521_v25 }
 0x3f1   :  { %v9546_v9 = vadd.f32 %v2310_v44, %v2019_v54  ;;  %v9548_v28 = vadd.f32 %v2435_v8, %v2014_v20  ;;  %v12528_v44 = vld [vmem:[#allocation46_spill] sm:$0xff]  ;;  %v12529_v8 = vld [vmem:[#allocation104_spill] sm:$0xff] }
 0x3f2   :  { %v2021_v34 = vadd.f32 %v9045_v10, %v1508_v16  ;;  %v12526_v10 = vld [vmem:[#allocation49_spill] sm:$0xff]  ;;  %v1505_v25 = vadd.f32 %v12529_v8, %v12528_v44  ;;  %v12530_v16 = vld [vmem:[#allocation135_spill] sm:$0xff] }
 0x3f3   :  { %3014 = vmatmul.f32.gmra.mxu0 %v9049_v41  ;;  %6680 = vmatmul.msk.f32.gmra.mxu1 %vm2573_vm5, %v9052_v18 }
 0x3f4   :  { %2794 = vmatmul.f32.gmra.mxu2 %v9546_v9  ;;  %6664 = vmatmul.msk.f32.gmra.mxu3 %vm2573_vm5, %v9548_v28  ;;  %v2018_v49 = vadd.f32 %v9054_v29, %v1505_v25  ;;  %v12531_v29 = vld [vmem:[#allocation51_spill] sm:$0xff] }
 0x3f7   :  { %v2872_v1 = vpop.f32.mrf.mxu3 }
 0x3f8   :  { %v9562_v41 = vadd.f32 %v2872_v1, %v2738_v45  ;;  %v2313_v35 = vpop.f32.mrf.mxu0  ;;  %v2438_v18 = vpop.f32.mrf.mxu1  ;;  %v12527_v45 = vld [vmem:[#allocation103_spill] sm:$0xff] }
 0x3f9   :  { %v9564_v20 = vadd.f32 %v2313_v35, %v2021_v34  ;;  %v9566_v54 = vadd.f32 %v2438_v18, %v2016_v7  ;;  %v1510_v53 = vadd.f32 %v12527_v45, %v12526_v10  ;;  %v2744_v34 = vpop.f32.mrf.mxu2  ;;  %v12532_v1 = vld [vmem:[#allocation107_spill] sm:$0xff]  ;;  %v12533_v18 = vld [vmem:[#allocation48_spill] sm:$0xff] }
 0x3fa   :  { %v1512_v35 = vadd.f32 %v12532_v1, %v12531_v29  ;;  %v12540_v1 = vld [vmem:[#allocation137_spill] sm:$0xff] }
 0x3fb   :  { %3017 = vmatmul.f32.gmra.mxu0 %v9066_v32  ;;  %6681 = vmatmul.msk.f32.gmra.mxu1 %vm2573_vm5, %v9069_v56  ;;  %v2023_v13 = vadd.f32 %v12530_v16, %v1510_v53 }
 0x3fc   :  { %2797 = vmatmul.f32.gmra.mxu2 %v9564_v20  ;;  %6665 = vmatmul.msk.f32.gmra.mxu3 %vm2573_vm5, %v9566_v54  ;;  %v2025_v53 = vadd.f32 %v9086_v12, %v1512_v35  ;;  %v12536_v12 = vld [vmem:[#allocation110_spill] sm:$0xff] }
 0x3ff   :  { %v2875_v11 = vpop.f32.mrf.mxu3 }
 0x400   :  { %v9580_v32 = vadd.f32 %v2875_v11, %v2741_v57  ;;  %v2316_v36 = vpop.f32.mrf.mxu0  ;;  %v2441_v56 = vpop.f32.mrf.mxu1  ;;  %v12534_v57 = vld [vmem:[#allocation108_spill] sm:$0xff]  ;;  %v12538_v11 = vld [vmem:[#allocation111_spill] sm:$0xff] }
 0x401   :  { %v9582_v55 = vadd.f32 %v2316_v36, %v2023_v13  ;;  %v9584_v7 = vadd.f32 %v2441_v56, %v2018_v49  ;;  %v1507_v10 = vadd.f32 %v12534_v57, %v12533_v18  ;;  %v12537_v13 = vld [vmem:[#allocation50_spill] sm:$0xff]  ;;  %v2747_v56 = vpop.f32.mrf.mxu2 }
 0x402   :  { %v1509_v36 = vadd.f32 %v12538_v11, %v12537_v13  ;;  %v12546_v11 = vld [vmem:[#allocation66_spill] sm:$0xff] }
 0x403   :  { %3020 = vmatmul.f32.gmra.mxu0 %v9081_v6  ;;  %6682 = vmatmul.msk.f32.gmra.mxu1 %vm2573_vm5, %v9084_v27  ;;  %v2020_v45 = vadd.f32 %v9077_v48, %v1507_v10  ;;  %v12535_v48 = vld [vmem:[#allocation53_spill] sm:$0xff] }
 0x404   :  { %2800 = vmatmul.f32.gmra.mxu2 %v9582_v55  ;;  %6666 = vmatmul.msk.f32.gmra.mxu3 %vm2573_vm5, %v9584_v7  ;;  %v1514_v16 = vadd.f32 %v12536_v12, %v12535_v48  ;;  %v12544_v48 = vld [vmem:[#allocation113_spill] sm:$0xff] }
 0x406   :  { %v2027_v35 = vadd.f32 %v12540_v1, %v1514_v16  ;;  %v12545_v16 = vld [vmem:[#allocation138_spill] sm:$0xff] }
 0x407   :  { %v2878_v44 = vpop.f32.mrf.mxu3 }
 0x408   :  { %v9598_v6 = vadd.f32 %v2878_v44, %v2744_v34  ;;  %v2319_v8 = vpop.f32.mrf.mxu0  ;;  %v2444_v27 = vpop.f32.mrf.mxu1  ;;  %v12539_v34 = vld [vmem:[#allocation136_spill] sm:$0xff] }
 0x409   :  { %v9600_v25 = vadd.f32 %v2319_v8, %v2025_v53  ;;  %v9602_v49 = vadd.f32 %v2444_v27, %v2020_v45  ;;  %v2022_v29 = vadd.f32 %v12539_v34, %v1509_v36  ;;  %v12541_v53 = vld [vmem:[#allocation55_spill] sm:$0xff]  ;;  %v12542_v44 = vld [vmem:[#allocation112_spill] sm:$0xff] }
 0x40a   :  { %v1516_v8 = vadd.f32 %v12542_v44, %v12541_v53  ;;  %v12543_v27 = vld [vmem:[#allocation52_spill] sm:$0xff]  ;;  %v12549_v53 = vld [vmem:[#allocation54_spill] sm:$0xff] }
 0x40b   :  { %3023 = vmatmul.f32.gmra.mxu0 %v9098_v5  ;;  %6683 = vmatmul.msk.f32.gmra.mxu1 %vm2573_vm5, %v9101_v37  ;;  %v1511_v12 = vadd.f32 %v12544_v48, %v12543_v27  ;;  %v12550_v44 = vld [vmem:[#allocation116_spill] sm:$0xff]  ;;  %v12551_v27 = vld [vmem:[#allocation67_spill] sm:$0xff] }
 0x40c   :  { %2803 = vmatmul.f32.gmra.mxu2 %v9600_v25  ;;  %6667 = vmatmul.msk.f32.gmra.mxu3 %vm2573_vm5, %v9602_v49  ;;  %v2029_v36 = vadd.f32 %v12546_v11, %v1516_v8  ;;  %v1513_v8 = vadd.f32 %v12550_v44, %v12549_v53  ;;  %v12558_v53 = vld [vmem:[#allocation141_spill] sm:$0xff] }
 0x40d   :  { %v2024_v13 = vadd.f32 %v12545_v16, %v1511_v12  ;;  %v12552_v12 = vld [vmem:[#allocation139_spill] sm:$0xff] }
 0x40e   :  { %v2026_v48 = vadd.f32 %v12551_v27, %v1513_v8 }
 0x40f   :  { %v2881_v5 = vpop.f32.mrf.mxu3 }
 0x410   :  { %v9616_v18 = vadd.f32 %v2881_v5, %v2747_v56  ;;  %v2322_v37 = vpop.f32.mrf.mxu0  ;;  %v2447_v57 = vpop.f32.mrf.mxu1  ;;  %v12547_v5 = vld [vmem:[#allocation57_spill] sm:$0xff] }
 0x411   :  { %v9618_v10 = vadd.f32 %v2322_v37, %v2027_v35  ;;  %v9620_v45 = vadd.f32 %v2447_v57, %v2022_v29  ;;  %v2750_v56 = vpop.f32.mrf.mxu2  ;;  %v12548_v37 = vld [vmem:[#allocation115_spill] sm:$0xff] }
 0x412   :  { %v1518_v57 = vadd.f32 %v12548_v37, %v12547_v5  ;;  %v12557_v37 = vld [vmem:[#allocation68_spill] sm:$0xff] }
 0x413   :  { %3026 = vmatmul.f32.gmra.mxu0 %v9115_v17  ;;  %6684 = vmatmul.msk.f32.gmra.mxu1 %vm2573_vm5, %v9118_v14 }
 0x414   :  { %2806 = vmatmul.f32.gmra.mxu2 %v9618_v10  ;;  %6668 = vmatmul.msk.f32.gmra.mxu3 %vm2573_vm5, %v9620_v45  ;;  %v2031_v16 = vadd.f32 %v12552_v12, %v1518_v57  ;;  %v12561_v12 = vld [vmem:[#allocation61_spill] sm:$0xff] }
 0x417   :  { %v2884_v17 = vpop.f32.mrf.mxu3 }
 0x418   :  { %v9634_v34 = vadd.f32 %v2884_v17, %v2750_v56  ;;  %v2325_v14 = vpop.f32.mrf.mxu0  ;;  %v2450_v29 = vpop.f32.mrf.mxu1  ;;  %v12554_v56 = vld [vmem:[#allocation118_spill] sm:$0xff] }
 0x419   :  { %v9636_v1 = vadd.f32 %v2325_v14, %v2029_v36  ;;  %v9638_v35 = vadd.f32 %v2450_v29, %v2024_v13  ;;  %v12553_v36 = vld [vmem:[#allocation59_spill] sm:$0xff]  ;;  %v12555_v14 = vld [vmem:[#allocation56_spill] sm:$0xff] }
 0x41a   :  { %v1520_v17 = vadd.f32 %v12554_v56, %v12553_v36  ;;  %v12556_v29 = vld [vmem:[#allocation119_spill] sm:$0xff]  ;;  %v12564_v36 = vld [vmem:[#allocation122_spill] sm:$0xff] }
 0x41b   :  { %3029 = vmatmul.f32.gmra.mxu0 %v9130_v51  ;;  %6685 = vmatmul.msk.f32.gmra.mxu1 %vm2573_vm5, %v9133_v62  ;;  %v1515_v5 = vadd.f32 %v12556_v29, %v12555_v14  ;;  %v12566_v14 = vld [vmem:[#allocation123_spill] sm:$0xff] }
 0x41c   :  { %2809 = vmatmul.f32.gmra.mxu2 %v9636_v1  ;;  %6669 = vmatmul.msk.f32.gmra.mxu3 %vm2573_vm5, %v9638_v35  ;;  %v2033_v44 = vadd.f32 %v12558_v53, %v1520_v17  ;;  %v12565_v17 = vld [vmem:[#allocation58_spill] sm:$0xff] }
 0x41d   :  { %v2028_v57 = vadd.f32 %v12557_v37, %v1515_v5  ;;  %v1517_v29 = vadd.f32 %v12566_v14, %v12565_v17  ;;  %v12567_v5 = vld [vmem:[#allocation142_spill] sm:$0xff] }
 0x41f   :  { %v2030_v37 = vadd.f32 %v12567_v5, %v1517_v29 }
 0x420   :  { %v2328_v13 = vpop.f32.mrf.mxu0  ;;  %v2453_v51 = vpop.f32.mrf.mxu1 }
 0x421   :  { %v9652_v11 = vadd.f32 %v2328_v13, %v2031_v16  ;;  %v9654_v62 = vadd.f32 %v2453_v51, %v2026_v48  ;;  %v12560_v48 = vld [vmem:[#allocation13_spill] sm:$0xff]  ;;  %v12562_v13 = vld [vmem:[#allocation140_spill] sm:$0xff] }
 0x422   :  { %v874_v16 = vadd.f32 %v12561_v12, %v12560_v48  ;;  %v12563_v51 = vld [vmem:[#allocation69_spill] sm:$0xff]  ;;  %v12568_v48 = vld [vmem:[#allocation14_spill] sm:$0xff]  ;;  %v12569_v12 = vld [vmem:[#allocation63_spill] sm:$0xff] }
 0x423   :  { %3032 = vmatmul.f32.gmra.mxu0 %v9147_v26  ;;  %6686 = vmatmul.msk.f32.gmra.mxu1 %vm2573_vm5, %v9150_v47 }
 0x424   :  { %2812 = vmatmul.f32.gmra.mxu2 %v9652_v11  ;;  %6670 = vmatmul.msk.f32.gmra.mxu3 %vm2573_vm5, %v9654_v62  ;;  %v1522_v56 = vadd.f32 %v12564_v36, %v874_v16  ;;  %v12573_v36 = vld [vmem:[#allocation60_spill] sm:$0xff] }
 0x428   :  { %v2331_v8 = vpop.f32.mrf.mxu0  ;;  %v2456_v26 = vpop.f32.mrf.mxu1 }
 0x429   :  { %v9668_v27 = vadd.f32 %v2331_v8, %v2033_v44  ;;  %v9670_v47 = vadd.f32 %v2456_v26, %v2028_v57  ;;  %v2035_v57 = vadd.f32 %v9192_v0, %v1522_v56  ;;  %v12572_v0 = vld [vmem:[#allocation126_spill] sm:$0xff]  ;;  %v12574_v56 = vld [vmem:[#allocation127_spill] sm:$0xff] }
 0x42a   :  { %v1519_v17 = vadd.f32 %v12574_v56, %v12573_v36  ;;  %v12580_v36 = vld [vmem:[#allocation72_spill] sm:$0xff]  ;;  %v12581_v56 = vld [vmem:[#allocation19_spill] sm:$0xff] }
 0x42b   :  { %12559 = vst [vmem:[#allocation105_spill] sm:$0xff] %v9670_v47  ;;  %3035 = vmatmul.f32.gmra.mxu0 %v12562_v13  ;;  %6687 = vmatmul.msk.f32.gmra.mxu1 %vm2573_vm5, %v12563_v51  ;;  %v877_v13 = vadd.f32 %v12569_v12, %v12568_v48  ;;  %v12570_v51 = vld [vmem:[#allocation143_spill] sm:$0xff]  ;;  %v12577_v48 = vld [vmem:[#allocation62_spill] sm:$0xff] }
 0x42c   :  { %2815 = vmatmul.f32.gmra.mxu2 %v9668_v27  ;;  %6671 = vmatmul.msk.f32.gmra.mxu3 %vm2573_vm5, %v9670_v47  ;;  %v12571_v47 = vld [vmem:[#allocation70_spill] sm:$0xff]  ;;  %v2032_v14 = vadd.f32 %v9198_v39, %v1519_v17  ;;  %v12578_v39 = vld [vmem:[#allocation128_spill] sm:$0xff] }
 0x42d   :  { %v1524_v16 = vadd.f32 %v12572_v0, %v877_v13  ;;  %v1521_v12 = vadd.f32 %v12578_v39, %v12577_v48  ;;  %v12582_v17 = vld [vmem:[#allocation64_spill] sm:$0xff]  ;;  %v12586_v39 = vld [vmem:[#allocation21_spill] sm:$0xff] }
 0x42f   :  { %v2037_v29 = vadd.f32 %v9221_v21, %v1524_v16  ;;  %v12579_v21 = vld [vmem:[#allocation73_spill] sm:$0xff] }
 0x430   :  { %v2334_v53 = vpop.f32.mrf.mxu0  ;;  %v2459_v44 = vpop.f32.mrf.mxu1  ;;  %v2034_v13 = vadd.f32 %v12579_v21, %v1521_v12  ;;  %v12587_v12 = vld [vmem:[#allocation144_spill] sm:$0xff]  ;;  %v12588_v21 = vld [vmem:[#allocation65_spill] sm:$0xff] }
 0x431   :  { %v9685_v8 = vadd.f32 %v2334_v53, %v2035_v57  ;;  %v9687_v26 = vadd.f32 %v2459_v44, %v2030_v37  ;;  %v12576_v44 = vld [vmem:[#allocation71_spill] sm:$0xff] }
 0x433   :  { %3038 = vmatmul.f32.gmra.mxu0 %v12570_v51  ;;  %6688 = vmatmul.msk.f32.gmra.mxu1 %vm2573_vm5, %v12571_v47  ;;  %v12575_v47 = vld [vmem:[#allocation17_spill] sm:$0xff] }
 0x434   :  { %2818 = vmatmul.f32.gmra.mxu2 %v9685_v8  ;;  %6672 = vmatmul.msk.f32.gmra.mxu3 %vm2573_vm5, %v9687_v26 }
 0x438   :  { %v2337_v5 = vpop.f32.mrf.mxu0  ;;  %v2462_v37 = vpop.f32.mrf.mxu1 }
 0x439   :  { %v9702_v57 = vadd.f32 %v2337_v5, %v2037_v29  ;;  %v9704_v53 = vadd.f32 %v2462_v37, %v2032_v14  ;;  %v12583_v14 = vld [vmem:[#allocation131_spill] sm:$0xff] }
 0x43a   :  { %v1523_v29 = vadd.f32 %v12583_v14, %v12582_v17  ;;  %v12584_v5 = vld [vmem:[#allocation23_spill] sm:$0xff] }
 0x43b   :  { %3041 = vmatmul.f32.gmra.mxu0 %v12575_v47  ;;  %6689 = vmatmul.msk.f32.gmra.mxu1 %vm2573_vm5, %v12576_v44 }
 0x43c   :  { %2821 = vmatmul.f32.gmra.mxu2 %v9702_v57  ;;  %6673 = vmatmul.msk.f32.gmra.mxu3 %vm2573_vm5, %v9704_v53  ;;  %v2036_v37 = vadd.f32 %v12584_v5, %v1523_v29  ;;  %v12591_v5 = vld [vmem:[#allocation15_spill] sm:$0xff] }
 0x440   :  { %v2465_v51 = vpop.f32.mrf.mxu1  ;;  %v2997_v0 = vpop.f32.mrf.mxu0 }
 0x441   :  { %v9715_v16 = vadd.f32 %v2465_v51, %v2034_v13  ;;  %v12589_v13 = vld [vmem:[#allocation132_spill] sm:$0xff] }
 0x442   :  { %v1525_v51 = vadd.f32 %v12589_v13, %v12588_v21  ;;  %v12594_v21 = vld [vmem:[#allocation99_spill] sm:$0xff]  ;;  %v12595_v13 = vld [vmem:[#allocation18_spill] sm:$0xff] }
 0x443   :  { %3044 = vmatmul.f32.gmra.mxu0 %v12580_v36  ;;  %6690 = vmatmul.msk.f32.gmra.mxu1 %vm2573_vm5, %v12581_v56  ;;  %v12590_v36 = vld [vmem:[#allocation16_spill] sm:$0xff] }
 0x444   :  { %6674 = vmatmul.msk.f32.gmra.mxu3 %vm2573_vm5, %v9715_v16  ;;  %v2038_v56 = vadd.f32 %v12590_v36, %v1525_v51 }
 0x448   :  { %v2468_v47 = vpop.f32.mrf.mxu1  ;;  %v3000_v44 = vpop.f32.mrf.mxu0 }
 0x449   :  { %v9725_v48 = vadd.f32 %v2468_v47, %v2036_v37  ;;  %v12592_v37 = vld [vmem:[#allocation20_spill] sm:$0xff] }
 0x44b   :  { %12585 = vst [vmem:[#allocation76_spill] sm:$0xff] %v9725_v48  ;;  %3047 = vmatmul.f32.gmra.mxu0 %v12586_v39  ;;  %6691 = vmatmul.msk.f32.gmra.mxu1 %vm2573_vm5, %v12587_v12 }
 0x44c   :  { %6675 = vmatmul.msk.f32.gmra.mxu3 %vm2573_vm5, %v9725_v48 }
 0x450   :  { %v2471_v17 = vpop.f32.mrf.mxu1  ;;  %v3003_v14 = vpop.f32.mrf.mxu0 }
 0x451   :  { %v9735_v29 = vadd.f32 %v2471_v17, %v2038_v56 }
 0x453   :  { %3050 = vmatmul.f32.gmra.mxu0 %v12591_v5  ;;  %6692 = vmatmul.msk.f32.gmra.mxu1 %vm2573_vm5, %v12592_v37  ;;  %v12597_v5 = vld [vmem:[#allocation25_spill] sm:$0xff]  ;;  %v12598_v37 = vld [vmem:[#allocation74_spill] sm:$0xff] }
 0x454   :  { %6676 = vmatmul.msk.f32.gmra.mxu3 %vm2573_vm5, %v9735_v29 }
 0x458   :  { %v3006_v47 = vpop.f32.mrf.mxu0  ;;  %v3131_v39 = vpop.f32.mrf.mxu1 }
 0x459   :  { %v3132_v12 = vadd.f32 %v3131_v39, %v2997_v0 }
 0x45b   :  { %v9743_v48 = vmax.f32 %v9359_v19, %v3132_v12  ;;  %3053 = vmatmul.f32.gmra.mxu0 %v12594_v21  ;;  %6693 = vmatmul.msk.f32.gmra.mxu1 %vm2573_vm5, %v12595_v13 }
 0x45d   :  { %12593 = vst [vmem:[#allocation27_spill] sm:$0xff] %v9743_v48 }
 0x460   :  { %v3009_v51 = vpop.f32.mrf.mxu0  ;;  %v3134_v36 = vpop.f32.mrf.mxu1 }
 0x461   :  { %v3135_v56 = vadd.f32 %v3134_v36, %v3000_v44  ;;  %v12601_v36 = vld [vmem:[#allocation22_spill] sm:$0xff] }
 0x463   :  { %v9749_v17 = vmax.f32 %v9386_v24, %v3135_v56  ;;  %3056 = vmatmul.f32.gmra.mxu0 %v12597_v5  ;;  %6694 = vmatmul.msk.f32.gmra.mxu1 %vm2573_vm5, %v12598_v37  ;;  %v12602_v56 = vld [vmem:[#allocation75_spill] sm:$0xff] }
 0x465   :  { %12596 = vst [vmem:[#allocation77_spill] sm:$0xff] %v9749_v17 }
 0x468   :  { %v3012_v0 = vpop.f32.mrf.mxu0  ;;  %v3137_v39 = vpop.f32.mrf.mxu1 }
 0x469   :  { %v3138_v19 = vadd.f32 %v3137_v39, %v3003_v14  ;;  %v2753_v39 = vpop.f32.mrf.mxu2 }
 0x46b   :  { %v9755_v12 = vmax.f32 %v9413_v33, %v3138_v19  ;;  %3059 = vmatmul.f32.gmra.mxu0 %v9389_v31  ;;  %6695 = vmatmul.msk.f32.gmra.mxu1 %vm2573_vm5, %v9391_v52 }
 0x46d   :  { %12599 = vst [vmem:[#allocation24_spill] sm:$0xff] %v9755_v12 }
 0x470   :  { %v3015_v44 = vpop.f32.mrf.mxu0  ;;  %v3140_v21 = vpop.f32.mrf.mxu1 }
 0x471   :  { %v3141_v24 = vadd.f32 %v3140_v21, %v3006_v47  ;;  %v9788_v21 = vpop.f32.mrf.mxu2 }
 0x472   :  { %12607 = vst [vmem:[#allocation29_spill] sm:$0xff] %v9788_v21 }
 0x473   :  { %v9761_v13 = vmax.f32 %v9438_v22, %v3141_v24  ;;  %3062 = vmatmul.f32.gmra.mxu0 %v12601_v36  ;;  %6696 = vmatmul.msk.f32.gmra.mxu1 %vm2573_vm5, %v12602_v56 }
 0x475   :  { %12600 = vst [vmem:[#allocation78_spill] sm:$0xff] %v9761_v13 }
 0x478   :  { %v3018_v14 = vpop.f32.mrf.mxu0  ;;  %v3143_v5 = vpop.f32.mrf.mxu1 }
 0x479   :  { %v3144_v33 = vadd.f32 %v3143_v5, %v3009_v51  ;;  %v9802_v36 = vpop.f32.mrf.mxu2 }
 0x47a   :  { %12610 = vst [vmem:[#allocation81_spill] sm:$0xff] %v9802_v36 }
 0x47b   :  { %v9767_v37 = vmax.f32 %v9456_v63, %v3144_v33  ;;  %3065 = vmatmul.f32.gmra.mxu0 %v9440_v46  ;;  %6697 = vmatmul.msk.f32.gmra.mxu1 %vm2573_vm5, %v9442_v43  ;;  %v12606_v43 = vld [vmem:[#allocation102_spill] sm:$0xff] }
 0x47d   :  { %12603 = vst [vmem:[#allocation106_spill] sm:$0xff] %v9767_v37 }
 0x480   :  { %v3021_v52 = vpop.f32.mrf.mxu0  ;;  %v3146_v31 = vpop.f32.mrf.mxu1 }
 0x481   :  { %v3147_v22 = vadd.f32 %v3146_v31, %v3012_v0 }
 0x483   :  { %v9773_v47 = vmax.f32 %v9473_v58, %v3147_v22  ;;  %3068 = vmatmul.f32.gmra.mxu0 %v9458_v61  ;;  %6698 = vmatmul.msk.f32.gmra.mxu1 %vm2573_vm5, %v9460_v42 }
 0x485   :  { %12604 = vst [vmem:[#allocation109_spill] sm:$0xff] %v9773_v47 }
 0x488   :  { %v9778_v51 = vpop.f32.mrf.mxu0  ;;  %v3149_v63 = vpop.f32.mrf.mxu1 }
 0x489   :  { %v3150_v19 = vadd.f32 %v3149_v63, %v3015_v44 }
 0x48b   :  { %v9781_v46 = vmax.f32 %v9490_v23, %v3150_v19  ;;  %3071 = vmatmul.f32.gmra.mxu0 %v9475_v3  ;;  %6699 = vmatmul.msk.f32.gmra.mxu1 %vm2573_vm5, %v12606_v43 }
 0x48d   :  { %12605 = vst [vmem:[#allocation79_spill] sm:$0xff] %v9781_v46 }
 0x490   :  { %v9786_v58 = vpop.f32.mrf.mxu0  ;;  %v3152_v0 = vpop.f32.mrf.mxu1 }
 0x491   :  { %v3153_v61 = vadd.f32 %v3152_v0, %v3018_v14 }
 0x493   :  { %v9791_v42 = vmax.f32 %v9508_v4, %v3153_v61  ;;  %3074 = vmatmul.f32.gmra.mxu0 %v9492_v50  ;;  %6700 = vmatmul.msk.f32.gmra.mxu1 %vm2573_vm5, %v9494_v59  ;;  %v2887_v4 = vpop.f32.mrf.mxu3  ;;  %v9807_v50 = vpop.f32.mrf.mxu2 }
 0x494   :  { %12611 = vst [vmem:[#allocation82_spill] sm:$0xff] %v9807_v50  ;;  %v2888_v43 = vadd.f32 %v2887_v4, %v2753_v39 }
 0x495   :  { %12608 = vst [vmem:[#allocation80_spill] sm:$0xff] %v9791_v42 }
 0x498   :  { %v3030_v23 = vpop.f32.mrf.mxu0  ;;  %v3155_v44 = vpop.f32.mrf.mxu1 }
 0x499   :  { %v3156_v3 = vadd.f32 %v3155_v44, %v3021_v52 }
 0x49b   :  { %v9797_v24 = vmax.f32 %v9526_v2, %v3156_v3  ;;  %3077 = vmatmul.f32.gmra.mxu0 %v9510_v15  ;;  %6701 = vmatmul.msk.f32.gmra.mxu1 %vm2573_vm5, %v9512_v40  ;;  %v9809_v5 = vpop.f32.mrf.mxu3  ;;  %v9814_v33 = vpop.f32.mrf.mxu2 }
 0x49c   :  { %12612 = vst [vmem:[#allocation31_spill] sm:$0xff] %v9809_v5 }
 0x49d   :  { %12609 = vst [vmem:[#allocation26_spill] sm:$0xff] %v9797_v24 }
 0x4a0   :  { %v3033_v56 = vpop.f32.mrf.mxu0  ;;  %v3158_v14 = vpop.f32.mrf.mxu1 }
 0x4a3   :  { %3080 = vmatmul.f32.gmra.mxu0 %v9528_v30  ;;  %6702 = vmatmul.msk.f32.gmra.mxu1 %vm2573_vm5, %v9530_v60  ;;  %v9816_v52 = vpop.f32.mrf.mxu3  ;;  %v9821_v31 = vpop.f32.mrf.mxu2 }
 0x4a4   :  { %12613 = vst [vmem:[#allocation83_spill] sm:$0xff] %v9816_v52  ;;  %v3320_v52 = vld [vmem:[%s12630_s21 + $0x108] sm:$0xff] }
 0x4a8   :  { %v3036_v59 = vpop.f32.mrf.mxu0  ;;  %v3161_v2 = vpop.f32.mrf.mxu1 }
 0x4ab   :  { %3083 = vmatmul.f32.gmra.mxu0 %v9546_v9  ;;  %6703 = vmatmul.msk.f32.gmra.mxu1 %vm2573_vm5, %v9548_v28  ;;  %v9826_v9 = vpop.f32.mrf.mxu3 }
 0x4ac   :  { %12614 = vst [vmem:[#allocation28_spill] sm:$0xff] %v9826_v9 }
 0x4b0   :  { %v3039_v15 = vpop.f32.mrf.mxu0  ;;  %v3164_v40 = vpop.f32.mrf.mxu1 }
 0x4b1   :  { %v3165_v4 = vadd.f32 %v3164_v40, %v3030_v23 }
 0x4b3   :  { %3086 = vmatmul.f32.gmra.mxu0 %v9564_v20  ;;  %6704 = vmatmul.msk.f32.gmra.mxu1 %vm2573_vm5, %v9566_v54  ;;  %v9833_v20 = vpop.f32.mrf.mxu2  ;;  %v9835_v54 = vpop.f32.mrf.mxu3  ;;  %v9879_v23 = vmax.f32 %v9580_v32, %v3165_v4  ;;  %v3296_v4 = vld [vmem:[%s12630_s21 + $0x48] sm:$0xff] }
 0x4b4   :  { %12616 = vst [vmem:[#allocation114_spill] sm:$0xff] %v9835_v54 }
 0x4b5   :  { %12624 = vst [vmem:[#allocation87_spill] sm:$0xff] %v9879_v23 }
 0x4b8   :  { %v3042_v30 = vpop.f32.mrf.mxu0  ;;  %v3167_v60 = vpop.f32.mrf.mxu1 }
 0x4bb   :  { %3089 = vmatmul.f32.gmra.mxu0 %v9582_v55  ;;  %6705 = vmatmul.msk.f32.gmra.mxu1 %vm2573_vm5, %v9584_v7  ;;  %v9842_v7 = vpop.f32.mrf.mxu2  ;;  %v9846_v0 = vpop.f32.mrf.mxu3 }
 0x4c0   :  { %v9828_v28 = vpop.f32.mrf.mxu0  ;;  %v3170_v22 = vpop.f32.mrf.mxu1 }
 0x4c1   :  { %12615 = vst [vmem:[#allocation84_spill] sm:$0xff] %v9828_v28  ;;  %v3171_v44 = vadd.f32 %v3170_v22, %v3036_v59 }
 0x4c3   :  { %3092 = vmatmul.f32.gmra.mxu0 %v9600_v25  ;;  %6706 = vmatmul.msk.f32.gmra.mxu1 %vm2573_vm5, %v9602_v49  ;;  %v9858_v39 = vmax.f32 %v9616_v18, %v3171_v44  ;;  %v3159_v18 = vadd.f32 %v3158_v14, %v9778_v51  ;;  %v12628_v51 = vld [vmem:[#allocation105_spill] sm:$0xff] }
 0x4c5   :  { %12621 = vst [vmem:[#allocation117_spill] sm:$0xff] %v9858_v39 }
 0x4c8   :  { %v9837_v63 = vpop.f32.mrf.mxu0  ;;  %v3173_v55 = vpop.f32.mrf.mxu1 }
 0x4c9   :  { %12617 = vst [vmem:[#allocation33_spill] sm:$0xff] %v9837_v63  ;;  %v3174_v49 = vadd.f32 %v3173_v55, %v3039_v15 }
 0x4cb   :  { %3095 = vmatmul.f32.gmra.mxu0 %v9618_v10  ;;  %6707 = vmatmul.msk.f32.gmra.mxu1 %vm2573_vm5, %v9620_v45  ;;  %v9854_v10 = vmax.f32 %v9634_v34, %v3174_v49  ;;  %v3168_v45 = vadd.f32 %v3167_v60, %v3033_v56  ;;  %v3162_v34 = vadd.f32 %v3161_v2, %v9786_v58  ;;  %v9872_v56 = vpop.f32.mrf.mxu3  ;;  %v3293_v49 = vld [vmem:[%s12630_s21 + $0x30] sm:$0xff] }
 0x4cd   :  { %12620 = vst [vmem:[#allocation86_spill] sm:$0xff] %v9854_v10  ;;  %v9883_v40 = vmax.f32 %v9562_v41, %v3162_v34 }
 0x4cf   :  { %12625 = vst [vmem:[#allocation32_spill] sm:$0xff] %v9883_v40 }
 0x4d0   :  { %v9844_v19 = vpop.f32.mrf.mxu0  ;;  %v3176_v25 = vpop.f32.mrf.mxu1 }
 0x4d1   :  { %12618 = vst [vmem:[#allocation85_spill] sm:$0xff] %v9844_v19  ;;  %v3177_v61 = vadd.f32 %v3176_v25, %v3042_v30  ;;  %v3290_v25 = vld [vmem:[%s12630_s21 + $0x18] sm:$0xff] }
 0x4d3   :  { %v9848_v3 = vmax.f32 %v2888_v43, %v3177_v61  ;;  %3098 = vmatmul.f32.gmra.mxu0 %v9636_v1  ;;  %6708 = vmatmul.msk.f32.gmra.mxu1 %vm2573_vm5, %v9638_v35  ;;  %v9865_v1 = vpop.f32.mrf.mxu2  ;;  %v9870_v35 = vmax.f32 %v9598_v6, %v3168_v45  ;;  %v9887_v6 = vmax.f32 %v9544_v38, %v3159_v18  ;;  %v9901_v41 = vpop.f32.mrf.mxu3  ;;  %v12631_v61 = vld [vmem:[#allocation76_spill] sm:$0xff] }
 0x4d5   :  { %12619 = vst [vmem:[#allocation30_spill] sm:$0xff] %v9848_v3  ;;  %3390 = vmatpush.msrb.mxu2 %v9848_v3 }
 0x4d6   :  { %12623 = vst [vmem:[#allocation35_spill] sm:$0xff] %v9870_v35 }
 0x4d7   :  { %3391 = vmatpush.msrb.mxu2 %v9854_v10  ;;  %12626 = vst [vmem:[#allocation88_spill] sm:$0xff] %v9887_v6  ;;  %v3314_v10 = vld [vmem:[%s12630_s21 + $0xd8] sm:$0xff] }
 0x4d8   :  { %v9861_v59 = vpop.f32.mrf.mxu0  ;;  %v9863_v15 = vpop.f32.mrf.mxu1 }
 0x4d9   :  { %12622 = vst [vmem:[#allocation120_spill] sm:$0xff] %v9863_v15  ;;  %3392 = vmatpush.msrb.mxu2 %v9858_v39  ;;  %v3317_v15 = vld [vmem:[%s12630_s21 + $0xf0] sm:$0xff] }
 0x4db   :  { %3101 = vmatmul.f32.gmra.mxu0 %v9652_v11  ;;  %6709 = vmatmul.msk.f32.gmra.mxu1 %vm2573_vm5, %v9654_v62  ;;  %v9895_v32 = vpop.f32.mrf.mxu2  ;;  %v9917_v14 = vpop.f32.mrf.mxu3 }
 0x4dc   :  { %3393 = vmatpush.msrb.mxu2 %v9870_v35 }
 0x4de   :  { %3394 = vmatpush.msrb.mxu2 %v9879_v23 }
 0x4e0   :  { %3395 = vmatpush.msrb.mxu2 %v9883_v40  ;;  %v9890_v11 = vpop.f32.mrf.mxu0  ;;  %v9892_v62 = vpop.f32.mrf.mxu1 }
 0x4e1   :  { %12627 = vst [vmem:[#allocation121_spill] sm:$0xff] %v9892_v62 }
 0x4e2   :  { %3396 = vmatpush.msrb.mxu2 %v9887_v6 }
 0x4e3   :  { %3104 = vmatmul.f32.gmra.mxu0 %v9668_v27  ;;  %6710 = vmatmul.msk.f32.gmra.mxu1 %vm2573_vm5, %v12628_v51  ;;  %v9914_v27 = vpop.f32.mrf.mxu2  ;;  %v9938_v55 = vpop.f32.mrf.mxu3 }
 0x4e4   :  { %3397 = vmatpush.msrb.mxu2 %v9797_v24 }
 0x4e6   :  { %3398 = vmatpush.msrb.mxu2 %v9791_v42  ;;  %v3308_v42 = vld [vmem:[%s12630_s21 + $0xa8] sm:$0xff] }
 0x4e8   :  { %3399 = vmatpush.msrb.mxu2 %v9781_v46  ;;  %v9905_v38 = vpop.f32.mrf.mxu0  ;;  %v9907_v58 = vpop.f32.mrf.mxu1 }
 0x4e9   :  { %12629 = vst [vmem:[#allocation124_spill] sm:$0xff] %v9907_v58 }
 0x4ea   :  { %3400 = vmatpush.msrb.mxu2 %v9773_v47 }
 0x4eb   :  { %3107 = vmatmul.f32.gmra.mxu0 %v9685_v8  ;;  %6711 = vmatmul.msk.f32.gmra.mxu1 %vm2573_vm5, %v9687_v26  ;;  %v3287_v8 = vld [vmem:[%s12630_s21] sm:$0xff]  ;;  %v9932_v26 = vpop.f32.mrf.mxu2  ;;  %v9956_v44 = vpop.f32.mrf.mxu3 }
 0x4ec   :  { %3401 = vmatpush.msrb.mxu2 %v9767_v37  ;;  %v3305_v37 = vld [vmem:[%s12630_s21 + $0x90] sm:$0xff] }
 0x4ee   :  { %3402 = vmatpush.msrb.mxu2 %v9761_v13 }
 0x4f0   :  { %3403 = vmatpush.msrb.mxu2 %v9755_v12  ;;  %v9920_v2 = vpop.f32.mrf.mxu0  ;;  %v9922_v30 = vpop.f32.mrf.mxu1 }
 0x4f2   :  { %3404 = vmatpush.msrb.mxu2 %v9749_v17 }
 0x4f3   :  { %3110 = vmatmul.f32.gmra.mxu0 %v9702_v57  ;;  %6712 = vmatmul.msk.f32.gmra.mxu1 %vm2573_vm5, %v9704_v53  ;;  %v9949_v43 = vpop.f32.mrf.mxu2  ;;  %v9967_v18 = vpop.f32.mrf.mxu3 }
 0x4f4   :  { %3405 = vmatpush.msrb.mxu2 %v9743_v48 }
 0x4f5   :  { %3406 = vmatmul.f32.vlgmr.msrb.gmra.mxu2 %v3287_v8 }
 0x4f8   :  { %v9934_v60 = vpop.f32.mrf.mxu0  ;;  %v9936_v22 = vpop.f32.mrf.mxu1 }
 0x4fb   :  { %6713 = vmatmul.msk.f32.gmra.mxu1 %vm2573_vm5, %v9715_v16  ;;  %v2792_v34 = vpop.f32.mrf.mxu2 }
 0x4fd   :  { %3409 = vmatmul.f32.gmra.mxu2 %v3290_v25  ;;  %v3299_v25 = vld [vmem:[%s12630_s21 + $0x60] sm:$0xff] }
 0x500   :  { %v9945_v57 = vpop.f32.mrf.mxu0  ;;  %v9947_v53 = vpop.f32.mrf.mxu1 }
 0x503   :  { %6714 = vmatmul.msk.f32.gmra.mxu1 %vm2573_vm5, %v12631_v61  ;;  %v2923_v61 = vpop.f32.mrf.mxu3 }
 0x505   :  { %3412 = vmatmul.f32.gmra.mxu2 %v3293_v49  ;;  %v2795_v49 = vpop.f32.mrf.mxu2 }
 0x508   :  { %v9958_v45 = vpop.f32.mrf.mxu0  ;;  %v9960_v16 = vpop.f32.mrf.mxu1 }
 0x50b   :  { %6715 = vmatmul.msk.f32.gmra.mxu1 %vm2573_vm5, %v9735_v29  ;;  %v3302_v29 = vld [vmem:[%s12630_s21 + $0x78] sm:$0xff]  ;;  %v2926_v13 = vpop.f32.mrf.mxu3 }
 0x50d   :  { %3415 = vmatmul.f32.gmra.mxu2 %v3296_v4  ;;  %v2798_v4 = vpop.f32.mrf.mxu2 }
 0x510   :  { %v9969_v51 = vpop.f32.mrf.mxu0  ;;  %v9971_v8 = vpop.f32.mrf.mxu1 }
 0x513   :  { %v2929_v24 = vpop.f32.mrf.mxu3 }
 0x514   :  { %v2930_v19 = vadd.f32 %v2929_v24, %v2795_v49 }
 0x515   :  { %3418 = vmatmul.f32.gmra.mxu2 %v3299_v25  ;;  %v2801_v46 = vpop.f32.mrf.mxu2 }
 0x518   :  { %v9976_v48 = vpop.f32.mrf.mxu1  ;;  %v3078_v17 = vpop.f32.mrf.mxu0 }
 0x51b   :  { %v2932_v35 = vpop.f32.mrf.mxu3 }
 0x51d   :  { %3421 = vmatmul.f32.gmra.mxu2 %v3302_v29  ;;  %v3311_v29 = vld [vmem:[%s12630_s21 + $0xc0] sm:$0xff]  ;;  %v9990_v23 = vpop.f32.mrf.mxu2 }
 0x51e   :  { %12632 = vst [vmem:[#allocation37_spill] sm:$0xff] %v9990_v23 }
 0x520   :  { %v3206_v12 = vpop.f32.mrf.mxu1  ;;  %v3081_v47 = vpop.f32.mrf.mxu0 }
 0x523   :  { %v2935_v5 = vpop.f32.mrf.mxu3 }
 0x524   :  { %v2936_v36 = vadd.f32 %v2935_v5, %v2801_v46  ;;  %v2927_v46 = vadd.f32 %v2926_v13, %v2792_v34  ;;  %v3207_v13 = vadd.f32 %v3206_v12, %v9958_v45  ;;  %v2915_v12 = vadd.f32 %v9938_v55, %v9895_v32  ;;  %v3329_v32 = vld [vmem:[%s12630_s21 + $0x150] sm:$0xff]  ;;  %v12639_v45 = vld [vmem:[#allocation124_spill] sm:$0xff] }
 0x525   :  { %3424 = vmatmul.f32.gmra.mxu2 %v3305_v37  ;;  %v9995_v3 = vpop.f32.mrf.mxu2  ;;  %v3195_v55 = vadd.f32 %v9947_v53, %v9905_v38  ;;  %v12638_v53 = vld [vmem:[#allocation85_spill] sm:$0xff] }
 0x526   :  { %12633 = vst [vmem:[#allocation89_spill] sm:$0xff] %v9995_v3 }
 0x528   :  { %v3209_v25 = vpop.f32.mrf.mxu1  ;;  %v3084_v6 = vpop.f32.mrf.mxu0 }
 0x529   :  { %v3210_v24 = vadd.f32 %v3209_v25, %v9969_v51  ;;  %v12642_v51 = vld [vmem:[#allocation33_spill] sm:$0xff] }
 0x52b   :  { %v10002_v28 = vpop.f32.mrf.mxu3 }
 0x52c   :  { %12635 = vst [vmem:[#allocation90_spill] sm:$0xff] %v10002_v28 }
 0x52d   :  { %3427 = vmatmul.f32.gmra.mxu2 %v3308_v42  ;;  %v10000_v23 = vpop.f32.mrf.mxu2 }
 0x52e   :  { %12634 = vst [vmem:[#allocation34_spill] sm:$0xff] %v10000_v23  ;;  %v2933_v23 = vadd.f32 %v2932_v35, %v2798_v4  ;;  %v12645_v4 = vld [vmem:[#allocation83_spill] sm:$0xff] }
 0x530   :  { %v3212_v40 = vpop.f32.mrf.mxu1  ;;  %v3087_v39 = vpop.f32.mrf.mxu0 }
 0x533   :  { %v10016_v58 = vpop.f32.mrf.mxu3 }
 0x535   :  { %3430 = vmatmul.f32.gmra.mxu2 %v3311_v29  ;;  %v10009_v9 = vpop.f32.mrf.mxu2 }
 0x538   :  { %v3215_v37 = vpop.f32.mrf.mxu1  ;;  %v3090_v21 = vpop.f32.mrf.mxu0 }
 0x539   :  { %v3216_v54 = vadd.f32 %v3215_v37, %v3081_v47  ;;  %v12646_v37 = vld [vmem:[#allocation84_spill] sm:$0xff] }
 0x53b   :  { %v10030_v47 = vmax.f32 %v2927_v46, %v3216_v54  ;;  %v2918_v54 = vadd.f32 %v9956_v44, %v9914_v27  ;;  %v2912_v27 = vadd.f32 %v9917_v14, %v9865_v1  ;;  %v2906_v1 = vadd.f32 %v9872_v56, %v9833_v20  ;;  %v12648_v46 = vld [vmem:[#allocation29_spill] sm:$0xff] }
 0x53c   :  { %v3192_v14 = vadd.f32 %v9936_v22, %v9890_v11  ;;  %v12637_v11 = vld [vmem:[#allocation114_spill] sm:$0xff] }
 0x53d   :  { %3433 = vmatmul.f32.gmra.mxu2 %v3314_v10  ;;  %v10094_v38 = vmax.f32 %v2906_v1, %v3195_v55  ;;  %v2900_v22 = vadd.f32 %v12637_v11, %v9814_v33  ;;  %v12644_v33 = vld [vmem:[#allocation81_spill] sm:$0xff]  ;;  %v3291_v1 = vld [vmem:[%s12630_s21 + $0x20] sm:$0xff] }
 0x53e   :  { %v2894_v25 = vadd.f32 %v12645_v4, %v12644_v33  ;;  %v12652_v55 = vld [vmem:[#allocation117_spill] sm:$0xff]  ;;  %v12654_v11 = vld [vmem:[#allocation87_spill] sm:$0xff] }
 0x540   :  { %v3218_v42 = vpop.f32.mrf.mxu1  ;;  %v10007_v10 = vpop.f32.mrf.mxu0 }
 0x541   :  { %12636 = vst [vmem:[#allocation125_spill] sm:$0xff] %v10007_v10  ;;  %v3219_v50 = vadd.f32 %v3218_v42, %v3084_v6  ;;  %v10057_v6 = vmax.f32 %v2918_v54, %v3207_v13  ;;  %v12647_v42 = vld [vmem:[#allocation120_spill] sm:$0xff] }
 0x542   :  { %v3288_v54 = vld [vmem:[%s12630_s21 + $0x8] sm:$0xff] }
 0x543   :  { %v10023_v5 = vmax.f32 %v2930_v19, %v3219_v50  ;;  %v10042_v19 = vpop.f32.mrf.mxu2 }
 0x545   :  { %3436 = vmatmul.f32.gmra.mxu2 %v3317_v15  ;;  %v3323_v15 = vld [vmem:[%s12630_s21 + $0x120] sm:$0xff] }
 0x548   :  { %v3221_v29 = vpop.f32.mrf.mxu1  ;;  %v10018_v10 = vpop.f32.mrf.mxu0 }
 0x549   :  { %v3222_v62 = vadd.f32 %v3221_v29, %v3087_v39  ;;  %v3204_v39 = vadd.f32 %v9976_v48, %v9945_v57  ;;  %v3180_v29 = vadd.f32 %v12647_v42, %v12646_v37  ;;  %v12660_v42 = vld [vmem:[#allocation109_spill] sm:$0xff] }
 0x54b   :  { %v10068_v57 = vmax.f32 %v2915_v12, %v3204_v39  ;;  %v10088_v44 = vpop.f32.mrf.mxu2  ;;  %v3335_v12 = vld [vmem:[%s12630_s21 + $0x180] sm:$0xff] }
 0x54d   :  { %3439 = vmatmul.f32.gmra.mxu2 %v3320_v52  ;;  %v10020_v52 = vmax.f32 %v2933_v23, %v3222_v62  ;;  %v10051_v23 = vpop.f32.mrf.mxu3 }
 0x550   :  { %v3224_v3 = vpop.f32.mrf.mxu1  ;;  %v10059_v62 = vpop.f32.mrf.mxu0 }
 0x551   :  { %v3225_v63 = vadd.f32 %v3224_v3, %v3090_v21  ;;  %v3213_v21 = vadd.f32 %v3212_v40, %v3078_v17  ;;  %v2921_v17 = vadd.f32 %v9967_v18, %v9932_v26  ;;  %v3201_v40 = vadd.f32 %v9971_v8, %v9934_v60  ;;  %v12643_v8 = vld [vmem:[#allocation121_spill] sm:$0xff] }
 0x552   :  { %v3198_v26 = vadd.f32 %v9960_v16, %v9920_v2  ;;  %v2909_v60 = vadd.f32 %v9901_v41, %v9842_v7  ;;  %v2903_v7 = vadd.f32 %v9846_v0, %v9821_v31  ;;  %v3189_v41 = vadd.f32 %v9922_v30, %v9861_v59  ;;  %v3332_v0 = vld [vmem:[%s12630_s21 + $0x168] sm:$0xff]  ;;  %v12640_v59 = vld [vmem:[#allocation82_spill] sm:$0xff] }
 0x553   :  { %v10014_v28 = vmax.f32 %v2936_v36, %v3225_v63  ;;  %v2924_v36 = vadd.f32 %v2923_v61, %v9949_v43  ;;  %v3326_v63 = vld [vmem:[%s12630_s21 + $0x138] sm:$0xff]  ;;  %v10048_v35 = vmax.f32 %v2921_v17, %v3210_v24  ;;  %v10078_v43 = vmax.f32 %v2912_v27, %v3201_v40  ;;  %v12641_v30 = vld [vmem:[#allocation28_spill] sm:$0xff] }
 0x554   :  { %v10085_v2 = vmax.f32 %v2909_v60, %v3198_v26  ;;  %v3186_v16 = vadd.f32 %v12639_v45, %v12638_v53  ;;  %v10105_v34 = vmax.f32 %v2903_v7, %v3192_v14  ;;  %v2897_v18 = vadd.f32 %v12641_v30, %v12640_v59  ;;  %v12650_v27 = vld [vmem:[#allocation30_spill] sm:$0xff]  ;;  %v12653_v14 = vld [vmem:[#allocation35_spill] sm:$0xff]  ;;  %v12658_v30 = vld [vmem:[#allocation80_spill] sm:$0xff] }
 0x555   :  { %3458 = vmatpush.msra.mxu3 %v10014_v28  ;;  %3442 = vmatmul.f32.gmra.mxu2 %v3323_v15  ;;  %v10039_v50 = vmax.f32 %v2924_v36, %v3213_v21  ;;  %v10097_v20 = vpop.f32.mrf.mxu3  ;;  %v3183_v49 = vadd.f32 %v12643_v8, %v12642_v51  ;;  %v10115_v61 = vmax.f32 %v2900_v22, %v3189_v41  ;;  %v12649_v21 = vld [vmem:[#allocation31_spill] sm:$0xff]  ;;  %v12651_v26 = vld [vmem:[#allocation86_spill] sm:$0xff]  ;;  %v12655_v22 = vld [vmem:[#allocation32_spill] sm:$0xff] }
 0x556   :  { %v10122_v15 = vmax.f32 %v2897_v18, %v3186_v16  ;;  %v2891_v36 = vadd.f32 %v12649_v21, %v12648_v46  ;;  %v12656_v16 = vld [vmem:[#allocation88_spill] sm:$0xff]  ;;  %v12657_v59 = vld [vmem:[#allocation26_spill] sm:$0xff]  ;;  %v12659_v8 = vld [vmem:[#allocation79_spill] sm:$0xff] }
 0x557   :  { %3459 = vmatpush.msra.mxu3 %v10020_v52  ;;  %v10127_v24 = vmax.f32 %v2894_v25, %v3183_v49 }
 0x558   :  { %v10026_v3 = vpop.f32.mrf.mxu1  ;;  %v3102_v31 = vpop.f32.mrf.mxu0  ;;  %v10130_v13 = vmax.f32 %v2891_v36, %v3180_v29  ;;  %v3297_v29 = vld [vmem:[%s12630_s21 + $0x50] sm:$0xff] }
 0x559   :  { %3460 = vmatpush.msra.mxu3 %v10023_v5 }
 0x55b   :  { %3461 = vmatpush.msra.mxu3 %v10030_v47 }
 0x55d   :  { %3462 = vmatpush.msra.mxu3 %v10039_v50  ;;  %3445 = vmatmul.f32.gmra.mxu2 %v3326_v63  ;;  %v2822_v63 = vpop.f32.mrf.mxu2  ;;  %v2950_v39 = vpop.f32.mrf.mxu3 }
 0x55f   :  { %3463 = vmatpush.msra.mxu3 %v10048_v35 }
 0x560   :  { %v10062_v48 = vpop.f32.mrf.mxu1  ;;  %v3105_v40 = vpop.f32.mrf.mxu0 }
 0x561   :  { %3464 = vmatpush.msra.mxu3 %v10057_v6 }
 0x563   :  { %3465 = vmatpush.msra.mxu3 %v10068_v57 }
 0x565   :  { %3466 = vmatpush.msra.mxu3 %v10078_v43  ;;  %3448 = vmatmul.f32.gmra.mxu2 %v3329_v32  ;;  %v2953_v7 = vpop.f32.mrf.mxu3 }
 0x566   :  { %v2954_v46 = vadd.f32 %v2953_v7, %v10088_v44  ;;  %v12663_v44 = vld [vmem:[#allocation24_spill] sm:$0xff] }
 0x567   :  { %3467 = vmatpush.msra.mxu3 %v10085_v2 }
 0x568   :  { %v10099_v56 = vpop.f32.mrf.mxu1  ;;  %v3108_v41 = vpop.f32.mrf.mxu0 }
 0x569   :  { %3468 = vmatpush.msra.mxu3 %v10094_v38 }
 0x56b   :  { %3469 = vmatpush.msra.mxu3 %v10105_v34 }
 0x56d   :  { %3470 = vmatpush.msra.mxu3 %v10115_v61  ;;  %3451 = vmatmul.f32.gmra.mxu2 %v3332_v0  ;;  %v3294_v0 = vld [vmem:[%s12630_s21 + $0x38] sm:$0xff]  ;;  %v2956_v18 = vpop.f32.mrf.mxu3 }
 0x56e   :  { %v2957_v4 = vadd.f32 %v2956_v18, %v2822_v63  ;;  %v12662_v63 = vld [vmem:[#allocation78_spill] sm:$0xff]  ;;  %v3313_v18 = vld [vmem:[%s12630_s21 + $0xd0] sm:$0xff] }
 0x56f   :  { %3471 = vmatpush.msra.mxu3 %v10122_v15 }
 0x570   :  { %v3236_v17 = vpop.f32.mrf.mxu1  ;;  %v3111_v51 = vpop.f32.mrf.mxu0 }
 0x571   :  { %3472 = vmatpush.msra.mxu3 %v10127_v24 }
 0x573   :  { %3473 = vmatpush.msra.mxu3 %v10130_v13 }
 0x574   :  { %3474 = vmatmul.f32.vlgmr.msra.gmra.mxu3 %v3288_v54  ;;  %v12661_v54 = vld [vmem:[#allocation106_spill] sm:$0xff] }
 0x575   :  { %3696 = vmatpush.msrb.mxu3 %v12650_v27  ;;  %3454 = vmatmul.f32.gmra.mxu2 %v3335_v12  ;;  %v2951_v12 = vadd.f32 %v2950_v39, %v10042_v19  ;;  %v3237_v27 = vadd.f32 %v3236_v17, %v3102_v31  ;;  %v3231_v19 = vadd.f32 %v10062_v48, %v10018_v10  ;;  %v12665_v17 = vld [vmem:[#allocation77_spill] sm:$0xff]  ;;  %v12670_v48 = vld [vmem:[#allocation90_spill] sm:$0xff] }
 0x576   :  { %v12667_v39 = vld [vmem:[#allocation125_spill] sm:$0xff] }
 0x577   :  { %3697 = vmatpush.msrb.mxu3 %v12651_v26  ;;  %v3228_v7 = vadd.f32 %v10026_v3, %v12667_v39  ;;  %v12669_v10 = vld [vmem:[#allocation37_spill] sm:$0xff]  ;;  %v3303_v3 = vld [vmem:[%s12630_s21 + $0x80] sm:$0xff] }
 0x578   :  { %v3239_v32 = vpop.f32.mrf.mxu1  ;;  %v10142_v60 = vpop.f32.mrf.mxu2  ;;  %v3606_v39 = vld [vmem:[%s12204_s5 + $0x60] sm:$0xff] }
 0x579   :  { %3698 = vmatpush.msrb.mxu3 %v12652_v55  ;;  %v3240_v21 = vadd.f32 %v3239_v32, %v3105_v40  ;;  %v2948_v55 = vadd.f32 %v10097_v20, %v10009_v9  ;;  %v12664_v40 = vld [vmem:[#allocation34_spill] sm:$0xff]  ;;  %v3300_v9 = vld [vmem:[%s12630_s21 + $0x68] sm:$0xff] }
 0x57a   :  { %v2945_v32 = vadd.f32 %v10051_v23, %v12664_v40  ;;  %v3600_v40 = vld [vmem:[%s12204_s5 + $0x30] sm:$0xff] }
 0x57b   :  { %3699 = vmatpush.msrb.mxu3 %v12653_v14  ;;  %v3284_v14 = vmax.f32 %v2951_v12, %v3240_v21  ;;  %v3283_v31 = vmax.f32 %v2948_v55, %v3237_v27  ;;  %v3336_v21 = vld [vmem:[%s12630_s21 + $0x188] sm:$0xff]  ;;  %v3325_v12 = vld [vmem:[%s12630_s21 + $0x130] sm:$0xff]  ;;  %v3594_v27 = vld [vmem:[%s12204_s5] sm:$0xff] }
 0x57c   :  { %3477 = vmatmul.f32.gmra.mxu3 %v3291_v1  ;;  %v3234_v1 = vadd.f32 %v10099_v56, %v10059_v62  ;;  %v12666_v62 = vld [vmem:[#allocation89_spill] sm:$0xff] }
 0x57d   :  { %3700 = vmatpush.msrb.mxu3 %v12654_v11  ;;  %v2942_v56 = vadd.f32 %v10016_v58, %v12666_v62  ;;  %v2939_v11 = vadd.f32 %v12670_v48, %v12669_v10  ;;  %v3289_v58 = vld [vmem:[%s12630_s21 + $0x10] sm:$0xff]  ;;  %v3595_v48 = vld [vmem:[%s12204_s5 + $0x8] sm:$0xff] }
 0x57e   :  { %v3282_v23 = vmax.f32 %v2945_v32, %v3234_v1  ;;  %v3597_v1 = vld [vmem:[%s12204_s5 + $0x18] sm:$0xff] }
 0x57f   :  { %3701 = vmatpush.msrb.mxu3 %v12655_v22  ;;  %v3281_v22 = vmax.f32 %v2942_v56, %v3231_v19  ;;  %v3337_v56 = vld [vmem:[%s12630_s21 + $0x190] sm:$0xff] }
 0x580   :  { %v3242_v53 = vpop.f32.mrf.mxu1  ;;  %v10151_v45 = vpop.f32.mrf.mxu2 }
 0x581   :  { %3702 = vmatpush.msrb.mxu3 %v12656_v16  ;;  %v3243_v25 = vadd.f32 %v3242_v53, %v3108_v41  ;;  %v12668_v41 = vld [vmem:[#allocation27_spill] sm:$0xff]  ;;  %v3280_v53 = vmax.f32 %v2939_v11, %v3228_v7  ;;  %v3609_v11 = vld [vmem:[%s12204_s5 + $0x78] sm:$0xff] }
 0x583   :  { %3703 = vmatpush.msrb.mxu3 %v12657_v59  ;;  %v3285_v26 = vmax.f32 %v2954_v46, %v3243_v25  ;;  %v3310_v59 = vld [vmem:[%s12630_s21 + $0xb8] sm:$0xff] }
 0x584   :  { %3480 = vmatmul.f32.gmra.mxu3 %v3294_v0  ;;  %v3306_v0 = vld [vmem:[%s12630_s21 + $0x98] sm:$0xff] }
 0x585   :  { %3704 = vmatpush.msrb.mxu3 %v12658_v30  ;;  %v3324_v30 = vld [vmem:[%s12630_s21 + $0x128] sm:$0xff]  ;;  %v3322_v46 = vld [vmem:[%s12630_s21 + $0x118] sm:$0xff] }
 0x587   :  { %3705 = vmatpush.msrb.mxu3 %v12659_v8  ;;  %v3327_v8 = vld [vmem:[%s12630_s21 + $0x140] sm:$0xff] }
 0x588   :  { %v3245_v49 = vpop.f32.mrf.mxu1  ;;  %v10160_v33 = vpop.f32.mrf.mxu2 }
 0x589   :  { %v3246_v37 = vadd.f32 %v3245_v49, %v3111_v51  ;;  %3706 = vmatpush.msrb.mxu3 %v12660_v42  ;;  %v3316_v49 = vld [vmem:[%s12630_s21 + $0xe8] sm:$0xff]  ;;  %v3333_v42 = vld [vmem:[%s12630_s21 + $0x170] sm:$0xff] }
 0x58b   :  { %v3286_v36 = vmax.f32 %v2957_v4, %v3246_v37  ;;  %3707 = vmatpush.msrb.mxu3 %v12661_v54  ;;  %v3330_v4 = vld [vmem:[%s12630_s21 + $0x158] sm:$0xff]  ;;  %v3319_v37 = vld [vmem:[%s12630_s21 + $0x100] sm:$0xff] }
 0x58c   :  { %3483 = vmatmul.f32.gmra.mxu3 %v3297_v29 }
 0x58d   :  { %3708 = vmatpush.msrb.mxu3 %v12662_v63  ;;  %3535 = vmatpush.msra.mxu2 %v3286_v36  ;;  %v3328_v63 = vld [vmem:[%s12630_s21 + $0x148] sm:$0xff] }
 0x58f   :  { %3709 = vmatpush.msrb.mxu3 %v12663_v44  ;;  %3536 = vmatpush.msra.mxu2 %v3285_v26  ;;  %v3331_v44 = vld [vmem:[%s12630_s21 + $0x160] sm:$0xff] }
 0x590   :  { %v10183_v20 = vpop.f32.mrf.mxu2 }
 0x591   :  { %3710 = vmatpush.msrb.mxu3 %v12665_v17  ;;  %3537 = vmatpush.msra.mxu2 %v3284_v14  ;;  %v3603_v17 = vld [vmem:[%s12204_s5 + $0x48] sm:$0xff] }
 0x593   :  { %3711 = vmatpush.msrb.mxu3 %v12668_v41  ;;  %3538 = vmatpush.msra.mxu2 %v3283_v31 }
 0x594   :  { %3486 = vmatmul.f32.gmra.mxu3 %v3300_v9 }
 0x595   :  { %3841 = vmatpush.msra.mxu3 %v3286_v36  ;;  %3539 = vmatpush.msra.mxu2 %v3282_v23 }
 0x597   :  { %3842 = vmatpush.msra.mxu3 %v3285_v26  ;;  %3540 = vmatpush.msra.mxu2 %v3281_v22 }
 0x598   :  { %v10201_v16 = vpop.f32.mrf.mxu2 }
 0x599   :  { %3843 = vmatpush.msra.mxu3 %v3284_v14  ;;  %3541 = vmatpush.msra.mxu2 %v3280_v53 }
 0x59a   :  { %6716 = vmatmul.msk.f32.vlgmr.msra.gmra.mxu2 %vm3338_vm6, %v3289_v58 }
 0x59b   :  { %3844 = vmatpush.msra.mxu3 %v3283_v31  ;;  %3764 = vmatpush.msrb.mxu2 %v10014_v28  ;;  %v3292_v28 = vld [vmem:[%s12630_s21 + $0x28] sm:$0xff]  ;;  %v3334_v31 = vld [vmem:[%s12630_s21 + $0x178] sm:$0xff] }
 0x59c   :  { %3489 = vmatmul.f32.gmra.mxu3 %v3303_v3  ;;  %v3598_v3 = vld [vmem:[%s12204_s5 + $0x20] sm:$0xff] }
 0x59d   :  { %3845 = vmatpush.msra.mxu3 %v3282_v23  ;;  %3765 = vmatpush.msrb.mxu2 %v10020_v52 }
 0x59f   :  { %3846 = vmatpush.msra.mxu3 %v3281_v22  ;;  %3766 = vmatpush.msrb.mxu2 %v10023_v5  ;;  %v3295_v5 = vld [vmem:[%s12630_s21 + $0x40] sm:$0xff] }
 0x5a0   :  { %v10215_v52 = vpop.f32.mrf.mxu2 }
 0x5a1   :  { %3847 = vmatpush.msra.mxu3 %v3280_v53  ;;  %3767 = vmatpush.msrb.mxu2 %v10030_v47  ;;  %v3309_v47 = vld [vmem:[%s12630_s21 + $0xb0] sm:$0xff] }
 0x5a2   :  { %6717 = vmatmul.msk.f32.gmra.mxu2 %vm3338_vm6, %v3292_v28  ;;  %v3612_v28 = vld [vmem:[%s12204_s5 + $0x90] sm:$0xff] }
 0x5a3   :  { %3768 = vmatpush.msrb.mxu2 %v10039_v50  ;;  %v3298_v50 = vld [vmem:[%s12630_s21 + $0x58] sm:$0xff] }
 0x5a4   :  { %3492 = vmatmul.f32.gmra.mxu3 %v3306_v0 }
 0x5a5   :  { %3769 = vmatpush.msrb.mxu2 %v10048_v35 }
 0x5a7   :  { %3770 = vmatpush.msrb.mxu2 %v10057_v6  ;;  %v3312_v6 = vld [vmem:[%s12630_s21 + $0xc8] sm:$0xff] }
 0x5a8   :  { %v10232_v35 = vpop.f32.mrf.mxu2 }
 0x5a9   :  { %3771 = vmatpush.msrb.mxu2 %v10068_v57  ;;  %v3301_v57 = vld [vmem:[%s12630_s21 + $0x70] sm:$0xff] }
 0x5aa   :  { %6718 = vmatmul.msk.f32.gmra.mxu2 %vm3338_vm6, %v3295_v5 }
 0x5ab   :  { %3772 = vmatpush.msrb.mxu2 %v10078_v43  ;;  %v3315_v43 = vld [vmem:[%s12630_s21 + $0xe0] sm:$0xff] }
 0x5ac   :  { %3495 = vmatmul.f32.gmra.mxu3 %v3309_v47 }
 0x5ad   :  { %3773 = vmatpush.msrb.mxu2 %v10085_v2 }
 0x5af   :  { %3774 = vmatpush.msrb.mxu2 %v10094_v38  ;;  %v3304_v38 = vld [vmem:[%s12630_s21 + $0x88] sm:$0xff] }
 0x5b0   :  { %v10248_v2 = vpop.f32.mrf.mxu2 }
 0x5b1   :  { %3775 = vmatpush.msrb.mxu2 %v10105_v34  ;;  %v3318_v34 = vld [vmem:[%s12630_s21 + $0xf8] sm:$0xff] }
 0x5b2   :  { %6719 = vmatmul.msk.f32.gmra.mxu2 %vm3338_vm6, %v3298_v50  ;;  %v3601_v50 = vld [vmem:[%s12204_s5 + $0x38] sm:$0xff] }
 0x5b3   :  { %3776 = vmatpush.msrb.mxu2 %v10115_v61 }
 0x5b4   :  { %3498 = vmatmul.f32.gmra.mxu3 %v3312_v6  ;;  %v3615_v6 = vld [vmem:[%s12204_s5 + $0xa8] sm:$0xff] }
 0x5b5   :  { %3777 = vmatpush.msrb.mxu2 %v10122_v15  ;;  %v3307_v15 = vld [vmem:[%s12630_s21 + $0xa0] sm:$0xff] }
 0x5b7   :  { %3778 = vmatpush.msrb.mxu2 %v10127_v24  ;;  %v3321_v24 = vld [vmem:[%s12630_s21 + $0x110] sm:$0xff] }
 0x5b8   :  { %v10258_v61 = vpop.f32.mrf.mxu2 }
 0x5b9   :  { %3779 = vmatpush.msrb.mxu2 %v10130_v13 }
 0x5ba   :  { %6720 = vmatmul.msk.f32.gmra.mxu2 %vm3338_vm6, %v3301_v57 }
 0x5bc   :  { %3501 = vmatmul.f32.gmra.mxu3 %v3315_v43 }
 0x5c0   :  { %v10267_v13 = vpop.f32.mrf.mxu2 }
 0x5c2   :  { %6721 = vmatmul.msk.f32.gmra.mxu2 %vm3338_vm6, %v3304_v38 }
 0x5c4   :  { %3504 = vmatmul.f32.gmra.mxu3 %v3318_v34  ;;  %v3604_v34 = vld [vmem:[%s12204_s5 + $0x50] sm:$0xff] }
 0x5c8   :  { %v10279_v51 = vpop.f32.mrf.mxu2 }
 0x5ca   :  { %6722 = vmatmul.msk.f32.gmra.mxu2 %vm3338_vm6, %v3307_v15  ;;  %v3618_v15 = vld [vmem:[%s12204_s5 + $0xc0] sm:$0xff] }
 0x5cc   :  { %3507 = vmatmul.f32.gmra.mxu3 %v3321_v24 }
 0x5d0   :  { %v10291_v25 = vpop.f32.mrf.mxu2 }
 0x5d2   :  { %6723 = vmatmul.msk.f32.gmra.mxu2 %vm3338_vm6, %v3310_v59 }
 0x5d4   :  { %3510 = vmatmul.f32.gmra.mxu3 %v3324_v30 }
 0x5d8   :  { %v10301_v29 = vpop.f32.mrf.mxu2 }
 0x5da   :  { %6724 = vmatmul.msk.f32.gmra.mxu2 %vm3338_vm6, %v3313_v18  ;;  %v3607_v18 = vld [vmem:[%s12204_s5 + $0x68] sm:$0xff] }
 0x5dc   :  { %3513 = vmatmul.f32.gmra.mxu3 %v3327_v8  ;;  %v3621_v8 = vld [vmem:[%s12204_s5 + $0xd8] sm:$0xff] }
 0x5e0   :  { %v10310_v36 = vpop.f32.mrf.mxu2 }
 0x5e2   :  { %6725 = vmatmul.msk.f32.gmra.mxu2 %vm3338_vm6, %v3316_v49 }
 0x5e4   :  { %3516 = vmatmul.f32.gmra.mxu3 %v3330_v4 }
 0x5e8   :  { %v10322_v55 = vpop.f32.mrf.mxu2 }
 0x5ea   :  { %6726 = vmatmul.msk.f32.gmra.mxu2 %vm3338_vm6, %v3319_v37 }
 0x5ec   :  { %3519 = vmatmul.f32.gmra.mxu3 %v3333_v42  ;;  %v3610_v42 = vld [vmem:[%s12204_s5 + $0x80] sm:$0xff] }
 0x5f0   :  { %v10334_v32 = vpop.f32.mrf.mxu2 }
 0x5f2   :  { %6727 = vmatmul.msk.f32.gmra.mxu2 %vm3338_vm6, %v3322_v46  ;;  %v3624_v46 = vld [vmem:[%s12204_s5 + $0xf0] sm:$0xff] }
 0x5f4   :  { %3522 = vmatmul.f32.gmra.mxu3 %v3336_v21 }
 0x5f7   :  { %v3475_v54 = vpop.f32.mrf.mxu3 }
 0x5f8   :  { %v10344_v9 = vpop.f32.mrf.mxu2  ;;  %v3476_v7 = vadd.f32 %v3475_v54, %v10142_v60 }
 0x5fa   :  { %6728 = vmatmul.msk.f32.gmra.mxu2 %vm3338_vm6, %v3325_v12 }
 0x5fc   :  { %3712 = vmatmul.f32.vlgmr.msrb.gmra.mxu3 %v3594_v27  ;;  %v3613_v27 = vld [vmem:[%s12204_s5 + $0x98] sm:$0xff] }
 0x5ff   :  { %v3478_v26 = vpop.f32.mrf.mxu3 }
 0x600   :  { %v3479_v22 = vadd.f32 %v3478_v26, %v10151_v45  ;;  %v3627_v26 = vld [vmem:[%s12204_s5 + $0x108] sm:$0xff] }
 0x602   :  { %6729 = vmatmul.msk.f32.gmra.mxu2 %vm3338_vm6, %v3328_v63 }
 0x604   :  { %3715 = vmatmul.f32.gmra.mxu3 %v3597_v1 }
 0x607   :  { %v3481_v14 = vpop.f32.mrf.mxu3 }
 0x608   :  { %v3482_v0 = vadd.f32 %v3481_v14, %v10160_v33 }
 0x60a   :  { %6730 = vmatmul.msk.f32.gmra.mxu2 %vm3338_vm6, %v3331_v44  ;;  %v3616_v44 = vld [vmem:[%s12204_s5 + $0xb0] sm:$0xff] }
 0x60c   :  { %3718 = vmatmul.f32.gmra.mxu3 %v3600_v40  ;;  %v3630_v40 = vld [vmem:[%s12204_s5 + $0x120] sm:$0xff] }
 0x60f   :  { %v3484_v19 = vpop.f32.mrf.mxu3 }
 0x610   :  { %v3485_v57 = vadd.f32 %v3484_v19, %v10183_v20 }
 0x612   :  { %6731 = vmatmul.msk.f32.gmra.mxu2 %vm3338_vm6, %v3334_v31 }
 0x614   :  { %3721 = vmatmul.f32.gmra.mxu3 %v3603_v17 }
 0x617   :  { %v3487_v62 = vpop.f32.mrf.mxu3 }
 0x618   :  { %v3488_v24 = vadd.f32 %v3487_v62, %v10201_v16  ;;  %v3619_v62 = vld [vmem:[%s12204_s5 + $0xc8] sm:$0xff] }
 0x61a   :  { %6732 = vmatmul.msk.f32.gmra.mxu2 %vm3338_vm6, %v3337_v56  ;;  %v3633_v56 = vld [vmem:[%s12204_s5 + $0x138] sm:$0xff] }
 0x61c   :  { %3724 = vmatmul.f32.gmra.mxu3 %v3606_v39 }
 0x61d   :  { %v3543_v23 = vpop.f32.mrf.mxu2 }
 0x61e   :  { %v10354_v41 = vadd.f32 %v3543_v23, %v3476_v7 }
 0x61f   :  { %v3490_v10 = vpop.f32.mrf.mxu3 }
 0x620   :  { %v3491_v49 = vadd.f32 %v3490_v10, %v10215_v52  ;;  %v3622_v10 = vld [vmem:[%s12204_s5 + $0xe0] sm:$0xff] }
 0x622   :  { %3780 = vmatmul.f32.vlgmr.msrb.gmra.mxu2 %v3595_v48  ;;  %v3636_v48 = vld [vmem:[%s12204_s5 + $0x150] sm:$0xff] }
 0x624   :  { %3727 = vmatmul.f32.gmra.mxu3 %v3609_v11 }
 0x625   :  { %v3546_v53 = vpop.f32.mrf.mxu2 }
 0x626   :  { %v10363_v58 = vadd.f32 %v3546_v53, %v3479_v22  ;;  %v3639_v22 = vld [vmem:[%s12204_s5 + $0x168] sm:$0xff] }
 0x627   :  { %v3493_v60 = vpop.f32.mrf.mxu3 }
 0x628   :  { %v3494_v21 = vadd.f32 %v3493_v60, %v10232_v35  ;;  %v3628_v60 = vld [vmem:[%s12204_s5 + $0x110] sm:$0xff] }
 0x62a   :  { %3783 = vmatmul.f32.gmra.mxu2 %v3598_v3  ;;  %v3642_v3 = vld [vmem:[%s12204_s5 + $0x180] sm:$0xff] }
 0x62c   :  { %3730 = vmatmul.f32.gmra.mxu3 %v3612_v28 }
 0x62d   :  { %v3549_v5 = vpop.f32.mrf.mxu2 }
 0x62e   :  { %v10372_v47 = vadd.f32 %v3549_v5, %v3482_v0  ;;  %v3631_v0 = vld [vmem:[%s12204_s5 + $0x128] sm:$0xff]  ;;  %v3596_v5 = vld [vmem:[%s12204_s5 + $0x10] sm:$0xff] }
 0x62f   :  { %v3496_v45 = vpop.f32.mrf.mxu3 }
 0x630   :  { %v3497_v63 = vadd.f32 %v3496_v45, %v10248_v2 }
 0x632   :  { %3786 = vmatmul.f32.gmra.mxu2 %v3601_v50  ;;  %v3634_v50 = vld [vmem:[%s12204_s5 + $0x140] sm:$0xff] }
 0x634   :  { %3733 = vmatmul.f32.gmra.mxu3 %v3615_v6  ;;  %v3599_v6 = vld [vmem:[%s12204_s5 + $0x28] sm:$0xff] }
 0x635   :  { %v3552_v43 = vpop.f32.mrf.mxu2 }
 0x636   :  { %v10381_v38 = vadd.f32 %v3552_v43, %v3485_v57  ;;  %v3637_v43 = vld [vmem:[%s12204_s5 + $0x158] sm:$0xff] }
 0x637   :  { %v3499_v33 = vpop.f32.mrf.mxu3 }
 0x638   :  { %v3500_v19 = vadd.f32 %v3499_v33, %v10258_v61  ;;  %v3602_v33 = vld [vmem:[%s12204_s5 + $0x40] sm:$0xff] }
 0x63a   :  { %3789 = vmatmul.f32.gmra.mxu2 %v3604_v34 }
 0x63c   :  { %3736 = vmatmul.f32.gmra.mxu3 %v3618_v15  ;;  %v3640_v15 = vld [vmem:[%s12204_s5 + $0x170] sm:$0xff] }
 0x63d   :  { %v3555_v59 = vpop.f32.mrf.mxu2 }
 0x63e   :  { %v10390_v30 = vadd.f32 %v3555_v59, %v3488_v24  ;;  %v3605_v24 = vld [vmem:[%s12204_s5 + $0x58] sm:$0xff] }
 0x63f   :  { %v3502_v20 = vpop.f32.mrf.mxu3 }
 0x640   :  { %v3503_v39 = vadd.f32 %v3502_v20, %v10267_v13  ;;  %v3625_v13 = vld [vmem:[%s12204_s5 + $0xf8] sm:$0xff] }
 0x642   :  { %3792 = vmatmul.f32.gmra.mxu2 %v3607_v18  ;;  %v3643_v18 = vld [vmem:[%s12204_s5 + $0x188] sm:$0xff] }
 0x644   :  { %3739 = vmatmul.f32.gmra.mxu3 %v3621_v8  ;;  %v3608_v8 = vld [vmem:[%s12204_s5 + $0x70] sm:$0xff] }
 0x645   :  { %v3558_v4 = vpop.f32.mrf.mxu2 }
 0x646   :  { %v10399_v37 = vadd.f32 %v3558_v4, %v3491_v49 }
 0x647   :  { %v10401_v16 = vpop.f32.mrf.mxu3 }
 0x64a   :  { %3795 = vmatmul.f32.gmra.mxu2 %v3610_v42  ;;  %v3611_v42 = vld [vmem:[%s12204_s5 + $0x88] sm:$0xff] }
 0x64c   :  { %3742 = vmatmul.f32.gmra.mxu3 %v3624_v46 }
 0x64d   :  { %v3561_v54 = vpop.f32.mrf.mxu2 }
 0x64e   :  { %v10410_v52 = vadd.f32 %v3561_v54, %v3494_v21  ;;  %v3614_v21 = vld [vmem:[%s12204_s5 + $0xa0] sm:$0xff] }
 0x64f   :  { %v10412_v12 = vpop.f32.mrf.mxu3 }
 0x652   :  { %3798 = vmatmul.f32.gmra.mxu2 %v3613_v27 }
 0x654   :  { %3745 = vmatmul.f32.gmra.mxu3 %v3627_v26  ;;  %v3617_v26 = vld [vmem:[%s12204_s5 + $0xb8] sm:$0xff] }
 0x655   :  { %v3564_v1 = vpop.f32.mrf.mxu2 }
 0x656   :  { %v10421_v35 = vadd.f32 %v3564_v1, %v3497_v63 }
 0x657   :  { %v10423_v14 = vpop.f32.mrf.mxu3 }
 0x65a   :  { %3801 = vmatmul.f32.gmra.mxu2 %v3616_v44  ;;  %v3620_v44 = vld [vmem:[%s12204_s5 + $0xd0] sm:$0xff] }
 0x65c   :  { %3748 = vmatmul.f32.gmra.mxu3 %v3630_v40 }
 0x65d   :  { %v3567_v31 = vpop.f32.mrf.mxu2 }
 0x65e   :  { %v10432_v2 = vadd.f32 %v3567_v31, %v3500_v19  ;;  %v3623_v31 = vld [vmem:[%s12204_s5 + $0xe8] sm:$0xff] }
 0x65f   :  { %v10434_v17 = vpop.f32.mrf.mxu3 }
 0x662   :  { %3804 = vmatmul.f32.gmra.mxu2 %v3619_v62 }
 0x664   :  { %3751 = vmatmul.f32.gmra.mxu3 %v3633_v56 }
 0x665   :  { %v3570_v7 = vpop.f32.mrf.mxu2 }
 0x666   :  { %v10443_v61 = vadd.f32 %v3570_v7, %v3503_v39  ;;  %v3626_v39 = vld [vmem:[%s12204_s5 + $0x100] sm:$0xff] }
 0x667   :  { %v10445_v23 = vpop.f32.mrf.mxu3 }
 0x66a   :  { %3807 = vmatmul.f32.gmra.mxu2 %v3622_v10  ;;  %v3975_v10 = vld [vmem:[%s12206_s7 + $0xa0] sm:$0xf] }
 0x66b   :  { %6806 = vmatpush.msk.msra.mxu2 %vm2048_vm4, %v3975_v10  ;;  %v6768_v10 = vld [vmem:[%s12206_s7 + $0x140] sm:$0xff] }
 0x66c   :  { %3754 = vmatmul.f32.gmra.mxu3 %v3636_v48  ;;  %v3976_v48 = vld [vmem:[%s12206_s7 + $0xa8] sm:$0xf] }
 0x66d   :  { %v10505_v59 = vpop.f32.mrf.mxu2  ;;  %6823 = vmatpush.msk.msrb.mxu3 %vm2048_vm4, %v3976_v48  ;;  %v6769_v48 = vld [vmem:[%s12206_s7 + $0x148] sm:$0xff] }
 0x66f   :  { %v10453_v11 = vpop.f32.mrf.mxu3 }
 0x672   :  { %3810 = vmatmul.f32.gmra.mxu2 %v3625_v13  ;;  %v3629_v13 = vld [vmem:[%s12204_s5 + $0x118] sm:$0xff] }
 0x674   :  { %3757 = vmatmul.f32.gmra.mxu3 %v3639_v22 }
 0x675   :  { %v10518_v4 = vpop.f32.mrf.mxu2 }
 0x677   :  { %v10461_v53 = vpop.f32.mrf.mxu3 }
 0x67a   :  { %3813 = vmatmul.f32.gmra.mxu2 %v3628_v60  ;;  %v6770_v60 = vld [vmem:[%s12206_s7 + $0x150] sm:$0xf] }
 0x67b   :  { %6772 = vmatpush.msk.msra.mxu0 %vm2048_vm4, %v6770_v60  ;;  %v3962_v60 = vld [vmem:[%s12206_s7 + $0x38] sm:$0xff] }
 0x67c   :  { %3760 = vmatmul.f32.gmra.mxu3 %v3642_v3  ;;  %v6771_v3 = vld [vmem:[%s12206_s7 + $0x158] sm:$0xf] }
 0x67d   :  { %v10529_v54 = vpop.f32.mrf.mxu2  ;;  %6789 = vmatpush.msk.msrb.mxu1 %vm2048_vm4, %v6771_v3  ;;  %4095 = vmatpush.msra.mxu0 %v6768_v10  ;;  %v3635_v3 = vld [vmem:[%s12204_s5 + $0x148] sm:$0xff] }
 0x67f   :  { %v10469_v28 = vpop.f32.mrf.mxu3  ;;  %4160 = vmatpush.msrb.mxu1 %v6769_v48  ;;  %v6760_v48 = vld [vmem:[%s12206_s7 + $0x100] sm:$0xff] }
 0x682   :  { %3816 = vmatmul.f32.gmra.mxu2 %v3631_v0  ;;  %v3973_v0 = vld [vmem:[%s12206_s7 + $0x90] sm:$0xff] }
 0x683   :  { %4263 = vmatpush.msra.mxu2 %v3973_v0  ;;  %v6766_v0 = vld [vmem:[%s12206_s7 + $0x130] sm:$0xff] }
 0x684   :  { %6733 = vmatmul.msk.f32.vlgmr.msra.gmra.mxu3 %vm3338_vm6, %v3596_v5  ;;  %v3974_v5 = vld [vmem:[%s12206_s7 + $0x98] sm:$0xff]  ;;  %4096 = vmatpush.msra.mxu0 %v6766_v0 }
 0x685   :  { %v10537_v63 = vpop.f32.mrf.mxu2  ;;  %4328 = vmatpush.msrb.mxu3 %v3974_v5  ;;  %v6767_v5 = vld [vmem:[%s12206_s7 + $0x138] sm:$0xff] }
 0x686   :  { %4161 = vmatpush.msrb.mxu1 %v6767_v5  ;;  %v6759_v0 = vld [vmem:[%s12206_s7 + $0xf8] sm:$0xff]  ;;  %v6756_v5 = vld [vmem:[%s12206_s7 + $0xe0] sm:$0xff] }
 0x687   :  { %v10478_v45 = vpop.f32.mrf.mxu3 }
 0x68a   :  { %3819 = vmatmul.f32.gmra.mxu2 %v3634_v50  ;;  %v3971_v50 = vld [vmem:[%s12206_s7 + $0x80] sm:$0xff] }
 0x68b   :  { %4264 = vmatpush.msra.mxu2 %v3971_v50  ;;  %v3959_v50 = vld [vmem:[%s12206_s7 + $0x20] sm:$0xff] }
 0x68c   :  { %6734 = vmatmul.msk.f32.gmra.mxu3 %vm3338_vm6, %v3599_v6  ;;  %v3972_v6 = vld [vmem:[%s12206_s7 + $0x88] sm:$0xff] }
 0x68d   :  { %v10546_v40 = vpop.f32.mrf.mxu2  ;;  %4329 = vmatpush.msrb.mxu3 %v3972_v6  ;;  %v3960_v6 = vld [vmem:[%s12206_s7 + $0x28] sm:$0xff] }
 0x68f   :  { %v10487_v57 = vpop.f32.mrf.mxu3 }
 0x692   :  { %3822 = vmatmul.f32.gmra.mxu2 %v3637_v43 }
 0x694   :  { %6735 = vmatmul.msk.f32.gmra.mxu3 %vm3338_vm6, %v3602_v33  ;;  %v3969_v33 = vld [vmem:[%s12206_s7 + $0x70] sm:$0xff] }
 0x695   :  { %v10556_v56 = vpop.f32.mrf.mxu2  ;;  %4265 = vmatpush.msra.mxu2 %v3969_v33  ;;  %v6764_v33 = vld [vmem:[%s12206_s7 + $0x120] sm:$0xff] }
 0x696   :  { %4097 = vmatpush.msra.mxu0 %v6764_v33  ;;  %v6755_v33 = vld [vmem:[%s12206_s7 + $0xd8] sm:$0xff] }
 0x697   :  { %v10496_v34 = vpop.f32.mrf.mxu3 }
 0x69a   :  { %3825 = vmatmul.f32.gmra.mxu2 %v3640_v15  ;;  %v3970_v15 = vld [vmem:[%s12206_s7 + $0x78] sm:$0xff] }
 0x69b   :  { %4330 = vmatpush.msrb.mxu3 %v3970_v15  ;;  %v6765_v15 = vld [vmem:[%s12206_s7 + $0x128] sm:$0xff] }
 0x69c   :  { %6736 = vmatmul.msk.f32.gmra.mxu3 %vm3338_vm6, %v3605_v24  ;;  %v3632_v24 = vld [vmem:[%s12204_s5 + $0x130] sm:$0xff]  ;;  %4162 = vmatpush.msrb.mxu1 %v6765_v15 }
 0x69d   :  { %v10575_v22 = vpop.f32.mrf.mxu2 }
 0x69e   :  { %12671 = vst [vmem:[#allocation39_spill] sm:$0xff] %v10575_v22 }
 0x69f   :  { %v10507_v20 = vpop.f32.mrf.mxu3 }
 0x6a2   :  { %3828 = vmatmul.f32.gmra.mxu2 %v3643_v18  ;;  %v3967_v18 = vld [vmem:[%s12206_s7 + $0x60] sm:$0xff] }
 0x6a3   :  { %4266 = vmatpush.msra.mxu2 %v3967_v18  ;;  %v3958_v18 = vld [vmem:[%s12206_s7 + $0x18] sm:$0xff] }
 0x6a4   :  { %6737 = vmatmul.msk.f32.gmra.mxu3 %vm3338_vm6, %v3608_v8  ;;  %v3968_v8 = vld [vmem:[%s12206_s7 + $0x68] sm:$0xff] }
 0x6a5   :  { %4331 = vmatpush.msrb.mxu3 %v3968_v8 }
 0x6a7   :  { %v10516_v49 = vpop.f32.mrf.mxu3 }
 0x6ac   :  { %6738 = vmatmul.msk.f32.gmra.mxu3 %vm3338_vm6, %v3611_v42  ;;  %v10615_v42 = vpop.f32.mrf.mxu2 }
 0x6af   :  { %v10524_v46 = vpop.f32.mrf.mxu3 }
 0x6b4   :  { %6739 = vmatmul.msk.f32.gmra.mxu3 %vm3338_vm6, %v3614_v21  ;;  %v3965_v21 = vld [vmem:[%s12206_s7 + $0x50] sm:$0xff]  ;;  %v3784_v8 = vpop.f32.mrf.mxu2 }
 0x6b5   :  { %4267 = vmatpush.msra.mxu2 %v3965_v21  ;;  %v6762_v21 = vld [vmem:[%s12206_s7 + $0x110] sm:$0xff] }
 0x6b6   :  { %4098 = vmatpush.msra.mxu0 %v6762_v21  ;;  %v6753_v21 = vld [vmem:[%s12206_s7 + $0xc8] sm:$0xff] }
 0x6b7   :  { %v10532_v27 = vpop.f32.mrf.mxu3 }
 0x6b8   :  { %4099 = vmatpush.msra.mxu0 %v6760_v48 }
 0x6bc   :  { %6740 = vmatmul.msk.f32.gmra.mxu3 %vm3338_vm6, %v3617_v26  ;;  %v3966_v26 = vld [vmem:[%s12206_s7 + $0x58] sm:$0xff] }
 0x6bd   :  { %4332 = vmatpush.msrb.mxu3 %v3966_v26  ;;  %v6763_v26 = vld [vmem:[%s12206_s7 + $0x118] sm:$0xff] }
 0x6be   :  { %4163 = vmatpush.msrb.mxu1 %v6763_v26  ;;  %v3641_v26 = vld [vmem:[%s12204_s5 + $0x178] sm:$0xff] }
 0x6bf   :  { %v10540_v1 = vpop.f32.mrf.mxu3 }
 0x6c4   :  { %6741 = vmatmul.msk.f32.gmra.mxu3 %vm3338_vm6, %v3620_v44  ;;  %v3963_v44 = vld [vmem:[%s12206_s7 + $0x40] sm:$0xff] }
 0x6c5   :  { %4268 = vmatpush.msra.mxu2 %v3963_v44  ;;  %v3955_v44 = vld [vmem:[%s12206_s7] sm:$0xff] }
 0x6c7   :  { %v10548_v19 = vpop.f32.mrf.mxu3 }
 0x6cc   :  { %6742 = vmatmul.msk.f32.gmra.mxu3 %vm3338_vm6, %v3623_v31  ;;  %v3964_v31 = vld [vmem:[%s12206_s7 + $0x48] sm:$0xff] }
 0x6cd   :  { %4333 = vmatpush.msrb.mxu3 %v3964_v31  ;;  %v3956_v31 = vld [vmem:[%s12206_s7 + $0x8] sm:$0xff] }
 0x6cf   :  { %v10554_v62 = vpop.f32.mrf.mxu3  ;;  %4334 = vmatpush.msrb.mxu3 %v3962_v60  ;;  %v3638_v60 = vld [vmem:[%s12204_s5 + $0x160] sm:$0xff] }
 0x6d1   :  { %4335 = vmatpush.msrb.mxu3 %v3960_v6  ;;  %v6754_v6 = vld [vmem:[%s12206_s7 + $0xd0] sm:$0xff] }
 0x6d3   :  { %4336 = vmatpush.msrb.mxu3 %v3958_v18  ;;  %v6752_v18 = vld [vmem:[%s12206_s7 + $0xc0] sm:$0xff] }
 0x6d4   :  { %6743 = vmatmul.msk.f32.gmra.mxu3 %vm3338_vm6, %v3626_v39 }
 0x6d5   :  { %4337 = vmatpush.msrb.mxu3 %v3956_v31  ;;  %v6751_v31 = vld [vmem:[%s12206_s7 + $0xb8] sm:$0xff] }
 0x6d7   :  { %v10562_v7 = vpop.f32.mrf.mxu3 }
 0x6dc   :  { %6744 = vmatmul.msk.f32.gmra.mxu3 %vm3338_vm6, %v3629_v13  ;;  %v3961_v13 = vld [vmem:[%s12206_s7 + $0x30] sm:$0xff] }
 0x6dd   :  { %4269 = vmatpush.msra.mxu2 %v3961_v13  ;;  %v6761_v13 = vld [vmem:[%s12206_s7 + $0x108] sm:$0xff] }
 0x6de   :  { %4164 = vmatpush.msrb.mxu1 %v6761_v13  ;;  %v3644_v13 = vld [vmem:[%s12204_s5 + $0x190] sm:$0xff] }
 0x6df   :  { %v10598_v43 = vpop.f32.mrf.mxu3  ;;  %4270 = vmatpush.msra.mxu2 %v3959_v50  ;;  %v6757_v50 = vld [vmem:[%s12206_s7 + $0xe8] sm:$0xff] }
 0x6e0   :  { %4165 = vmatpush.msrb.mxu1 %v6759_v0 }
 0x6e2   :  { %4166 = vmatpush.msrb.mxu1 %v6757_v50  ;;  %v10743_v50 = vld [vmem:[%s12205_s6] ss:$0 sm:$0xff] }
 0x6e4   :  { %6745 = vmatmul.msk.f32.gmra.mxu3 %vm3338_vm6, %v3632_v24  ;;  %v3957_v24 = vld [vmem:[%s12206_s7 + $0x10] sm:$0xff]  ;;  %4167 = vmatpush.msrb.mxu1 %v6755_v33 }
 0x6e5   :  { %4271 = vmatpush.msra.mxu2 %v3957_v24  ;;  %v3787_v24 = vpop.f32.mrf.mxu2 }
 0x6e6   :  { %4168 = vmatpush.msrb.mxu1 %v6753_v21 }
 0x6e7   :  { %v10630_v39 = vpop.f32.mrf.mxu3  ;;  %4272 = vmatpush.msra.mxu2 %v3955_v44  ;;  %v6750_v44 = vld [vmem:[%s12206_s7 + $0xb0] sm:$0xff] }
 0x6e8   :  { %4169 = vmatpush.msrb.mxu1 %v6751_v31 }
 0x6ec   :  { %6746 = vmatmul.msk.f32.gmra.mxu3 %vm3338_vm6, %v3635_v3  ;;  %v6758_v3 = vld [vmem:[%s12206_s7 + $0xf0] sm:$0xff] }
 0x6ed   :  { %4100 = vmatpush.msra.mxu0 %v6758_v3  ;;  %v3782_v3 = vadd.f32 %v10615_v42, %v10469_v28 }
 0x6ef   :  { %v10684_v10 = vpop.f32.mrf.mxu3  ;;  %4101 = vmatpush.msra.mxu0 %v6756_v5 }
 0x6f1   :  { %4102 = vmatpush.msra.mxu0 %v6754_v6 }
 0x6f3   :  { %4103 = vmatpush.msra.mxu0 %v6752_v18 }
 0x6f4   :  { %6747 = vmatmul.msk.f32.gmra.mxu3 %vm3338_vm6, %v3638_v60  ;;  %v3790_v60 = vpop.f32.mrf.mxu2 }
 0x6f5   :  { %4104 = vmatpush.msra.mxu0 %v6750_v44 }
 0x6f7   :  { %v10714_v15 = vpop.f32.mrf.mxu3 }
 0x6fc   :  { %6748 = vmatmul.msk.f32.gmra.mxu3 %vm3338_vm6, %v3641_v26  ;;  %v3793_v33 = vpop.f32.mrf.mxu2  ;;  %v3785_v26 = vadd.f32 %v3784_v8, %v10478_v45 }
 0x6ff   :  { %v10732_v48 = vpop.f32.mrf.mxu3 }
 0x704   :  { %6749 = vmatmul.msk.f32.gmra.mxu3 %vm3338_vm6, %v3644_v13  ;;  %v3796_v13 = vpop.f32.mrf.mxu2 }
 0x707   :  { %v3849_v0 = vpop.f32.mrf.mxu3 }
 0x708   :  { %v3850_v5 = vadd.f32 %v3849_v0, %v3782_v3 }
 0x70a   :  { %v3900_v6 = vmax.f32 %v10354_v41, %v3850_v5  ;;  %v3788_v41 = vadd.f32 %v3787_v24, %v10487_v57 }
 0x70c   :  { %v3921_v18 = vadd.f32 %v10743_v50, %v3900_v6 }
 0x70e   :  { %v3938_v21 = vmax.f32 %v3921_v18, 0.0 }
 0x70f   :  { %v3852_v44 = vpop.f32.mrf.mxu3 }
 0x710   :  { %v3853_v31 = vadd.f32 %v3852_v44, %v3785_v26  ;;  %6807 = vmatmul.msk.f32.vlgmr.msra.gmra.mxu2 %vm4050_vm7, %v3938_v21  ;;  %6824 = vmatmul.msk.f32.vlgmr.msrb.gmra.mxu3 %vm4050_vm7, %v3938_v21  ;;  %v4017_v5 = vrot.slane %v3938_v21, 1  ;;  %v4666_v6 = vrot.slane %v3938_v21, 3  ;;  %v4410_v18 = vrot.slane %v3938_v21, 2 }
 0x711   :  { %v4922_v44 = vrot.slane %v3938_v21, 4 }
 0x712   :  { %v3901_v28 = vmax.f32 %v10363_v58, %v3853_v31 }
 0x714   :  { %v3922_v42 = vadd.f32 %v10743_v50, %v3901_v28 }
 0x716   :  { %v3939_v3 = vmax.f32 %v3922_v42, 0.0 }
 0x717   :  { %v3855_v0 = vpop.f32.mrf.mxu3 }
 0x718   :  { %v3856_v22 = vadd.f32 %v3855_v0, %v3788_v41  ;;  %6808 = vmatmul.msk.f32.gmra.mxu2 %vm4050_vm7, %v3939_v3  ;;  %6825 = vmatmul.msk.f32.gmra.mxu3 %vm4050_vm7, %v3939_v3  ;;  %v4018_v45 = vrot.slane %v3939_v3, 1  ;;  %v4667_v8 = vrot.slane %v3939_v3, 3  ;;  %v4411_v26 = vrot.slane %v3939_v3, 2  ;;  %v3799_v41 = vpop.f32.mrf.mxu2 }
 0x719   :  { %v4923_v58 = vrot.slane %v3939_v3, 4 }
 0x71a   :  { %v3902_v31 = vmax.f32 %v10372_v47, %v3856_v22  ;;  %v4019_v28 = vsel %vm240_vm0, %v4017_v5, %v4018_v45  ;;  %v10758_v57 = vsel %vm1535_vm3, %v4666_v6, %v4667_v8  ;;  %v10761_v24 = vsel %vm1022_vm2, %v4410_v18, %v4411_v26 }
 0x71b   :  { %12672 = vst [vmem:[#allocation91_spill] sm:$0xff] %v10761_v24  ;;  %6773 = vmatmul.msk.f32.vlgmr.msra.gmra.mxu0 %vm4050_vm7, %v4019_v28  ;;  %6790 = vmatmul.msk.f32.vlgmr.msrb.gmra.mxu1 %vm4050_vm7, %v4019_v28  ;;  %v10766_v42 = vsel %vm2048_vm4, %v4922_v44, %v4923_v58  ;;  %v3791_v47 = vadd.f32 %v3790_v60, %v10496_v34 }
 0x71c   :  { %12673 = vst [vmem:[#allocation36_spill] sm:$0xff] %v10766_v42  ;;  %v3923_v21 = vadd.f32 %v10743_v50, %v3902_v31 }
 0x71e   :  { %v3940_v3 = vmax.f32 %v3923_v21, 0.0 }
 0x71f   :  { %v3858_v22 = vpop.f32.mrf.mxu3 }
 0x720   :  { %v3859_v0 = vadd.f32 %v3858_v22, %v3791_v47  ;;  %6809 = vmatmul.msk.f32.gmra.mxu2 %vm4050_vm7, %v3940_v3  ;;  %6826 = vmatmul.msk.f32.gmra.mxu3 %vm4050_vm7, %v3940_v3  ;;  %v4020_v5 = vrot.slane %v3940_v3, 1  ;;  %v4669_v6 = vrot.slane %v3940_v3, 3  ;;  %v4413_v18 = vrot.slane %v3940_v3, 2 }
 0x721   :  { %v4925_v24 = vrot.slane %v3940_v3, 4 }
 0x722   :  { %v3903_v28 = vmax.f32 %v10381_v38, %v3859_v0  ;;  %v4021_v44 = vsel %vm240_vm0, %v4018_v45, %v4020_v5  ;;  %v10775_v31 = vsel %vm1535_vm3, %v4667_v8, %v4669_v6  ;;  %v10778_v34 = vsel %vm1022_vm2, %v4411_v26, %v4413_v18  ;;  %v3802_v0 = vpop.f32.mrf.mxu2 }
 0x723   :  { %6774 = vmatmul.msk.f32.gmra.mxu0 %vm4050_vm7, %v4021_v44  ;;  %6791 = vmatmul.msk.f32.gmra.mxu1 %vm4050_vm7, %v4021_v44  ;;  %v10783_v60 = vsel %vm2048_vm4, %v4923_v58, %v4925_v24  ;;  %v3794_v38 = vadd.f32 %v3793_v33, %v10507_v20 }
 0x724   :  { %v3924_v21 = vadd.f32 %v10743_v50, %v3903_v28 }
 0x726   :  { %v3941_v3 = vmax.f32 %v3924_v21, 0.0 }
 0x727   :  { %v3861_v47 = vpop.f32.mrf.mxu3 }
 0x728   :  { %v3862_v45 = vadd.f32 %v3861_v47, %v3794_v38  ;;  %6810 = vmatmul.msk.f32.gmra.mxu2 %vm4050_vm7, %v3941_v3  ;;  %6827 = vmatmul.msk.f32.gmra.mxu3 %vm4050_vm7, %v3941_v3  ;;  %v4022_v8 = vrot.slane %v3941_v3, 1  ;;  %v4671_v26 = vrot.slane %v3941_v3, 3  ;;  %v4415_v22 = vrot.slane %v3941_v3, 2 }
 0x729   :  { %v4927_v42 = vrot.slane %v3941_v3, 4 }
 0x72a   :  { %v3904_v44 = vmax.f32 %v10390_v30, %v3862_v45  ;;  %v4023_v58 = vsel %vm240_vm0, %v4020_v5, %v4022_v8  ;;  %v10792_v28 = vsel %vm1535_vm3, %v4669_v6, %v4671_v26  ;;  %v10795_v20 = vsel %vm1022_vm2, %v4413_v18, %v4415_v22 }
 0x72b   :  { %6775 = vmatmul.msk.f32.gmra.mxu0 %vm4050_vm7, %v4023_v58  ;;  %6792 = vmatmul.msk.f32.gmra.mxu1 %vm4050_vm7, %v4023_v58  ;;  %v10800_v33 = vsel %vm2048_vm4, %v4925_v24, %v4927_v42  ;;  %v3797_v30 = vadd.f32 %v3796_v13, %v10516_v49  ;;  %v3805_v49 = vpop.f32.mrf.mxu2 }
 0x72c   :  { %12674 = vst [vmem:[#allocation92_spill] sm:$0xff] %v10800_v33  ;;  %v3925_v21 = vadd.f32 %v10743_v50, %v3904_v44 }
 0x72e   :  { %v3942_v3 = vmax.f32 %v3925_v21, 0.0 }
 0x72f   :  { %v3864_v38 = vpop.f32.mrf.mxu3 }
 0x730   :  { %v3865_v5 = vadd.f32 %v3864_v38, %v3797_v30  ;;  %6811 = vmatmul.msk.f32.gmra.mxu2 %vm4050_vm7, %v3942_v3  ;;  %6828 = vmatmul.msk.f32.gmra.mxu3 %vm4050_vm7, %v3942_v3  ;;  %v4024_v6 = vrot.slane %v3942_v3, 1  ;;  %v4673_v18 = vrot.slane %v3942_v3, 3  ;;  %v4417_v47 = vrot.slane %v3942_v3, 2 }
 0x731   :  { %v4929_v45 = vrot.slane %v3942_v3, 4 }
 0x732   :  { %v3905_v58 = vmax.f32 %v10399_v37, %v3865_v5  ;;  %v4025_v24 = vsel %vm240_vm0, %v4022_v8, %v4024_v6  ;;  %v10809_v33 = vsel %vm1535_vm3, %v4671_v26, %v4673_v18  ;;  %v10812_v44 = vsel %vm1022_vm2, %v4415_v22, %v4417_v47 }
 0x733   :  { %6776 = vmatmul.msk.f32.gmra.mxu0 %vm4050_vm7, %v4025_v24  ;;  %6793 = vmatmul.msk.f32.gmra.mxu1 %vm4050_vm7, %v4025_v24  ;;  %v10817_v13 = vsel %vm2048_vm4, %v4927_v42, %v4929_v45  ;;  %v3800_v37 = vadd.f32 %v3799_v41, %v10524_v46 }
 0x734   :  { %12675 = vst [vmem:[#allocation129_spill] sm:$0xff] %v10817_v13  ;;  %v3926_v21 = vadd.f32 %v10743_v50, %v3905_v58 }
 0x736   :  { %v3943_v3 = vmax.f32 %v3926_v21, 0.0  ;;  %v3808_v21 = vpop.f32.mrf.mxu2 }
 0x737   :  { %v3867_v8 = vpop.f32.mrf.mxu3 }
 0x738   :  { %v3868_v30 = vadd.f32 %v3867_v8, %v3800_v37  ;;  %6812 = vmatmul.msk.f32.gmra.mxu2 %vm4050_vm7, %v3943_v3  ;;  %6829 = vmatmul.msk.f32.gmra.mxu3 %vm4050_vm7, %v3943_v3  ;;  %v4026_v26 = vrot.slane %v3943_v3, 1  ;;  %v4675_v22 = vrot.slane %v3943_v3, 3  ;;  %v4419_v38 = vrot.slane %v3943_v3, 2 }
 0x739   :  { %v4931_v5 = vrot.slane %v3943_v3, 4 }
 0x73a   :  { %v3906_v24 = vmax.f32 %v10410_v52, %v3868_v30  ;;  %v4027_v42 = vsel %vm240_vm0, %v4024_v6, %v4026_v26  ;;  %v10826_v13 = vsel %vm1535_vm3, %v4673_v18, %v4675_v22  ;;  %v10829_v58 = vsel %vm1022_vm2, %v4417_v47, %v4419_v38 }
 0x73b   :  { %6777 = vmatmul.msk.f32.gmra.mxu0 %vm4050_vm7, %v4027_v42  ;;  %6794 = vmatmul.msk.f32.gmra.mxu1 %vm4050_vm7, %v4027_v42  ;;  %v10834_v46 = vsel %vm2048_vm4, %v4929_v45, %v4931_v5  ;;  %v3803_v52 = vadd.f32 %v3802_v0, %v10532_v27 }
 0x73c   :  { %12676 = vst [vmem:[#allocation130_spill] sm:$0xff] %v10834_v46  ;;  %v3927_v41 = vadd.f32 %v10743_v50, %v3906_v24 }
 0x73e   :  { %v3944_v3 = vmax.f32 %v3927_v41, 0.0 }
 0x73f   :  { %v3870_v6 = vpop.f32.mrf.mxu3 }
 0x740   :  { %v3871_v37 = vadd.f32 %v3870_v6, %v3803_v52  ;;  %6813 = vmatmul.msk.f32.gmra.mxu2 %vm4050_vm7, %v3944_v3  ;;  %6830 = vmatmul.msk.f32.gmra.mxu3 %vm4050_vm7, %v3944_v3  ;;  %v4028_v18 = vrot.slane %v3944_v3, 1  ;;  %v4677_v47 = vrot.slane %v3944_v3, 3  ;;  %v4421_v8 = vrot.slane %v3944_v3, 2 }
 0x741   :  { %v4933_v30 = vrot.slane %v3944_v3, 4 }
 0x742   :  { %v3907_v42 = vmax.f32 %v10421_v35, %v3871_v37  ;;  %v4029_v45 = vsel %vm240_vm0, %v4026_v26, %v4028_v18  ;;  %v10843_v24 = vsel %vm1535_vm3, %v4675_v22, %v4677_v47  ;;  %v10846_v41 = vsel %vm1022_vm2, %v4419_v38, %v4421_v8  ;;  %v3811_v26 = vpop.f32.mrf.mxu2 }
 0x743   :  { %6778 = vmatmul.msk.f32.gmra.mxu0 %vm4050_vm7, %v4029_v45  ;;  %6795 = vmatmul.msk.f32.gmra.mxu1 %vm4050_vm7, %v4029_v45  ;;  %v10851_v27 = vsel %vm2048_vm4, %v4931_v5, %v4933_v30  ;;  %v3806_v35 = vadd.f32 %v3805_v49, %v10540_v1 }
 0x744   :  { %12677 = vst [vmem:[#allocation41_spill] sm:$0xff] %v10851_v27  ;;  %v3928_v0 = vadd.f32 %v10743_v50, %v3907_v42 }
 0x746   :  { %v3945_v3 = vmax.f32 %v3928_v0, 0.0 }
 0x747   :  { %v3873_v52 = vpop.f32.mrf.mxu3 }
 0x748   :  { %v3874_v6 = vadd.f32 %v3873_v52, %v3806_v35  ;;  %6814 = vmatmul.msk.f32.gmra.mxu2 %vm4050_vm7, %v3945_v3  ;;  %6831 = vmatmul.msk.f32.gmra.mxu3 %vm4050_vm7, %v3945_v3  ;;  %v4030_v22 = vrot.slane %v3945_v3, 1  ;;  %v4679_v38 = vrot.slane %v3945_v3, 3  ;;  %v4423_v37 = vrot.slane %v3945_v3, 2 }
 0x749   :  { %v4935_v46 = vrot.slane %v3945_v3, 4 }
 0x74a   :  { %v3908_v45 = vmax.f32 %v10432_v2, %v3874_v6  ;;  %v4031_v5 = vsel %vm240_vm0, %v4028_v18, %v4030_v22  ;;  %v10860_v42 = vsel %vm1535_vm3, %v4677_v47, %v4679_v38  ;;  %v10863_v1 = vsel %vm1022_vm2, %v4421_v8, %v4423_v37  ;;  %v3814_v6 = vpop.f32.mrf.mxu2 }
 0x74b   :  { %6779 = vmatmul.msk.f32.gmra.mxu0 %vm4050_vm7, %v4031_v5  ;;  %6796 = vmatmul.msk.f32.gmra.mxu1 %vm4050_vm7, %v4031_v5  ;;  %v10868_v49 = vsel %vm2048_vm4, %v4933_v30, %v4935_v46  ;;  %v3809_v2 = vadd.f32 %v3808_v21, %v10548_v19 }
 0x74c   :  { %v3929_v0 = vadd.f32 %v10743_v50, %v3908_v45 }
 0x74e   :  { %v3946_v3 = vmax.f32 %v3929_v0, 0.0 }
 0x74f   :  { %v3876_v35 = vpop.f32.mrf.mxu3 }
 0x750   :  { %v3877_v18 = vadd.f32 %v3876_v35, %v3809_v2  ;;  %6815 = vmatmul.msk.f32.gmra.mxu2 %vm4050_vm7, %v3946_v3  ;;  %6832 = vmatmul.msk.f32.gmra.mxu3 %vm4050_vm7, %v3946_v3  ;;  %v4032_v47 = vrot.slane %v3946_v3, 1  ;;  %v4681_v8 = vrot.slane %v3946_v3, 3  ;;  %v4425_v52 = vrot.slane %v3946_v3, 2 }
 0x751   :  { %v4937_v27 = vrot.slane %v3946_v3, 4 }
 0x752   :  { %v3909_v5 = vmax.f32 %v10443_v61, %v3877_v18  ;;  %v4033_v30 = vsel %vm240_vm0, %v4030_v22, %v4032_v47  ;;  %v10877_v45 = vsel %vm1535_vm3, %v4679_v38, %v4681_v8  ;;  %v10880_v19 = vsel %vm1022_vm2, %v4423_v37, %v4425_v52 }
 0x753   :  { %6780 = vmatmul.msk.f32.gmra.mxu0 %vm4050_vm7, %v4033_v30  ;;  %6797 = vmatmul.msk.f32.gmra.mxu1 %vm4050_vm7, %v4033_v30  ;;  %v10885_v21 = vsel %vm2048_vm4, %v4935_v46, %v4937_v27  ;;  %v3506_v61 = vadd.f32 %v10401_v16, %v10279_v51  ;;  %v3812_v22 = vadd.f32 %v3811_v26, %v10554_v62  ;;  %v6916_v51 = vld [vmem:[%s12206_s7 + $0x2b0] sm:$0xf]  ;;  %v6917_v16 = vld [vmem:[%s12206_s7 + $0x2b8] sm:$0xf]  ;;  %v3817_v26 = vpop.f32.mrf.mxu2 }
 0x754   :  { %12678 = vst [vmem:[#allocation93_spill] sm:$0xff] %v10885_v21  ;;  %v3930_v0 = vadd.f32 %v10743_v50, %v3909_v5  ;;  %6918 = vmatpush.msk.msrb.mxu2 %vm2048_vm4, %v6916_v51  ;;  %6935 = vmatpush.msk.msra.mxu3 %vm2048_vm4, %v6917_v16 }
 0x755   :  { %v3574_v38 = vadd.f32 %v10505_v59, %v3506_v61  ;;  %v3509_v61 = vadd.f32 %v10412_v12, %v10291_v25 }
 0x756   :  { %v3947_v3 = vmax.f32 %v3930_v0, 0.0 }
 0x757   :  { %v3879_v2 = vpop.f32.mrf.mxu3 }
 0x758   :  { %v3880_v37 = vadd.f32 %v3879_v2, %v3812_v22  ;;  %6816 = vmatmul.msk.f32.gmra.mxu2 %vm4050_vm7, %v3947_v3  ;;  %6833 = vmatmul.msk.f32.gmra.mxu3 %vm4050_vm7, %v3947_v3  ;;  %v4034_v35 = vrot.slane %v3947_v3, 1  ;;  %v4683_v18 = vrot.slane %v3947_v3, 3  ;;  %v4427_v46 = vrot.slane %v3947_v3, 2  ;;  %v6913_v22 = vld [vmem:[%s12206_s7 + $0x298] sm:$0xff] }
 0x759   :  { %v4939_v30 = vrot.slane %v3947_v3, 4 }
 0x75a   :  { %v3910_v21 = vmax.f32 %v3574_v38, %v3880_v37  ;;  %v4035_v5 = vsel %vm240_vm0, %v4032_v47, %v4034_v35  ;;  %v10902_v59 = vsel %vm1535_vm3, %v4681_v8, %v4683_v18  ;;  %v10905_v62 = vsel %vm1022_vm2, %v4425_v52, %v4427_v46  ;;  %v6914_v8 = vld [vmem:[%s12206_s7 + $0x2a0] sm:$0xff]  ;;  %v6915_v52 = vld [vmem:[%s12206_s7 + $0x2a8] sm:$0xff] }
 0x75b   :  { %6781 = vmatmul.msk.f32.gmra.mxu0 %vm4050_vm7, %v4035_v5  ;;  %6798 = vmatmul.msk.f32.gmra.mxu1 %vm4050_vm7, %v4035_v5  ;;  %v10910_v47 = vsel %vm2048_vm4, %v4937_v27, %v4939_v30  ;;  %v3815_v27 = vadd.f32 %v3814_v6, %v10562_v7  ;;  %v3577_v38 = vadd.f32 %v10518_v4, %v3509_v61  ;;  %v6910_v4 = vld [vmem:[%s12206_s7 + $0x280] sm:$0xff]  ;;  %v6911_v6 = vld [vmem:[%s12206_s7 + $0x288] sm:$0xff]  ;;  %v6909_v61 = vld [vmem:[%s12206_s7 + $0x278] sm:$0xff] }
 0x75c   :  { %v3931_v0 = vadd.f32 %v10743_v50, %v3910_v21  ;;  %4743 = vmatpush.msrb.mxu2 %v6914_v8  ;;  %4808 = vmatpush.msra.mxu3 %v6915_v52  ;;  %v6912_v21 = vld [vmem:[%s12206_s7 + $0x290] sm:$0xff] }
 0x75d   :  { %v6908_v52 = vld [vmem:[%s12206_s7 + $0x270] sm:$0xff] }
 0x75e   :  { %v10923_v3 = vmax.f32 %v3931_v0, 0.0  ;;  %4744 = vmatpush.msrb.mxu2 %v6912_v21  ;;  %4809 = vmatpush.msra.mxu3 %v6913_v22  ;;  %v6861_v21 = vld [vmem:[%s12206_s7 + $0x208] sm:$0xf] }
 0x75f   :  { %v3882_v2 = vpop.f32.mrf.mxu3  ;;  %6879 = vmatpush.msk.msra.mxu1 %vm2048_vm4, %v6861_v21 }
 0x760   :  { %v3883_v37 = vadd.f32 %v3882_v2, %v3815_v27  ;;  %6817 = vmatmul.msk.f32.gmra.mxu2 %vm4050_vm7, %v10923_v3  ;;  %6834 = vmatmul.msk.f32.gmra.mxu3 %vm4050_vm7, %v10923_v3  ;;  %v4036_v25 = vrot.slane %v10923_v3, 1  ;;  %v4685_v12 = vrot.slane %v10923_v3, 3  ;;  %v4429_v7 = vrot.slane %v10923_v3, 2  ;;  %v6860_v27 = vld [vmem:[%s12206_s7 + $0x200] sm:$0xf] }
 0x761   :  { %v4941_v5 = vrot.slane %v10923_v3, 4  ;;  %4745 = vmatpush.msrb.mxu2 %v6910_v4  ;;  %4810 = vmatpush.msra.mxu3 %v6911_v6  ;;  %v3820_v3 = vpop.f32.mrf.mxu2 }
 0x762   :  { %v3911_v51 = vmax.f32 %v3577_v38, %v3883_v37  ;;  %v4037_v16 = vsel %vm240_vm0, %v4034_v35, %v4036_v25  ;;  %v10949_v0 = vsel %vm1535_vm3, %v4683_v18, %v4685_v12  ;;  %v10952_v8 = vsel %vm1022_vm2, %v4427_v46, %v4429_v7  ;;  %v6906_v38 = vld [vmem:[%s12206_s7 + $0x260] sm:$0xff]  ;;  %6862 = vmatpush.msk.msrb.mxu0 %vm2048_vm4, %v6860_v27  ;;  %v6857_v27 = vld [vmem:[%s12206_s7 + $0x1e8] sm:$0xff] }
 0x763   :  { %6782 = vmatmul.msk.f32.gmra.mxu0 %vm4050_vm7, %v4037_v16  ;;  %6799 = vmatmul.msk.f32.gmra.mxu1 %vm4050_vm7, %v4037_v16  ;;  %v10963_v35 = vsel %vm2048_vm4, %v4939_v30, %v4941_v5  ;;  %v3512_v46 = vadd.f32 %v10423_v14, %v10301_v29  ;;  %v3818_v30 = vadd.f32 %v3817_v26, %v10598_v43  ;;  %v6907_v29 = vld [vmem:[%s12206_s7 + $0x268] sm:$0xff]  ;;  %v6858_v43 = vld [vmem:[%s12206_s7 + $0x1f0] sm:$0xff]  ;;  %v6859_v26 = vld [vmem:[%s12206_s7 + $0x1f8] sm:$0xff] }
 0x764   :  { %v3932_v18 = vadd.f32 %v10743_v50, %v3911_v51  ;;  %4746 = vmatpush.msrb.mxu2 %v6908_v52  ;;  %4811 = vmatpush.msra.mxu3 %v6909_v61  ;;  %v6904_v51 = vld [vmem:[%s12206_s7 + $0x250] sm:$0xff]  ;;  %v6905_v16 = vld [vmem:[%s12206_s7 + $0x258] sm:$0xff] }
 0x765   :  { %v3580_v14 = vadd.f32 %v10529_v54, %v3512_v46  ;;  %4487 = vmatpush.msrb.mxu0 %v6858_v43  ;;  %4552 = vmatpush.msra.mxu1 %v6859_v26  ;;  %v6856_v46 = vld [vmem:[%s12206_s7 + $0x1e0] sm:$0xff]  ;;  %v3515_v43 = vadd.f32 %v10434_v17, %v10310_v36  ;;  %v6900_v26 = vld [vmem:[%s12206_s7 + $0x230] sm:$0xff] }
 0x766   :  { %v10974_v22 = vmax.f32 %v3932_v18, 0.0  ;;  %4747 = vmatpush.msrb.mxu2 %v6906_v38  ;;  %4812 = vmatpush.msra.mxu3 %v6907_v29  ;;  %v6852_v17 = vld [vmem:[%s12206_s7 + $0x1c0] sm:$0xff] }
 0x767   :  { %v3885_v2 = vpop.f32.mrf.mxu3  ;;  %4488 = vmatpush.msrb.mxu0 %v6856_v46  ;;  %4553 = vmatpush.msra.mxu1 %v6857_v27  ;;  %v6898_v46 = vld [vmem:[%s12206_s7 + $0x220] sm:$0xff]  ;;  %v6899_v27 = vld [vmem:[%s12206_s7 + $0x228] sm:$0xff] }
 0x768   :  { %v3886_v37 = vadd.f32 %v3885_v2, %v3818_v30  ;;  %6818 = vmatmul.msk.f32.gmra.mxu2 %vm4050_vm7, %v10974_v22  ;;  %6835 = vmatmul.msk.f32.gmra.mxu3 %vm4050_vm7, %v10974_v22  ;;  %v4038_v54 = vrot.slane %v10974_v22, 1  ;;  %v4687_v4 = vrot.slane %v10974_v22, 3  ;;  %v4431_v6 = vrot.slane %v10974_v22, 2  ;;  %v6903_v30 = vld [vmem:[%s12206_s7 + $0x248] sm:$0xff]  ;;  %v6855_v2 = vld [vmem:[%s12206_s7 + $0x1d8] sm:$0xff] }
 0x769   :  { %v4943_v52 = vrot.slane %v10974_v22, 4  ;;  %4748 = vmatpush.msrb.mxu2 %v6904_v51  ;;  %4813 = vmatpush.msra.mxu3 %v6905_v16  ;;  %v3583_v51 = vadd.f32 %v10537_v63, %v3515_v43  ;;  %v3823_v36 = vpop.f32.mrf.mxu2  ;;  %v3518_v22 = vadd.f32 %v10445_v23, %v10322_v55 }
 0x76a   :  { %v3912_v61 = vmax.f32 %v3580_v14, %v3886_v37  ;;  %v4039_v18 = vsel %vm240_vm0, %v4036_v25, %v4038_v54  ;;  %v11014_v21 = vsel %vm1535_vm3, %v4685_v12, %v4687_v4  ;;  %v6902_v25 = vld [vmem:[%s12206_s7 + $0x240] sm:$0xff]  ;;  %v11027_v38 = vsel %vm1022_vm2, %v4429_v7, %v4431_v6  ;;  %v6854_v14 = vld [vmem:[%s12206_s7 + $0x1d0] sm:$0xff]  ;;  %v6901_v37 = vld [vmem:[%s12206_s7 + $0x238] sm:$0xff]  ;;  %4554 = vmatpush.msra.mxu1 %v6855_v2 }
 0x76b   :  { %6783 = vmatmul.msk.f32.gmra.mxu0 %vm4050_vm7, %v4039_v18  ;;  %6800 = vmatmul.msk.f32.gmra.mxu1 %vm4050_vm7, %v4039_v18  ;;  %v11030_v12 = vsel %vm2048_vm4, %v4941_v5, %v4943_v52  ;;  %v3821_v5 = vadd.f32 %v3820_v3, %v10630_v39  ;;  %v6853_v39 = vld [vmem:[%s12206_s7 + $0x1c8] sm:$0xff]  ;;  %v6851_v2 = vld [vmem:[%s12206_s7 + $0x1b8] sm:$0xff] }
 0x76c   :  { %v3933_v29 = vadd.f32 %v10743_v50, %v3912_v61  ;;  %4749 = vmatpush.msrb.mxu2 %v6902_v25  ;;  %4814 = vmatpush.msra.mxu3 %v6903_v30 }
 0x76d   :  { %4489 = vmatpush.msrb.mxu0 %v6854_v14  ;;  %4555 = vmatpush.msra.mxu1 %v6853_v39  ;;  %v6850_v14 = vld [vmem:[%s12206_s7 + $0x1b0] sm:$0xff]  ;;  %v3586_v39 = vadd.f32 %v10546_v40, %v3518_v22  ;;  %v6845_v40 = vld [vmem:[%s12206_s7 + $0x188] sm:$0xff]  ;;  %v6840_v22 = vld [vmem:[%s12206_s7 + $0x160] sm:$0xff] }
 0x76e   :  { %v11041_v7 = vmax.f32 %v3933_v29, 0.0  ;;  %4750 = vmatpush.msrb.mxu2 %v6900_v26  ;;  %4815 = vmatpush.msra.mxu3 %v6901_v37  ;;  %v6848_v37 = vld [vmem:[%s12206_s7 + $0x1a0] sm:$0xff] }
 0x76f   :  { %v3888_v16 = vpop.f32.mrf.mxu3  ;;  %4490 = vmatpush.msrb.mxu0 %v6852_v17  ;;  %4556 = vmatpush.msra.mxu1 %v6851_v2  ;;  %v6847_v17 = vld [vmem:[%s12206_s7 + $0x198] sm:$0xff] }
 0x770   :  { %v3889_v3 = vadd.f32 %v3888_v16, %v3821_v5  ;;  %6819 = vmatmul.msk.f32.gmra.mxu2 %vm4050_vm7, %v11041_v7  ;;  %6836 = vmatmul.msk.f32.gmra.mxu3 %vm4050_vm7, %v11041_v7  ;;  %v4040_v63 = vrot.slane %v11041_v7, 1  ;;  %v4689_v61 = vrot.slane %v11041_v7, 3  ;;  %v4433_v18 = vrot.slane %v11041_v7, 2  ;;  %v6846_v16 = vld [vmem:[%s12206_s7 + $0x190] sm:$0xff] }
 0x771   :  { %v4945_v25 = vrot.slane %v11041_v7, 4  ;;  %v6897_v7 = vld [vmem:[%s12206_s7 + $0x218] sm:$0xff]  ;;  %4751 = vmatpush.msrb.mxu2 %v6898_v46  ;;  %4816 = vmatpush.msra.mxu3 %v6899_v27  ;;  %v3826_v46 = vpop.f32.mrf.mxu2  ;;  %v6844_v27 = vld [vmem:[%s12206_s7 + $0x180] sm:$0xff] }
 0x772   :  { %v3913_v30 = vmax.f32 %v3583_v51, %v3889_v3  ;;  %v4041_v29 = vsel %vm240_vm0, %v4038_v54, %v4040_v63  ;;  %v11079_v43 = vsel %vm1535_vm3, %v4687_v4, %v4689_v61  ;;  %v6896_v54 = vld [vmem:[%s12206_s7 + $0x210] sm:$0xff]  ;;  %v11092_v5 = vsel %vm1022_vm2, %v4431_v6, %v4433_v18  ;;  %v6849_v51 = vld [vmem:[%s12206_s7 + $0x1a8] sm:$0xff]  ;;  %4491 = vmatpush.msrb.mxu0 %v6850_v14 }
 0x773   :  { %6784 = vmatmul.msk.f32.gmra.mxu0 %vm4050_vm7, %v4041_v29  ;;  %6801 = vmatmul.msk.f32.gmra.mxu1 %vm4050_vm7, %v4041_v29  ;;  %v11095_v4 = vsel %vm2048_vm4, %v4943_v52, %v4945_v25  ;;  %v3824_v52 = vadd.f32 %v3823_v36, %v10684_v10 }
 0x774   :  { %v3934_v26 = vadd.f32 %v10743_v50, %v3913_v30  ;;  %4752 = vmatpush.msrb.mxu2 %v6896_v54  ;;  %4817 = vmatpush.msra.mxu3 %v6897_v7  ;;  %v6842_v7 = vld [vmem:[%s12206_s7 + $0x170] sm:$0xff] }
 0x775   :  { %4492 = vmatpush.msrb.mxu0 %v6848_v37  ;;  %4557 = vmatpush.msra.mxu1 %v6849_v51  ;;  %v3827_v51 = vadd.f32 %v3826_v46, %v10714_v15 }
 0x776   :  { %v3951_v6 = vmax.f32 %v3934_v26, 0.0  ;;  %v6843_v26 = vld [vmem:[%s12206_s7 + $0x178] sm:$0xff] }
 0x777   :  { %v3891_v3 = vpop.f32.mrf.mxu3  ;;  %4493 = vmatpush.msrb.mxu0 %v6846_v16  ;;  %4558 = vmatpush.msra.mxu1 %v6847_v17 }
 0x778   :  { %v3892_v55 = vadd.f32 %v3891_v3, %v3824_v52  ;;  %6820 = vmatmul.msk.f32.gmra.mxu2 %vm4050_vm7, %v3951_v6  ;;  %6837 = vmatmul.msk.f32.gmra.mxu3 %vm4050_vm7, %v3951_v6  ;;  %v4042_v23 = vrot.slane %v3951_v6, 1  ;;  %v4691_v10 = vrot.slane %v3951_v6, 3  ;;  %v4435_v36 = vrot.slane %v3951_v6, 2 }
 0x779   :  { %v4947_v30 = vrot.slane %v3951_v6, 4  ;;  %4494 = vmatpush.msrb.mxu0 %v6844_v27  ;;  %4559 = vmatpush.msra.mxu1 %v6845_v40  ;;  %v3829_v46 = vpop.f32.mrf.mxu2 }
 0x77a   :  { %v3914_v29 = vmax.f32 %v3586_v39, %v3892_v55  ;;  %v4043_v14 = vsel %vm240_vm0, %v4040_v63, %v4042_v23  ;;  %v11124_v2 = vsel %vm1535_vm3, %v4689_v61, %v4691_v10  ;;  %v11127_v54 = vsel %vm1022_vm2, %v4433_v18, %v4435_v36 }
 0x77b   :  { %6785 = vmatmul.msk.f32.gmra.mxu0 %vm4050_vm7, %v4043_v14  ;;  %6802 = vmatmul.msk.f32.gmra.mxu1 %vm4050_vm7, %v4043_v14  ;;  %v11138_v63 = vsel %vm2048_vm4, %v4945_v25, %v4947_v30  ;;  %v3521_v18 = vadd.f32 %v10453_v11, %v10334_v32  ;;  %v6841_v25 = vld [vmem:[%s12206_s7 + $0x168] sm:$0xff]  ;;  %v12679_v14 = vld [vmem:[#allocation39_spill] sm:$0xff] }
 0x77c   :  { %v3935_v61 = vadd.f32 %v10743_v50, %v3914_v29  ;;  %4495 = vmatpush.msrb.mxu0 %v6842_v7  ;;  %4560 = vmatpush.msra.mxu1 %v6843_v26  ;;  %v3524_v29 = vadd.f32 %v10461_v53, %v10344_v9 }
 0x77d   :  { %v3589_v6 = vadd.f32 %v10556_v56, %v3521_v18 }
 0x77e   :  { %v3952_v37 = vmax.f32 %v3935_v61, 0.0  ;;  %4496 = vmatpush.msrb.mxu0 %v6840_v22  ;;  %4561 = vmatpush.msra.mxu1 %v6841_v25  ;;  %v3592_v7 = vadd.f32 %v12679_v14, %v3524_v29 }
 0x77f   :  { %v3894_v52 = vpop.f32.mrf.mxu3 }
 0x780   :  { %v3895_v16 = vadd.f32 %v3894_v52, %v3827_v51  ;;  %6821 = vmatmul.msk.f32.gmra.mxu2 %vm4050_vm7, %v3952_v37  ;;  %6838 = vmatmul.msk.f32.gmra.mxu3 %vm4050_vm7, %v3952_v37  ;;  %v4044_v32 = vrot.slane %v3952_v37, 1  ;;  %v4693_v11 = vrot.slane %v3952_v37, 3  ;;  %v4437_v15 = vrot.slane %v3952_v37, 2 }
 0x781   :  { %v4949_v17 = vrot.slane %v3952_v37, 4 }
 0x782   :  { %v3915_v39 = vmax.f32 %v3589_v6, %v3895_v16  ;;  %v4045_v3 = vsel %vm240_vm0, %v4042_v23, %v4044_v32  ;;  %v11155_v55 = vsel %vm1535_vm3, %v4691_v10, %v4693_v11  ;;  %v11158_v56 = vsel %vm1022_vm2, %v4435_v36, %v4437_v15 }
 0x783   :  { %6786 = vmatmul.msk.f32.gmra.mxu0 %vm4050_vm7, %v4045_v3  ;;  %6803 = vmatmul.msk.f32.gmra.mxu1 %vm4050_vm7, %v4045_v3  ;;  %v11163_v27 = vsel %vm2048_vm4, %v4947_v30, %v4949_v17  ;;  %v3830_v10 = vadd.f32 %v3829_v46, %v10732_v48  ;;  %v12680_v46 = vld [vmem:[#allocation91_spill] sm:$0xff] }
 0x784   :  { %v3936_v40 = vadd.f32 %v10743_v50, %v3915_v39 }
 0x786   :  { %v3953_v23 = vmax.f32 %v3936_v40, 0.0 }
 0x787   :  { %v3897_v36 = vpop.f32.mrf.mxu3 }
 0x788   :  { %v3898_v26 = vadd.f32 %v3897_v36, %v3830_v10  ;;  %6822 = vmatmul.msk.f32.gmra.mxu2 %vm4050_vm7, %v3953_v23  ;;  %6839 = vmatmul.msk.f32.gmra.mxu3 %vm4050_vm7, %v3953_v23  ;;  %v4046_v61 = vrot.slane %v3953_v23, 1  ;;  %v4695_v18 = vrot.slane %v3953_v23, 3  ;;  %v4439_v30 = vrot.slane %v3953_v23, 2 }
 0x789   :  { %v4951_v37 = vrot.slane %v3953_v23, 4 }
 0x78a   :  { %v3916_v51 = vmax.f32 %v3592_v7, %v3898_v26  ;;  %v4047_v22 = vsel %vm240_vm0, %v4044_v32, %v4046_v61  ;;  %v11174_v9 = vsel %vm1535_vm3, %v4693_v11, %v4695_v18  ;;  %v11177_v53 = vsel %vm1022_vm2, %v4437_v15, %v4439_v30 }
 0x78b   :  { %6787 = vmatmul.msk.f32.gmra.mxu0 %vm4050_vm7, %v4047_v22  ;;  %6804 = vmatmul.msk.f32.gmra.mxu1 %vm4050_vm7, %v4047_v22  ;;  %v11182_v48 = vsel %vm2048_vm4, %v4949_v17, %v4951_v37 }
 0x78c   :  { %v3937_v25 = vadd.f32 %v10743_v50, %v3916_v51  ;;  %v6971_v51 = vld [vmem:[%s12206_s7 + $0x358] sm:$0xff] }
 0x78e   :  { %v3954_v6 = vmax.f32 %v3937_v25, 0.0 }
 0x790   :  { %6919 = vmatmul.msk.f32.vlgmr.msrb.gmra.mxu2 %vm4050_vm7, %v10758_v57  ;;  %6936 = vmatmul.msk.f32.vlgmr.msra.gmra.mxu3 %vm4050_vm7, %v10758_v57  ;;  %v4048_v52 = vrot.slane %v3954_v6, 1  ;;  %v4697_v16 = vrot.slane %v3954_v6, 3  ;;  %v4441_v32 = vrot.slane %v3954_v6, 2  ;;  %v4953_v11 = vrot.slane %v3954_v6, 4  ;;  %v6968_v6 = vld [vmem:[%s12206_s7 + $0x340] sm:$0xff] }
 0x792   :  { %v4049_v15 = vsel %vm240_vm0, %v4046_v61, %v4048_v52  ;;  %v11191_v39 = vsel %vm1535_vm3, %v4695_v18, %v4697_v16  ;;  %v11194_v17 = vsel %vm1022_vm2, %v4439_v30, %v4441_v32  ;;  %v11197_v50 = vsel %vm2048_vm4, %v4951_v37, %v4953_v11  ;;  %v6966_v52 = vld [vmem:[%s12206_s7 + $0x330] sm:$0xff]  ;;  %v6967_v16 = vld [vmem:[%s12206_s7 + $0x338] sm:$0xff]  ;;  %v6964_v32 = vld [vmem:[%s12206_s7 + $0x320] sm:$0xff] }
 0x793   :  { %6788 = vmatmul.msk.f32.gmra.mxu0 %vm4050_vm7, %v4049_v15  ;;  %6805 = vmatmul.msk.f32.gmra.mxu1 %vm4050_vm7, %v4049_v15  ;;  %v11271_v14 = vpop.f32.mrf.mxu3 }
 0x798   :  { %v11201_v57 = vpop.f32.mrf.mxu0  ;;  %v11203_v3 = vpop.f32.mrf.mxu1  ;;  %6920 = vmatmul.msk.f32.gmra.mxu2 %vm4050_vm7, %v10775_v31  ;;  %6937 = vmatmul.msk.f32.gmra.mxu3 %vm4050_vm7, %v10775_v31 }
 0x79b   :  { %6863 = vmatmul.msk.f32.vlgmr.msrb.gmra.mxu0 %vm4050_vm7, %v12680_v46  ;;  %6880 = vmatmul.msk.f32.vlgmr.msra.gmra.mxu1 %vm4050_vm7, %v12680_v46  ;;  %v11287_v7 = vpop.f32.mrf.mxu3  ;;  %v6962_v46 = vld [vmem:[%s12206_s7 + $0x310] sm:$0xff] }
 0x7a0   :  { %v11213_v40 = vpop.f32.mrf.mxu0  ;;  %v11215_v29 = vpop.f32.mrf.mxu1  ;;  %6921 = vmatmul.msk.f32.gmra.mxu2 %vm4050_vm7, %v10792_v28  ;;  %6938 = vmatmul.msk.f32.gmra.mxu3 %vm4050_vm7, %v10792_v28 }
 0x7a3   :  { %6864 = vmatmul.msk.f32.gmra.mxu0 %vm4050_vm7, %v10778_v34  ;;  %6881 = vmatmul.msk.f32.gmra.mxu1 %vm4050_vm7, %v10778_v34  ;;  %v11307_v26 = vpop.f32.mrf.mxu3 }
 0x7a8   :  { %v11225_v31 = vpop.f32.mrf.mxu0  ;;  %v11227_v23 = vpop.f32.mrf.mxu1  ;;  %6922 = vmatmul.msk.f32.gmra.mxu2 %vm4050_vm7, %v10809_v33  ;;  %6939 = vmatmul.msk.f32.gmra.mxu3 %vm4050_vm7, %v10809_v33 }
 0x7ab   :  { %6865 = vmatmul.msk.f32.gmra.mxu0 %vm4050_vm7, %v10795_v20  ;;  %6882 = vmatmul.msk.f32.gmra.mxu1 %vm4050_vm7, %v10795_v20 }
 0x7b0   :  { %v11237_v28 = vpop.f32.mrf.mxu0  ;;  %v11239_v10 = vpop.f32.mrf.mxu1  ;;  %6923 = vmatmul.msk.f32.gmra.mxu2 %vm4050_vm7, %v10826_v13  ;;  %6940 = vmatmul.msk.f32.gmra.mxu3 %vm4050_vm7, %v10826_v13 }
 0x7b3   :  { %6866 = vmatmul.msk.f32.gmra.mxu0 %vm4050_vm7, %v10812_v44  ;;  %6883 = vmatmul.msk.f32.gmra.mxu1 %vm4050_vm7, %v10812_v44  ;;  %v11269_v44 = vpop.f32.mrf.mxu2 }
 0x7b8   :  { %v11249_v34 = vpop.f32.mrf.mxu0  ;;  %v11251_v33 = vpop.f32.mrf.mxu1  ;;  %6924 = vmatmul.msk.f32.gmra.mxu2 %vm4050_vm7, %v10843_v24  ;;  %6941 = vmatmul.msk.f32.gmra.mxu3 %vm4050_vm7, %v10843_v24 }
 0x7bb   :  { %6867 = vmatmul.msk.f32.gmra.mxu0 %vm4050_vm7, %v10829_v58  ;;  %6884 = vmatmul.msk.f32.gmra.mxu1 %vm4050_vm7, %v10829_v58 }
 0x7c0   :  { %v11261_v20 = vpop.f32.mrf.mxu0  ;;  %v11263_v13 = vpop.f32.mrf.mxu1  ;;  %6925 = vmatmul.msk.f32.gmra.mxu2 %vm4050_vm7, %v10860_v42  ;;  %6942 = vmatmul.msk.f32.gmra.mxu3 %vm4050_vm7, %v10860_v42 }
 0x7c1   :  { %v11285_v42 = vpop.f32.mrf.mxu2 }
 0x7c3   :  { %6868 = vmatmul.msk.f32.gmra.mxu0 %vm4050_vm7, %v10846_v41  ;;  %6885 = vmatmul.msk.f32.gmra.mxu1 %vm4050_vm7, %v10846_v41 }
 0x7c8   :  { %v11277_v58 = vpop.f32.mrf.mxu0  ;;  %v11279_v24 = vpop.f32.mrf.mxu1  ;;  %6926 = vmatmul.msk.f32.gmra.mxu2 %vm4050_vm7, %v10877_v45  ;;  %6943 = vmatmul.msk.f32.gmra.mxu3 %vm4050_vm7, %v10877_v45 }
 0x7c9   :  { %v11305_v45 = vpop.f32.mrf.mxu2 }
 0x7cb   :  { %6869 = vmatmul.msk.f32.gmra.mxu0 %vm4050_vm7, %v10863_v1  ;;  %6886 = vmatmul.msk.f32.gmra.mxu1 %vm4050_vm7, %v10863_v1 }
 0x7d0   :  { %v11293_v41 = vpop.f32.mrf.mxu0  ;;  %v11295_v36 = vpop.f32.mrf.mxu1  ;;  %6927 = vmatmul.msk.f32.gmra.mxu2 %vm4050_vm7, %v10902_v59  ;;  %6944 = vmatmul.msk.f32.gmra.mxu3 %vm4050_vm7, %v10902_v59 }
 0x7d1   :  { %v11323_v59 = vpop.f32.mrf.mxu3 }
 0x7d3   :  { %6870 = vmatmul.msk.f32.gmra.mxu0 %vm4050_vm7, %v10880_v19  ;;  %6887 = vmatmul.msk.f32.gmra.mxu1 %vm4050_vm7, %v10880_v19  ;;  %v11321_v19 = vpop.f32.mrf.mxu2 }
 0x7d8   :  { %v11309_v1 = vpop.f32.mrf.mxu0  ;;  %v11311_v61 = vpop.f32.mrf.mxu1  ;;  %6928 = vmatmul.msk.f32.gmra.mxu2 %vm4050_vm7, %v10949_v0  ;;  %6945 = vmatmul.msk.f32.gmra.mxu3 %vm4050_vm7, %v10949_v0  ;;  %v6973_v0 = vld [vmem:[%s12206_s7 + $0x368] sm:$0xf] }
 0x7d9   :  { %12681 = vst [vmem:[#allocation38_spill] sm:$0xff] %v11309_v1  ;;  %6991 = vmatpush.msk.msrb.mxu1 %vm2048_vm4, %v6973_v0  ;;  %v11361_v25 = vpop.f32.mrf.mxu3  ;;  %v5167_v1 = vld [vmem:[%s12207_s8 + $0x60] sm:$0xff] }
 0x7da   :  { %12682 = vst [vmem:[#allocation94_spill] sm:$0xff] %v11311_v61 }
 0x7db   :  { %6871 = vmatmul.msk.f32.gmra.mxu0 %vm4050_vm7, %v10905_v62  ;;  %6888 = vmatmul.msk.f32.gmra.mxu1 %vm4050_vm7, %v10905_v62  ;;  %v6972_v62 = vld [vmem:[%s12206_s7 + $0x360] sm:$0xf]  ;;  %v11359_v22 = vpop.f32.mrf.mxu2 }
 0x7dc   :  { %6974 = vmatpush.msk.msra.mxu0 %vm2048_vm4, %v6972_v62  ;;  %5064 = vmatpush.msrb.mxu1 %v6971_v51  ;;  %v6963_v62 = vld [vmem:[%s12206_s7 + $0x318] sm:$0xff]  ;;  %v6961_v51 = vld [vmem:[%s12206_s7 + $0x308] sm:$0xff] }
 0x7e0   :  { %v11325_v18 = vpop.f32.mrf.mxu0  ;;  %v11327_v30 = vpop.f32.mrf.mxu1  ;;  %6929 = vmatmul.msk.f32.gmra.mxu2 %vm4050_vm7, %v11014_v21  ;;  %6946 = vmatmul.msk.f32.gmra.mxu3 %vm4050_vm7, %v11014_v21 }
 0x7e1   :  { %12683 = vst [vmem:[#allocation43_spill] sm:$0xff] %v11325_v18 }
 0x7e2   :  { %12684 = vst [vmem:[#allocation95_spill] sm:$0xff] %v11327_v30  ;;  %v12707_v30 = vld [vmem:[#allocation41_spill] sm:$0xff] }
 0x7e3   :  { %6872 = vmatmul.msk.f32.gmra.mxu0 %vm4050_vm7, %v10952_v8  ;;  %6889 = vmatmul.msk.f32.gmra.mxu1 %vm4050_vm7, %v10952_v8  ;;  %v6970_v8 = vld [vmem:[%s12206_s7 + $0x350] sm:$0xff]  ;;  %v11399_v0 = vpop.f32.mrf.mxu2 }
 0x7e4   :  { %4999 = vmatpush.msra.mxu0 %v6970_v8  ;;  %v11401_v8 = vpop.f32.mrf.mxu3 }
 0x7e6   :  { %5000 = vmatpush.msra.mxu0 %v6968_v6  ;;  %v6958_v6 = vld [vmem:[%s12206_s7 + $0x2f0] sm:$0xff] }
 0x7e8   :  { %v11345_v37 = vpop.f32.mrf.mxu0  ;;  %v11347_v21 = vpop.f32.mrf.mxu1  ;;  %6930 = vmatmul.msk.f32.gmra.mxu2 %vm4050_vm7, %v11079_v43  ;;  %6947 = vmatmul.msk.f32.gmra.mxu3 %vm4050_vm7, %v11079_v43  ;;  %v6969_v43 = vld [vmem:[%s12206_s7 + $0x348] sm:$0xff] }
 0x7e9   :  { %12685 = vst [vmem:[#allocation40_spill] sm:$0xff] %v11345_v37  ;;  %5065 = vmatpush.msrb.mxu1 %v6969_v43  ;;  %5001 = vmatpush.msra.mxu0 %v6966_v52 }
 0x7ea   :  { %12686 = vst [vmem:[#allocation96_spill] sm:$0xff] %v11347_v21  ;;  %v12706_v21 = vld [vmem:[#allocation130_spill] sm:$0xff] }
 0x7eb   :  { %6873 = vmatmul.msk.f32.gmra.mxu0 %vm4050_vm7, %v11027_v38  ;;  %6890 = vmatmul.msk.f32.gmra.mxu1 %vm4050_vm7, %v11027_v38  ;;  %v6965_v38 = vld [vmem:[%s12206_s7 + $0x328] sm:$0xff] }
 0x7ec   :  { %5066 = vmatpush.msrb.mxu1 %v6967_v16  ;;  %5002 = vmatpush.msra.mxu0 %v6964_v32  ;;  %v6956_v16 = vld [vmem:[%s12206_s7 + $0x2e0] sm:$0xff]  ;;  %v6957_v32 = vld [vmem:[%s12206_s7 + $0x2e8] sm:$0xff] }
 0x7ee   :  { %5067 = vmatpush.msrb.mxu1 %v6965_v38  ;;  %5003 = vmatpush.msra.mxu0 %v6962_v46  ;;  %v6955_v38 = vld [vmem:[%s12206_s7 + $0x2d8] sm:$0xff]  ;;  %v11443_v46 = vpop.f32.mrf.mxu2 }
 0x7f0   :  { %v11385_v11 = vpop.f32.mrf.mxu0  ;;  %v11387_v15 = vpop.f32.mrf.mxu1  ;;  %6931 = vmatmul.msk.f32.gmra.mxu2 %vm4050_vm7, %v11124_v2  ;;  %6948 = vmatmul.msk.f32.gmra.mxu3 %vm4050_vm7, %v11124_v2  ;;  %v6960_v2 = vld [vmem:[%s12206_s7 + $0x300] sm:$0xff] }
 0x7f1   :  { %12687 = vst [vmem:[#allocation45_spill] sm:$0xff] %v11385_v11  ;;  %5068 = vmatpush.msrb.mxu1 %v6963_v62  ;;  %5004 = vmatpush.msra.mxu0 %v6960_v2  ;;  %v11445_v62 = vpop.f32.mrf.mxu3  ;;  %v6953_v2 = vld [vmem:[%s12206_s7 + $0x2c8] sm:$0xff] }
 0x7f2   :  { %12688 = vst [vmem:[#allocation97_spill] sm:$0xff] %v11387_v15 }
 0x7f3   :  { %6874 = vmatmul.msk.f32.gmra.mxu0 %vm4050_vm7, %v11092_v5  ;;  %6891 = vmatmul.msk.f32.gmra.mxu1 %vm4050_vm7, %v11092_v5  ;;  %v6959_v5 = vld [vmem:[%s12206_s7 + $0x2f8] sm:$0xff] }
 0x7f4   :  { %5069 = vmatpush.msrb.mxu1 %v6961_v51  ;;  %5005 = vmatpush.msra.mxu0 %v6958_v6 }
 0x7f6   :  { %5070 = vmatpush.msrb.mxu1 %v6959_v5  ;;  %5006 = vmatpush.msra.mxu0 %v6956_v16  ;;  %v11465_v5 = vpop.f32.mrf.mxu2 }
 0x7f8   :  { %v11419_v43 = vpop.f32.mrf.mxu0  ;;  %v11421_v52 = vpop.f32.mrf.mxu1  ;;  %6932 = vmatmul.msk.f32.gmra.mxu2 %vm4050_vm7, %v11155_v55  ;;  %6949 = vmatmul.msk.f32.gmra.mxu3 %vm4050_vm7, %v11155_v55  ;;  %v6954_v55 = vld [vmem:[%s12206_s7 + $0x2d0] sm:$0xff] }
 0x7f9   :  { %12689 = vst [vmem:[#allocation42_spill] sm:$0xff] %v11419_v43  ;;  %5071 = vmatpush.msrb.mxu1 %v6957_v32  ;;  %5007 = vmatpush.msra.mxu0 %v6954_v55  ;;  %v11467_v16 = vpop.f32.mrf.mxu3 }
 0x7fa   :  { %12690 = vst [vmem:[#allocation98_spill] sm:$0xff] %v11421_v52  ;;  %v12703_v52 = vld [vmem:[#allocation129_spill] sm:$0xff] }
 0x7fb   :  { %6875 = vmatmul.msk.f32.gmra.mxu0 %vm4050_vm7, %v11127_v54  ;;  %6892 = vmatmul.msk.f32.gmra.mxu1 %vm4050_vm7, %v11127_v54  ;;  %v6952_v54 = vld [vmem:[%s12206_s7 + $0x2c0] sm:$0xff] }
 0x7fc   :  { %5072 = vmatpush.msrb.mxu1 %v6955_v38  ;;  %5008 = vmatpush.msra.mxu0 %v6952_v54 }
 0x7fe   :  { %5073 = vmatpush.msrb.mxu1 %v6953_v2 }
 0x800   :  { %v11453_v51 = vpop.f32.mrf.mxu0  ;;  %v11455_v6 = vpop.f32.mrf.mxu1  ;;  %6933 = vmatmul.msk.f32.gmra.mxu2 %vm4050_vm7, %v11174_v9  ;;  %6950 = vmatmul.msk.f32.gmra.mxu3 %vm4050_vm7, %v11174_v9 }
 0x801   :  { %12691 = vst [vmem:[#allocation133_spill] sm:$0xff] %v11453_v51 }
 0x802   :  { %12692 = vst [vmem:[#allocation47_spill] sm:$0xff] %v11455_v6 }
 0x803   :  { %6876 = vmatmul.msk.f32.gmra.mxu0 %vm4050_vm7, %v11158_v56  ;;  %6893 = vmatmul.msk.f32.gmra.mxu1 %vm4050_vm7, %v11158_v56 }
 0x808   :  { %v11469_v32 = vpop.f32.mrf.mxu0  ;;  %v11471_v55 = vpop.f32.mrf.mxu1  ;;  %6934 = vmatmul.msk.f32.gmra.mxu2 %vm4050_vm7, %v11191_v39  ;;  %6951 = vmatmul.msk.f32.gmra.mxu3 %vm4050_vm7, %v11191_v39  ;;  %v12697_v39 = vld [vmem:[#allocation36_spill] sm:$0xff] }
 0x809   :  { %12693 = vst [vmem:[#allocation100_spill] sm:$0xff] %v11469_v32  ;;  %v12700_v32 = vld [vmem:[#allocation92_spill] sm:$0xff] }
 0x80a   :  { %12694 = vst [vmem:[#allocation44_spill] sm:$0xff] %v11471_v55 }
 0x80b   :  { %6877 = vmatmul.msk.f32.gmra.mxu0 %vm4050_vm7, %v11177_v53  ;;  %6894 = vmatmul.msk.f32.gmra.mxu1 %vm4050_vm7, %v11177_v53 }
 0x810   :  { %v11481_v56 = vpop.f32.mrf.mxu0  ;;  %v11483_v9 = vpop.f32.mrf.mxu1 }
 0x811   :  { %12695 = vst [vmem:[#allocation101_spill] sm:$0xff] %v11481_v56 }
 0x812   :  { %12696 = vst [vmem:[#allocation134_spill] sm:$0xff] %v11483_v9  ;;  %v11507_v9 = vpop.f32.mrf.mxu3 }
 0x813   :  { %6878 = vmatmul.msk.f32.gmra.mxu0 %vm4050_vm7, %v11194_v17  ;;  %6895 = vmatmul.msk.f32.gmra.mxu1 %vm4050_vm7, %v11194_v17  ;;  %v11505_v17 = vpop.f32.mrf.mxu2  ;;  %12699 = vst [vmem:[#allocation103_spill] sm:$0xff] %v11507_v9 }
 0x814   :  { %12698 = vst [vmem:[#allocation49_spill] sm:$0xff] %v11505_v17 }
 0x818   :  { %v11489_v38 = vpop.f32.mrf.mxu0  ;;  %v11491_v54 = vpop.f32.mrf.mxu1 }
 0x81b   :  { %6975 = vmatmul.msk.f32.vlgmr.msra.gmra.mxu0 %vm4050_vm7, %v12697_v39  ;;  %6992 = vmatmul.msk.f32.vlgmr.msrb.gmra.mxu1 %vm4050_vm7, %v12697_v39  ;;  %v11521_v51 = vpop.f32.mrf.mxu2 }
 0x81c   :  { %12701 = vst [vmem:[#allocation46_spill] sm:$0xff] %v11521_v51 }
 0x820   :  { %v11497_v53 = vpop.f32.mrf.mxu0  ;;  %v11499_v2 = vpop.f32.mrf.mxu1 }
 0x823   :  { %6976 = vmatmul.msk.f32.gmra.mxu0 %vm4050_vm7, %v10783_v60  ;;  %6993 = vmatmul.msk.f32.gmra.mxu1 %vm4050_vm7, %v10783_v60  ;;  %v11523_v60 = vpop.f32.mrf.mxu3  ;;  %v11533_v11 = vpop.f32.mrf.mxu2 }
 0x824   :  { %12702 = vst [vmem:[#allocation104_spill] sm:$0xff] %v11523_v60 }
 0x825   :  { %12704 = vst [vmem:[#allocation135_spill] sm:$0xff] %v11533_v11 }
 0x828   :  { %v11509_v56 = vpop.f32.mrf.mxu0  ;;  %v11511_v55 = vpop.f32.mrf.mxu1 }
 0x82b   :  { %6977 = vmatmul.msk.f32.gmra.mxu0 %vm4050_vm7, %v12700_v32  ;;  %6994 = vmatmul.msk.f32.gmra.mxu1 %vm4050_vm7, %v12700_v32  ;;  %v11535_v32 = vpop.f32.mrf.mxu3 }
 0x82c   :  { %12705 = vst [vmem:[#allocation51_spill] sm:$0xff] %v11535_v32 }
 0x830   :  { %v11517_v39 = vpop.f32.mrf.mxu0  ;;  %v11519_v6 = vpop.f32.mrf.mxu1 }
 0x833   :  { %6978 = vmatmul.msk.f32.gmra.mxu0 %vm4050_vm7, %v12703_v52  ;;  %6995 = vmatmul.msk.f32.gmra.mxu1 %vm4050_vm7, %v12703_v52  ;;  %v11549_v52 = vpop.f32.mrf.mxu2  ;;  %v11551_v11 = vpop.f32.mrf.mxu3 }
 0x834   :  { %12708 = vst [vmem:[#allocation107_spill] sm:$0xff] %v11549_v52  ;;  %v12713_v52 = vld [vmem:[#allocation93_spill] sm:$0xff] }
 0x835   :  { %12709 = vst [vmem:[#allocation48_spill] sm:$0xff] %v11551_v11 }
 0x838   :  { %v11529_v43 = vpop.f32.mrf.mxu0  ;;  %v11531_v15 = vpop.f32.mrf.mxu1 }
 0x83b   :  { %6979 = vmatmul.msk.f32.gmra.mxu0 %vm4050_vm7, %v12706_v21  ;;  %6996 = vmatmul.msk.f32.gmra.mxu1 %vm4050_vm7, %v12706_v21  ;;  %v11561_v21 = vpop.f32.mrf.mxu2  ;;  %v11563_v18 = vpop.f32.mrf.mxu3 }
 0x83c   :  { %12710 = vst [vmem:[#allocation108_spill] sm:$0xff] %v11561_v21  ;;  %v5368_v21 = vld [vmem:[#allocation2 + $0x78] sm:$0xff] }
 0x83d   :  { %12711 = vst [vmem:[#allocation53_spill] sm:$0xff] %v11563_v18  ;;  %v5170_v18 = vld [vmem:[%s12207_s8 + $0x78] sm:$0xff]  ;;  %5373 = vmatpush.msrb.mxu0 %v5368_v21 }
 0x83e   :  { %5223 = vmatpush.msra.mxu2 %v5170_v18  ;;  %v5365_v18 = vld [vmem:[#allocation2 + $0x60] sm:$0xff] }
 0x840   :  { %v11541_v37 = vpop.f32.mrf.mxu0  ;;  %v11543_v60 = vpop.f32.mrf.mxu1 }
 0x843   :  { %6980 = vmatmul.msk.f32.gmra.mxu0 %vm4050_vm7, %v12707_v30  ;;  %6997 = vmatmul.msk.f32.gmra.mxu1 %vm4050_vm7, %v12707_v30  ;;  %v11577_v17 = vpop.f32.mrf.mxu2 }
 0x844   :  { %12716 = vst [vmem:[#allocation136_spill] sm:$0xff] %v11577_v17  ;;  %v5367_v17 = vld [vmem:[#allocation2 + $0x70] sm:$0xff] }
 0x845   :  { %5374 = vmatpush.msrb.mxu0 %v5367_v17  ;;  %v5166_v17 = vld [vmem:[%s12207_s8 + $0x58] sm:$0xff] }
 0x848   :  { %v11553_v32 = vpop.f32.mrf.mxu0  ;;  %v11555_v51 = vpop.f32.mrf.mxu1 }
 0x84b   :  { %6981 = vmatmul.msk.f32.gmra.mxu0 %vm4050_vm7, %v10868_v49  ;;  %6998 = vmatmul.msk.f32.gmra.mxu1 %vm4050_vm7, %v10868_v49  ;;  %v11579_v49 = vpop.f32.mrf.mxu3  ;;  %v11601_v21 = vpop.f32.mrf.mxu2 }
 0x84c   :  { %12717 = vst [vmem:[#allocation137_spill] sm:$0xff] %v11579_v49 }
 0x84d   :  { %12720 = vst [vmem:[#allocation52_spill] sm:$0xff] %v11601_v21  ;;  %v5363_v21 = vld [vmem:[#allocation2 + $0x50] sm:$0xff] }
 0x850   :  { %v11565_v9 = vpop.f32.mrf.mxu0  ;;  %v11567_v30 = vpop.f32.mrf.mxu1 }
 0x851   :  { %12712 = vst [vmem:[#allocation110_spill] sm:$0xff] %v11567_v30 }
 0x853   :  { %6982 = vmatmul.msk.f32.gmra.mxu0 %vm4050_vm7, %v12713_v52  ;;  %6999 = vmatmul.msk.f32.gmra.mxu1 %vm4050_vm7, %v12713_v52  ;;  %v5169_v52 = vld [vmem:[%s12207_s8 + $0x70] sm:$0xff] }
 0x854   :  { %5224 = vmatpush.msra.mxu2 %v5169_v52  ;;  %v11603_v52 = vpop.f32.mrf.mxu3 }
 0x855   :  { %12721 = vst [vmem:[#allocation113_spill] sm:$0xff] %v11603_v52 }
 0x858   :  { %v11573_v11 = vpop.f32.mrf.mxu0  ;;  %v11575_v61 = vpop.f32.mrf.mxu1 }
 0x859   :  { %12714 = vst [vmem:[#allocation50_spill] sm:$0xff] %v11573_v11  ;;  %v5366_v11 = vld [vmem:[#allocation2 + $0x68] sm:$0xff] }
 0x85a   :  { %12715 = vst [vmem:[#allocation111_spill] sm:$0xff] %v11575_v61  ;;  %5375 = vmatpush.msrb.mxu0 %v5366_v11  ;;  %v5364_v11 = vld [vmem:[#allocation2 + $0x58] sm:$0xff] }
 0x85b   :  { %6983 = vmatmul.msk.f32.gmra.mxu0 %vm4050_vm7, %v10910_v47  ;;  %7000 = vmatmul.msk.f32.gmra.mxu1 %vm4050_vm7, %v10910_v47  ;;  %v5168_v47 = vld [vmem:[%s12207_s8 + $0x68] sm:$0xff] }
 0x85c   :  { %5225 = vmatpush.msra.mxu2 %v5168_v47  ;;  %5376 = vmatpush.msrb.mxu0 %v5365_v18  ;;  %v5165_v47 = vld [vmem:[%s12207_s8 + $0x50] sm:$0xff]  ;;  %v5361_v18 = vld [vmem:[#allocation2 + $0x40] sm:$0xff] }
 0x85e   :  { %5226 = vmatpush.msra.mxu2 %v5167_v1  ;;  %5377 = vmatpush.msrb.mxu0 %v5364_v11  ;;  %v5163_v1 = vld [vmem:[%s12207_s8 + $0x40] sm:$0xff]  ;;  %v11632_v11 = vpop.f32.mrf.mxu2 }
 0x85f   :  { %12724 = vst [vmem:[#allocation57_spill] sm:$0xff] %v11632_v11  ;;  %v5357_v11 = vld [vmem:[#allocation2 + $0x20] sm:$0xff] }
 0x860   :  { %v11591_v49 = vpop.f32.mrf.mxu0  ;;  %v11593_v61 = vpop.f32.mrf.mxu1  ;;  %5227 = vmatpush.msra.mxu2 %v5166_v17  ;;  %5378 = vmatpush.msrb.mxu0 %v5363_v21  ;;  %v5162_v21 = vld [vmem:[%s12207_s8 + $0x38] sm:$0xff] }
 0x861   :  { %12718 = vst [vmem:[#allocation55_spill] sm:$0xff] %v11591_v49  ;;  %v5362_v49 = vld [vmem:[#allocation2 + $0x48] sm:$0xff]  ;;  %v5360_v17 = vld [vmem:[#allocation2 + $0x38] sm:$0xff] }
 0x862   :  { %12719 = vst [vmem:[#allocation112_spill] sm:$0xff] %v11593_v61  ;;  %5228 = vmatpush.msra.mxu2 %v5165_v47  ;;  %5379 = vmatpush.msrb.mxu0 %v5362_v49  ;;  %v11634_v47 = vpop.f32.mrf.mxu3  ;;  %v5161_v49 = vld [vmem:[%s12207_s8 + $0x30] sm:$0xff] }
 0x863   :  { %6984 = vmatmul.msk.f32.gmra.mxu0 %vm4050_vm7, %v10963_v35  ;;  %7001 = vmatmul.msk.f32.gmra.mxu1 %vm4050_vm7, %v10963_v35  ;;  %v5164_v35 = vld [vmem:[%s12207_s8 + $0x48] sm:$0xff]  ;;  %12725 = vst [vmem:[#allocation115_spill] sm:$0xff] %v11634_v47  ;;  %v5159_v47 = vld [vmem:[%s12207_s8 + $0x20] sm:$0xff] }
 0x864   :  { %5229 = vmatpush.msra.mxu2 %v5164_v35  ;;  %5380 = vmatpush.msrb.mxu0 %v5361_v18  ;;  %v5359_v35 = vld [vmem:[#allocation2 + $0x30] sm:$0xff]  ;;  %v5358_v18 = vld [vmem:[#allocation2 + $0x28] sm:$0xff] }
 0x866   :  { %5230 = vmatpush.msra.mxu2 %v5163_v1  ;;  %5381 = vmatpush.msrb.mxu0 %v5360_v17  ;;  %v5160_v1 = vld [vmem:[%s12207_s8 + $0x28] sm:$0xff]  ;;  %v5174_v17 = vld [vmem:[%s12207_s8 + $0x98] sm:$0xff] }
 0x867   :  { %5300 = vmatpush.msrb.mxu3 %v5174_v17  ;;  %v5156_v17 = vld [vmem:[%s12207_s8 + $0x8] sm:$0xff] }
 0x868   :  { %v11615_v52 = vpop.f32.mrf.mxu0  ;;  %v11617_v61 = vpop.f32.mrf.mxu1  ;;  %5231 = vmatpush.msra.mxu2 %v5162_v21  ;;  %5382 = vmatpush.msrb.mxu0 %v5359_v35  ;;  %v5158_v21 = vld [vmem:[%s12207_s8 + $0x18] sm:$0xff] }
 0x869   :  { %12722 = vst [vmem:[#allocation138_spill] sm:$0xff] %v11615_v52  ;;  %v5372_v35 = vld [vmem:[#allocation2 + $0x98] sm:$0xff] }
 0x86a   :  { %12723 = vst [vmem:[#allocation66_spill] sm:$0xff] %v11617_v61  ;;  %5232 = vmatpush.msra.mxu2 %v5161_v49  ;;  %5383 = vmatpush.msrb.mxu0 %v5358_v18  ;;  %v5356_v49 = vld [vmem:[#allocation2 + $0x18] sm:$0xff]  ;;  %v5355_v18 = vld [vmem:[#allocation2 + $0x10] sm:$0xff]  ;;  %v4819_v52 = vpop.f32.mrf.mxu3 }
 0x86b   :  { %6985 = vmatmul.msk.f32.gmra.mxu0 %vm4050_vm7, %v11030_v12  ;;  %7002 = vmatmul.msk.f32.gmra.mxu1 %vm4050_vm7, %v11030_v12 }
 0x86c   :  { %5233 = vmatpush.msra.mxu2 %v5160_v1  ;;  %5384 = vmatpush.msrb.mxu0 %v5357_v11  ;;  %v5173_v1 = vld [vmem:[%s12207_s8 + $0x90] sm:$0xff] }
 0x86d   :  { %5450 = vmatpush.msra.mxu1 %v5372_v35  ;;  %5301 = vmatpush.msrb.mxu3 %v5173_v1  ;;  %v5172_v35 = vld [vmem:[%s12207_s8 + $0x88] sm:$0xff]  ;;  %v5171_v1 = vld [vmem:[%s12207_s8 + $0x80] sm:$0xff] }
 0x86e   :  { %5234 = vmatpush.msra.mxu2 %v5159_v47  ;;  %5385 = vmatpush.msrb.mxu0 %v5356_v49  ;;  %v5370_v49 = vld [vmem:[#allocation2 + $0x88] sm:$0xff] }
 0x86f   :  { %5302 = vmatpush.msrb.mxu3 %v5172_v35 }
 0x870   :  { %v11639_v61 = vpop.f32.mrf.mxu0  ;;  %v11641_v12 = vpop.f32.mrf.mxu1  ;;  %5235 = vmatpush.msra.mxu2 %v5158_v21  ;;  %5386 = vmatpush.msrb.mxu0 %v5355_v18  ;;  %v5354_v21 = vld [vmem:[#allocation2 + $0x8] sm:$0xff]  ;;  %v5369_v18 = vld [vmem:[#allocation2 + $0x80] sm:$0xff] }
 0x871   :  { %12726 = vst [vmem:[#allocation54_spill] sm:$0xff] %v11639_v61  ;;  %v4754_v61 = vpop.f32.mrf.mxu2  ;;  %5303 = vmatpush.msrb.mxu3 %v5171_v1 }
 0x872   :  { %12727 = vst [vmem:[#allocation116_spill] sm:$0xff] %v11641_v12  ;;  %v5371_v12 = vld [vmem:[#allocation2 + $0x90] sm:$0xff]  ;;  %5387 = vmatpush.msrb.mxu0 %v5354_v21 }
 0x873   :  { %6986 = vmatmul.msk.f32.gmra.mxu0 %vm4050_vm7, %v11095_v4  ;;  %7003 = vmatmul.msk.f32.gmra.mxu1 %vm4050_vm7, %v11095_v4  ;;  %v5157_v4 = vld [vmem:[%s12207_s8 + $0x10] sm:$0xff] }
 0x874   :  { %5451 = vmatpush.msra.mxu1 %v5371_v12  ;;  %5236 = vmatpush.msra.mxu2 %v5157_v4  ;;  %v5155_v12 = vld [vmem:[%s12207_s8] sm:$0xff] }
 0x875   :  { %v5353_v4 = vld [vmem:[#allocation2] sm:$0xff] }
 0x876   :  { %5237 = vmatpush.msra.mxu2 %v5156_v17  ;;  %5452 = vmatpush.msra.mxu1 %v5370_v49 }
 0x877   :  { %5388 = vmatpush.msrb.mxu0 %v5353_v4 }
 0x878   :  { %v11665_v11 = vpop.f32.mrf.mxu0  ;;  %v11667_v47 = vpop.f32.mrf.mxu1  ;;  %5238 = vmatpush.msra.mxu2 %v5155_v12  ;;  %5453 = vmatpush.msra.mxu1 %v5369_v18  ;;  %v4275_v18 = vadd.f32 %v11269_v44, %v11201_v57  ;;  %v4278_v57 = vadd.f32 %v11285_v42, %v11213_v40 }
 0x879   :  { %12728 = vst [vmem:[#allocation67_spill] sm:$0xff] %v11665_v11  ;;  %v4757_v21 = vpop.f32.mrf.mxu2 }
 0x87a   :  { %12729 = vst [vmem:[#allocation139_spill] sm:$0xff] %v11667_v47  ;;  %v4822_v47 = vpop.f32.mrf.mxu3 }
 0x87b   :  { %6987 = vmatmul.msk.f32.gmra.mxu0 %vm4050_vm7, %v11138_v63  ;;  %7004 = vmatmul.msk.f32.gmra.mxu1 %vm4050_vm7, %v11138_v63 }
 0x880   :  { %v11685_v35 = vpop.f32.mrf.mxu0  ;;  %v11687_v17 = vpop.f32.mrf.mxu1 }
 0x881   :  { %12730 = vst [vmem:[#allocation59_spill] sm:$0xff] %v11685_v35  ;;  %v4760_v49 = vpop.f32.mrf.mxu2 }
 0x882   :  { %12731 = vst [vmem:[#allocation118_spill] sm:$0xff] %v11687_v17  ;;  %v4825_v12 = vpop.f32.mrf.mxu3 }
 0x883   :  { %6988 = vmatmul.msk.f32.gmra.mxu0 %vm4050_vm7, %v11163_v27  ;;  %7005 = vmatmul.msk.f32.gmra.mxu1 %vm4050_vm7, %v11163_v27  ;;  %v4340_v27 = vadd.f32 %v11271_v14, %v11203_v3  ;;  %v4343_v3 = vadd.f32 %v11287_v7, %v11215_v29  ;;  %v4281_v29 = vadd.f32 %v11305_v45, %v11225_v31 }
 0x884   :  { %v4346_v7 = vadd.f32 %v11307_v26, %v11227_v23  ;;  %v4284_v31 = vadd.f32 %v11321_v19, %v11237_v28  ;;  %v4349_v23 = vadd.f32 %v11323_v59, %v11239_v10  ;;  %v4287_v10 = vadd.f32 %v11359_v22, %v11249_v34 }
 0x885   :  { %v4352_v59 = vadd.f32 %v11361_v25, %v11251_v33  ;;  %v4290_v33 = vadd.f32 %v11399_v0, %v11261_v20  ;;  %v4355_v25 = vadd.f32 %v11401_v8, %v11263_v13  ;;  %v4293_v13 = vadd.f32 %v11443_v46, %v11277_v58 }
 0x888   :  { %v11693_v11 = vpop.f32.mrf.mxu0  ;;  %v11695_v63 = vpop.f32.mrf.mxu1 }
 0x889   :  { %12732 = vst [vmem:[#allocation56_spill] sm:$0xff] %v11693_v11  ;;  %v4612_v11 = vadd.f32 %v11491_v54, %v4340_v27  ;;  %v4614_v54 = vadd.f32 %v11499_v2, %v4343_v3 }
 0x88a   :  { %12733 = vst [vmem:[#allocation119_spill] sm:$0xff] %v11695_v63  ;;  %v4611_v63 = vadd.f32 %v11489_v38, %v4275_v18  ;;  %v4613_v38 = vadd.f32 %v11497_v53, %v4278_v57  ;;  %v4618_v18 = vadd.f32 %v11519_v6, %v4349_v23  ;;  %v4619_v6 = vadd.f32 %v11529_v43, %v4287_v10 }
 0x88b   :  { %6989 = vmatmul.msk.f32.gmra.mxu0 %vm4050_vm7, %v11182_v48  ;;  %7006 = vmatmul.msk.f32.gmra.mxu1 %vm4050_vm7, %v11182_v48  ;;  %v4763_v48 = vpop.f32.mrf.mxu2  ;;  %v4620_v57 = vadd.f32 %v11531_v15, %v4352_v59  ;;  %v12743_v59 = vld [vmem:[#allocation43_spill] sm:$0xff] }
 0x88c   :  { %v4867_v17 = vadd.f32 %v4754_v61, %v4611_v63 }
 0x890   :  { %v11701_v1 = vpop.f32.mrf.mxu0  ;;  %v11703_v4 = vpop.f32.mrf.mxu1 }
 0x891   :  { %12734 = vst [vmem:[#allocation68_spill] sm:$0xff] %v11701_v1  ;;  %v4828_v1 = vpop.f32.mrf.mxu3 }
 0x892   :  { %12735 = vst [vmem:[#allocation141_spill] sm:$0xff] %v11703_v4  ;;  %v4868_v4 = vadd.f32 %v4819_v52, %v4612_v11  ;;  %v4869_v52 = vadd.f32 %v4757_v21, %v4613_v38  ;;  %v4870_v11 = vadd.f32 %v4822_v47, %v4614_v54  ;;  %v4622_v38 = vadd.f32 %v11543_v60, %v4355_v25 }
 0x893   :  { %6990 = vmatmul.msk.f32.gmra.mxu0 %vm4050_vm7, %v11197_v50  ;;  %7007 = vmatmul.msk.f32.gmra.mxu1 %vm4050_vm7, %v11197_v50  ;;  %v4766_v50 = vpop.f32.mrf.mxu2 }
 0x898   :  { %v5010_v35 = vpop.f32.mrf.mxu0  ;;  %v5075_v30 = vpop.f32.mrf.mxu1 }
 0x899   :  { %v5123_v44 = vadd.f32 %v5010_v35, %v4867_v17  ;;  %v5124_v14 = vadd.f32 %v5075_v30, %v4868_v4  ;;  %v4831_v61 = vpop.f32.mrf.mxu3  ;;  %v4615_v30 = vadd.f32 %v11509_v56, %v4281_v29  ;;  %v4616_v35 = vadd.f32 %v11511_v55, %v4346_v7 }
 0x89a   :  { %v4617_v4 = vadd.f32 %v11517_v39, %v4284_v31 }
 0x89b   :  { %5239 = vmatmul.f32.vlgmr.msra.gmra.mxu2 %v5123_v44  ;;  %7008 = vmatmul.msk.f32.vlgmr.msrb.gmra.mxu3 %vm320_vm1, %v5124_v14  ;;  %v4871_v47 = vadd.f32 %v4760_v49, %v4615_v30  ;;  %v4872_v17 = vadd.f32 %v4825_v12, %v4616_v35  ;;  %v4769_v45 = vpop.f32.mrf.mxu2  ;;  %v4874_v12 = vadd.f32 %v4828_v1, %v4618_v18  ;;  %v12736_v30 = vld [vmem:[#allocation110_spill] sm:$0xff]  ;;  %v12742_v18 = vld [vmem:[#allocation111_spill] sm:$0xff] }
 0x89c   :  { %5389 = vmatmul.f32.vlgmr.msrb.gmra.mxu0 %v5123_v44  ;;  %7024 = vmatmul.msk.f32.vlgmr.msra.gmra.mxu1 %vm320_vm1, %v5124_v14  ;;  %v4873_v49 = vadd.f32 %v4763_v48, %v4617_v4  ;;  %v4875_v1 = vadd.f32 %v4766_v50, %v4619_v6  ;;  %v4876_v48 = vadd.f32 %v4831_v61, %v4620_v57  ;;  %v12745_v6 = vld [vmem:[#allocation95_spill] sm:$0xff]  ;;  %v12746_v57 = vld [vmem:[#allocation104_spill] sm:$0xff] }
 0x89d   :  { %v4621_v14 = vadd.f32 %v11541_v37, %v4290_v33  ;;  %v4358_v37 = vadd.f32 %v11445_v62, %v11279_v24  ;;  %v4296_v24 = vadd.f32 %v11465_v5, %v11293_v41  ;;  %v4361_v62 = vadd.f32 %v11467_v16, %v11295_v36  ;;  %v12737_v41 = vld [vmem:[#allocation38_spill] sm:$0xff]  ;;  %v12738_v5 = vld [vmem:[#allocation49_spill] sm:$0xff]  ;;  %v12740_v16 = vld [vmem:[#allocation103_spill] sm:$0xff] }
 0x89e   :  { %v4299_v31 = vadd.f32 %v12738_v5, %v12737_v41  ;;  %v12739_v36 = vld [vmem:[#allocation94_spill] sm:$0xff]  ;;  %v12760_v41 = vld [vmem:[#allocation116_spill] sm:$0xff] }
 0x89f   :  { %v4877_v61 = vadd.f32 %v4769_v45, %v4621_v14  ;;  %v4626_v35 = vadd.f32 %v12736_v30, %v4361_v62  ;;  %v4364_v23 = vadd.f32 %v12740_v16, %v12739_v36  ;;  %v12755_v62 = vld [vmem:[#allocation45_spill] sm:$0xff]  ;;  %v12758_v30 = vld [vmem:[#allocation48_spill] sm:$0xff] }
 0x8a0   :  { %v5013_v40 = vpop.f32.mrf.mxu0  ;;  %v5078_v42 = vpop.f32.mrf.mxu1 }
 0x8a1   :  { %v5125_v53 = vadd.f32 %v5013_v40, %v4869_v52  ;;  %v5126_v2 = vadd.f32 %v5078_v42, %v4870_v11  ;;  %v4834_v26 = vpop.f32.mrf.mxu3  ;;  %v4623_v11 = vadd.f32 %v11553_v32, %v4293_v13  ;;  %v4624_v40 = vadd.f32 %v11555_v51, %v4358_v37 }
 0x8a2   :  { %v4878_v52 = vadd.f32 %v4834_v26, %v4622_v38 }
 0x8a3   :  { %5242 = vmatmul.f32.gmra.mxu2 %v5125_v53  ;;  %7009 = vmatmul.msk.f32.gmra.mxu3 %vm320_vm1, %v5126_v2  ;;  %v4772_v3 = vpop.f32.mrf.mxu2 }
 0x8a4   :  { %5392 = vmatmul.f32.gmra.mxu0 %v5125_v53  ;;  %7025 = vmatmul.msk.f32.gmra.mxu1 %vm320_vm1, %v5126_v2  ;;  %v4879_v7 = vadd.f32 %v4772_v3, %v4623_v11  ;;  %v4625_v2 = vadd.f32 %v11565_v9, %v4296_v24  ;;  %v4367_v3 = vadd.f32 %v12746_v57, %v12745_v6 }
 0x8a8   :  { %v5016_v21 = vpop.f32.mrf.mxu0  ;;  %v5081_v63 = vpop.f32.mrf.mxu1 }
 0x8a9   :  { %v5127_v56 = vadd.f32 %v5016_v21, %v4871_v47  ;;  %v5128_v55 = vadd.f32 %v5081_v63, %v4872_v17  ;;  %v4837_v44 = vpop.f32.mrf.mxu3 }
 0x8aa   :  { %v4880_v53 = vadd.f32 %v4837_v44, %v4624_v40  ;;  %v12754_v40 = vld [vmem:[#allocation66_spill] sm:$0xff] }
 0x8ab   :  { %5245 = vmatmul.f32.gmra.mxu2 %v5127_v56  ;;  %7010 = vmatmul.msk.f32.gmra.mxu3 %vm320_vm1, %v5128_v55  ;;  %v4775_v54 = vpop.f32.mrf.mxu2 }
 0x8ac   :  { %5395 = vmatmul.f32.gmra.mxu0 %v5127_v56  ;;  %7026 = vmatmul.msk.f32.gmra.mxu1 %vm320_vm1, %v5128_v55  ;;  %v4881_v47 = vadd.f32 %v4775_v54, %v4625_v2  ;;  %v12741_v55 = vld [vmem:[#allocation50_spill] sm:$0xff]  ;;  %v12757_v2 = vld [vmem:[#allocation97_spill] sm:$0xff] }
 0x8ad   :  { %v4627_v4 = vadd.f32 %v12741_v55, %v4299_v31 }
 0x8b0   :  { %v5019_v28 = vpop.f32.mrf.mxu0  ;;  %v5084_v19 = vpop.f32.mrf.mxu1 }
 0x8b1   :  { %v5129_v27 = vadd.f32 %v5019_v28, %v4873_v49  ;;  %v5130_v39 = vadd.f32 %v5084_v19, %v4874_v12  ;;  %v4840_v50 = vpop.f32.mrf.mxu3  ;;  %v4628_v49 = vadd.f32 %v12742_v18, %v4364_v23  ;;  %v12764_v18 = vld [vmem:[#allocation53_spill] sm:$0xff] }
 0x8b2   :  { %v4882_v17 = vadd.f32 %v4840_v50, %v4626_v35  ;;  %v12749_v50 = vld [vmem:[#allocation40_spill] sm:$0xff]  ;;  %v4373_v35 = vadd.f32 %v12758_v30, %v12757_v2 }
 0x8b3   :  { %5248 = vmatmul.f32.gmra.mxu2 %v5129_v27  ;;  %7011 = vmatmul.msk.f32.gmra.mxu3 %vm320_vm1, %v5130_v39  ;;  %v4778_v42 = vpop.f32.mrf.mxu2 }
 0x8b4   :  { %5398 = vmatmul.f32.gmra.mxu0 %v5129_v27  ;;  %7027 = vmatmul.msk.f32.gmra.mxu1 %vm320_vm1, %v5130_v39  ;;  %v4883_v12 = vadd.f32 %v4778_v42, %v4627_v4  ;;  %v12744_v27 = vld [vmem:[#allocation46_spill] sm:$0xff]  ;;  %v4634_v5 = vadd.f32 %v12760_v41, %v4373_v35  ;;  %v12782_v41 = vld [vmem:[#allocation115_spill] sm:$0xff] }
 0x8b5   :  { %v4302_v39 = vadd.f32 %v12744_v27, %v12743_v59  ;;  %v12763_v4 = vld [vmem:[#allocation98_spill] sm:$0xff]  ;;  %v12766_v59 = vld [vmem:[#allocation139_spill] sm:$0xff] }
 0x8b8   :  { %v5022_v34 = vpop.f32.mrf.mxu0  ;;  %v5087_v22 = vpop.f32.mrf.mxu1 }
 0x8b9   :  { %v5131_v43 = vadd.f32 %v5022_v34, %v4875_v1  ;;  %v5132_v15 = vadd.f32 %v5087_v22, %v4876_v48  ;;  %v4843_v29 = vpop.f32.mrf.mxu3  ;;  %v12747_v48 = vld [vmem:[#allocation55_spill] sm:$0xff]  ;;  %v12748_v22 = vld [vmem:[#allocation112_spill] sm:$0xff] }
 0x8ba   :  { %v4884_v28 = vadd.f32 %v4843_v29, %v4628_v49  ;;  %v4629_v34 = vadd.f32 %v12747_v48, %v4302_v39  ;;  %v4630_v33 = vadd.f32 %v12748_v22, %v4367_v3  ;;  %v4376_v49 = vadd.f32 %v12764_v18, %v12763_v4  ;;  %v12770_v22 = vld [vmem:[#allocation137_spill] sm:$0xff] }
 0x8bb   :  { %5251 = vmatmul.f32.gmra.mxu2 %v5131_v43  ;;  %7012 = vmatmul.msk.f32.gmra.mxu3 %vm320_vm1, %v5132_v15  ;;  %v4781_v45 = vpop.f32.mrf.mxu2 }
 0x8bc   :  { %5401 = vmatmul.f32.gmra.mxu0 %v5131_v43  ;;  %7028 = vmatmul.msk.f32.gmra.mxu1 %vm320_vm1, %v5132_v15  ;;  %v4885_v15 = vadd.f32 %v4781_v45, %v4629_v34  ;;  %v4636_v27 = vadd.f32 %v12766_v59, %v4376_v49  ;;  %v12769_v34 = vld [vmem:[#allocation47_spill] sm:$0xff] }
 0x8c0   :  { %v5025_v20 = vpop.f32.mrf.mxu0  ;;  %v5090_v0 = vpop.f32.mrf.mxu1 }
 0x8c1   :  { %v5133_v8 = vadd.f32 %v5025_v20, %v4877_v61  ;;  %v5134_v60 = vadd.f32 %v5090_v0, %v4878_v52  ;;  %v4846_v9 = vpop.f32.mrf.mxu3  ;;  %v12750_v61 = vld [vmem:[#allocation135_spill] sm:$0xff]  ;;  %v12751_v20 = vld [vmem:[#allocation96_spill] sm:$0xff] }
 0x8c2   :  { %v4886_v14 = vadd.f32 %v4846_v9, %v4630_v33  ;;  %v4305_v52 = vadd.f32 %v12750_v61, %v12749_v50  ;;  %v12752_v0 = vld [vmem:[#allocation51_spill] sm:$0xff]  ;;  %v4379_v33 = vadd.f32 %v12770_v22, %v12769_v34  ;;  %v12772_v50 = vld [vmem:[#allocation118_spill] sm:$0xff] }
 0x8c3   :  { %5254 = vmatmul.f32.gmra.mxu2 %v5133_v8  ;;  %7013 = vmatmul.msk.f32.gmra.mxu3 %vm320_vm1, %v5134_v60  ;;  %v4784_v25 = vpop.f32.mrf.mxu2  ;;  %v4370_v13 = vadd.f32 %v12752_v0, %v12751_v20 }
 0x8c4   :  { %5404 = vmatmul.f32.gmra.mxu0 %v5133_v8  ;;  %7029 = vmatmul.msk.f32.gmra.mxu1 %vm320_vm1, %v5134_v60  ;;  %v12753_v60 = vld [vmem:[#allocation138_spill] sm:$0xff]  ;;  %v4638_v61 = vadd.f32 %v12772_v50, %v4379_v33 }
 0x8c5   :  { %v4631_v11 = vadd.f32 %v12753_v60, %v4305_v52  ;;  %v4632_v42 = vadd.f32 %v12754_v40, %v4370_v13  ;;  %v12776_v40 = vld [vmem:[#allocation113_spill] sm:$0xff] }
 0x8c8   :  { %v5028_v58 = vpop.f32.mrf.mxu0  ;;  %v5093_v46 = vpop.f32.mrf.mxu1 }
 0x8c9   :  { %v5135_v32 = vadd.f32 %v5028_v58, %v4879_v7  ;;  %v5136_v51 = vadd.f32 %v5093_v46, %v4880_v53  ;;  %v4849_v43 = vpop.f32.mrf.mxu3  ;;  %v4887_v53 = vadd.f32 %v4784_v25, %v4631_v11  ;;  %v12775_v11 = vld [vmem:[#allocation44_spill] sm:$0xff] }
 0x8ca   :  { %v4888_v58 = vadd.f32 %v4849_v43, %v4632_v42  ;;  %v4382_v42 = vadd.f32 %v12776_v40, %v12775_v11 }
 0x8cb   :  { %5257 = vmatmul.f32.gmra.mxu2 %v5135_v32  ;;  %7014 = vmatmul.msk.f32.gmra.mxu3 %vm320_vm1, %v5136_v51  ;;  %v4787_v29 = vpop.f32.mrf.mxu2 }
 0x8cc   :  { %5407 = vmatmul.f32.gmra.mxu0 %v5135_v32  ;;  %7030 = vmatmul.msk.f32.gmra.mxu1 %vm320_vm1, %v5136_v51  ;;  %v12756_v32 = vld [vmem:[#allocation107_spill] sm:$0xff] }
 0x8cd   :  { %v4308_v51 = vadd.f32 %v12756_v32, %v12755_v62 }
 0x8d0   :  { %v5031_v21 = vpop.f32.mrf.mxu0  ;;  %v5096_v63 = vpop.f32.mrf.mxu1 }
 0x8d1   :  { %v5137_v26 = vadd.f32 %v5031_v21, %v4881_v47  ;;  %v5138_v56 = vadd.f32 %v5096_v63, %v4882_v17  ;;  %v4852_v7 = vpop.f32.mrf.mxu3  ;;  %v12759_v21 = vld [vmem:[#allocation54_spill] sm:$0xff] }
 0x8d2   :  { %v4633_v63 = vadd.f32 %v12759_v21, %v4308_v51  ;;  %v4890_v23 = vadd.f32 %v4852_v7, %v4634_v5 }
 0x8d3   :  { %5260 = vmatmul.f32.gmra.mxu2 %v5137_v26  ;;  %7015 = vmatmul.msk.f32.gmra.mxu3 %vm320_vm1, %v5138_v56  ;;  %v4790_v31 = vpop.f32.mrf.mxu2 }
 0x8d4   :  { %5410 = vmatmul.f32.gmra.mxu0 %v5137_v26  ;;  %7031 = vmatmul.msk.f32.gmra.mxu1 %vm320_vm1, %v5138_v56  ;;  %v4889_v16 = vadd.f32 %v4787_v29, %v4633_v63  ;;  %v12761_v26 = vld [vmem:[#allocation42_spill] sm:$0xff]  ;;  %v12762_v56 = vld [vmem:[#allocation108_spill] sm:$0xff] }
 0x8d5   :  { %v4311_v55 = vadd.f32 %v12762_v56, %v12761_v26  ;;  %v12781_v63 = vld [vmem:[#allocation134_spill] sm:$0xff] }
 0x8d6   :  { %v4385_v5 = vadd.f32 %v12782_v41, %v12781_v63 }
 0x8d8   :  { %v5034_v19 = vpop.f32.mrf.mxu0  ;;  %v5099_v10 = vpop.f32.mrf.mxu1 }
 0x8d9   :  { %v5139_v44 = vadd.f32 %v5034_v19, %v4883_v12  ;;  %v5140_v1 = vadd.f32 %v5099_v10, %v4884_v28  ;;  %v4855_v36 = vpop.f32.mrf.mxu3  ;;  %v12765_v19 = vld [vmem:[#allocation67_spill] sm:$0xff] }
 0x8da   :  { %v4635_v10 = vadd.f32 %v12765_v19, %v4311_v55  ;;  %v4892_v6 = vadd.f32 %v4855_v36, %v4636_v27 }
 0x8db   :  { %5263 = vmatmul.f32.gmra.mxu2 %v5139_v44  ;;  %7016 = vmatmul.msk.f32.gmra.mxu3 %vm320_vm1, %v5140_v1 }
 0x8dc   :  { %5413 = vmatmul.f32.gmra.mxu0 %v5139_v44  ;;  %7032 = vmatmul.msk.f32.gmra.mxu1 %vm320_vm1, %v5140_v1  ;;  %v4891_v39 = vadd.f32 %v4790_v31, %v4635_v10  ;;  %v12767_v44 = vld [vmem:[#allocation133_spill] sm:$0xff]  ;;  %v12768_v1 = vld [vmem:[#allocation136_spill] sm:$0xff] }
 0x8dd   :  { %v4314_v48 = vadd.f32 %v12768_v1, %v12767_v44 }
 0x8e0   :  { %v5037_v38 = vpop.f32.mrf.mxu0  ;;  %v5102_v54 = vpop.f32.mrf.mxu1 }
 0x8e1   :  { %v5141_v37 = vadd.f32 %v5037_v38, %v4885_v15  ;;  %v5142_v8 = vadd.f32 %v5102_v54, %v4886_v14  ;;  %v4793_v15 = vpop.f32.mrf.mxu2  ;;  %v4858_v14 = vpop.f32.mrf.mxu3  ;;  %v12771_v38 = vld [vmem:[#allocation59_spill] sm:$0xff] }
 0x8e2   :  { %v4637_v54 = vadd.f32 %v12771_v38, %v4314_v48  ;;  %v4894_v20 = vadd.f32 %v4858_v14, %v4638_v61 }
 0x8e3   :  { %5266 = vmatmul.f32.gmra.mxu2 %v5141_v37  ;;  %7017 = vmatmul.msk.f32.gmra.mxu3 %vm320_vm1, %v5142_v8 }
 0x8e4   :  { %5416 = vmatmul.f32.gmra.mxu0 %v5141_v37  ;;  %7033 = vmatmul.msk.f32.gmra.mxu1 %vm320_vm1, %v5142_v8  ;;  %v4893_v52 = vadd.f32 %v4793_v15, %v4637_v54  ;;  %v12773_v37 = vld [vmem:[#allocation100_spill] sm:$0xff] }
 0x8e5   :  { %v12774_v8 = vld [vmem:[#allocation52_spill] sm:$0xff] }
 0x8e6   :  { %v4317_v60 = vadd.f32 %v12774_v8, %v12773_v37 }
 0x8e8   :  { %v5040_v46 = vpop.f32.mrf.mxu0  ;;  %v5105_v24 = vpop.f32.mrf.mxu1 }
 0x8e9   :  { %v5143_v47 = vadd.f32 %v5040_v46, %v4887_v53  ;;  %v5144_v17 = vadd.f32 %v5105_v24, %v4888_v58  ;;  %v12777_v53 = vld [vmem:[#allocation56_spill] sm:$0xff]  ;;  %v12778_v46 = vld [vmem:[#allocation119_spill] sm:$0xff]  ;;  %v4796_v62 = vpop.f32.mrf.mxu2  ;;  %v4861_v32 = vpop.f32.mrf.mxu3 }
 0x8ea   :  { %v4639_v58 = vadd.f32 %v12777_v53, %v4317_v60  ;;  %v4640_v24 = vadd.f32 %v12778_v46, %v4382_v42 }
 0x8eb   :  { %5269 = vmatmul.f32.gmra.mxu2 %v5143_v47  ;;  %7018 = vmatmul.msk.f32.gmra.mxu3 %vm320_vm1, %v5144_v17 }
 0x8ec   :  { %5419 = vmatmul.f32.gmra.mxu0 %v5143_v47  ;;  %7034 = vmatmul.msk.f32.gmra.mxu1 %vm320_vm1, %v5144_v17  ;;  %v4895_v51 = vadd.f32 %v4796_v62, %v4639_v58  ;;  %v4896_v2 = vadd.f32 %v4861_v32, %v4640_v24  ;;  %v12779_v47 = vld [vmem:[#allocation101_spill] sm:$0xff] }
 0x8ed   :  { %v12780_v17 = vld [vmem:[#allocation57_spill] sm:$0xff] }
 0x8ee   :  { %v4320_v21 = vadd.f32 %v12780_v17, %v12779_v47 }
 0x8f0   :  { %v5043_v45 = vpop.f32.mrf.mxu0  ;;  %v5108_v9 = vpop.f32.mrf.mxu1 }
 0x8f1   :  { %v5145_v12 = vadd.f32 %v5043_v45, %v4889_v16  ;;  %v5146_v28 = vadd.f32 %v5108_v9, %v4890_v23  ;;  %v12783_v16 = vld [vmem:[#allocation68_spill] sm:$0xff]  ;;  %v12784_v45 = vld [vmem:[#allocation141_spill] sm:$0xff]  ;;  %v4799_v26 = vpop.f32.mrf.mxu2  ;;  %v4864_v56 = vpop.f32.mrf.mxu3 }
 0x8f2   :  { %v4641_v23 = vadd.f32 %v12783_v16, %v4320_v21  ;;  %v4642_v9 = vadd.f32 %v12784_v45, %v4385_v5 }
 0x8f3   :  { %5272 = vmatmul.f32.gmra.mxu2 %v5145_v12  ;;  %7019 = vmatmul.msk.f32.gmra.mxu3 %vm320_vm1, %v5146_v28 }
 0x8f4   :  { %5422 = vmatmul.f32.gmra.mxu0 %v5145_v12  ;;  %7035 = vmatmul.msk.f32.gmra.mxu1 %vm320_vm1, %v5146_v28  ;;  %v4897_v55 = vadd.f32 %v4799_v26, %v4641_v23  ;;  %v4898_v4 = vadd.f32 %v4864_v56, %v4642_v9 }
 0x8f8   :  { %v5046_v57 = vpop.f32.mrf.mxu0  ;;  %v5111_v3 = vpop.f32.mrf.mxu1 }
 0x8f9   :  { %v5147_v25 = vadd.f32 %v5046_v57, %v4891_v39  ;;  %v5148_v43 = vadd.f32 %v5111_v3, %v4892_v6 }
 0x8fb   :  { %5275 = vmatmul.f32.gmra.mxu2 %v5147_v25  ;;  %7020 = vmatmul.msk.f32.gmra.mxu3 %vm320_vm1, %v5148_v43 }
 0x8fc   :  { %5425 = vmatmul.f32.gmra.mxu0 %v5147_v25  ;;  %7036 = vmatmul.msk.f32.gmra.mxu1 %vm320_vm1, %v5148_v43 }
 0x900   :  { %v5049_v0 = vpop.f32.mrf.mxu0  ;;  %v5114_v13 = vpop.f32.mrf.mxu1 }
 0x901   :  { %v5149_v29 = vadd.f32 %v5049_v0, %v4893_v52  ;;  %v5150_v7 = vadd.f32 %v5114_v13, %v4894_v20 }
 0x903   :  { %5278 = vmatmul.f32.gmra.mxu2 %v5149_v29  ;;  %7021 = vmatmul.msk.f32.gmra.mxu3 %vm320_vm1, %v5150_v7 }
 0x904   :  { %5428 = vmatmul.f32.gmra.mxu0 %v5149_v29  ;;  %7037 = vmatmul.msk.f32.gmra.mxu1 %vm320_vm1, %v5150_v7 }
 0x908   :  { %v5052_v30 = vpop.f32.mrf.mxu0  ;;  %v5117_v35 = vpop.f32.mrf.mxu1 }
 0x909   :  { %v5151_v31 = vadd.f32 %v5052_v30, %v4895_v51  ;;  %v5152_v36 = vadd.f32 %v5117_v35, %v4896_v2 }
 0x90b   :  { %5281 = vmatmul.f32.gmra.mxu2 %v5151_v31  ;;  %7022 = vmatmul.msk.f32.gmra.mxu3 %vm320_vm1, %v5152_v36 }
 0x90c   :  { %5431 = vmatmul.f32.gmra.mxu0 %v5151_v31  ;;  %7038 = vmatmul.msk.f32.gmra.mxu1 %vm320_vm1, %v5152_v36 }
 0x910   :  { %v5055_v18 = vpop.f32.mrf.mxu0  ;;  %v5120_v49 = vpop.f32.mrf.mxu1 }
 0x911   :  { %v5153_v12 = vadd.f32 %v5055_v18, %v4897_v55  ;;  %v5154_v28 = vadd.f32 %v5120_v49, %v4898_v4 }
 0x913   :  { %5284 = vmatmul.f32.gmra.mxu2 %v5153_v12  ;;  %7023 = vmatmul.msk.f32.gmra.mxu3 %vm320_vm1, %v5154_v28 }
 0x914   :  { %5434 = vmatmul.f32.gmra.mxu0 %v5153_v12  ;;  %7039 = vmatmul.msk.f32.gmra.mxu1 %vm320_vm1, %v5154_v28 }
 0x919   :  { %v11837_v19 = vpop.f32.mrf.mxu0  ;;  %v11839_v10 = vpop.f32.mrf.mxu1 }
 0x91a   :  { %12785 = vst [vmem:[#allocation13_spill] sm:$0xff] %v11837_v19 }
 0x91b   :  { %12786 = vst [vmem:[#allocation61_spill] sm:$0xff] %v11839_v10 }
 0x91e   :  { %v11841_v59 = vpop.f32.mrf.mxu2  ;;  %v11843_v27 = vpop.f32.mrf.mxu3 }
 0x91f   :  { %12787 = vst [vmem:[#allocation140_spill] sm:$0xff] %v11841_v59 }
 0x920   :  { %12788 = vst [vmem:[#allocation69_spill] sm:$0xff] %v11843_v27 }
 0x921   :  { %v11845_v39 = vpop.f32.mrf.mxu0  ;;  %v11847_v6 = vpop.f32.mrf.mxu1 }
 0x922   :  { %12789 = vst [vmem:[#allocation122_spill] sm:$0xff] %v11845_v39 }
 0x923   :  { %12790 = vst [vmem:[#allocation58_spill] sm:$0xff] %v11847_v6 }
 0x926   :  { %v11849_v57 = vpop.f32.mrf.mxu2  ;;  %v11851_v3 = vpop.f32.mrf.mxu3 }
 0x927   :  { %12791 = vst [vmem:[#allocation123_spill] sm:$0xff] %v11849_v57 }
 0x928   :  { %12792 = vst [vmem:[#allocation142_spill] sm:$0xff] %v11851_v3 }
 0x929   :  { %v11853_v44 = vpop.f32.mrf.mxu0  ;;  %v11855_v1 = vpop.f32.mrf.mxu1 }
 0x92a   :  { %12793 = vst [vmem:[#allocation14_spill] sm:$0xff] %v11853_v44 }
 0x92b   :  { %12794 = vst [vmem:[#allocation63_spill] sm:$0xff] %v11855_v1 }
 0x92e   :  { %v11857_v48 = vpop.f32.mrf.mxu2  ;;  %v11859_v34 = vpop.f32.mrf.mxu3 }
 0x92f   :  { %12795 = vst [vmem:[#allocation143_spill] sm:$0xff] %v11857_v48 }
 0x930   :  { %12796 = vst [vmem:[#allocation70_spill] sm:$0xff] %v11859_v34 }
 0x931   :  { %v11861_v22 = vpop.f32.mrf.mxu0  ;;  %v11863_v33 = vpop.f32.mrf.mxu1 }
 0x932   :  { %12797 = vst [vmem:[#allocation126_spill] sm:$0xff] %v11861_v22 }
 0x933   :  { %12798 = vst [vmem:[#allocation60_spill] sm:$0xff] %v11863_v33 }
 0x936   :  { %v11865_v25 = vpop.f32.mrf.mxu2  ;;  %v11867_v43 = vpop.f32.mrf.mxu3 }
 0x939   :  { %v11869_v15 = vpop.f32.mrf.mxu0  ;;  %v11871_v14 = vpop.f32.mrf.mxu1 }
 0x93e   :  { %v11873_v38 = vpop.f32.mrf.mxu2  ;;  %v11875_v54 = vpop.f32.mrf.mxu3 }
 0x941   :  { %v11877_v50 = vpop.f32.mrf.mxu0  ;;  %v11879_v61 = vpop.f32.mrf.mxu1 }
 0x946   :  { %v11881_v52 = vpop.f32.mrf.mxu2  ;;  %v11883_v20 = vpop.f32.mrf.mxu3 }
 0x949   :  { %v11885_v0 = vpop.f32.mrf.mxu0  ;;  %v11887_v13 = vpop.f32.mrf.mxu1 }
 0x94e   :  { %v11889_v37 = vpop.f32.mrf.mxu2  ;;  %v11891_v8 = vpop.f32.mrf.mxu3 }
 0x951   :  { %v11893_v60 = vpop.f32.mrf.mxu0  ;;  %v11895_v11 = vpop.f32.mrf.mxu1 }
 0x956   :  { %v11897_v40 = vpop.f32.mrf.mxu2  ;;  %v11899_v42 = vpop.f32.mrf.mxu3 }
 0x959   :  { %v5414_v29 = vpop.f32.mrf.mxu0  ;;  %v5479_v7 = vpop.f32.mrf.mxu1 }
 0x95a   :  { %v11901_v53 = vadd.f32 %v5479_v7, %v5414_v29 }
 0x95e   :  { %v5264_v58 = vpop.f32.mrf.mxu2  ;;  %v5329_v46 = vpop.f32.mrf.mxu3 }
 0x961   :  { %v5417_v24 = vpop.f32.mrf.mxu0  ;;  %v5482_v62 = vpop.f32.mrf.mxu1 }
 0x966   :  { %v5267_v32 = vpop.f32.mrf.mxu2  ;;  %v5332_v51 = vpop.f32.mrf.mxu3 }
 0x969   :  { %v5420_v2 = vpop.f32.mrf.mxu0  ;;  %v5485_v30 = vpop.f32.mrf.mxu1 }
 0x96e   :  { %v5270_v35 = vpop.f32.mrf.mxu2  ;;  %v5335_v47 = vpop.f32.mrf.mxu3 }
 0x96f   :  { %v5336_v22 = vadd.f32 %v5335_v47, %v5270_v35 }
 0x971   :  { %v5423_v17 = vpop.f32.mrf.mxu0  ;;  %v5488_v21 = vpop.f32.mrf.mxu1 }
 0x972   :  { %v5489_v34 = vadd.f32 %v5488_v21, %v5423_v17  ;;  %v5519_v17 = vld [vmem:[#allocation4] sm:$0xff]  ;;  %v5572_v21 = vld [vmem:[#allocation6] sm:$0xff] }
 0x976   :  { %v5273_v63 = vpop.f32.mrf.mxu2  ;;  %v5338_v41 = vpop.f32.mrf.mxu3 }
 0x977   :  { %v5339_v3 = vadd.f32 %v5338_v41, %v5273_v63  ;;  %v5520_v63 = vld [vmem:[#allocation4 + $0x8] sm:$0xff]  ;;  %v5573_v41 = vld [vmem:[#allocation6 + $0x8] sm:$0xff] }
 0x979   :  { %v5426_v5 = vpop.f32.mrf.mxu0  ;;  %v5491_v31 = vpop.f32.mrf.mxu1 }
 0x97a   :  { %v5492_v57 = vadd.f32 %v5491_v31, %v5426_v5  ;;  %v5521_v5 = vld [vmem:[#allocation4 + $0x10] sm:$0xff]  ;;  %v5574_v31 = vld [vmem:[#allocation6 + $0x10] sm:$0xff] }
 0x97e   :  { %v5276_v36 = vpop.f32.mrf.mxu2  ;;  %v5341_v16 = vpop.f32.mrf.mxu3 }
 0x97f   :  { %v5342_v59 = vadd.f32 %v5341_v16, %v5276_v36  ;;  %v5522_v36 = vld [vmem:[#allocation4 + $0x18] sm:$0xff]  ;;  %v5575_v16 = vld [vmem:[#allocation6 + $0x18] sm:$0xff] }
 0x981   :  { %v5429_v23 = vpop.f32.mrf.mxu0  ;;  %v5494_v45 = vpop.f32.mrf.mxu1  ;;  %v5515_v48 = vmax.f32 %v5342_v59, %v5492_v57  ;;  %v5324_v59 = vadd.f32 %v11891_v8, %v11889_v37  ;;  %v5477_v57 = vadd.f32 %v11895_v11, %v11893_v60  ;;  %v5315_v37 = vadd.f32 %v11867_v43, %v11865_v25  ;;  %v12801_v60 = vld [vmem:[#allocation126_spill] sm:$0xff]  ;;  %v12806_v25 = vld [vmem:[#allocation63_spill] sm:$0xff] }
 0x982   :  { %v5495_v1 = vadd.f32 %v5494_v45, %v5429_v23  ;;  %v5523_v23 = vld [vmem:[#allocation4 + $0x20] sm:$0xff]  ;;  %v5576_v45 = vld [vmem:[#allocation6 + $0x20] sm:$0xff] }
 0x986   :  { %v5279_v9 = vpop.f32.mrf.mxu2  ;;  %v5344_v26 = vpop.f32.mrf.mxu3 }
 0x987   :  { %v5345_v6 = vadd.f32 %v5344_v26, %v5279_v9  ;;  %v5514_v9 = vmax.f32 %v5339_v3, %v5489_v34  ;;  %v5318_v34 = vadd.f32 %v11875_v54, %v11873_v38  ;;  %v12802_v38 = vld [vmem:[#allocation60_spill] sm:$0xff]  ;;  %v7049_v26 = vld [vmem:[%s12212_s13 + $0x98] sm:$0xff] }
 0x988   :  { %v5465_v54 = vadd.f32 %v12802_v38, %v12801_v60  ;;  %5726 = vmatpush.msra.mxu0 %v7049_v26  ;;  %v7071_v60 = vld [vmem:[%s12212_s13 + $0xc8] sm:$0xff]  ;;  %v7089_v38 = vld [vmem:[%s12212_s13 + $0x118] sm:$0xff] }
 0x989   :  { %v5432_v56 = vpop.f32.mrf.mxu0  ;;  %v5497_v55 = vpop.f32.mrf.mxu1  ;;  %v5516_v33 = vmax.f32 %v5345_v6, %v5495_v1  ;;  %v5474_v1 = vadd.f32 %v11887_v13, %v11885_v0  ;;  %v12799_v0 = vld [vmem:[#allocation143_spill] sm:$0xff]  ;;  %v12800_v13 = vld [vmem:[#allocation70_spill] sm:$0xff] }
 0x98a   :  { %v5498_v39 = vadd.f32 %v5497_v55, %v5432_v56  ;;  %v5312_v8 = vadd.f32 %v12800_v13, %v12799_v0  ;;  %v5524_v56 = vld [vmem:[#allocation4 + $0x28] sm:$0xff]  ;;  %v5577_v55 = vld [vmem:[#allocation6 + $0x28] sm:$0xff]  ;;  %v7090_v13 = vld [vmem:[%s12212_s13 + $0x120] sm:$0xff] }
 0x98b   :  { %v7072_v0 = vld [vmem:[%s12212_s13 + $0xd0] sm:$0xff] }
 0x98e   :  { %v5282_v4 = vpop.f32.mrf.mxu2  ;;  %v5347_v18 = vpop.f32.mrf.mxu3 }
 0x98f   :  { %v5348_v7 = vadd.f32 %v5347_v18, %v5282_v4  ;;  %v5333_v4 = vadd.f32 %v5332_v51, %v5267_v32  ;;  %v5486_v18 = vadd.f32 %v5485_v30, %v5420_v2  ;;  %v12811_v51 = vld [vmem:[#allocation13_spill] sm:$0xff] }
 0x990   :  { %v12812_v2 = vld [vmem:[#allocation61_spill] sm:$0xff] }
 0x991   :  { %v5435_v49 = vpop.f32.mrf.mxu0  ;;  %v5500_v12 = vpop.f32.mrf.mxu1  ;;  %v5517_v44 = vmax.f32 %v5348_v7, %v5498_v39  ;;  %v5513_v39 = vmax.f32 %v5336_v22, %v5486_v18  ;;  %v5471_v22 = vadd.f32 %v11879_v61, %v11877_v50  ;;  %v12803_v50 = vld [vmem:[#allocation123_spill] sm:$0xff]  ;;  %v12804_v61 = vld [vmem:[#allocation142_spill] sm:$0xff]  ;;  %v5456_v30 = vadd.f32 %v12812_v2, %v12811_v51  ;;  %v5665_v18 = vld [vmem:[%s12212_s13 + $0x48] sm:$0xff] }
 0x992   :  { %v5501_v10 = vadd.f32 %v5500_v12, %v5435_v49  ;;  %v5525_v49 = vld [vmem:[#allocation4 + $0x30] sm:$0xff]  ;;  %v5578_v12 = vld [vmem:[#allocation6 + $0x30] sm:$0xff]  ;;  %v5527_v7 = vld [vmem:[#allocation4 + $0x40] sm:$0xff]  ;;  %5783 = vmatpush.msrb.mxu1 %v5665_v18 }
 0x996   :  { %v5285_v28 = vpop.f32.mrf.mxu2  ;;  %v5350_v29 = vpop.f32.mrf.mxu3 }
 0x997   :  { %v5351_v19 = vadd.f32 %v5350_v29, %v5285_v28  ;;  %v5526_v28 = vld [vmem:[#allocation4 + $0x38] sm:$0xff]  ;;  %v5579_v29 = vld [vmem:[#allocation6 + $0x38] sm:$0xff] }
 0x999   :  { %v5518_v27 = vmax.f32 %v5351_v19, %v5501_v10  ;;  %v5330_v19 = vadd.f32 %v5329_v46, %v5264_v58  ;;  %v5483_v10 = vadd.f32 %v5482_v62, %v5417_v24  ;;  %v12809_v46 = vld [vmem:[#allocation122_spill] sm:$0xff] }
 0x99a   :  { %v12810_v24 = vld [vmem:[#allocation58_spill] sm:$0xff] }
 0x99b   :  { %5528 = vmatpush.msrb.mxu2 %v5518_v27  ;;  %5581 = vmatpush.msra.mxu3 %v5518_v27  ;;  %v5327_v27 = vadd.f32 %v11899_v42, %v11897_v40  ;;  %v5512_v6 = vmax.f32 %v5333_v4, %v5483_v10  ;;  %v5511_v3 = vmax.f32 %v5330_v19, %v11901_v53  ;;  %v12805_v42 = vld [vmem:[#allocation14_spill] sm:$0xff]  ;;  %v5580_v4 = vld [vmem:[#allocation6 + $0x40] sm:$0xff]  ;;  %v5662_v10 = vld [vmem:[%s12212_s13 + $0x30] sm:$0xff] }
 0x99c   :  { %v5309_v40 = vadd.f32 %v12804_v61, %v12803_v50  ;;  %v5462_v43 = vadd.f32 %v12806_v25, %v12805_v42  ;;  %v5506_v53 = vmax.f32 %v5315_v37, %v5465_v54  ;;  %v5459_v62 = vadd.f32 %v12810_v24, %v12809_v46  ;;  %v5663_v19 = vld [vmem:[%s12212_s13 + $0x38] sm:$0xff]  ;;  %v5657_v37 = vld [vmem:[%s12212_s13 + $0x8] sm:$0xff]  ;;  %v7044_v54 = vld [vmem:[%s12212_s13 + $0x70] sm:$0xff] }
 0x99d   :  { %5529 = vmatpush.msrb.mxu2 %v5517_v44  ;;  %5582 = vmatpush.msra.mxu3 %v5517_v44  ;;  %v5321_v44 = vadd.f32 %v11883_v20, %v11881_v52  ;;  %v5468_v52 = vadd.f32 %v11871_v14, %v11869_v15  ;;  %v12807_v15 = vld [vmem:[#allocation140_spill] sm:$0xff]  ;;  %v12808_v14 = vld [vmem:[#allocation69_spill] sm:$0xff]  ;;  %v7042_v25 = vld [vmem:[%s12212_s13 + $0x60] sm:$0xff] }
 0x99e   :  { %v5306_v58 = vadd.f32 %v12808_v14, %v12807_v15  ;;  %v5505_v32 = vmax.f32 %v5312_v8, %v5462_v43  ;;  %v5504_v35 = vmax.f32 %v5309_v40, %v5459_v62  ;;  %v5656_v8 = vld [vmem:[%s12212_s13] sm:$0xff]  ;;  %v7088_v50 = vld [vmem:[%s12212_s13 + $0x110] sm:$0xff]  ;;  %v7043_v61 = vld [vmem:[%s12212_s13 + $0x68] sm:$0xff] }
 0x99f   :  { %5530 = vmatpush.msrb.mxu2 %v5516_v33  ;;  %5583 = vmatpush.msra.mxu3 %v5516_v33  ;;  %v5509_v33 = vmax.f32 %v5324_v59, %v5474_v1  ;;  %v5508_v20 = vmax.f32 %v5321_v44, %v5471_v22  ;;  %v5507_v11 = vmax.f32 %v5318_v34, %v5468_v52  ;;  %v7093_v59 = vld [vmem:[%s12212_s13 + $0x138] sm:$0xff]  ;;  %v7074_v44 = vld [vmem:[%s12212_s13 + $0xe0] sm:$0xff]  ;;  %v7092_v1 = vld [vmem:[%s12212_s13 + $0x130] sm:$0xff] }
 0x9a0   :  { %v5503_v47 = vmax.f32 %v5306_v58, %v5456_v30  ;;  %v7047_v34 = vld [vmem:[%s12212_s13 + $0x88] sm:$0xff]  ;;  %v7073_v22 = vld [vmem:[%s12212_s13 + $0xd8] sm:$0xff]  ;;  %v7046_v52 = vld [vmem:[%s12212_s13 + $0x80] sm:$0xff] }
 0x9a1   :  { %5531 = vmatpush.msrb.mxu2 %v5515_v48  ;;  %5584 = vmatpush.msra.mxu3 %v5515_v48  ;;  %v5510_v48 = vmax.f32 %v5327_v27, %v5477_v57  ;;  %v5660_v27 = vld [vmem:[%s12212_s13 + $0x20] sm:$0xff]  ;;  %v5659_v57 = vld [vmem:[%s12212_s13 + $0x18] sm:$0xff]  ;;  %v7087_v42 = vld [vmem:[%s12212_s13 + $0x108] sm:$0xff] }
 0x9a2   :  { %v7069_v40 = vld [vmem:[%s12212_s13 + $0xb8] sm:$0xff]  ;;  %v7086_v15 = vld [vmem:[%s12212_s13 + $0x100] sm:$0xff]  ;;  %v7067_v14 = vld [vmem:[%s12212_s13 + $0xa8] sm:$0xff] }
 0x9a3   :  { %5532 = vmatpush.msrb.mxu2 %v5514_v9  ;;  %5585 = vmatpush.msra.mxu3 %v5514_v9  ;;  %v5664_v9 = vld [vmem:[%s12212_s13 + $0x40] sm:$0xff]  ;;  %v7041_v43 = vld [vmem:[%s12212_s13 + $0x58] sm:$0xff]  ;;  %v7040_v46 = vld [vmem:[%s12212_s13 + $0x50] sm:$0xff] }
 0x9a4   :  { %5784 = vmatpush.msrb.mxu1 %v5664_v9  ;;  %v7085_v58 = vld [vmem:[%s12212_s13 + $0xf8] sm:$0xff]  ;;  %v7066_v24 = vld [vmem:[%s12212_s13 + $0xa0] sm:$0xff]  ;;  %v7084_v62 = vld [vmem:[%s12212_s13 + $0xf0] sm:$0xff] }
 0x9a5   :  { %5533 = vmatpush.msrb.mxu2 %v5513_v39  ;;  %5586 = vmatpush.msra.mxu3 %v5513_v39  ;;  %v5661_v39 = vld [vmem:[%s12212_s13 + $0x28] sm:$0xff] }
 0x9a6   :  { %5785 = vmatpush.msrb.mxu1 %v5663_v19 }
 0x9a7   :  { %5534 = vmatpush.msrb.mxu2 %v5512_v6  ;;  %5587 = vmatpush.msra.mxu3 %v5512_v6  ;;  %v7075_v6 = vld [vmem:[%s12212_s13 + $0xe8] sm:$0xff] }
 0x9a8   :  { %5786 = vmatpush.msrb.mxu1 %v5662_v10 }
 0x9a9   :  { %5535 = vmatpush.msrb.mxu2 %v5511_v3  ;;  %5588 = vmatpush.msra.mxu3 %v5511_v3  ;;  %v7048_v3 = vld [vmem:[%s12212_s13 + $0x90] sm:$0xff] }
 0x9aa   :  { %5787 = vmatpush.msrb.mxu1 %v5661_v39  ;;  %5727 = vmatpush.msra.mxu0 %v7048_v3 }
 0x9ab   :  { %5536 = vmatpush.msrb.mxu2 %v5510_v48  ;;  %5589 = vmatpush.msra.mxu3 %v5510_v48  ;;  %v5658_v48 = vld [vmem:[%s12212_s13 + $0x10] sm:$0xff] }
 0x9ac   :  { %5788 = vmatpush.msrb.mxu1 %v5660_v27  ;;  %5728 = vmatpush.msra.mxu0 %v7047_v34 }
 0x9ad   :  { %5537 = vmatpush.msrb.mxu2 %v5509_v33  ;;  %5590 = vmatpush.msra.mxu3 %v5509_v33  ;;  %v7091_v33 = vld [vmem:[%s12212_s13 + $0x128] sm:$0xff] }
 0x9ae   :  { %5789 = vmatpush.msrb.mxu1 %v5659_v57  ;;  %5729 = vmatpush.msra.mxu0 %v7046_v52 }
 0x9af   :  { %5538 = vmatpush.msrb.mxu2 %v5508_v20  ;;  %5591 = vmatpush.msra.mxu3 %v5508_v20  ;;  %v7045_v20 = vld [vmem:[%s12212_s13 + $0x78] sm:$0xff] }
 0x9b0   :  { %5790 = vmatpush.msrb.mxu1 %v5658_v48  ;;  %5730 = vmatpush.msra.mxu0 %v7045_v20 }
 0x9b1   :  { %5539 = vmatpush.msrb.mxu2 %v5507_v11  ;;  %5592 = vmatpush.msra.mxu3 %v5507_v11  ;;  %v7070_v11 = vld [vmem:[%s12212_s13 + $0xc0] sm:$0xff] }
 0x9b2   :  { %5791 = vmatpush.msrb.mxu1 %v5657_v37  ;;  %5731 = vmatpush.msra.mxu0 %v7044_v54  ;;  %v7111_v37 = vld [vmem:[%s12212_s13 + $0x188] sm:$0xff] }
 0x9b3   :  { %5540 = vmatpush.msrb.mxu2 %v5506_v53  ;;  %5593 = vmatpush.msra.mxu3 %v5506_v53  ;;  %v7068_v53 = vld [vmem:[%s12212_s13 + $0xb0] sm:$0xff] }
 0x9b4   :  { %5792 = vmatpush.msrb.mxu1 %v5656_v8  ;;  %5732 = vmatpush.msra.mxu0 %v7043_v61 }
 0x9b5   :  { %5541 = vmatpush.msrb.mxu2 %v5505_v32  ;;  %5594 = vmatpush.msra.mxu3 %v5505_v32  ;;  %v12059_v32 = vld [vmem:[%s12211_s12] ss:$0 sm:$0xff] }
 0x9b6   :  { %5733 = vmatpush.msra.mxu0 %v7042_v25  ;;  %v7109_v25 = vld [vmem:[%s12212_s13 + $0x178] sm:$0xff] }
 0x9b7   :  { %5542 = vmatpush.msrb.mxu2 %v5504_v35  ;;  %5595 = vmatpush.msra.mxu3 %v5504_v35 }
 0x9b8   :  { %5734 = vmatpush.msra.mxu0 %v7041_v43 }
 0x9b9   :  { %5543 = vmatpush.msrb.mxu2 %v5503_v47  ;;  %5596 = vmatpush.msra.mxu3 %v5503_v47 }
 0x9ba   :  { %5544 = vmatmul.f32.vlgmr.msrb.gmra.mxu2 %v5519_v17  ;;  %5597 = vmatmul.f32.vlgmr.msra.gmra.mxu3 %v5572_v21 }
 0x9bb   :  { %5868 = vmatpush.msra.mxu2 %v7075_v6  ;;  %5961 = vmatpush.msrb.mxu3 %v7093_v59 }
 0x9bc   :  { %5735 = vmatpush.msra.mxu0 %v7040_v46 }
 0x9bd   :  { %5869 = vmatpush.msra.mxu2 %v7074_v44  ;;  %5962 = vmatpush.msrb.mxu3 %v7092_v1 }
 0x9be   :  { %6054 = vmatpush.msrb.mxu0 %v7111_v37 }
 0x9bf   :  { %5870 = vmatpush.msra.mxu2 %v7073_v22  ;;  %5963 = vmatpush.msrb.mxu3 %v7091_v33 }
 0x9c1   :  { %5871 = vmatpush.msra.mxu2 %v7072_v0  ;;  %5964 = vmatpush.msrb.mxu3 %v7090_v13 }
 0x9c2   :  { %5547 = vmatmul.f32.gmra.mxu2 %v5520_v63  ;;  %5600 = vmatmul.f32.gmra.mxu3 %v5573_v41 }
 0x9c3   :  { %5872 = vmatpush.msra.mxu2 %v7071_v60  ;;  %5965 = vmatpush.msrb.mxu3 %v7089_v38 }
 0x9c5   :  { %5873 = vmatpush.msra.mxu2 %v7070_v11  ;;  %5966 = vmatpush.msrb.mxu3 %v7088_v50  ;;  %v7110_v11 = vld [vmem:[%s12212_s13 + $0x180] sm:$0xff] }
 0x9c6   :  { %6055 = vmatpush.msrb.mxu0 %v7110_v11 }
 0x9c7   :  { %5874 = vmatpush.msra.mxu2 %v7069_v40  ;;  %5967 = vmatpush.msrb.mxu3 %v7087_v42 }
 0x9c8   :  { %6056 = vmatpush.msrb.mxu0 %v7109_v25 }
 0x9c9   :  { %5875 = vmatpush.msra.mxu2 %v7068_v53  ;;  %5968 = vmatpush.msrb.mxu3 %v7086_v15  ;;  %v7108_v53 = vld [vmem:[%s12212_s13 + $0x170] sm:$0xff]  ;;  %v7107_v15 = vld [vmem:[%s12212_s13 + $0x168] sm:$0xff] }
 0x9ca   :  { %5550 = vmatmul.f32.gmra.mxu2 %v5521_v5  ;;  %5603 = vmatmul.f32.gmra.mxu3 %v5574_v31 }
 0x9cb   :  { %5876 = vmatpush.msra.mxu2 %v7067_v14  ;;  %5969 = vmatpush.msrb.mxu3 %v7085_v58 }
 0x9cc   :  { %6057 = vmatpush.msrb.mxu0 %v7108_v53 }
 0x9cd   :  { %5877 = vmatpush.msra.mxu2 %v7066_v24  ;;  %5970 = vmatpush.msrb.mxu3 %v7084_v62 }
 0x9ce   :  { %6058 = vmatpush.msrb.mxu0 %v7107_v15 }
 0x9d2   :  { %5553 = vmatmul.f32.gmra.mxu2 %v5522_v36  ;;  %5606 = vmatmul.f32.gmra.mxu3 %v5575_v16 }
 0x9da   :  { %5556 = vmatmul.f32.gmra.mxu2 %v5523_v23  ;;  %5609 = vmatmul.f32.gmra.mxu3 %v5576_v45 }
 0x9e2   :  { %5559 = vmatmul.f32.gmra.mxu2 %v5524_v56  ;;  %5612 = vmatmul.f32.gmra.mxu3 %v5577_v55 }
 0x9ea   :  { %5562 = vmatmul.f32.gmra.mxu2 %v5525_v49  ;;  %5615 = vmatmul.f32.gmra.mxu3 %v5578_v12 }
 0x9f2   :  { %5565 = vmatmul.f32.gmra.mxu2 %v5526_v28  ;;  %5618 = vmatmul.f32.gmra.mxu3 %v5579_v29 }
 0x9fa   :  { %5568 = vmatmul.f32.gmra.mxu2 %v5527_v7  ;;  %5621 = vmatmul.f32.gmra.mxu3 %v5580_v4 }
 0xa3d   :  { %v5545_v51 = vpop.f32.mrf.mxu2  ;;  %v5598_v2 = vpop.f32.mrf.mxu3 }
 0xa3e   :  { %v5625_v30 = vmax.f32 %v5545_v51, %v5598_v2  ;;  %v7106_v2 = vld [vmem:[%s12212_s13 + $0x160] sm:$0xff] }
 0xa3f   :  { %6059 = vmatpush.msrb.mxu0 %v7106_v2 }
 0xa40   :  { %v5638_v35 = vadd.f32 %v12059_v32, %v5625_v30 }
 0xa42   :  { %v5647_v47 = vmax.f32 %v5638_v35, 0.0 }
 0xa44   :  { %7058 = vmatmul.msk.f32.vlgmr.msrb.gmra.mxu1 %vm5703_vm8, %v5647_v47  ;;  %v5686_v31 = vrot.slane %v5647_v47, 1  ;;  %v5829_v36 = vrot.slane %v5647_v47, 2  ;;  %v5922_v16 = vrot.slane %v5647_v47, 3  ;;  %v6015_v12 = vrot.slane %v5647_v47, 4 }
 0xa45   :  { %v5548_v17 = vpop.f32.mrf.mxu2  ;;  %v5601_v21 = vpop.f32.mrf.mxu3 }
 0xa46   :  { %v5626_v63 = vmax.f32 %v5548_v17, %v5601_v21  ;;  %v7105_v21 = vld [vmem:[%s12212_s13 + $0x158] sm:$0xff] }
 0xa47   :  { %6060 = vmatpush.msrb.mxu0 %v7105_v21 }
 0xa48   :  { %v5639_v41 = vadd.f32 %v12059_v32, %v5626_v63 }
 0xa4a   :  { %v5648_v5 = vmax.f32 %v5639_v41, 0.0 }
 0xa4c   :  { %v5687_v23 = vrot.slane %v5648_v5, 1  ;;  %v5830_v45 = vrot.slane %v5648_v5, 2  ;;  %v5923_v26 = vrot.slane %v5648_v5, 3  ;;  %v6016_v56 = vrot.slane %v5648_v5, 4  ;;  %7059 = vmatmul.msk.f32.gmra.mxu1 %vm5703_vm8, %v5648_v5  ;;  %v7104_v5 = vld [vmem:[%s12212_s13 + $0x150] sm:$0xff] }
 0xa4d   :  { %v5551_v55 = vpop.f32.mrf.mxu2  ;;  %v5604_v49 = vpop.f32.mrf.mxu3  ;;  %6061 = vmatpush.msrb.mxu0 %v7104_v5 }
 0xa4e   :  { %v5627_v28 = vmax.f32 %v5551_v55, %v5604_v49  ;;  %v5688_v29 = vsel %vm240_vm0, %v5686_v31, %v5687_v23  ;;  %v5831_v7 = vsel %vm1022_vm2, %v5829_v36, %v5830_v45  ;;  %v5924_v4 = vsel %vm1535_vm3, %v5922_v16, %v5923_v26  ;;  %v7103_v36 = vld [vmem:[%s12212_s13 + $0x148] sm:$0xff]  ;;  %v7102_v49 = vld [vmem:[%s12212_s13 + $0x140] sm:$0xff] }
 0xa4f   :  { %7050 = vmatmul.msk.f32.vlgmr.msra.gmra.mxu0 %vm5703_vm8, %v5688_v29  ;;  %7076 = vmatmul.msk.f32.vlgmr.msra.gmra.mxu2 %vm5703_vm8, %v5831_v7  ;;  %v12071_v18 = vsel %vm2048_vm4, %v6015_v12, %v6016_v56 }
 0xa50   :  { %v5640_v9 = vadd.f32 %v12059_v32, %v5627_v28  ;;  %7094 = vmatmul.msk.f32.vlgmr.msrb.gmra.mxu3 %vm5703_vm8, %v5924_v4  ;;  %6062 = vmatpush.msrb.mxu0 %v7103_v36 }
 0xa52   :  { %v5649_v19 = vmax.f32 %v5640_v9, 0.0  ;;  %6063 = vmatpush.msrb.mxu0 %v7102_v49 }
 0xa54   :  { %v5689_v10 = vrot.slane %v5649_v19, 1  ;;  %v5832_v39 = vrot.slane %v5649_v19, 2  ;;  %v5925_v27 = vrot.slane %v5649_v19, 3  ;;  %v6018_v6 = vrot.slane %v5649_v19, 4  ;;  %7060 = vmatmul.msk.f32.gmra.mxu1 %vm5703_vm8, %v5649_v19 }
 0xa55   :  { %v5554_v59 = vpop.f32.mrf.mxu2  ;;  %v5607_v57 = vpop.f32.mrf.mxu3 }
 0xa56   :  { %v5628_v3 = vmax.f32 %v5554_v59, %v5607_v57  ;;  %v5690_v44 = vsel %vm240_vm0, %v5687_v23, %v5689_v10  ;;  %v5833_v1 = vsel %vm1022_vm2, %v5830_v45, %v5832_v39  ;;  %v5926_v48 = vsel %vm1535_vm3, %v5923_v26, %v5925_v27 }
 0xa57   :  { %7051 = vmatmul.msk.f32.gmra.mxu0 %vm5703_vm8, %v5690_v44  ;;  %7077 = vmatmul.msk.f32.gmra.mxu2 %vm5703_vm8, %v5833_v1  ;;  %v12082_v34 = vsel %vm2048_vm4, %v6016_v56, %v6018_v6 }
 0xa58   :  { %v5641_v22 = vadd.f32 %v12059_v32, %v5628_v3  ;;  %7095 = vmatmul.msk.f32.gmra.mxu3 %vm5703_vm8, %v5926_v48 }
 0xa5a   :  { %v5650_v33 = vmax.f32 %v5641_v22, 0.0 }
 0xa5c   :  { %v5691_v52 = vrot.slane %v5650_v33, 1  ;;  %v5834_v20 = vrot.slane %v5650_v33, 2  ;;  %v5927_v0 = vrot.slane %v5650_v33, 3  ;;  %v6020_v13 = vrot.slane %v5650_v33, 4  ;;  %7061 = vmatmul.msk.f32.gmra.mxu1 %vm5703_vm8, %v5650_v33 }
 0xa5d   :  { %v5557_v8 = vpop.f32.mrf.mxu2  ;;  %v5610_v60 = vpop.f32.mrf.mxu3 }
 0xa5e   :  { %v5629_v38 = vmax.f32 %v5557_v8, %v5610_v60  ;;  %v5692_v54 = vsel %vm240_vm0, %v5689_v10, %v5691_v52  ;;  %v5835_v50 = vsel %vm1022_vm2, %v5832_v39, %v5834_v20  ;;  %v5928_v61 = vsel %vm1535_vm3, %v5925_v27, %v5927_v0 }
 0xa5f   :  { %7052 = vmatmul.msk.f32.gmra.mxu0 %vm5703_vm8, %v5692_v54  ;;  %7078 = vmatmul.msk.f32.gmra.mxu2 %vm5703_vm8, %v5835_v50  ;;  %v12099_v40 = vsel %vm2048_vm4, %v6018_v6, %v6020_v13 }
 0xa60   :  { %v5642_v42 = vadd.f32 %v12059_v32, %v5629_v38  ;;  %7096 = vmatmul.msk.f32.gmra.mxu3 %vm5703_vm8, %v5928_v61 }
 0xa62   :  { %v5651_v43 = vmax.f32 %v5642_v42, 0.0 }
 0xa64   :  { %v5693_v14 = vrot.slane %v5651_v43, 1  ;;  %v5836_v58 = vrot.slane %v5651_v43, 2  ;;  %v5929_v46 = vrot.slane %v5651_v43, 3  ;;  %v6022_v24 = vrot.slane %v5651_v43, 4  ;;  %7062 = vmatmul.msk.f32.gmra.mxu1 %vm5703_vm8, %v5651_v43 }
 0xa65   :  { %v5560_v62 = vpop.f32.mrf.mxu2  ;;  %v5613_v51 = vpop.f32.mrf.mxu3 }
 0xa66   :  { %v5630_v30 = vmax.f32 %v5560_v62, %v5613_v51  ;;  %v5694_v35 = vsel %vm240_vm0, %v5691_v52, %v5693_v14  ;;  %v5837_v47 = vsel %vm1022_vm2, %v5834_v20, %v5836_v58  ;;  %v5930_v17 = vsel %vm1535_vm3, %v5927_v0, %v5929_v46 }
 0xa67   :  { %7053 = vmatmul.msk.f32.gmra.mxu0 %vm5703_vm8, %v5694_v35  ;;  %7079 = vmatmul.msk.f32.gmra.mxu2 %vm5703_vm8, %v5837_v47  ;;  %v12125_v63 = vsel %vm2048_vm4, %v6020_v13, %v6022_v24 }
 0xa68   :  { %v5643_v41 = vadd.f32 %v12059_v32, %v5630_v30  ;;  %7097 = vmatmul.msk.f32.gmra.mxu3 %vm5703_vm8, %v5930_v17 }
 0xa6a   :  { %v5652_v31 = vmax.f32 %v5643_v41, 0.0 }
 0xa6c   :  { %v5695_v16 = vrot.slane %v5652_v31, 1  ;;  %v5838_v23 = vrot.slane %v5652_v31, 2  ;;  %v5931_v45 = vrot.slane %v5652_v31, 3  ;;  %v6024_v26 = vrot.slane %v5652_v31, 4  ;;  %7063 = vmatmul.msk.f32.gmra.mxu1 %vm5703_vm8, %v5652_v31 }
 0xa6d   :  { %v5563_v56 = vpop.f32.mrf.mxu2  ;;  %v5616_v55 = vpop.f32.mrf.mxu3 }
 0xa6e   :  { %v5631_v12 = vmax.f32 %v5563_v56, %v5616_v55  ;;  %v5696_v28 = vsel %vm240_vm0, %v5693_v14, %v5695_v16  ;;  %v5839_v29 = vsel %vm1022_vm2, %v5836_v58, %v5838_v23  ;;  %v5932_v7 = vsel %vm1535_vm3, %v5929_v46, %v5931_v45 }
 0xa6f   :  { %7054 = vmatmul.msk.f32.gmra.mxu0 %vm5703_vm8, %v5696_v28  ;;  %7080 = vmatmul.msk.f32.gmra.mxu2 %vm5703_vm8, %v5839_v29  ;;  %v6025_v4 = vsel %vm2048_vm4, %v6022_v24, %v6024_v26 }
 0xa70   :  { %v5644_v9 = vadd.f32 %v12059_v32, %v5631_v12  ;;  %7098 = vmatmul.msk.f32.gmra.mxu3 %vm5703_vm8, %v5932_v7 }
 0xa72   :  { %v5653_v19 = vmax.f32 %v5644_v9, 0.0 }
 0xa74   :  { %v5697_v10 = vrot.slane %v5653_v19, 1  ;;  %v5840_v39 = vrot.slane %v5653_v19, 2  ;;  %v5933_v27 = vrot.slane %v5653_v19, 3  ;;  %v6026_v6 = vrot.slane %v5653_v19, 4  ;;  %7064 = vmatmul.msk.f32.gmra.mxu1 %vm5703_vm8, %v5653_v19 }
 0xa75   :  { %v5566_v59 = vpop.f32.mrf.mxu2  ;;  %v5619_v57 = vpop.f32.mrf.mxu3 }
 0xa76   :  { %v5632_v3 = vmax.f32 %v5566_v59, %v5619_v57  ;;  %v5698_v44 = vsel %vm240_vm0, %v5695_v16, %v5697_v10  ;;  %v5841_v1 = vsel %vm1022_vm2, %v5838_v23, %v5840_v39  ;;  %v5934_v48 = vsel %vm1535_vm3, %v5931_v45, %v5933_v27 }
 0xa77   :  { %7055 = vmatmul.msk.f32.gmra.mxu0 %vm5703_vm8, %v5698_v44  ;;  %7081 = vmatmul.msk.f32.gmra.mxu2 %vm5703_vm8, %v5841_v1  ;;  %v6027_v22 = vsel %vm2048_vm4, %v6024_v26, %v6026_v6 }
 0xa78   :  { %v5645_v33 = vadd.f32 %v12059_v32, %v5632_v3  ;;  %7099 = vmatmul.msk.f32.gmra.mxu3 %vm5703_vm8, %v5934_v48 }
 0xa7a   :  { %v5654_v37 = vmax.f32 %v5645_v33, 0.0 }
 0xa7c   :  { %v5699_v52 = vrot.slane %v5654_v37, 1  ;;  %v5842_v20 = vrot.slane %v5654_v37, 2  ;;  %v5935_v0 = vrot.slane %v5654_v37, 3  ;;  %v6028_v13 = vrot.slane %v5654_v37, 4  ;;  %7065 = vmatmul.msk.f32.gmra.mxu1 %vm5703_vm8, %v5654_v37 }
 0xa7d   :  { %v5569_v8 = vpop.f32.mrf.mxu2  ;;  %v5622_v60 = vpop.f32.mrf.mxu3 }
 0xa7e   :  { %v5633_v38 = vmax.f32 %v5569_v8, %v5622_v60  ;;  %v5700_v54 = vsel %vm240_vm0, %v5697_v10, %v5699_v52  ;;  %v5843_v11 = vsel %vm1022_vm2, %v5840_v39, %v5842_v20  ;;  %v5936_v50 = vsel %vm1535_vm3, %v5933_v27, %v5935_v0 }
 0xa7f   :  { %7056 = vmatmul.msk.f32.gmra.mxu0 %vm5703_vm8, %v5700_v54  ;;  %7082 = vmatmul.msk.f32.gmra.mxu2 %vm5703_vm8, %v5843_v11  ;;  %v6029_v61 = vsel %vm2048_vm4, %v6026_v6, %v6028_v13 }
 0xa80   :  { %v5646_v42 = vadd.f32 %v12059_v32, %v5633_v38  ;;  %7100 = vmatmul.msk.f32.gmra.mxu3 %vm5703_vm8, %v5936_v50 }
 0xa82   :  { %v5655_v25 = vmax.f32 %v5646_v42, 0.0 }
 0xa84   :  { %v5701_v43 = vrot.slane %v5655_v25, 1  ;;  %v5844_v53 = vrot.slane %v5655_v25, 2  ;;  %v5937_v15 = vrot.slane %v5655_v25, 3  ;;  %v6030_v14 = vrot.slane %v5655_v25, 4 }
 0xa86   :  { %v5702_v58 = vsel %vm240_vm0, %v5699_v52, %v5701_v43  ;;  %v5845_v46 = vsel %vm1022_vm2, %v5842_v20, %v5844_v53  ;;  %v5938_v24 = vsel %vm1535_vm3, %v5935_v0, %v5937_v15  ;;  %v6031_v62 = vsel %vm2048_vm4, %v6028_v13, %v6030_v14 }
 0xa87   :  { %7057 = vmatmul.msk.f32.gmra.mxu0 %vm5703_vm8, %v5702_v58  ;;  %7083 = vmatmul.msk.f32.gmra.mxu2 %vm5703_vm8, %v5845_v46 }
 0xa88   :  { %7101 = vmatmul.msk.f32.gmra.mxu3 %vm5703_vm8, %v5938_v24 }
 0xa8f   :  { %7112 = vmatmul.msk.f32.vlgmr.msrb.gmra.mxu0 %vm5703_vm8, %v12071_v18 }
 0xa97   :  { %7113 = vmatmul.msk.f32.gmra.mxu0 %vm5703_vm8, %v12082_v34 }
 0xa9f   :  { %7114 = vmatmul.msk.f32.gmra.mxu0 %vm5703_vm8, %v12099_v40 }
 0xaa7   :  { %7115 = vmatmul.msk.f32.gmra.mxu0 %vm5703_vm8, %v12125_v63 }
 0xaaf   :  { %7116 = vmatmul.msk.f32.gmra.mxu0 %vm5703_vm8, %v6025_v4 }
 0xab7   :  { %7117 = vmatmul.msk.f32.gmra.mxu0 %vm5703_vm8, %v6027_v22 }
 0xabf   :  { %7118 = vmatmul.msk.f32.gmra.mxu0 %vm5703_vm8, %v6029_v61 }
 0xac1   :  { %v5794_v51 = vpop.f32.mrf.mxu1 }
 0xac7   :  { %7119 = vmatmul.msk.f32.gmra.mxu0 %vm5703_vm8, %v6031_v62 }
 0xac9   :  { %v5797_v5 = vpop.f32.mrf.mxu1 }
 0xacc   :  { %v5737_v32 = vpop.f32.mrf.mxu0 }
 0xacd   :  { %v5795_v18 = vadd.f32 %v5794_v51, %v5737_v32 }
 0xad1   :  { %v5800_v23 = vpop.f32.mrf.mxu1 }
 0xad2   :  { %v5879_v2 = vpop.f32.mrf.mxu2 }
 0xad3   :  { %v5903_v30 = vadd.f32 %v5879_v2, %v5795_v18  ;;  %v5972_v35 = vpop.f32.mrf.mxu3 }
 0xad4   :  { %v5740_v34 = vpop.f32.mrf.mxu0 }
 0xad5   :  { %v5996_v47 = vadd.f32 %v5972_v35, %v5903_v30  ;;  %v5798_v58 = vadd.f32 %v5797_v5, %v5740_v34  ;;  %v6097_v34 = vld [vmem:[%s12213_s14] sm:$0xff]  ;;  %v6138_v5 = vld [vmem:[#allocation7 + $0x58] sm:$0xff] }
 0xad9   :  { %v5803_v49 = vpop.f32.mrf.mxu1 }
 0xada   :  { %v5882_v31 = vpop.f32.mrf.mxu2 }
 0xadb   :  { %v5975_v16 = vpop.f32.mrf.mxu3  ;;  %v5904_v32 = vadd.f32 %v5882_v31, %v5798_v58  ;;  %v6137_v31 = vld [vmem:[#allocation7 + $0x50] sm:$0xff] }
 0xadc   :  { %v5743_v40 = vpop.f32.mrf.mxu0 }
 0xadd   :  { %v5801_v43 = vadd.f32 %v5800_v23, %v5743_v40  ;;  %v5997_v35 = vadd.f32 %v5975_v16, %v5904_v32  ;;  %v6135_v16 = vld [vmem:[#allocation7 + $0x40] sm:$0xff]  ;;  %v6134_v23 = vld [vmem:[#allocation7 + $0x38] sm:$0xff] }
 0xae1   :  { %v5806_v4 = vpop.f32.mrf.mxu1 }
 0xae2   :  { %v5885_v45 = vpop.f32.mrf.mxu2 }
 0xae3   :  { %v5978_v55 = vpop.f32.mrf.mxu3  ;;  %v5905_v46 = vadd.f32 %v5885_v45, %v5801_v43  ;;  %v6133_v45 = vld [vmem:[#allocation7 + $0x30] sm:$0xff] }
 0xae4   :  { %v5746_v17 = vpop.f32.mrf.mxu0 }
 0xae5   :  { %v5804_v50 = vadd.f32 %v5803_v49, %v5746_v17  ;;  %v5998_v2 = vadd.f32 %v5978_v55, %v5905_v46  ;;  %v6142_v17 = vld [vmem:[#allocation7 + $0x78] sm:$0xff]  ;;  %v6129_v49 = vld [vmem:[#allocation7 + $0x10] sm:$0xff] }
 0xae6   :  { %v6130_v55 = vld [vmem:[#allocation7 + $0x18] sm:$0xff] }
 0xae9   :  { %v5809_v39 = vpop.f32.mrf.mxu1 }
 0xaea   :  { %v5888_v28 = vpop.f32.mrf.mxu2 }
 0xaeb   :  { %v5981_v29 = vpop.f32.mrf.mxu3  ;;  %v5906_v53 = vadd.f32 %v5888_v28, %v5804_v50  ;;  %v6127_v28 = vld [vmem:[#allocation7] sm:$0xff] }
 0xaec   :  { %v5749_v21 = vpop.f32.mrf.mxu0 }
 0xaed   :  { %v5807_v60 = vadd.f32 %v5806_v4, %v5749_v21  ;;  %v5999_v51 = vadd.f32 %v5981_v29, %v5906_v53  ;;  %v6141_v21 = vld [vmem:[#allocation7 + $0x70] sm:$0xff]  ;;  %v6183_v29 = vld [vmem:[#allocation9 + $0x78] sm:$0xff]  ;;  %v6181_v4 = vld [vmem:[#allocation9 + $0x68] sm:$0xff] }
 0xaee   :  { %6188 = vmatpush.msrb.mxu2 %v6183_v29 }
 0xaf1   :  { %v5812_v57 = vpop.f32.mrf.mxu1 }
 0xaf2   :  { %v5891_v9 = vpop.f32.mrf.mxu2 }
 0xaf3   :  { %v5984_v10 = vpop.f32.mrf.mxu3  ;;  %v5907_v61 = vadd.f32 %v5891_v9, %v5807_v60  ;;  %v6180_v9 = vld [vmem:[#allocation9 + $0x60] sm:$0xff] }
 0xaf4   :  { %v5752_v63 = vpop.f32.mrf.mxu0 }
 0xaf5   :  { %v5810_v0 = vadd.f32 %v5809_v39, %v5752_v63  ;;  %v6000_v24 = vadd.f32 %v5984_v10, %v5907_v61  ;;  %v6140_v63 = vld [vmem:[#allocation7 + $0x68] sm:$0xff]  ;;  %v6178_v10 = vld [vmem:[#allocation9 + $0x50] sm:$0xff] }
 0xaf6   :  { %v6177_v39 = vld [vmem:[#allocation9 + $0x48] sm:$0xff] }
 0xaf9   :  { %v5815_v48 = vpop.f32.mrf.mxu1 }
 0xafa   :  { %v5894_v27 = vpop.f32.mrf.mxu2 }
 0xafb   :  { %v5987_v59 = vpop.f32.mrf.mxu3  ;;  %v5908_v38 = vadd.f32 %v5894_v27, %v5810_v0  ;;  %v6176_v27 = vld [vmem:[#allocation9 + $0x40] sm:$0xff]  ;;  %v7139_v0 = vld [vmem:[%s12216_s17] ss:$0 sm:$0xff] }
 0xafc   :  { %v5755_v41 = vpop.f32.mrf.mxu0 }
 0xafd   :  { %v5813_v52 = vadd.f32 %v5812_v57, %v5755_v41  ;;  %v6001_v15 = vadd.f32 %v5987_v59, %v5908_v38  ;;  %v6139_v41 = vld [vmem:[#allocation7 + $0x60] sm:$0xff]  ;;  %v6174_v59 = vld [vmem:[#allocation9 + $0x30] sm:$0xff]  ;;  %v6173_v57 = vld [vmem:[#allocation9 + $0x28] sm:$0xff] }
 0xafe   :  { %v7140_v38 = vld [vmem:[%s12218_s19] ss:$0 sm:$0xff] }
 0xb02   :  { %v5897_v3 = vpop.f32.mrf.mxu2 }
 0xb03   :  { %v5990_v1 = vpop.f32.mrf.mxu3  ;;  %v5909_v13 = vadd.f32 %v5897_v3, %v5813_v52  ;;  %v6172_v3 = vld [vmem:[#allocation9 + $0x20] sm:$0xff] }
 0xb04   :  { %v5758_v36 = vpop.f32.mrf.mxu0 }
 0xb05   :  { %v5816_v37 = vadd.f32 %v5815_v48, %v5758_v36  ;;  %v6002_v42 = vadd.f32 %v5990_v1, %v5909_v13  ;;  %v6136_v36 = vld [vmem:[#allocation7 + $0x48] sm:$0xff]  ;;  %v7138_v1 = vld [vmem:[%s12214_s15] ss:$0 sm:$0xff] }
 0xb06   :  { %v6170_v48 = vld [vmem:[#allocation9 + $0x10] sm:$0xff] }
 0xb0a   :  { %v5900_v33 = vpop.f32.mrf.mxu2 }
 0xb0b   :  { %v5910_v20 = vadd.f32 %v5900_v33, %v5816_v37  ;;  %v5993_v8 = vpop.f32.mrf.mxu3 }
 0xb0c   :  { %v6065_v26 = vpop.f32.mrf.mxu0 }
 0xb0d   :  { %v6089_v56 = vadd.f32 %v6065_v26, %v5996_v47  ;;  %v6003_v54 = vadd.f32 %v5993_v8, %v5910_v20  ;;  %v6132_v26 = vld [vmem:[#allocation7 + $0x28] sm:$0xff]  ;;  %v6168_v20 = vld [vmem:[#allocation9] sm:$0xff] }
 0xb14   :  { %v6068_v12 = vpop.f32.mrf.mxu0 }
 0xb15   :  { %v6090_v40 = vadd.f32 %v6068_v12, %v5997_v35  ;;  %v6128_v12 = vld [vmem:[#allocation7 + $0x8] sm:$0xff] }
 0xb1c   :  { %v6071_v7 = vpop.f32.mrf.mxu0 }
 0xb1d   :  { %v6091_v47 = vadd.f32 %v6071_v7, %v5998_v2  ;;  %v6182_v7 = vld [vmem:[#allocation9 + $0x70] sm:$0xff] }
 0xb1e   :  { %6189 = vmatpush.msrb.mxu2 %v6182_v7 }
 0xb20   :  { %6190 = vmatpush.msrb.mxu2 %v6181_v4 }
 0xb22   :  { %6191 = vmatpush.msrb.mxu2 %v6180_v9 }
 0xb24   :  { %v6074_v19 = vpop.f32.mrf.mxu0 }
 0xb25   :  { %v6092_v30 = vadd.f32 %v6074_v19, %v5999_v51  ;;  %v6179_v19 = vld [vmem:[#allocation9 + $0x58] sm:$0xff] }
 0xb26   :  { %6192 = vmatpush.msrb.mxu2 %v6179_v19 }
 0xb28   :  { %6193 = vmatpush.msrb.mxu2 %v6178_v10 }
 0xb2a   :  { %6194 = vmatpush.msrb.mxu2 %v6177_v39 }
 0xb2c   :  { %v6077_v6 = vpop.f32.mrf.mxu0  ;;  %6195 = vmatpush.msrb.mxu2 %v6176_v27 }
 0xb2d   :  { %v6093_v18 = vadd.f32 %v6077_v6, %v6000_v24  ;;  %v6175_v6 = vld [vmem:[#allocation9 + $0x38] sm:$0xff] }
 0xb2e   :  { %6196 = vmatpush.msrb.mxu2 %v6175_v6 }
 0xb30   :  { %6197 = vmatpush.msrb.mxu2 %v6174_v59 }
 0xb32   :  { %6198 = vmatpush.msrb.mxu2 %v6173_v57 }
 0xb34   :  { %v6080_v44 = vpop.f32.mrf.mxu0  ;;  %6199 = vmatpush.msrb.mxu2 %v6172_v3 }
 0xb35   :  { %v6094_v62 = vadd.f32 %v6080_v44, %v6001_v15  ;;  %v6171_v44 = vld [vmem:[#allocation9 + $0x18] sm:$0xff] }
 0xb36   :  { %6200 = vmatpush.msrb.mxu2 %v6171_v44 }
 0xb38   :  { %6201 = vmatpush.msrb.mxu2 %v6170_v48 }
 0xb3c   :  { %v6083_v22 = vpop.f32.mrf.mxu0 }
 0xb3d   :  { %v6095_v14 = vadd.f32 %v6083_v22, %v6002_v42  ;;  %v6169_v22 = vld [vmem:[#allocation9 + $0x8] sm:$0xff] }
 0xb3e   :  { %6202 = vmatpush.msrb.mxu2 %v6169_v22 }
 0xb40   :  { %6203 = vmatpush.msrb.mxu2 %v6168_v20 }
 0xb44   :  { %v6086_v11 = vpop.f32.mrf.mxu0 }
 0xb45   :  { %v6096_v25 = vadd.f32 %v6086_v11, %v6003_v54 }
 0xb47   :  { %6114 = vmatpush.msra.mxu1 %v6096_v25 }
 0xb49   :  { %6115 = vmatpush.msra.mxu1 %v6095_v14 }
 0xb4b   :  { %6116 = vmatpush.msra.mxu1 %v6094_v62 }
 0xb4d   :  { %6117 = vmatpush.msra.mxu1 %v6093_v18 }
 0xb4f   :  { %6118 = vmatpush.msra.mxu1 %v6092_v30 }
 0xb51   :  { %6119 = vmatpush.msra.mxu1 %v6091_v47 }
 0xb53   :  { %6120 = vmatpush.msra.mxu1 %v6090_v40 }
 0xb55   :  { %6121 = vmatpush.msra.mxu1 %v6089_v56  ;;  %v6131_v56 = vld [vmem:[#allocation7 + $0x20] sm:$0xff] }
 0xb56   :  { %7120 = vmatmul.msk.f32.vlgmr.msra.gmra.mxu1 %vm6102_vm9, %v6097_v34 }
 0xb57   :  { %6147 = vmatpush.msrb.mxu1 %v6142_v17 }
 0xb59   :  { %6148 = vmatpush.msrb.mxu1 %v6141_v21 }
 0xb5b   :  { %6149 = vmatpush.msrb.mxu1 %v6140_v63 }
 0xb5d   :  { %6150 = vmatpush.msrb.mxu1 %v6139_v41 }
 0xb5f   :  { %6151 = vmatpush.msrb.mxu1 %v6138_v5 }
 0xb61   :  { %6152 = vmatpush.msrb.mxu1 %v6137_v31 }
 0xb63   :  { %6153 = vmatpush.msrb.mxu1 %v6136_v36 }
 0xb65   :  { %6154 = vmatpush.msrb.mxu1 %v6135_v16 }
 0xb67   :  { %6155 = vmatpush.msrb.mxu1 %v6134_v23 }
 0xb69   :  { %6156 = vmatpush.msrb.mxu1 %v6133_v45 }
 0xb6b   :  { %6157 = vmatpush.msrb.mxu1 %v6132_v26 }
 0xb6d   :  { %6158 = vmatpush.msrb.mxu1 %v6131_v56 }
 0xb6f   :  { %6159 = vmatpush.msrb.mxu1 %v6130_v55 }
 0xb71   :  { %6160 = vmatpush.msrb.mxu1 %v6129_v49 }
 0xb73   :  { %6161 = vmatpush.msrb.mxu1 %v6128_v12 }
 0xb75   :  { %6162 = vmatpush.msrb.mxu1 %v6127_v28 }
 0xbd3   :  { %v6123_v33 = vpop.f32.mrf.mxu1 }
 0xbd4   :  { %v6124_v37 = vadd.f32 %v7138_v1, %v6123_v33 }
 0xbd6   :  { %v6126_v52 = vmax.f32 %v6124_v37, 0.0 }
 0xbd8   :  { %6163 = vmatmul.f32.vlgmr.msrb.gmra.mxu1 %v6126_v52 }
 0xc55   :  { %v6164_v13 = vpop.f32.mrf.mxu1 }
 0xc56   :  { %v6165_v8 = vadd.f32 %v7139_v0, %v6164_v13 }
 0xc58   :  { %v6167_v60 = vmax.f32 %v6165_v8, 0.0 }
 0xc5a   :  { %6204 = vmatmul.f32.vlgmr.msrb.gmra.mxu2 %v6167_v60 }
 0xcdd   :  { %v6205_v54 = vpop.f32.mrf.mxu2 }
 0xcde   :  { %v6206_v11 = vadd.f32 %v7140_v38, %v6205_v54 }
 0xce0   :  { %6208 = vst [vmem:[%s12219_s20] sm:$0xff] %v6206_v11 }
 0xce1   :  { %6213 = vsyncpa [#allocation3], 1 }
 0xce2   :  { %6214 = vsyncpa [#allocation5], 1 }
 0xce3   :  { %6215 = vsyncpa [#allocation8], 1 }

</bundles_post_ra>
